<compile_context>
chip_gen: v7x
topology: tpu7x:2x2x1
jax: 0.10.0
libtpu: 0.0.40
codegen_flags: <defaults>
</compile_context>

<pallas_src>
import functools
from math import sqrt

import jax
import jax.numpy as jnp
from jax.experimental import pallas as pl
from jax.experimental.pallas import tpu as pltpu

NEG_SLOPE = 0.2  # LeakyReLU negative slope (fixed by the module)


def _round_up(x, m):
    return (x + m - 1) // m * m


def _conv_block_kernel(x_ref, w1_ref, b1_ref, w2_ref, b2_ref, o_ref, *, H, W, Wp):
    """One batch element per grid step.

    x_ref  : (1, H+2, Wp, Cin)   bf16 zero-haloed NHWC canvas (Wp % 8 == 0)
    w1_ref : (9, Cin,  Cmid)     bf16 EqualLR-scaled conv1 weights, tap-major
    b1_ref : (1, Cmid)           f32
    w2_ref : (9, Cmid, Cout)     bf16 EqualLR-scaled conv2 weights, tap-major
    b2_ref : (1, Cout)           f32
    o_ref  : (1, H, W, Cout)
    """
    n = (H + 2) * Wp
    cin = x_ref.shape[-1]
    cmid = w1_ref.shape[-1]
    cout = w2_ref.shape[-1]

    def shifted(p, k):
        # Returns q with q[t] = p[(t + k) % n].
        # jnp/pltpu roll semantics: roll(p, s)[t] = p[(t - s) % n]  =>  s = -k.
        s = (-k) % n
        return p if s == 0 else pltpu.roll(p, s, axis=0)

    # ---------------- conv1 (canvas-origin accumulation) -------------------
    # Flattened slab: row index r*Wp + c over the zero-haloed canvas.
    x_slab = x_ref[0].reshape(n, cin)                      # contiguous, no copy
    acc = None
    for dy in range(3):
        for dx in range(3):
            p = jnp.dot(x_slab, w1_ref[3 * dy + dx],
                        preferred_element_type=jnp.float32)
            # mid[r*Wp + c] needs partial[(r-1+dy)*Wp + (c-1+dx)]
            p = shifted(p, (dy - 1) * Wp + (dx - 1))
            acc = p if acc is None else acc + p
    y1 = acc + b1_ref[...]                                 # f32 bias
    y1 = jnp.maximum(y1, NEG_SLOPE * y1)                   # LeakyReLU(0.2)

    # Zero everything outside the valid image (rows 1..H, cols 1..W) so conv2
    # sees an exact zero-padded halo; the rolled partials leave garbage there.
    rows = jax.lax.broadcasted_iota(jnp.int32, (H + 2, Wp, 1), 0)
    cols = jax.lax.broadcasted_iota(jnp.int32, (H + 2, Wp, 1), 1)
    valid = (rows >= 1) & (rows <= H) & (cols >= 1) & (cols <= W)
    mid = jnp.where(valid, y1.reshape(H + 2, Wp, cmid), 0.0)
    mid_slab = mid.reshape(n, cmid).astype(jnp.bfloat16)   # bf16 MXU operand

    # ---------------- conv2 (output-origin accumulation) -------------------
    acc = None
    for dy in range(3):
        for dx in range(3):
            p = jnp.dot(mid_slab, w2_ref[3 * dy + dx],
                        preferred_element_type=jnp.float32)
            # out[i*Wp + j] needs partial[(i+dy)*Wp + (j+dx)]
            p = shifted(p, dy * Wp + dx)
            acc = p if acc is None else acc + p
    y2 = acc + b2_ref[...]
    y2 = jnp.maximum(y2, NEG_SLOPE * y2)
    o_ref[0] = y2.reshape(H + 2, Wp, cout)[:H, :W, :].astype(o_ref.dtype)


@jax.jit
def conv_block_forward(x_nchw, w1, b1, w2, b2):
    """ConvBlock forward with PyTorch NCHW semantics.

    x_nchw : (N, Cin, H, W)
    w1     : (Cmid, Cin, 3, 3)   raw (unscaled) EqualConv2d weight
    b1     : (Cmid,)
    w2     : (Cout, Cmid, 3, 3)
    b2     : (Cout,)
    """
    N, cin, H, W = x_nchw.shape
    cmid = w1.shape[0]
    cout = w2.shape[0]
    Wp = _round_up(W + 2, 8)          # padded canvas width, sublane aligned

    # EqualLR: weight * sqrt(2 / fan_in), fan_in = Cin * kh * kw; folded into
    # the (tiny) weights once, then cast to bf16 for the native MXU path.
    s1 = sqrt(2.0 / (w1.shape[1] * w1.shape[2] * w1.shape[3]))
    s2 = sqrt(2.0 / (w2.shape[1] * w2.shape[2] * w2.shape[3]))

    def prep_w(w, s):
        # (Cout, Cin, 3, 3) -> (9, Cin, Cout), tap-major, scaled, bf16, no pad.
        t = jnp.transpose(w.astype(jnp.float32) * s, (2, 3, 1, 0))  # (3,3,Ci,Co)
        return t.reshape(9, w.shape[1], w.shape[0]).astype(jnp.bfloat16)

    w1_t = prep_w(w1, s1)
    w2_t = prep_w(w2, s2)
    b1_r = b1.astype(jnp.float32).reshape(1, cmid)
    b2_r = b2.astype(jnp.float32).reshape(1, cout)

    # NCHW -> NHWC canvas: 1-px zero halo + right pad so width is a multiple of
    # 8; channels are NOT lane-padded (DMA moves only real data); bf16 operand.
    # (Transpose+pad+cast fuse into a single XLA pass over this small tensor;
    #  a real model would keep activations NHWC between layers.)
    x = jnp.transpose(x_nchw, (0, 2, 3, 1))
    x = jnp.pad(x, ((0, 0), (1, 1), (1, Wp - (W + 1)), (0, 0)))
    x = x.astype(jnp.bfloat16)

    kernel = functools.partial(_conv_block_kernel, H=H, W=W, Wp=Wp)

    out = pl.pallas_call(
        kernel,
        out_shape=jax.ShapeDtypeStruct((N, H, W, cout), x_nchw.dtype),
        grid_spec=pltpu.PrefetchScalarGridSpec(
            num_scalar_prefetch=0,
            grid=(N,),
            in_specs=[
                pl.BlockSpec((1, H + 2, Wp, cin), lambda b: (b, 0, 0, 0)),
                # constant block index => weights/bias stay resident in VMEM
                pl.BlockSpec((9, cin, cmid), lambda b: (0, 0, 0)),
                pl.BlockSpec((1, cmid), lambda b: (0, 0)),
                pl.BlockSpec((9, cmid, cout), lambda b: (0, 0, 0)),
                pl.BlockSpec((1, cout), lambda b: (0, 0)),
            ],
            out_specs=pl.BlockSpec((1, H, W, cout), lambda b: (b, 0, 0, 0)),
        ),
        compiler_params=pltpu.CompilerParams(
            dimension_semantics=("parallel",),
            vmem_limit_bytes=32 * 1024 * 1024,
        ),
    )(x, w1_t, b1_r, w2_t, b2_r)

    # NHWC -> NCHW (no channel-padding slice needed any more).
    return jnp.transpose(out, (0, 3, 1, 2))


# ----------------------------- references ----------------------------------
def _leaky(y):
    return jnp.maximum(y, NEG_SLOPE * y)


def _conv(x, w, b):
    dn = ("NCHW", "OIHW", "NCHW")
    y = jax.lax.conv_general_dilated(
        x, w, (1, 1), ((1, 1), (1, 1)), dimension_numbers=dn,
        precision=jax.lax.Precision.HIGHEST)
    return y + b[None, :, None, None]


def _reference_f32(x, w1, b1, w2, b2):
    """Pure-f32 reference matching the PyTorch ConvBlock forward."""
    s1 = sqrt(2.0 / (w1.shape[1] * 9))
    s2 = sqrt(2.0 / (w2.shape[1] * 9))
    y = _leaky(_conv(x, w1 * s1, b1))
    return _leaky(_conv(y, w2 * s2, b2))


def _reference_bf16_operands(x, w1, b1, w2, b2):
    """Same math with the kernel's operand quantisation points: input, scaled
    weights and the conv1 activation rounded to bf16; accumulation, bias and
    LeakyReLU in f32.  The kernel should match this to ~accumulation-order."""
    s1 = sqrt(2.0 / (w1.shape[1] * 9))
    s2 = sqrt(2.0 / (w2.shape[1] * 9))
    q = lambda a: a.astype(jnp.bfloat16).astype(jnp.float32)
    y = _leaky(_conv(q(x), q(w1 * s1), b1))
    return _leaky(_conv(q(y), q(w2 * s2), b2))


if __name__ == "__main__":
    key = jax.random.PRNGKey(0)
    kx, k1, k2 = jax.random.split(key, 3)

    N, cin, H, W = 2, 4, 16, 16      # ConvBlock(in_plane=4, out_plane=8)
    cout = 8

    x = jax.random.normal(kx, (N, cin, H, W), jnp.float32)
    w1 = jax.random.normal(k1, (cout, cin, 3, 3), jnp.float32)   # .normal_()
    b1 = jnp.zeros((cout,), jnp.float32)                         # .zero_()
    w2 = jax.random.normal(k2, (cout, cout, 3, 3), jnp.float32)
    b2 = jnp.zeros((cout,), jnp.float32)

    out = jax.block_until_ready(conv_block_forward(x, w1, b1, w2, b2))

    # Tight check vs. a reference with the same bf16 operand rounding: this
    # validates the slab/roll indexing, halo masking and bias/LeakyReLU path.
    ref_q = _reference_bf16_operands(x, w1, b1, w2, b2)
    if not jnp.allclose(out, ref_q, rtol=2e-3, atol=2e-3):
        max_err = float(jnp.max(jnp.abs(out - ref_q)))
        raise AssertionError(
            f"Pallas ConvBlock mismatch vs bf16-operand ref: max abs err = {max_err}")

    # Loose check vs. the full-f32 module semantics (slack only accounts for
    # bf16 MXU operand rounding).
    ref = _reference_f32(x, w1, b1, w2, b2)
    if not jnp.allclose(out, ref, rtol=5e-2, atol=6e-2):
        max_err = float(jnp.max(jnp.abs(out - ref)))
        raise AssertionError(
            f"Pallas ConvBlock mismatch vs f32 ref: max abs err = {max_err}")

    print("KERNEL_OK")
</pallas_src>

<mosaic_0001>
module attributes {stable_mosaic.version = 11 : i64} {
  func.func @_conv_block_kernel(%arg0: i32, %arg1: memref<1x18x24x4xbf16, #tpu.memory_space<vmem>>, %arg2: memref<9x4x8xbf16, #tpu.memory_space<vmem>>, %arg3: memref<1x8xf32, #tpu.memory_space<vmem>>, %arg4: memref<9x8x8xbf16, #tpu.memory_space<vmem>>, %arg5: memref<1x8xf32, #tpu.memory_space<vmem>>, %arg6: memref<1x16x16x8xf32, #tpu.memory_space<vmem>>) attributes {dimension_semantics = [#tpu.dimension_semantics<parallel>], iteration_bounds = array<i64: 2>, scalar_prefetch = 0 : i64, scratch_operands = 0 : i64, tpu.core_type = #tpu.core_type<tc>, window_params = [{transform_indices = @transform_0, window_bounds = array<i64: 1, 18, 24, 4>}, {pipeline_mode = #tpu.pipeline_mode<synchronous>, transform_indices = @transform_1, window_bounds = array<i64: 9, 4, 8>}, {pipeline_mode = #tpu.pipeline_mode<synchronous>, transform_indices = @transform_2, window_bounds = array<i64: 1, 8>}, {pipeline_mode = #tpu.pipeline_mode<synchronous>, transform_indices = @transform_3, window_bounds = array<i64: 9, 8, 8>}, {pipeline_mode = #tpu.pipeline_mode<synchronous>, transform_indices = @transform_4, window_bounds = array<i64: 1, 8>}, {transform_indices = @transform_5, window_bounds = array<i64: 1, 16, 16, 8>}]} {
    %c0 = arith.constant 0 : index
    %c0_0 = arith.constant 0 : index
    %c0_1 = arith.constant 0 : index
    %c0_2 = arith.constant 0 : index
    %0 = vector.load %arg1[%c0, %c0_0, %c0_1, %c0_2] : memref<1x18x24x4xbf16, #tpu.memory_space<vmem>>, vector<1x18x24x4xbf16>
    %1 = vector.shape_cast %0 : vector<1x18x24x4xbf16> to vector<18x24x4xbf16>
    %2 = vector.shape_cast %1 : vector<18x24x4xbf16> to vector<432x4xbf16>
    %c0_3 = arith.constant 0 : index
    %c0_4 = arith.constant 0 : index
    %c0_5 = arith.constant 0 : index
    %3 = vector.load %arg2[%c0_3, %c0_4, %c0_5] : memref<9x4x8xbf16, #tpu.memory_space<vmem>>, vector<1x4x8xbf16>
    %4 = vector.shape_cast %3 : vector<1x4x8xbf16> to vector<4x8xbf16>
    %cst = arith.constant dense<0.000000e+00> : vector<432x8xf32>
    %5 = tpu.matmul %2, %4, %cst {dimension_numbers = #tpu.dot_dimension_numbers<[1], [0], [0], [1], [0, 0, 1, 1], [], []>} : vector<432x4xbf16>, vector<4x8xbf16>, vector<432x8xf32> -> vector<432x8xf32>
    %c25_i32 = arith.constant 25 : i32
    %6 = tpu.dynamic_rotate %5 by %c25_i32 dim 0 : vector<432x8xf32>, i32 -> vector<432x8xf32>
    %c1 = arith.constant 1 : index
    %c0_6 = arith.constant 0 : index
    %c0_7 = arith.constant 0 : index
    %7 = vector.load %arg2[%c1, %c0_6, %c0_7] : memref<9x4x8xbf16, #tpu.memory_space<vmem>>, vector<1x4x8xbf16>
    %8 = vector.shape_cast %7 : vector<1x4x8xbf16> to vector<4x8xbf16>
    %cst_8 = arith.constant dense<0.000000e+00> : vector<432x8xf32>
    %9 = tpu.matmul %2, %8, %cst_8 {dimension_numbers = #tpu.dot_dimension_numbers<[1], [0], [0], [1], [0, 0, 1, 1], [], []>} : vector<432x4xbf16>, vector<4x8xbf16>, vector<432x8xf32> -> vector<432x8xf32>
    %c24_i32 = arith.constant 24 : i32
    %10 = tpu.dynamic_rotate %9 by %c24_i32 dim 0 : vector<432x8xf32>, i32 -> vector<432x8xf32>
    %11 = arith.addf %6, %10 : vector<432x8xf32>
    %c2 = arith.constant 2 : index
    %c0_9 = arith.constant 0 : index
    %c0_10 = arith.constant 0 : index
    %12 = vector.load %arg2[%c2, %c0_9, %c0_10] : memref<9x4x8xbf16, #tpu.memory_space<vmem>>, vector<1x4x8xbf16>
    %13 = vector.shape_cast %12 : vector<1x4x8xbf16> to vector<4x8xbf16>
    %cst_11 = arith.constant dense<0.000000e+00> : vector<432x8xf32>
    %14 = tpu.matmul %2, %13, %cst_11 {dimension_numbers = #tpu.dot_dimension_numbers<[1], [0], [0], [1], [0, 0, 1, 1], [], []>} : vector<432x4xbf16>, vector<4x8xbf16>, vector<432x8xf32> -> vector<432x8xf32>
    %c23_i32 = arith.constant 23 : i32
    %15 = tpu.dynamic_rotate %14 by %c23_i32 dim 0 : vector<432x8xf32>, i32 -> vector<432x8xf32>
    %16 = arith.addf %11, %15 : vector<432x8xf32>
    %c3 = arith.constant 3 : index
    %c0_12 = arith.constant 0 : index
    %c0_13 = arith.constant 0 : index
    %17 = vector.load %arg2[%c3, %c0_12, %c0_13] : memref<9x4x8xbf16, #tpu.memory_space<vmem>>, vector<1x4x8xbf16>
    %18 = vector.shape_cast %17 : vector<1x4x8xbf16> to vector<4x8xbf16>
    %cst_14 = arith.constant dense<0.000000e+00> : vector<432x8xf32>
    %19 = tpu.matmul %2, %18, %cst_14 {dimension_numbers = #tpu.dot_dimension_numbers<[1], [0], [0], [1], [0, 0, 1, 1], [], []>} : vector<432x4xbf16>, vector<4x8xbf16>, vector<432x8xf32> -> vector<432x8xf32>
    %c1_i32 = arith.constant 1 : i32
    %20 = tpu.dynamic_rotate %19 by %c1_i32 dim 0 : vector<432x8xf32>, i32 -> vector<432x8xf32>
    %21 = arith.addf %16, %20 : vector<432x8xf32>
    %c4 = arith.constant 4 : index
    %c0_15 = arith.constant 0 : index
    %c0_16 = arith.constant 0 : index
    %22 = vector.load %arg2[%c4, %c0_15, %c0_16] : memref<9x4x8xbf16, #tpu.memory_space<vmem>>, vector<1x4x8xbf16>
    %23 = vector.shape_cast %22 : vector<1x4x8xbf16> to vector<4x8xbf16>
    %cst_17 = arith.constant dense<0.000000e+00> : vector<432x8xf32>
    %24 = tpu.matmul %2, %23, %cst_17 {dimension_numbers = #tpu.dot_dimension_numbers<[1], [0], [0], [1], [0, 0, 1, 1], [], []>} : vector<432x4xbf16>, vector<4x8xbf16>, vector<432x8xf32> -> vector<432x8xf32>
    %25 = arith.addf %21, %24 : vector<432x8xf32>
    %c5 = arith.constant 5 : index
    %c0_18 = arith.constant 0 : index
    %c0_19 = arith.constant 0 : index
    %26 = vector.load %arg2[%c5, %c0_18, %c0_19] : memref<9x4x8xbf16, #tpu.memory_space<vmem>>, vector<1x4x8xbf16>
    %27 = vector.shape_cast %26 : vector<1x4x8xbf16> to vector<4x8xbf16>
    %cst_20 = arith.constant dense<0.000000e+00> : vector<432x8xf32>
    %28 = tpu.matmul %2, %27, %cst_20 {dimension_numbers = #tpu.dot_dimension_numbers<[1], [0], [0], [1], [0, 0, 1, 1], [], []>} : vector<432x4xbf16>, vector<4x8xbf16>, vector<432x8xf32> -> vector<432x8xf32>
    %c431_i32 = arith.constant 431 : i32
    %29 = tpu.dynamic_rotate %28 by %c431_i32 dim 0 : vector<432x8xf32>, i32 -> vector<432x8xf32>
    %30 = arith.addf %25, %29 : vector<432x8xf32>
    %c6 = arith.constant 6 : index
    %c0_21 = arith.constant 0 : index
    %c0_22 = arith.constant 0 : index
    %31 = vector.load %arg2[%c6, %c0_21, %c0_22] : memref<9x4x8xbf16, #tpu.memory_space<vmem>>, vector<1x4x8xbf16>
    %32 = vector.shape_cast %31 : vector<1x4x8xbf16> to vector<4x8xbf16>
    %cst_23 = arith.constant dense<0.000000e+00> : vector<432x8xf32>
    %33 = tpu.matmul %2, %32, %cst_23 {dimension_numbers = #tpu.dot_dimension_numbers<[1], [0], [0], [1], [0, 0, 1, 1], [], []>} : vector<432x4xbf16>, vector<4x8xbf16>, vector<432x8xf32> -> vector<432x8xf32>
    %c409_i32 = arith.constant 409 : i32
    %34 = tpu.dynamic_rotate %33 by %c409_i32 dim 0 : vector<432x8xf32>, i32 -> vector<432x8xf32>
    %35 = arith.addf %30, %34 : vector<432x8xf32>
    %c7 = arith.constant 7 : index
    %c0_24 = arith.constant 0 : index
    %c0_25 = arith.constant 0 : index
    %36 = vector.load %arg2[%c7, %c0_24, %c0_25] : memref<9x4x8xbf16, #tpu.memory_space<vmem>>, vector<1x4x8xbf16>
    %37 = vector.shape_cast %36 : vector<1x4x8xbf16> to vector<4x8xbf16>
    %cst_26 = arith.constant dense<0.000000e+00> : vector<432x8xf32>
    %38 = tpu.matmul %2, %37, %cst_26 {dimension_numbers = #tpu.dot_dimension_numbers<[1], [0], [0], [1], [0, 0, 1, 1], [], []>} : vector<432x4xbf16>, vector<4x8xbf16>, vector<432x8xf32> -> vector<432x8xf32>
    %c408_i32 = arith.constant 408 : i32
    %39 = tpu.dynamic_rotate %38 by %c408_i32 dim 0 : vector<432x8xf32>, i32 -> vector<432x8xf32>
    %40 = arith.addf %35, %39 : vector<432x8xf32>
    %c8 = arith.constant 8 : index
    %c0_27 = arith.constant 0 : index
    %c0_28 = arith.constant 0 : index
    %41 = vector.load %arg2[%c8, %c0_27, %c0_28] : memref<9x4x8xbf16, #tpu.memory_space<vmem>>, vector<1x4x8xbf16>
    %42 = vector.shape_cast %41 : vector<1x4x8xbf16> to vector<4x8xbf16>
    %cst_29 = arith.constant dense<0.000000e+00> : vector<432x8xf32>
    %43 = tpu.matmul %2, %42, %cst_29 {dimension_numbers = #tpu.dot_dimension_numbers<[1], [0], [0], [1], [0, 0, 1, 1], [], []>} : vector<432x4xbf16>, vector<4x8xbf16>, vector<432x8xf32> -> vector<432x8xf32>
    %c407_i32 = arith.constant 407 : i32
    %44 = tpu.dynamic_rotate %43 by %c407_i32 dim 0 : vector<432x8xf32>, i32 -> vector<432x8xf32>
    %45 = arith.addf %40, %44 : vector<432x8xf32>
    %c0_30 = arith.constant 0 : index
    %c0_31 = arith.constant 0 : index
    %46 = vector.load %arg3[%c0_30, %c0_31] : memref<1x8xf32, #tpu.memory_space<vmem>>, vector<1x8xf32>
    %47 = vector.broadcast %46 : vector<1x8xf32> to vector<432x8xf32>
    %48 = arith.addf %45, %47 : vector<432x8xf32>
    %cst_32 = arith.constant 2.000000e-01 : f32
    %49 = vector.broadcast %cst_32 : f32 to vector<432x8xf32>
    %50 = arith.mulf %49, %48 : vector<432x8xf32>
    %51 = arith.maximumf %48, %50 : vector<432x8xf32>
    %52 = tpu.iota {dimensions = array<i32: 0>} : vector<18x24x1xi32>
    %53 = tpu.iota {dimensions = array<i32: 1>} : vector<18x24x1xi32>
    %c1_i32_33 = arith.constant 1 : i32
    %54 = vector.broadcast %c1_i32_33 : i32 to vector<18x24x1xi32>
    %55 = arith.cmpi sge, %52, %54 : vector<18x24x1xi32>
    %c16_i32 = arith.constant 16 : i32
    %56 = vector.broadcast %c16_i32 : i32 to vector<18x24x1xi32>
    %57 = arith.cmpi sle, %52, %56 : vector<18x24x1xi32>
    %58 = arith.andi %55, %57 : vector<18x24x1xi1>
    %c1_i32_34 = arith.constant 1 : i32
    %59 = vector.broadcast %c1_i32_34 : i32 to vector<18x24x1xi32>
    %60 = arith.cmpi sge, %53, %59 : vector<18x24x1xi32>
    %61 = arith.andi %58, %60 : vector<18x24x1xi1>
    %c16_i32_35 = arith.constant 16 : i32
    %62 = vector.broadcast %c16_i32_35 : i32 to vector<18x24x1xi32>
    %63 = arith.cmpi sle, %53, %62 : vector<18x24x1xi32>
    %64 = arith.andi %61, %63 : vector<18x24x1xi1>
    %65 = vector.shape_cast %51 : vector<432x8xf32> to vector<18x24x8xf32>
    %cst_36 = arith.constant 0.000000e+00 : f32
    %66 = vector.shape_cast %64 : vector<18x24x1xi1> to vector<18x24x1xi1>
    %67 = vector.broadcast %66 : vector<18x24x1xi1> to vector<18x24x8xi1>
    %68 = vector.broadcast %cst_36 : f32 to vector<18x24x8xf32>
    %69 = arith.select %67, %65, %68 : vector<18x24x8xi1>, vector<18x24x8xf32>
    %70 = vector.shape_cast %69 : vector<18x24x8xf32> to vector<432x8xf32>
    %71 = arith.truncf %70 : vector<432x8xf32> to vector<432x8xbf16>
    %c0_37 = arith.constant 0 : index
    %c0_38 = arith.constant 0 : index
    %c0_39 = arith.constant 0 : index
    %72 = vector.load %arg4[%c0_37, %c0_38, %c0_39] : memref<9x8x8xbf16, #tpu.memory_space<vmem>>, vector<1x8x8xbf16>
    %73 = vector.shape_cast %72 : vector<1x8x8xbf16> to vector<8x8xbf16>
    %cst_40 = arith.constant dense<0.000000e+00> : vector<432x8xf32>
    %74 = tpu.matmul %71, %73, %cst_40 {dimension_numbers = #tpu.dot_dimension_numbers<[1], [0], [0], [1], [0, 0, 1, 1], [], []>} : vector<432x8xbf16>, vector<8x8xbf16>, vector<432x8xf32> -> vector<432x8xf32>
    %c1_41 = arith.constant 1 : index
    %c0_42 = arith.constant 0 : index
    %c0_43 = arith.constant 0 : index
    %75 = vector.load %arg4[%c1_41, %c0_42, %c0_43] : memref<9x8x8xbf16, #tpu.memory_space<vmem>>, vector<1x8x8xbf16>
    %76 = vector.shape_cast %75 : vector<1x8x8xbf16> to vector<8x8xbf16>
    %cst_44 = arith.constant dense<0.000000e+00> : vector<432x8xf32>
    %77 = tpu.matmul %71, %76, %cst_44 {dimension_numbers = #tpu.dot_dimension_numbers<[1], [0], [0], [1], [0, 0, 1, 1], [], []>} : vector<432x8xbf16>, vector<8x8xbf16>, vector<432x8xf32> -> vector<432x8xf32>
    %c431_i32_45 = arith.constant 431 : i32
    %78 = tpu.dynamic_rotate %77 by %c431_i32_45 dim 0 : vector<432x8xf32>, i32 -> vector<432x8xf32>
    %79 = arith.addf %74, %78 : vector<432x8xf32>
    %c2_46 = arith.constant 2 : index
    %c0_47 = arith.constant 0 : index
    %c0_48 = arith.constant 0 : index
    %80 = vector.load %arg4[%c2_46, %c0_47, %c0_48] : memref<9x8x8xbf16, #tpu.memory_space<vmem>>, vector<1x8x8xbf16>
    %81 = vector.shape_cast %80 : vector<1x8x8xbf16> to vector<8x8xbf16>
    %cst_49 = arith.constant dense<0.000000e+00> : vector<432x8xf32>
    %82 = tpu.matmul %71, %81, %cst_49 {dimension_numbers = #tpu.dot_dimension_numbers<[1], [0], [0], [1], [0, 0, 1, 1], [], []>} : vector<432x8xbf16>, vector<8x8xbf16>, vector<432x8xf32> -> vector<432x8xf32>
    %c430_i32 = arith.constant 430 : i32
    %83 = tpu.dynamic_rotate %82 by %c430_i32 dim 0 : vector<432x8xf32>, i32 -> vector<432x8xf32>
    %84 = arith.addf %79, %83 : vector<432x8xf32>
    %c3_50 = arith.constant 3 : index
    %c0_51 = arith.constant 0 : index
    %c0_52 = arith.constant 0 : index
    %85 = vector.load %arg4[%c3_50, %c0_51, %c0_52] : memref<9x8x8xbf16, #tpu.memory_space<vmem>>, vector<1x8x8xbf16>
    %86 = vector.shape_cast %85 : vector<1x8x8xbf16> to vector<8x8xbf16>
    %cst_53 = arith.constant dense<0.000000e+00> : vector<432x8xf32>
    %87 = tpu.matmul %71, %86, %cst_53 {dimension_numbers = #tpu.dot_dimension_numbers<[1], [0], [0], [1], [0, 0, 1, 1], [], []>} : vector<432x8xbf16>, vector<8x8xbf16>, vector<432x8xf32> -> vector<432x8xf32>
    %c408_i32_54 = arith.constant 408 : i32
    %88 = tpu.dynamic_rotate %87 by %c408_i32_54 dim 0 : vector<432x8xf32>, i32 -> vector<432x8xf32>
    %89 = arith.addf %84, %88 : vector<432x8xf32>
    %c4_55 = arith.constant 4 : index
    %c0_56 = arith.constant 0 : index
    %c0_57 = arith.constant 0 : index
    %90 = vector.load %arg4[%c4_55, %c0_56, %c0_57] : memref<9x8x8xbf16, #tpu.memory_space<vmem>>, vector<1x8x8xbf16>
    %91 = vector.shape_cast %90 : vector<1x8x8xbf16> to vector<8x8xbf16>
    %cst_58 = arith.constant dense<0.000000e+00> : vector<432x8xf32>
    %92 = tpu.matmul %71, %91, %cst_58 {dimension_numbers = #tpu.dot_dimension_numbers<[1], [0], [0], [1], [0, 0, 1, 1], [], []>} : vector<432x8xbf16>, vector<8x8xbf16>, vector<432x8xf32> -> vector<432x8xf32>
    %c407_i32_59 = arith.constant 407 : i32
    %93 = tpu.dynamic_rotate %92 by %c407_i32_59 dim 0 : vector<432x8xf32>, i32 -> vector<432x8xf32>
    %94 = arith.addf %89, %93 : vector<432x8xf32>
    %c5_60 = arith.constant 5 : index
    %c0_61 = arith.constant 0 : index
    %c0_62 = arith.constant 0 : index
    %95 = vector.load %arg4[%c5_60, %c0_61, %c0_62] : memref<9x8x8xbf16, #tpu.memory_space<vmem>>, vector<1x8x8xbf16>
    %96 = vector.shape_cast %95 : vector<1x8x8xbf16> to vector<8x8xbf16>
    %cst_63 = arith.constant dense<0.000000e+00> : vector<432x8xf32>
    %97 = tpu.matmul %71, %96, %cst_63 {dimension_numbers = #tpu.dot_dimension_numbers<[1], [0], [0], [1], [0, 0, 1, 1], [], []>} : vector<432x8xbf16>, vector<8x8xbf16>, vector<432x8xf32> -> vector<432x8xf32>
    %c406_i32 = arith.constant 406 : i32
    %98 = tpu.dynamic_rotate %97 by %c406_i32 dim 0 : vector<432x8xf32>, i32 -> vector<432x8xf32>
    %99 = arith.addf %94, %98 : vector<432x8xf32>
    %c6_64 = arith.constant 6 : index
    %c0_65 = arith.constant 0 : index
    %c0_66 = arith.constant 0 : index
    %100 = vector.load %arg4[%c6_64, %c0_65, %c0_66] : memref<9x8x8xbf16, #tpu.memory_space<vmem>>, vector<1x8x8xbf16>
    %101 = vector.shape_cast %100 : vector<1x8x8xbf16> to vector<8x8xbf16>
    %cst_67 = arith.constant dense<0.000000e+00> : vector<432x8xf32>
    %102 = tpu.matmul %71, %101, %cst_67 {dimension_numbers = #tpu.dot_dimension_numbers<[1], [0], [0], [1], [0, 0, 1, 1], [], []>} : vector<432x8xbf16>, vector<8x8xbf16>, vector<432x8xf32> -> vector<432x8xf32>
    %c384_i32 = arith.constant 384 : i32
    %103 = tpu.dynamic_rotate %102 by %c384_i32 dim 0 : vector<432x8xf32>, i32 -> vector<432x8xf32>
    %104 = arith.addf %99, %103 : vector<432x8xf32>
    %c7_68 = arith.constant 7 : index
    %c0_69 = arith.constant 0 : index
    %c0_70 = arith.constant 0 : index
    %105 = vector.load %arg4[%c7_68, %c0_69, %c0_70] : memref<9x8x8xbf16, #tpu.memory_space<vmem>>, vector<1x8x8xbf16>
    %106 = vector.shape_cast %105 : vector<1x8x8xbf16> to vector<8x8xbf16>
    %cst_71 = arith.constant dense<0.000000e+00> : vector<432x8xf32>
    %107 = tpu.matmul %71, %106, %cst_71 {dimension_numbers = #tpu.dot_dimension_numbers<[1], [0], [0], [1], [0, 0, 1, 1], [], []>} : vector<432x8xbf16>, vector<8x8xbf16>, vector<432x8xf32> -> vector<432x8xf32>
    %c383_i32 = arith.constant 383 : i32
    %108 = tpu.dynamic_rotate %107 by %c383_i32 dim 0 : vector<432x8xf32>, i32 -> vector<432x8xf32>
    %109 = arith.addf %104, %108 : vector<432x8xf32>
    %c8_72 = arith.constant 8 : index
    %c0_73 = arith.constant 0 : index
    %c0_74 = arith.constant 0 : index
    %110 = vector.load %arg4[%c8_72, %c0_73, %c0_74] : memref<9x8x8xbf16, #tpu.memory_space<vmem>>, vector<1x8x8xbf16>
    %111 = vector.shape_cast %110 : vector<1x8x8xbf16> to vector<8x8xbf16>
    %cst_75 = arith.constant dense<0.000000e+00> : vector<432x8xf32>
    %112 = tpu.matmul %71, %111, %cst_75 {dimension_numbers = #tpu.dot_dimension_numbers<[1], [0], [0], [1], [0, 0, 1, 1], [], []>} : vector<432x8xbf16>, vector<8x8xbf16>, vector<432x8xf32> -> vector<432x8xf32>
    %c382_i32 = arith.constant 382 : i32
    %113 = tpu.dynamic_rotate %112 by %c382_i32 dim 0 : vector<432x8xf32>, i32 -> vector<432x8xf32>
    %114 = arith.addf %109, %113 : vector<432x8xf32>
    %c0_76 = arith.constant 0 : index
    %c0_77 = arith.constant 0 : index
    %115 = vector.load %arg5[%c0_76, %c0_77] : memref<1x8xf32, #tpu.memory_space<vmem>>, vector<1x8xf32>
    %116 = vector.broadcast %115 : vector<1x8xf32> to vector<432x8xf32>
    %117 = arith.addf %114, %116 : vector<432x8xf32>
    %cst_78 = arith.constant 2.000000e-01 : f32
    %118 = vector.broadcast %cst_78 : f32 to vector<432x8xf32>
    %119 = arith.mulf %118, %117 : vector<432x8xf32>
    %120 = arith.maximumf %117, %119 : vector<432x8xf32>
    %121 = vector.shape_cast %120 : vector<432x8xf32> to vector<18x24x8xf32>
    %122 = vector.extract_strided_slice %121 {offsets = [0, 0, 0], sizes = [16, 16, 8], strides = [1, 1, 1]} : vector<18x24x8xf32> to vector<16x16x8xf32>
    %c0_79 = arith.constant 0 : index
    %c0_80 = arith.constant 0 : index
    %c0_81 = arith.constant 0 : index
    %c0_82 = arith.constant 0 : index
    %123 = vector.load %arg6[%c0_79, %c0_80, %c0_81, %c0_82] : memref<1x16x16x8xf32, #tpu.memory_space<vmem>>, vector<1x16x16x8xf32>
    %124 = vector.shape_cast %123 : vector<1x16x16x8xf32> to vector<16x16x8xf32>
    %125 = vector.shape_cast %122 : vector<16x16x8xf32> to vector<1x16x16x8xf32>
    tpu.vector_store %arg6[%c0_79, %c0_80, %c0_81, %c0_82], %125 {strides = array<i32>} : memref<1x16x16x8xf32, #tpu.memory_space<vmem>>, vector<1x16x16x8xf32>,
    return
  }
  func.func @transform_0(%arg0: i32) -> (i32, i32, i32, i32) {
    %c0_i32 = arith.constant 0 : i32
    %c0_i32_0 = arith.constant 0 : i32
    %c0_i32_1 = arith.constant 0 : i32
    %c0_i32_2 = arith.constant 0 : i32
    return %arg0, %c0_i32, %c0_i32_0, %c0_i32_1 : i32, i32, i32, i32
  }
  func.func @transform_1(%arg0: i32) -> (i32, i32, i32) {
    %c0_i32 = arith.constant 0 : i32
    %c0_i32_0 = arith.constant 0 : i32
    %c0_i32_1 = arith.constant 0 : i32
    %c0_i32_2 = arith.constant 0 : i32
    return %c0_i32, %c0_i32_0, %c0_i32_1 : i32, i32, i32
  }
  func.func @transform_2(%arg0: i32) -> (i32, i32) {
    %c0_i32 = arith.constant 0 : i32
    %c0_i32_0 = arith.constant 0 : i32
    %c0_i32_1 = arith.constant 0 : i32
    return %c0_i32, %c0_i32_0 : i32, i32
  }
  func.func @transform_3(%arg0: i32) -> (i32, i32, i32) {
    %c0_i32 = arith.constant 0 : i32
    %c0_i32_0 = arith.constant 0 : i32
    %c0_i32_1 = arith.constant 0 : i32
    %c0_i32_2 = arith.constant 0 : i32
    return %c0_i32, %c0_i32_0, %c0_i32_1 : i32, i32, i32
  }
  func.func @transform_4(%arg0: i32) -> (i32, i32) {
    %c0_i32 = arith.constant 0 : i32
    %c0_i32_0 = arith.constant 0 : i32
    %c0_i32_1 = arith.constant 0 : i32
    return %c0_i32, %c0_i32_0 : i32, i32
  }
  func.func @transform_5(%arg0: i32) -> (i32, i32, i32, i32) {
    %c0_i32 = arith.constant 0 : i32
    %c0_i32_0 = arith.constant 0 : i32
    %c0_i32_1 = arith.constant 0 : i32
    %c0_i32_2 = arith.constant 0 : i32
    return %arg0, %c0_i32, %c0_i32_0, %c0_i32_1 : i32, i32, i32, i32
  }
}

</mosaic_0001>

<bundles_post_ra>
// kernel: conv_block_forward.1
= control target key start
LH: loop header
LB: loop body
LE: loop exit
PB: predicated region body
PF: predicated region fallthrough
CT: control target
= control target key end

     0   :  { %s10455_s18 = smov 0   ;;  %s14843_s0 = inlined_call_operand.vmem [shape: bf16[2,18,24,4], index: 0, kind: input, shape index: {}]   ;;  %s14844_s1 = inlined_call_operand.vmem [shape: bf16[9,4,8], index: 1, kind: input, shape index: {}]   ;;  %s14845_s2 = inlined_call_operand.vmem [shape: f32[1,8], index: 2, kind: input, shape index: {}]   ;;  %s14846_s3 = inlined_call_operand.vmem [shape: bf16[9,8,8], index: 3, kind: input, shape index: {}]   ;;  %s14847_s4 = inlined_call_operand.vmem [shape: f32[1,8], index: 4, kind: input, shape index: {}]   ;;  %s14848_s5 = inlined_call_operand.vmem [shape: f32[2,16,16,8], index: 5, kind: output, shape index: {}]  }
   0x1 LB: > { %s7310_s19 = sadd.s32 4294967295, %s10420_s18   ;;  %p7314_p0 = scmp.ge.s32.totalorder %s10420_s18, 1  ;;  %s10420_s18 = sphi %s10455_s18, %s15_s18  }
   0x2   : > { %p187_p1 = scmp.lt.s32.totalorder %s10420_s18, 3 }
   0x4   : > { %p188_p2 = pnand %p7314_p0, %p187_p1 }
   0x6   : > { %191 = sbr.rel (%p188_p2) target bundleno = 2427 (0x97b), region = 40 }
   0xd   : > { %v280_v0 = vld [vmem:[%s14844_s1] sm:$0x3]  ;;  %vm498_vm0 = vcmask 1041408   ;;  %v7372_v1 = vld [vmem:[%s14844_s1 + $0x2] sm:$0x3]  ;;  %v14850_v2 = vmov 0.0   ;;  %v805_v36 = vlaneseq }
   0xe   : > { %8338 = vmatprep.subr.bf16.mxu0 %v14850_v2  ;;  %v500_v3 = vsel %vm498_vm0, %v280_v0, 0  ;;  %8448 = vmatprep.subr.bf16.mxu1 %v14850_v2  ;;  %v865_v4 = vsel %vm498_vm0, %v7372_v1, 0  ;;  %p215_p3 = scmp.lt.s32.totalorder %s7310_s19, 1  ;;  %vm10423_vm1 = vmmov 0   ;;  %v7400_v5 = vld [vmem:[%s14844_s1 + $0x4] sm:$0x3] }
   0xf   : > { %8339 = vmatpush3.bf16.msra.mxu0 %v500_v3  ;;  %8449 = vmatpush3.bf16.msra.mxu1 %v865_v4  ;;  %vm416_vm2 = vcmask 31744   ;;  %v1173_v7 = vsel %vm498_vm0, %v7400_v5, 0  ;;  %v7428_v18 = vld [vmem:[%s14844_s1 + $0x6] sm:$0x3]  ;;  %v10794_v37 = vshrl.u32 %v805_v36, 7  ;;  %vm4234_vm5 = vcmask 1043456  }
  0x10   : > { %8340 = vmatprep.mubr.msk.bf16.mxu0 %vm10423_vm1, %v14850_v2  ;;  %8450 = vmatprep.mubr.msk.bf16.mxu1 %vm10423_vm1, %v14850_v2  ;;  %s15038_s19 = smov (!%p215_p3, %s7310_s19), 1  ;;  %v1590_v20 = vsel %vm498_vm0, %v7428_v18, 0  ;;  %v7456_v40 = vld [vmem:[%s14844_s1 + $0x8] sm:$0x3]  ;;  %vm4152_vm7 = vcmask 64512  }
  0x11   : > { %8558 = vmatprep.subr.bf16.mxu0 %v14850_v2  ;;  %8668 = vmatprep.subr.bf16.mxu1 %v14850_v2  ;;  %s10318_s24 = smul.u32 216, %s15038_s19  ;;  %vm807_vm3 = vcmp.lt.s32.totalorder %v10794_v37, 1  ;;  %v2006_v48 = vsel %vm498_vm0, %v7456_v40, 0  ;;  %vm1478_vm4 = vcmp.lt.s32.totalorder %v10794_v37, 7  ;;  %vm4038_vm6 = vcmp.ge.s32.totalorder %v10794_v37, 1  ;;  %s7833_s20 = sshll.u32 %s15038_s19, 8 }
  0x12   : > { %vm5087_vm9 = vcmp.lt.s32.totalorder %v10794_v37, 6  ;;  %s14650_s23 = scalar_lea.vmem %s14848_s5, %s7833_s20 }
  0x13   : > { %s10488_s29 = scalar_lea.vmem %s14843_s0, %s10318_s24 }
  0x14   : > { %v10491_v6 = vld [vmem:[%s10488_s29] sm:$0xff]   ;;  %v10504_v8 = vld [vmem:[%s10488_s29 + $0x8] sm:$0xff]   ;;  %v10515_v9 = vld [vmem:[%s10488_s29 + $0x10] sm:$0xff]  }
  0x15   : > { %8341 = vmatmul.mubr.msk.bf16.vlgmr.msra.gmra.mrb[0].mxu0 %vm416_vm2, %v10491_v6  ;;  %8451 = vmatmul.mubr.msk.bf16.vlgmr.msra.gmra.mrb[0].mxu1 %vm416_vm2, %v10491_v6  ;;  %v10526_v10 = vld [vmem:[%s10488_s29 + $0x18] sm:$0xff]   ;;  %v10537_v11 = vld [vmem:[%s10488_s29 + $0x20] sm:$0xff]   ;;  %v10548_v12 = vld [vmem:[%s10488_s29 + $0x28] sm:$0xff]  }
  0x16   : > { %8559 = vmatpush3.bf16.msra.mxu0 %v1173_v7  ;;  %8344 = vmatprep.mubr.msk.bf16.mxu0 %vm10423_vm1, %v14850_v2  ;;  %v10559_v13 = vld [vmem:[%s10488_s29 + $0x30] sm:$0xff]   ;;  %v10570_v14 = vld [vmem:[%s10488_s29 + $0x38] sm:$0xff]   ;;  %v10581_v15 = vld [vmem:[%s10488_s29 + $0x40] sm:$0xff]  }
  0x17   : > { %8454 = vmatprep.mubr.msk.bf16.mxu1 %vm10423_vm1, %v14850_v2  ;;  %8778 = vmatprep.subr.bf16.mxu0 %v14850_v2  ;;  %v10592_v16 = vld [vmem:[%s10488_s29 + $0x48] sm:$0xff]   ;;  %v10603_v17 = vld [vmem:[%s10488_s29 + $0x50] sm:$0xff]   ;;  %v10617_v19 = vld [vmem:[%s10488_s29 + $0x58] sm:$0xff]  }
  0x18   : > { %8669 = vmatpush3.bf16.msra.mxu1 %v1590_v20  ;;  %v10630_v21 = vld [vmem:[%s10488_s29 + $0x60] sm:$0xff]   ;;  %v10641_v22 = vld [vmem:[%s10488_s29 + $0x68] sm:$0xff]   ;;  %v10652_v23 = vld [vmem:[%s10488_s29 + $0x70] sm:$0xff]  }
  0x19   : > { %8888 = vmatprep.subr.bf16.mxu1 %v14850_v2  ;;  %v10663_v24 = vld [vmem:[%s10488_s29 + $0x78] sm:$0xff]   ;;  %v10674_v25 = vld [vmem:[%s10488_s29 + $0x80] sm:$0xff]   ;;  %v10685_v26 = vld [vmem:[%s10488_s29 + $0x88] sm:$0xff]  }
  0x1a   : > { %v10696_v27 = vld [vmem:[%s10488_s29 + $0x90] sm:$0xff]   ;;  %v10707_v28 = vld [vmem:[%s10488_s29 + $0x98] sm:$0xff]   ;;  %v10718_v29 = vld [vmem:[%s10488_s29 + $0xa0] sm:$0xff]  }
  0x1b   : > { %v10729_v30 = vld [vmem:[%s10488_s29 + $0xa8] sm:$0xff]   ;;  %v10740_v31 = vld [vmem:[%s10488_s29 + $0xb0] sm:$0xff]   ;;  %v10751_v32 = vld [vmem:[%s10488_s29 + $0xb8] sm:$0xff]  }
  0x1c   : > { %v10762_v33 = vld [vmem:[%s10488_s29 + $0xc0] sm:$0xff]   ;;  %v10773_v34 = vld [vmem:[%s10488_s29 + $0xc8] sm:$0xff]   ;;  %v10784_v35 = vld [vmem:[%s10488_s29 + $0xd0] sm:$0xff]  }
  0x1d   : > { %8345 = vmatmul.mubr.msk.bf16.gmra.mrb[4].mxu0 %vm416_vm2, %v10504_v8  ;;  %8455 = vmatmul.mubr.msk.bf16.gmra.mrb[4].mxu1 %vm416_vm2, %v10504_v8 }
  0x1e   : > { %8348 = vmatprep.mubr.msk.bf16.mxu0 %vm10423_vm1, %v14850_v2  ;;  %8458 = vmatprep.mubr.msk.bf16.mxu1 %vm10423_vm1, %v14850_v2 }
  0x25   : > { %8349 = vmatmul.mubr.msk.bf16.gmra.mrb[8].mxu0 %vm416_vm2, %v10515_v9  ;;  %8459 = vmatmul.mubr.msk.bf16.gmra.mrb[8].mxu1 %vm416_vm2, %v10515_v9 }
  0x26   : > { %8352 = vmatprep.mubr.msk.bf16.mxu0 %vm10423_vm1, %v14850_v2  ;;  %8462 = vmatprep.mubr.msk.bf16.mxu1 %vm10423_vm1, %v14850_v2 }
  0x2d   : > { %8353 = vmatmul.mubr.msk.bf16.gmra.mrb[12].mxu0 %vm416_vm2, %v10526_v10  ;;  %8463 = vmatmul.mubr.msk.bf16.gmra.mrb[12].mxu1 %vm416_vm2, %v10526_v10 }
  0x2e   : > { %8356 = vmatprep.mubr.msk.bf16.mxu0 %vm10423_vm1, %v14850_v2  ;;  %8466 = vmatprep.mubr.msk.bf16.mxu1 %vm10423_vm1, %v14850_v2 }
  0x35   : > { %8357 = vmatmul.mubr.msk.bf16.gmra.mrb[16].mxu0 %vm416_vm2, %v10537_v11  ;;  %8467 = vmatmul.mubr.msk.bf16.gmra.mrb[16].mxu1 %vm416_vm2, %v10537_v11 }
  0x36   : > { %8360 = vmatprep.mubr.msk.bf16.mxu0 %vm10423_vm1, %v14850_v2  ;;  %8470 = vmatprep.mubr.msk.bf16.mxu1 %vm10423_vm1, %v14850_v2 }
  0x3d   : > { %8361 = vmatmul.mubr.msk.bf16.gmra.mrb[20].mxu0 %vm416_vm2, %v10548_v12  ;;  %8471 = vmatmul.mubr.msk.bf16.gmra.mrb[20].mxu1 %vm416_vm2, %v10548_v12 }
  0x3e   : > { %8364 = vmatprep.mubr.msk.bf16.mxu0 %vm10423_vm1, %v14850_v2  ;;  %8474 = vmatprep.mubr.msk.bf16.mxu1 %vm10423_vm1, %v14850_v2 }
  0x45   : > { %8365 = vmatmul.mubr.msk.bf16.gmra.mrb[24].mxu0 %vm416_vm2, %v10559_v13  ;;  %8475 = vmatmul.mubr.msk.bf16.gmra.mrb[24].mxu1 %vm416_vm2, %v10559_v13 }
  0x46   : > { %8368 = vmatprep.mubr.msk.bf16.mxu0 %vm10423_vm1, %v14850_v2  ;;  %8478 = vmatprep.mubr.msk.bf16.mxu1 %vm10423_vm1, %v14850_v2 }
  0x4d   : > { %8369 = vmatmul.mubr.msk.bf16.gmra.mrb[28].mxu0 %vm416_vm2, %v10570_v14  ;;  %8479 = vmatmul.mubr.msk.bf16.gmra.mrb[28].mxu1 %vm416_vm2, %v10570_v14 }
  0x4e   : > { %8372 = vmatprep.mubr.msk.bf16.mxu0 %vm10423_vm1, %v14850_v2  ;;  %8482 = vmatprep.mubr.msk.bf16.mxu1 %vm10423_vm1, %v14850_v2 }
  0x55   : > { %8373 = vmatmul.mubr.msk.bf16.gmra.mrb[32].mxu0 %vm416_vm2, %v10581_v15  ;;  %8483 = vmatmul.mubr.msk.bf16.gmra.mrb[32].mxu1 %vm416_vm2, %v10581_v15 }
  0x56   : > { %8376 = vmatprep.mubr.msk.bf16.mxu0 %vm10423_vm1, %v14850_v2  ;;  %8486 = vmatprep.mubr.msk.bf16.mxu1 %vm10423_vm1, %v14850_v2 }
  0x5d   : > { %8377 = vmatmul.mubr.msk.bf16.gmra.mrb[36].mxu0 %vm416_vm2, %v10592_v16  ;;  %8487 = vmatmul.mubr.msk.bf16.gmra.mrb[36].mxu1 %vm416_vm2, %v10592_v16 }
  0x5e   : > { %8380 = vmatprep.mubr.msk.bf16.mxu0 %vm10423_vm1, %v14850_v2  ;;  %8490 = vmatprep.mubr.msk.bf16.mxu1 %vm10423_vm1, %v14850_v2 }
  0x65   : > { %8381 = vmatmul.mubr.msk.bf16.gmra.mrb[40].mxu0 %vm416_vm2, %v10603_v17  ;;  %8491 = vmatmul.mubr.msk.bf16.gmra.mrb[40].mxu1 %vm416_vm2, %v10603_v17 }
  0x66   : > { %8384 = vmatprep.mubr.msk.bf16.mxu0 %vm10423_vm1, %v14850_v2  ;;  %8494 = vmatprep.mubr.msk.bf16.mxu1 %vm10423_vm1, %v14850_v2 }
  0x6d   : > { %8385 = vmatmul.mubr.msk.bf16.gmra.mrb[44].mxu0 %vm416_vm2, %v10617_v19  ;;  %8495 = vmatmul.mubr.msk.bf16.gmra.mrb[44].mxu1 %vm416_vm2, %v10617_v19 }
  0x6e   : > { %8388 = vmatprep.mubr.msk.bf16.mxu0 %vm10423_vm1, %v14850_v2  ;;  %8498 = vmatprep.mubr.msk.bf16.mxu1 %vm10423_vm1, %v14850_v2 }
  0x75   : > { %8389 = vmatmul.mubr.msk.bf16.gmra.mrb[48].mxu0 %vm416_vm2, %v10630_v21  ;;  %8499 = vmatmul.mubr.msk.bf16.gmra.mrb[48].mxu1 %vm416_vm2, %v10630_v21 }
  0x76   : > { %8392 = vmatprep.mubr.msk.bf16.mxu0 %vm10423_vm1, %v14850_v2  ;;  %8502 = vmatprep.mubr.msk.bf16.mxu1 %vm10423_vm1, %v14850_v2 }
  0x7d   : > { %8393 = vmatmul.mubr.msk.bf16.gmra.mrb[52].mxu0 %vm416_vm2, %v10641_v22  ;;  %8503 = vmatmul.mubr.msk.bf16.gmra.mrb[52].mxu1 %vm416_vm2, %v10641_v22 }
  0x7e   : > { %8396 = vmatprep.mubr.msk.bf16.mxu0 %vm10423_vm1, %v14850_v2  ;;  %8506 = vmatprep.mubr.msk.bf16.mxu1 %vm10423_vm1, %v14850_v2 }
  0x85   : > { %8397 = vmatmul.mubr.msk.bf16.gmra.mrb[56].mxu0 %vm416_vm2, %v10652_v23  ;;  %8507 = vmatmul.mubr.msk.bf16.gmra.mrb[56].mxu1 %vm416_vm2, %v10652_v23 }
  0x86   : > { %8400 = vmatprep.mubr.msk.bf16.mxu0 %vm10423_vm1, %v14850_v2  ;;  %8510 = vmatprep.mubr.msk.bf16.mxu1 %vm10423_vm1, %v14850_v2 }
  0x8d   : > { %8401 = vmatmul.mubr.msk.bf16.gmra.mrb[60].mxu0 %vm416_vm2, %v10663_v24  ;;  %8511 = vmatmul.mubr.msk.bf16.gmra.mrb[60].mxu1 %vm416_vm2, %v10663_v24 }
  0x8e   : > { %8404 = vmatprep.mubr.msk.bf16.mxu0 %vm10423_vm1, %v14850_v2  ;;  %8514 = vmatprep.mubr.msk.bf16.mxu1 %vm10423_vm1, %v14850_v2 }
  0x95   : > { %8405 = vmatmul.mubr.msk.bf16.gmra.mrb[64].mxu0 %vm416_vm2, %v10674_v25  ;;  %8515 = vmatmul.mubr.msk.bf16.gmra.mrb[64].mxu1 %vm416_vm2, %v10674_v25 }
  0x96   : > { %8408 = vmatprep.mubr.msk.bf16.mxu0 %vm10423_vm1, %v14850_v2  ;;  %8518 = vmatprep.mubr.msk.bf16.mxu1 %vm10423_vm1, %v14850_v2 }
  0x9d   : > { %8409 = vmatmul.mubr.msk.bf16.gmra.mrb[68].mxu0 %vm416_vm2, %v10685_v26  ;;  %8519 = vmatmul.mubr.msk.bf16.gmra.mrb[68].mxu1 %vm416_vm2, %v10685_v26 }
  0x9e   : > { %8412 = vmatprep.mubr.msk.bf16.mxu0 %vm10423_vm1, %v14850_v2  ;;  %8522 = vmatprep.mubr.msk.bf16.mxu1 %vm10423_vm1, %v14850_v2 }
  0xa5   : > { %8413 = vmatmul.mubr.msk.bf16.gmra.mrb[72].mxu0 %vm416_vm2, %v10696_v27  ;;  %8523 = vmatmul.mubr.msk.bf16.gmra.mrb[72].mxu1 %vm416_vm2, %v10696_v27 }
  0xa6   : > { %8416 = vmatprep.mubr.msk.bf16.mxu0 %vm10423_vm1, %v14850_v2  ;;  %8526 = vmatprep.mubr.msk.bf16.mxu1 %vm10423_vm1, %v14850_v2 }
  0xad   : > { %8417 = vmatmul.mubr.msk.bf16.gmra.mrb[76].mxu0 %vm416_vm2, %v10707_v28  ;;  %8527 = vmatmul.mubr.msk.bf16.gmra.mrb[76].mxu1 %vm416_vm2, %v10707_v28 }
  0xae   : > { %8420 = vmatprep.mubr.msk.bf16.mxu0 %vm10423_vm1, %v14850_v2  ;;  %8530 = vmatprep.mubr.msk.bf16.mxu1 %vm10423_vm1, %v14850_v2 }
  0xb5   : > { %8421 = vmatmul.mubr.msk.bf16.gmra.mrb[80].mxu0 %vm416_vm2, %v10718_v29  ;;  %8531 = vmatmul.mubr.msk.bf16.gmra.mrb[80].mxu1 %vm416_vm2, %v10718_v29 }
  0xb6   : > { %8424 = vmatprep.mubr.msk.bf16.mxu0 %vm10423_vm1, %v14850_v2  ;;  %8534 = vmatprep.mubr.msk.bf16.mxu1 %vm10423_vm1, %v14850_v2 }
  0xbd   : > { %8425 = vmatmul.mubr.msk.bf16.gmra.mrb[84].mxu0 %vm416_vm2, %v10729_v30  ;;  %8535 = vmatmul.mubr.msk.bf16.gmra.mrb[84].mxu1 %vm416_vm2, %v10729_v30 }
  0xbe   : > { %8428 = vmatprep.mubr.msk.bf16.mxu0 %vm10423_vm1, %v14850_v2  ;;  %8538 = vmatprep.mubr.msk.bf16.mxu1 %vm10423_vm1, %v14850_v2 }
  0xc5   : > { %8429 = vmatmul.mubr.msk.bf16.gmra.mrb[88].mxu0 %vm416_vm2, %v10740_v31  ;;  %8539 = vmatmul.mubr.msk.bf16.gmra.mrb[88].mxu1 %vm416_vm2, %v10740_v31 }
  0xc6   : > { %8432 = vmatprep.mubr.msk.bf16.mxu0 %vm10423_vm1, %v14850_v2  ;;  %8542 = vmatprep.mubr.msk.bf16.mxu1 %vm10423_vm1, %v14850_v2 }
  0xcd   : > { %8433 = vmatmul.mubr.msk.bf16.gmra.mrb[92].mxu0 %vm416_vm2, %v10751_v32  ;;  %8543 = vmatmul.mubr.msk.bf16.gmra.mrb[92].mxu1 %vm416_vm2, %v10751_v32 }
  0xce   : > { %8436 = vmatprep.mubr.msk.bf16.mxu0 %vm10423_vm1, %v14850_v2  ;;  %8546 = vmatprep.mubr.msk.bf16.mxu1 %vm10423_vm1, %v14850_v2 }
  0xd5   : > { %8437 = vmatmul.mubr.msk.bf16.gmra.mrb[96].mxu0 %vm416_vm2, %v10762_v33  ;;  %8547 = vmatmul.mubr.msk.bf16.gmra.mrb[96].mxu1 %vm416_vm2, %v10762_v33 }
  0xd6   : > { %8440 = vmatprep.mubr.msk.bf16.mxu0 %vm10423_vm1, %v14850_v2  ;;  %8550 = vmatprep.mubr.msk.bf16.mxu1 %vm10423_vm1, %v14850_v2 }
  0xdd   : > { %8441 = vmatmul.mubr.msk.bf16.gmra.mrb[100].mxu0 %vm416_vm2, %v10773_v34  ;;  %8551 = vmatmul.mubr.msk.bf16.gmra.mrb[100].mxu1 %vm416_vm2, %v10773_v34 }
  0xde   : > { %8444 = vmatprep.mubr.msk.bf16.mxu0 %vm10423_vm1, %v14850_v2  ;;  %8554 = vmatprep.mubr.msk.bf16.mxu1 %vm10423_vm1, %v14850_v2 }
  0xe5   : > { %8445 = vmatmul.mubr.msk.bf16.gmra.mrb[104].mxu0 %vm416_vm2, %v10784_v35  ;;  %8555 = vmatmul.mubr.msk.bf16.gmra.mrb[104].mxu1 %vm416_vm2, %v10784_v35 }
  0xe6   : > { %8560 = vmatprep.mubr.msk.bf16.mxu0 %vm10423_vm1, %v14850_v2  ;;  %8670 = vmatprep.mubr.msk.bf16.mxu1 %vm10423_vm1, %v14850_v2 }
  0xe8   : > { %v10796_v38 = vpop.f32.mrb[0].mxu0  ;;  %v10798_v39 = vpop.f32.mrb[0].mxu1 }
  0xe9   : > { %v8342_v41 = vpop.f32.mrb[1].mxu0  ;;  %v8452_v42 = vpop.f32.mrb[1].mxu1  ;;  %v14849_v45 = vrot.slane %v10796_v38, 7 }
  0xea   : > { %v539_v43 = vpop.f32.mrb[2].mxu0  ;;  %v904_v44 = vpop.f32.mrb[2].mxu1 }
  0xeb   : > { %v752_v46 = vrot.slane %v539_v43, 7  ;;  %v8343_v47 = vpop.f32.mrb[3].mxu0  ;;  %v8453_v49 = vpop.f32.mrb[3].mxu1 }
  0xed   : > { %v860_v50 = vsel %vm807_vm3, %v14849_v45, %v752_v46  ;;  %8561 = vmatmul.mubr.msk.bf16.vlgmr.msra.gmra.mrb[108].mxu0 %vm416_vm2, %v10491_v6  ;;  %8671 = vmatmul.mubr.msk.bf16.vlgmr.msra.gmra.mrb[108].mxu1 %vm416_vm2, %v10491_v6 }
  0xee   : > { %v10814_v51 = vadd.f32 %v904_v44, %v860_v50  ;;  %8779 = vmatpush3.bf16.msra.mxu0 %v2006_v48  ;;  %8564 = vmatprep.mubr.msk.bf16.mxu0 %vm10423_vm1, %v14850_v2 }
  0xef   : > { %8674 = vmatprep.mubr.msk.bf16.mxu1 %vm10423_vm1, %v14850_v2  ;;  %8998 = vmatprep.subr.bf16.mxu0 %v14850_v2 }
  0xf0   : > { %v544_v52 = vpop.f32.mrb[4].mxu0  ;;  %v909_v53 = vpop.f32.mrb[4].mxu1 }
  0xf1   : > { %v753_v54 = vrot.slane %v544_v52, 7  ;;  %v8346_v55 = vpop.f32.mrb[5].mxu0  ;;  %v8456_v56 = vpop.f32.mrb[5].mxu1 }
  0xf2   : > { %v547_v57 = vpop.f32.mrb[6].mxu0  ;;  %v912_v58 = vpop.f32.mrb[6].mxu1 }
  0xf3   : > { %v754_v59 = vrot.slane %v547_v57, 7  ;;  %v8347_v60 = vpop.f32.mrb[7].mxu0  ;;  %v859_v61 = vsel %vm807_vm3, %v752_v46, %v753_v54  ;;  %v8457_v62 = vpop.f32.mrb[7].mxu1 }
  0xf4   : > { %v10823_v63 = vadd.f32 %v909_v53, %v859_v61 }
  0xf5   : > { %v858_v0 = vsel %vm807_vm3, %v753_v54, %v754_v59  ;;  %8565 = vmatmul.mubr.msk.bf16.gmra.mrb[112].mxu0 %vm416_vm2, %v10504_v8  ;;  %8675 = vmatmul.mubr.msk.bf16.gmra.mrb[112].mxu1 %vm416_vm2, %v10504_v8 }
  0xf6   : > { %v10831_v1 = vadd.f32 %v912_v58, %v858_v0  ;;  %8568 = vmatprep.mubr.msk.bf16.mxu0 %vm10423_vm1, %v14850_v2  ;;  %8678 = vmatprep.mubr.msk.bf16.mxu1 %vm10423_vm1, %v14850_v2 }
  0xf8   : > { %v552_v3 = vpop.f32.mrb[8].mxu0  ;;  %v917_v4 = vpop.f32.mrb[8].mxu1 }
  0xf9   : > { %v755_v5 = vrot.slane %v552_v3, 7  ;;  %v8350_v6 = vpop.f32.mrb[9].mxu0  ;;  %v8460_v7 = vpop.f32.mrb[9].mxu1 }
  0xfa   : > { %v555_v18 = vpop.f32.mrb[10].mxu0  ;;  %v920_v20 = vpop.f32.mrb[10].mxu1 }
  0xfb   : > { %v756_v36 = vrot.slane %v555_v18, 7  ;;  %v8351_v40 = vpop.f32.mrb[11].mxu0  ;;  %v857_v8 = vsel %vm807_vm3, %v754_v59, %v755_v5  ;;  %v8461_v41 = vpop.f32.mrb[11].mxu1 }
  0xfc   : > { %v10839_v42 = vadd.f32 %v917_v4, %v857_v8 }
  0xfd   : > { %v856_v43 = vsel %vm807_vm3, %v755_v5, %v756_v36  ;;  %8569 = vmatmul.mubr.msk.bf16.gmra.mrb[116].mxu0 %vm416_vm2, %v10515_v9  ;;  %8679 = vmatmul.mubr.msk.bf16.gmra.mrb[116].mxu1 %vm416_vm2, %v10515_v9 }
  0xfe   : > { %v10847_v44 = vadd.f32 %v920_v20, %v856_v43  ;;  %8572 = vmatprep.mubr.msk.bf16.mxu0 %vm10423_vm1, %v14850_v2  ;;  %8682 = vmatprep.mubr.msk.bf16.mxu1 %vm10423_vm1, %v14850_v2 }
 0x100   : > { %v560_v46 = vpop.f32.mrb[12].mxu0  ;;  %v925_v47 = vpop.f32.mrb[12].mxu1 }
 0x101   : > { %v757_v48 = vrot.slane %v560_v46, 7  ;;  %v8354_v49 = vpop.f32.mrb[13].mxu0  ;;  %v8464_v50 = vpop.f32.mrb[13].mxu1 }
 0x102   : > { %v563_v52 = vpop.f32.mrb[14].mxu0  ;;  %v928_v53 = vpop.f32.mrb[14].mxu1 }
 0x103   : > { %v758_v54 = vrot.slane %v563_v52, 7  ;;  %v8355_v55 = vpop.f32.mrb[15].mxu0  ;;  %v855_v9 = vsel %vm807_vm3, %v756_v36, %v757_v48  ;;  %v8465_v56 = vpop.f32.mrb[15].mxu1 }
 0x104   : > { %v10855_v57 = vadd.f32 %v925_v47, %v855_v9 }
 0x105   : > { %v854_v58 = vsel %vm807_vm3, %v757_v48, %v758_v54  ;;  %8573 = vmatmul.mubr.msk.bf16.gmra.mrb[120].mxu0 %vm416_vm2, %v10526_v10  ;;  %8683 = vmatmul.mubr.msk.bf16.gmra.mrb[120].mxu1 %vm416_vm2, %v10526_v10 }
 0x106   : > { %v10863_v59 = vadd.f32 %v928_v53, %v854_v58  ;;  %8576 = vmatprep.mubr.msk.bf16.mxu0 %vm10423_vm1, %v14850_v2  ;;  %8686 = vmatprep.mubr.msk.bf16.mxu1 %vm10423_vm1, %v14850_v2 }
 0x108   : > { %v568_v60 = vpop.f32.mrb[16].mxu0  ;;  %v933_v61 = vpop.f32.mrb[16].mxu1 }
 0x109   : > { %v759_v62 = vrot.slane %v568_v60, 7  ;;  %v8358_v0 = vpop.f32.mrb[17].mxu0  ;;  %v8468_v3 = vpop.f32.mrb[17].mxu1 }
 0x10a   : > { %v571_v4 = vpop.f32.mrb[18].mxu0  ;;  %v936_v5 = vpop.f32.mrb[18].mxu1 }
 0x10b   : > { %v760_v6 = vrot.slane %v571_v4, 7  ;;  %v8359_v7 = vpop.f32.mrb[19].mxu0  ;;  %v853_v10 = vsel %vm807_vm3, %v758_v54, %v759_v62  ;;  %v8469_v18 = vpop.f32.mrb[19].mxu1 }
 0x10c   : > { %v10871_v20 = vadd.f32 %v933_v61, %v853_v10 }
 0x10d   : > { %v852_v36 = vsel %vm807_vm3, %v759_v62, %v760_v6  ;;  %8577 = vmatmul.mubr.msk.bf16.gmra.mrb[124].mxu0 %vm416_vm2, %v10537_v11  ;;  %8687 = vmatmul.mubr.msk.bf16.gmra.mrb[124].mxu1 %vm416_vm2, %v10537_v11 }
 0x10e   : > { %v10879_v40 = vadd.f32 %v936_v5, %v852_v36  ;;  %8580 = vmatprep.mubr.msk.bf16.mxu0 %vm10423_vm1, %v14850_v2  ;;  %8690 = vmatprep.mubr.msk.bf16.mxu1 %vm10423_vm1, %v14850_v2 }
 0x110   : > { %v576_v8 = vpop.f32.mrb[20].mxu0  ;;  %v941_v41 = vpop.f32.mrb[20].mxu1 }
 0x111   : > { %v761_v43 = vrot.slane %v576_v8, 7  ;;  %v8362_v46 = vpop.f32.mrb[21].mxu0  ;;  %v8472_v47 = vpop.f32.mrb[21].mxu1 }
 0x112   : > { %v579_v48 = vpop.f32.mrb[22].mxu0  ;;  %v944_v49 = vpop.f32.mrb[22].mxu1 }
 0x113   : > { %v762_v50 = vrot.slane %v579_v48, 7  ;;  %v8363_v52 = vpop.f32.mrb[23].mxu0  ;;  %v851_v11 = vsel %vm807_vm3, %v760_v6, %v761_v43  ;;  %v8473_v53 = vpop.f32.mrb[23].mxu1 }
 0x114   : > { %v10887_v54 = vadd.f32 %v941_v41, %v851_v11 }
 0x115   : > { %v850_v55 = vsel %vm807_vm3, %v761_v43, %v762_v50  ;;  %8581 = vmatmul.mubr.msk.bf16.gmra.mrb[128].mxu0 %vm416_vm2, %v10548_v12  ;;  %8691 = vmatmul.mubr.msk.bf16.gmra.mrb[128].mxu1 %vm416_vm2, %v10548_v12 }
 0x116   : > { %v10895_v9 = vadd.f32 %v944_v49, %v850_v55  ;;  %8584 = vmatprep.mubr.msk.bf16.mxu0 %vm10423_vm1, %v14850_v2  ;;  %8694 = vmatprep.mubr.msk.bf16.mxu1 %vm10423_vm1, %v14850_v2 }
 0x118   : > { %v584_v56 = vpop.f32.mrb[24].mxu0  ;;  %v949_v58 = vpop.f32.mrb[24].mxu1 }
 0x119   : > { %v763_v60 = vrot.slane %v584_v56, 7  ;;  %v8366_v61 = vpop.f32.mrb[25].mxu0  ;;  %v8476_v62 = vpop.f32.mrb[25].mxu1 }
 0x11a   : > { %v587_v0 = vpop.f32.mrb[26].mxu0  ;;  %v952_v3 = vpop.f32.mrb[26].mxu1 }
 0x11b   : > { %v764_v4 = vrot.slane %v587_v0, 7  ;;  %v8367_v5 = vpop.f32.mrb[27].mxu0  ;;  %v849_v12 = vsel %vm807_vm3, %v762_v50, %v763_v60  ;;  %v8477_v6 = vpop.f32.mrb[27].mxu1 }
 0x11c   : > { %v10903_v7 = vadd.f32 %v949_v58, %v849_v12 }
 0x11d   : > { %v848_v10 = vsel %vm807_vm3, %v763_v60, %v764_v4  ;;  %8585 = vmatmul.mubr.msk.bf16.gmra.mrb[132].mxu0 %vm416_vm2, %v10559_v13  ;;  %8695 = vmatmul.mubr.msk.bf16.gmra.mrb[132].mxu1 %vm416_vm2, %v10559_v13 }
 0x11e   : > { %v10911_v18 = vadd.f32 %v952_v3, %v848_v10  ;;  %8588 = vmatprep.mubr.msk.bf16.mxu0 %vm10423_vm1, %v14850_v2  ;;  %8698 = vmatprep.mubr.msk.bf16.mxu1 %vm10423_vm1, %v14850_v2 }
 0x120   : > { %v592_v36 = vpop.f32.mrb[28].mxu0  ;;  %v957_v8 = vpop.f32.mrb[28].mxu1 }
 0x121   : > { %v765_v41 = vrot.slane %v592_v36, 7  ;;  %v8370_v43 = vpop.f32.mrb[29].mxu0  ;;  %v8480_v46 = vpop.f32.mrb[29].mxu1 }
 0x122   : > { %v595_v47 = vpop.f32.mrb[30].mxu0  ;;  %v960_v48 = vpop.f32.mrb[30].mxu1 }
 0x123   : > { %v766_v49 = vrot.slane %v595_v47, 7  ;;  %v8371_v50 = vpop.f32.mrb[31].mxu0  ;;  %v847_v13 = vsel %vm807_vm3, %v764_v4, %v765_v41  ;;  %v8481_v52 = vpop.f32.mrb[31].mxu1 }
 0x124   : > { %v10919_v11 = vadd.f32 %v957_v8, %v847_v13 }
 0x125   : > { %v846_v53 = vsel %vm807_vm3, %v765_v41, %v766_v49  ;;  %8589 = vmatmul.mubr.msk.bf16.gmra.mrb[136].mxu0 %vm416_vm2, %v10570_v14  ;;  %8699 = vmatmul.mubr.msk.bf16.gmra.mrb[136].mxu1 %vm416_vm2, %v10570_v14 }
 0x126   : > { %v10927_v55 = vadd.f32 %v960_v48, %v846_v53  ;;  %8592 = vmatprep.mubr.msk.bf16.mxu0 %vm10423_vm1, %v14850_v2  ;;  %8702 = vmatprep.mubr.msk.bf16.mxu1 %vm10423_vm1, %v14850_v2 }
 0x128   : > { %v600_v56 = vpop.f32.mrb[32].mxu0  ;;  %v965_v58 = vpop.f32.mrb[32].mxu1 }
 0x129   : > { %v767_v60 = vrot.slane %v600_v56, 7  ;;  %v8374_v61 = vpop.f32.mrb[33].mxu0  ;;  %v8484_v62 = vpop.f32.mrb[33].mxu1 }
 0x12a   : > { %v603_v0 = vpop.f32.mrb[34].mxu0  ;;  %v968_v3 = vpop.f32.mrb[34].mxu1 }
 0x12b   : > { %v768_v4 = vrot.slane %v603_v0, 7  ;;  %v8375_v5 = vpop.f32.mrb[35].mxu0  ;;  %v845_v14 = vsel %vm807_vm3, %v766_v49, %v767_v60  ;;  %v8485_v12 = vpop.f32.mrb[35].mxu1 }
 0x12c   : > { %v10935_v6 = vadd.f32 %v965_v58, %v845_v14 }
 0x12d   : > { %v844_v10 = vsel %vm807_vm3, %v767_v60, %v768_v4  ;;  %8593 = vmatmul.mubr.msk.bf16.gmra.mrb[140].mxu0 %vm416_vm2, %v10581_v15  ;;  %8703 = vmatmul.mubr.msk.bf16.gmra.mrb[140].mxu1 %vm416_vm2, %v10581_v15 }
 0x12e   : > { %v10943_v36 = vadd.f32 %v968_v3, %v844_v10  ;;  %8596 = vmatprep.mubr.msk.bf16.mxu0 %vm10423_vm1, %v14850_v2  ;;  %8706 = vmatprep.mubr.msk.bf16.mxu1 %vm10423_vm1, %v14850_v2 }
 0x130   : > { %v608_v8 = vpop.f32.mrb[36].mxu0  ;;  %v973_v41 = vpop.f32.mrb[36].mxu1 }
 0x131   : > { %v769_v43 = vrot.slane %v608_v8, 7  ;;  %v8378_v46 = vpop.f32.mrb[37].mxu0  ;;  %v8488_v47 = vpop.f32.mrb[37].mxu1 }
 0x132   : > { %v611_v48 = vpop.f32.mrb[38].mxu0  ;;  %v976_v49 = vpop.f32.mrb[38].mxu1 }
 0x133   : > { %v770_v50 = vrot.slane %v611_v48, 7  ;;  %v8379_v13 = vpop.f32.mrb[39].mxu0  ;;  %v843_v15 = vsel %vm807_vm3, %v768_v4, %v769_v43  ;;  %v8489_v52 = vpop.f32.mrb[39].mxu1  ;;  %v7484_v48 = vld [vmem:[%s14844_s1 + $0xa] sm:$0x3] }
 0x134   : > { %v10951_v53 = vadd.f32 %v973_v41, %v843_v15  ;;  %v2314_v15 = vsel %vm498_vm0, %v7484_v48, 0 }
 0x135   : > { %v842_v56 = vsel %vm807_vm3, %v769_v43, %v770_v50  ;;  %8597 = vmatmul.mubr.msk.bf16.gmra.mrb[144].mxu0 %vm416_vm2, %v10592_v16  ;;  %8707 = vmatmul.mubr.msk.bf16.gmra.mrb[144].mxu1 %vm416_vm2, %v10592_v16 }
 0x136   : > { %v10959_v58 = vadd.f32 %v976_v49, %v842_v56  ;;  %8600 = vmatprep.mubr.msk.bf16.mxu0 %vm10423_vm1, %v14850_v2  ;;  %8710 = vmatprep.mubr.msk.bf16.mxu1 %vm10423_vm1, %v14850_v2 }
 0x137   : > { %8889 = vmatpush3.bf16.msra.mxu1 %v2314_v15 }
 0x138   : > { %v616_v60 = vpop.f32.mrb[40].mxu0  ;;  %v981_v61 = vpop.f32.mrb[40].mxu1  ;;  %9108 = vmatprep.subr.bf16.mxu1 %v14850_v2 }
 0x139   : > { %v771_v62 = vrot.slane %v616_v60, 7  ;;  %v8382_v0 = vpop.f32.mrb[41].mxu0  ;;  %v8492_v3 = vpop.f32.mrb[41].mxu1 }
 0x13a   : > { %v619_v4 = vpop.f32.mrb[42].mxu0  ;;  %v984_v5 = vpop.f32.mrb[42].mxu1 }
 0x13b   : > { %v772_v14 = vrot.slane %v619_v4, 7  ;;  %v8383_v12 = vpop.f32.mrb[43].mxu0  ;;  %v841_v16 = vsel %vm807_vm3, %v770_v50, %v771_v62  ;;  %v8493_v10 = vpop.f32.mrb[43].mxu1 }
 0x13c   : > { %v10967_v8 = vadd.f32 %v981_v61, %v841_v16 }
 0x13d   : > { %v840_v41 = vsel %vm807_vm3, %v771_v62, %v772_v14  ;;  %8601 = vmatmul.mubr.msk.bf16.gmra.mrb[148].mxu0 %vm416_vm2, %v10603_v17  ;;  %8711 = vmatmul.mubr.msk.bf16.gmra.mrb[148].mxu1 %vm416_vm2, %v10603_v17 }
 0x13e   : > { %v10975_v43 = vadd.f32 %v984_v5, %v840_v41  ;;  %8604 = vmatprep.mubr.msk.bf16.mxu0 %vm10423_vm1, %v14850_v2  ;;  %8714 = vmatprep.mubr.msk.bf16.mxu1 %vm10423_vm1, %v14850_v2 }
 0x140   : > { %v624_v46 = vpop.f32.mrb[44].mxu0  ;;  %v989_v47 = vpop.f32.mrb[44].mxu1 }
 0x141   : > { %v773_v49 = vrot.slane %v624_v46, 7  ;;  %v8386_v50 = vpop.f32.mrb[45].mxu0  ;;  %v8496_v13 = vpop.f32.mrb[45].mxu1 }
 0x142   : > { %v627_v17 = vpop.f32.mrb[46].mxu0  ;;  %v992_v52 = vpop.f32.mrb[46].mxu1 }
 0x143   : > { %v774_v56 = vrot.slane %v627_v17, 7  ;;  %v8387_v60 = vpop.f32.mrb[47].mxu0  ;;  %v839_v61 = vsel %vm807_vm3, %v772_v14, %v773_v49  ;;  %v8497_v62 = vpop.f32.mrb[47].mxu1 }
 0x144   : > { %v10988_v0 = vadd.f32 %v989_v47, %v839_v61 }
 0x145   : > { %v838_v3 = vsel %vm807_vm3, %v773_v49, %v774_v56  ;;  %8605 = vmatmul.mubr.msk.bf16.gmra.mrb[152].mxu0 %vm416_vm2, %v10617_v19  ;;  %8715 = vmatmul.mubr.msk.bf16.gmra.mrb[152].mxu1 %vm416_vm2, %v10617_v19 }
 0x146   : > { %v10996_v4 = vadd.f32 %v992_v52, %v838_v3  ;;  %8608 = vmatprep.mubr.msk.bf16.mxu0 %vm10423_vm1, %v14850_v2  ;;  %8718 = vmatprep.mubr.msk.bf16.mxu1 %vm10423_vm1, %v14850_v2 }
 0x148   : > { %v632_v5 = vpop.f32.mrb[48].mxu0  ;;  %v997_v14 = vpop.f32.mrb[48].mxu1 }
 0x149   : > { %v775_v12 = vrot.slane %v632_v5, 7  ;;  %v8390_v16 = vpop.f32.mrb[49].mxu0  ;;  %v8500_v10 = vpop.f32.mrb[49].mxu1 }
 0x14a   : > { %v635_v41 = vpop.f32.mrb[50].mxu0  ;;  %v1000_v46 = vpop.f32.mrb[50].mxu1 }
 0x14b   : > { %v776_v47 = vrot.slane %v635_v41, 7  ;;  %v8391_v48 = vpop.f32.mrb[51].mxu0  ;;  %v837_v19 = vsel %vm807_vm3, %v774_v56, %v775_v12  ;;  %v8501_v49 = vpop.f32.mrb[51].mxu1 }
 0x14c   : > { %v11004_v50 = vadd.f32 %v997_v14, %v837_v19 }
 0x14d   : > { %v836_v13 = vsel %vm807_vm3, %v775_v12, %v776_v47  ;;  %8609 = vmatmul.mubr.msk.bf16.gmra.mrb[156].mxu0 %vm416_vm2, %v10630_v21  ;;  %8719 = vmatmul.mubr.msk.bf16.gmra.mrb[156].mxu1 %vm416_vm2, %v10630_v21 }
 0x14e   : > { %v11012_v15 = vadd.f32 %v1000_v46, %v836_v13  ;;  %8612 = vmatprep.mubr.msk.bf16.mxu0 %vm10423_vm1, %v14850_v2  ;;  %8722 = vmatprep.mubr.msk.bf16.mxu1 %vm10423_vm1, %v14850_v2 }
 0x150   : > { %v640_v17 = vpop.f32.mrb[52].mxu0  ;;  %v1005_v52 = vpop.f32.mrb[52].mxu1 }
 0x151   : > { %v777_v56 = vrot.slane %v640_v17, 7  ;;  %v8394_v60 = vpop.f32.mrb[53].mxu0  ;;  %v8504_v61 = vpop.f32.mrb[53].mxu1 }
 0x152   : > { %v643_v62 = vpop.f32.mrb[54].mxu0  ;;  %v1008_v3 = vpop.f32.mrb[54].mxu1 }
 0x153   : > { %v778_v5 = vrot.slane %v643_v62, 7  ;;  %v8395_v14 = vpop.f32.mrb[55].mxu0  ;;  %v835_v21 = vsel %vm807_vm3, %v776_v47, %v777_v56  ;;  %v8505_v12 = vpop.f32.mrb[55].mxu1 }
 0x154   : > { %v11020_v16 = vadd.f32 %v1005_v52, %v835_v21 }
 0x155   : > { %v834_v10 = vsel %vm807_vm3, %v777_v56, %v778_v5  ;;  %8613 = vmatmul.mubr.msk.bf16.gmra.mrb[160].mxu0 %vm416_vm2, %v10641_v22  ;;  %8723 = vmatmul.mubr.msk.bf16.gmra.mrb[160].mxu1 %vm416_vm2, %v10641_v22 }
 0x156   : > { %v11028_v41 = vadd.f32 %v1008_v3, %v834_v10  ;;  %8616 = vmatprep.mubr.msk.bf16.mxu0 %vm10423_vm1, %v14850_v2  ;;  %8726 = vmatprep.mubr.msk.bf16.mxu1 %vm10423_vm1, %v14850_v2 }
 0x158   : > { %v648_v46 = vpop.f32.mrb[56].mxu0  ;;  %v1013_v47 = vpop.f32.mrb[56].mxu1 }
 0x159   : > { %v779_v48 = vrot.slane %v648_v46, 7  ;;  %v8398_v19 = vpop.f32.mrb[57].mxu0  ;;  %v8508_v49 = vpop.f32.mrb[57].mxu1 }
 0x15a   : > { %v651_v13 = vpop.f32.mrb[58].mxu0  ;;  %v1016_v17 = vpop.f32.mrb[58].mxu1 }
 0x15b   : > { %v780_v52 = vrot.slane %v651_v13, 7  ;;  %v8399_v56 = vpop.f32.mrb[59].mxu0  ;;  %v833_v22 = vsel %vm807_vm3, %v778_v5, %v779_v48  ;;  %v8509_v60 = vpop.f32.mrb[59].mxu1 }
 0x15c   : > { %v11036_v61 = vadd.f32 %v1013_v47, %v833_v22 }
 0x15d   : > { %v832_v62 = vsel %vm807_vm3, %v779_v48, %v780_v52  ;;  %8617 = vmatmul.mubr.msk.bf16.gmra.mrb[164].mxu0 %vm416_vm2, %v10652_v23  ;;  %8727 = vmatmul.mubr.msk.bf16.gmra.mrb[164].mxu1 %vm416_vm2, %v10652_v23 }
 0x15e   : > { %v11044_v3 = vadd.f32 %v1016_v17, %v832_v62  ;;  %8620 = vmatprep.mubr.msk.bf16.mxu0 %vm10423_vm1, %v14850_v2  ;;  %8730 = vmatprep.mubr.msk.bf16.mxu1 %vm10423_vm1, %v14850_v2 }
 0x160   : > { %v656_v5 = vpop.f32.mrb[60].mxu0  ;;  %v1021_v14 = vpop.f32.mrb[60].mxu1 }
 0x161   : > { %v781_v21 = vrot.slane %v656_v5, 7  ;;  %v8402_v12 = vpop.f32.mrb[61].mxu0  ;;  %v8512_v10 = vpop.f32.mrb[61].mxu1 }
 0x162   : > { %v659_v46 = vpop.f32.mrb[62].mxu0  ;;  %v1024_v47 = vpop.f32.mrb[62].mxu1 }
 0x163   : > { %v782_v48 = vrot.slane %v659_v46, 7  ;;  %v8403_v19 = vpop.f32.mrb[63].mxu0  ;;  %v831_v23 = vsel %vm807_vm3, %v780_v52, %v781_v21  ;;  %v8513_v49 = vpop.f32.mrb[63].mxu1 }
 0x164   : > { %v11052_v13 = vadd.f32 %v1021_v14, %v831_v23 }
 0x165   : > { %v830_v17 = vsel %vm807_vm3, %v781_v21, %v782_v48  ;;  %8621 = vmatmul.mubr.msk.bf16.gmra.mrb[168].mxu0 %vm416_vm2, %v10663_v24  ;;  %8731 = vmatmul.mubr.msk.bf16.gmra.mrb[168].mxu1 %vm416_vm2, %v10663_v24 }
 0x166   : > { %v11060_v56 = vadd.f32 %v1024_v47, %v830_v17  ;;  %8624 = vmatprep.mubr.msk.bf16.mxu0 %vm10423_vm1, %v14850_v2  ;;  %8734 = vmatprep.mubr.msk.bf16.mxu1 %vm10423_vm1, %v14850_v2 }
 0x168   : > { %v664_v52 = vpop.f32.mrb[64].mxu0  ;;  %v1029_v22 = vpop.f32.mrb[64].mxu1 }
 0x169   : > { %v783_v60 = vrot.slane %v664_v52, 7  ;;  %v8406_v62 = vpop.f32.mrb[65].mxu0  ;;  %v8516_v5 = vpop.f32.mrb[65].mxu1 }
 0x16a   : > { %v667_v14 = vpop.f32.mrb[66].mxu0  ;;  %v1032_v21 = vpop.f32.mrb[66].mxu1 }
 0x16b   : > { %v784_v12 = vrot.slane %v667_v14, 7  ;;  %v8407_v10 = vpop.f32.mrb[67].mxu0  ;;  %v829_v24 = vsel %vm807_vm3, %v782_v48, %v783_v60  ;;  %v8517_v46 = vpop.f32.mrb[67].mxu1 }
 0x16c   : > { %v11068_v47 = vadd.f32 %v1029_v22, %v829_v24 }
 0x16d   : > { %v828_v19 = vsel %vm807_vm3, %v783_v60, %v784_v12  ;;  %8625 = vmatmul.mubr.msk.bf16.gmra.mrb[172].mxu0 %vm416_vm2, %v10674_v25  ;;  %8735 = vmatmul.mubr.msk.bf16.gmra.mrb[172].mxu1 %vm416_vm2, %v10674_v25 }
 0x16e   : > { %v11076_v23 = vadd.f32 %v1032_v21, %v828_v19  ;;  %8628 = vmatprep.mubr.msk.bf16.mxu0 %vm10423_vm1, %v14850_v2  ;;  %8738 = vmatprep.mubr.msk.bf16.mxu1 %vm10423_vm1, %v14850_v2 }
 0x170   : > { %v672_v48 = vpop.f32.mrb[68].mxu0  ;;  %v1037_v49 = vpop.f32.mrb[68].mxu1 }
 0x171   : > { %v785_v17 = vrot.slane %v672_v48, 7  ;;  %v8410_v52 = vpop.f32.mrb[69].mxu0  ;;  %v8520_v22 = vpop.f32.mrb[69].mxu1 }
 0x172   : > { %v675_v60 = vpop.f32.mrb[70].mxu0  ;;  %v1040_v62 = vpop.f32.mrb[70].mxu1 }
 0x173   : > { %v786_v5 = vrot.slane %v675_v60, 7  ;;  %v8411_v14 = vpop.f32.mrb[71].mxu0  ;;  %v827_v25 = vsel %vm807_vm3, %v784_v12, %v785_v17  ;;  %v8521_v21 = vpop.f32.mrb[71].mxu1 }
 0x174   : > { %v11084_v10 = vadd.f32 %v1037_v49, %v827_v25 }
 0x175   : > { %v826_v24 = vsel %vm807_vm3, %v785_v17, %v786_v5  ;;  %8629 = vmatmul.mubr.msk.bf16.gmra.mrb[176].mxu0 %vm416_vm2, %v10685_v26  ;;  %8739 = vmatmul.mubr.msk.bf16.gmra.mrb[176].mxu1 %vm416_vm2, %v10685_v26 }
 0x176   : > { %v11092_v46 = vadd.f32 %v1040_v62, %v826_v24  ;;  %8632 = vmatprep.mubr.msk.bf16.mxu0 %vm10423_vm1, %v14850_v2  ;;  %8742 = vmatprep.mubr.msk.bf16.mxu1 %vm10423_vm1, %v14850_v2 }
 0x178   : > { %v680_v12 = vpop.f32.mrb[72].mxu0  ;;  %v1045_v19 = vpop.f32.mrb[72].mxu1 }
 0x179   : > { %v787_v48 = vrot.slane %v680_v12, 7  ;;  %v8414_v49 = vpop.f32.mrb[73].mxu0  ;;  %v8524_v52 = vpop.f32.mrb[73].mxu1 }
 0x17a   : > { %v683_v17 = vpop.f32.mrb[74].mxu0  ;;  %v1048_v22 = vpop.f32.mrb[74].mxu1 }
 0x17b   : > { %v788_v60 = vrot.slane %v683_v17, 7  ;;  %v8415_v14 = vpop.f32.mrb[75].mxu0  ;;  %v825_v26 = vsel %vm807_vm3, %v786_v5, %v787_v48  ;;  %v8525_v62 = vpop.f32.mrb[75].mxu1 }
 0x17c   : > { %v11100_v25 = vadd.f32 %v1045_v19, %v825_v26 }
 0x17d   : > { %v824_v21 = vsel %vm807_vm3, %v787_v48, %v788_v60  ;;  %8633 = vmatmul.mubr.msk.bf16.gmra.mrb[180].mxu0 %vm416_vm2, %v10696_v27  ;;  %8743 = vmatmul.mubr.msk.bf16.gmra.mrb[180].mxu1 %vm416_vm2, %v10696_v27 }
 0x17e   : > { %v11108_v24 = vadd.f32 %v1048_v22, %v824_v21  ;;  %8636 = vmatprep.mubr.msk.bf16.mxu0 %vm10423_vm1, %v14850_v2  ;;  %8746 = vmatprep.mubr.msk.bf16.mxu1 %vm10423_vm1, %v14850_v2 }
 0x180   : > { %v688_v5 = vpop.f32.mrb[76].mxu0  ;;  %v1053_v12 = vpop.f32.mrb[76].mxu1 }
 0x181   : > { %v789_v19 = vrot.slane %v688_v5, 7  ;;  %v8418_v49 = vpop.f32.mrb[77].mxu0  ;;  %v8528_v52 = vpop.f32.mrb[77].mxu1 }
 0x182   : > { %v691_v48 = vpop.f32.mrb[78].mxu0  ;;  %v1056_v17 = vpop.f32.mrb[78].mxu1 }
 0x183   : > { %v790_v14 = vrot.slane %v691_v48, 7  ;;  %v8419_v26 = vpop.f32.mrb[79].mxu0  ;;  %v823_v27 = vsel %vm807_vm3, %v788_v60, %v789_v19  ;;  %v8529_v22 = vpop.f32.mrb[79].mxu1 }
 0x184   : > { %v11116_v62 = vadd.f32 %v1053_v12, %v823_v27 }
 0x185   : > { %v822_v21 = vsel %vm807_vm3, %v789_v19, %v790_v14  ;;  %8637 = vmatmul.mubr.msk.bf16.gmra.mrb[184].mxu0 %vm416_vm2, %v10707_v28  ;;  %8747 = vmatmul.mubr.msk.bf16.gmra.mrb[184].mxu1 %vm416_vm2, %v10707_v28 }
 0x186   : > { %v11124_v5 = vadd.f32 %v1056_v17, %v822_v21  ;;  %8640 = vmatprep.mubr.msk.bf16.mxu0 %vm10423_vm1, %v14850_v2  ;;  %8750 = vmatprep.mubr.msk.bf16.mxu1 %vm10423_vm1, %v14850_v2 }
 0x188   : > { %v696_v60 = vpop.f32.mrb[80].mxu0  ;;  %v1061_v12 = vpop.f32.mrb[80].mxu1 }
 0x189   : > { %v791_v49 = vrot.slane %v696_v60, 7  ;;  %v8422_v52 = vpop.f32.mrb[81].mxu0  ;;  %v8532_v48 = vpop.f32.mrb[81].mxu1 }
 0x18a   : > { %v699_v19 = vpop.f32.mrb[82].mxu0  ;;  %v1064_v26 = vpop.f32.mrb[82].mxu1 }
 0x18b   : > { %v792_v27 = vrot.slane %v699_v19, 7  ;;  %v8423_v22 = vpop.f32.mrb[83].mxu0  ;;  %v821_v28 = vsel %vm807_vm3, %v790_v14, %v791_v49  ;;  %v8533_v17 = vpop.f32.mrb[83].mxu1 }
 0x18c   : > { %v11132_v21 = vadd.f32 %v1061_v12, %v821_v28 }
 0x18d   : > { %v820_v45 = vsel %vm807_vm3, %v791_v49, %v792_v27  ;;  %8641 = vmatmul.mubr.msk.bf16.gmra.mrb[188].mxu0 %vm416_vm2, %v10718_v29  ;;  %8751 = vmatmul.mubr.msk.bf16.gmra.mrb[188].mxu1 %vm416_vm2, %v10718_v29 }
 0x18e   : > { %v11140_v60 = vadd.f32 %v1064_v26, %v820_v45  ;;  %8644 = vmatprep.mubr.msk.bf16.mxu0 %vm10423_vm1, %v14850_v2  ;;  %8754 = vmatprep.mubr.msk.bf16.mxu1 %vm10423_vm1, %v14850_v2 }
 0x190   : > { %14887 = vst [vmem:[#allocation2_spill] sm:$0xff] %v11140_v60  ;;  %v704_v14 = vpop.f32.mrb[84].mxu0  ;;  %v1069_v12 = vpop.f32.mrb[84].mxu1 }
 0x191   : > { %v793_v52 = vrot.slane %v704_v14, 7  ;;  %v8426_v48 = vpop.f32.mrb[85].mxu0  ;;  %v8536_v19 = vpop.f32.mrb[85].mxu1 }
 0x192   : > { %v707_v49 = vpop.f32.mrb[86].mxu0  ;;  %v1072_v22 = vpop.f32.mrb[86].mxu1 }
 0x193   : > { %v794_v28 = vrot.slane %v707_v49, 7  ;;  %v8427_v17 = vpop.f32.mrb[87].mxu0  ;;  %v819_v29 = vsel %vm807_vm3, %v792_v27, %v793_v52  ;;  %v8537_v45 = vpop.f32.mrb[87].mxu1 }
 0x194   : > { %v11148_v26 = vadd.f32 %v1069_v12, %v819_v29 }
 0x195   : > { %v818_v60 = vsel %vm807_vm3, %v793_v52, %v794_v28  ;;  %8645 = vmatmul.mubr.msk.bf16.gmra.mrb[192].mxu0 %vm416_vm2, %v10729_v30  ;;  %8755 = vmatmul.mubr.msk.bf16.gmra.mrb[192].mxu1 %vm416_vm2, %v10729_v30 }
 0x196   : > { %v11156_v14 = vadd.f32 %v1072_v22, %v818_v60  ;;  %8648 = vmatprep.mubr.msk.bf16.mxu0 %vm10423_vm1, %v14850_v2  ;;  %8758 = vmatprep.mubr.msk.bf16.mxu1 %vm10423_vm1, %v14850_v2 }
 0x198   : > { %14888 = vst [vmem:[#allocation3_spill] sm:$0xff] %v11156_v14  ;;  %v712_v27 = vpop.f32.mrb[88].mxu0  ;;  %v1077_v12 = vpop.f32.mrb[88].mxu1 }
 0x199   : > { %v795_v48 = vrot.slane %v712_v27, 7  ;;  %v8430_v19 = vpop.f32.mrb[89].mxu0  ;;  %v8540_v49 = vpop.f32.mrb[89].mxu1 }
 0x19a   : > { %v715_v52 = vpop.f32.mrb[90].mxu0  ;;  %v1080_v17 = vpop.f32.mrb[90].mxu1 }
 0x19b   : > { %v796_v29 = vrot.slane %v715_v52, 7  ;;  %v8431_v45 = vpop.f32.mrb[91].mxu0  ;;  %v817_v30 = vsel %vm807_vm3, %v794_v28, %v795_v48  ;;  %v8541_v60 = vpop.f32.mrb[91].mxu1 }
 0x19c   : > { %v11164_v22 = vadd.f32 %v1077_v12, %v817_v30 }
 0x19d   : > { %v816_v14 = vsel %vm807_vm3, %v795_v48, %v796_v29  ;;  %8649 = vmatmul.mubr.msk.bf16.gmra.mrb[196].mxu0 %vm416_vm2, %v10740_v31  ;;  %8759 = vmatmul.mubr.msk.bf16.gmra.mrb[196].mxu1 %vm416_vm2, %v10740_v31 }
 0x19e   : > { %v11172_v27 = vadd.f32 %v1080_v17, %v816_v14  ;;  %8652 = vmatprep.mubr.msk.bf16.mxu0 %vm10423_vm1, %v14850_v2  ;;  %8762 = vmatprep.mubr.msk.bf16.mxu1 %vm10423_vm1, %v14850_v2 }
 0x1a0   : > { %14889 = vst [vmem:[#allocation4_spill] sm:$0xff] %v11172_v27  ;;  %v720_v28 = vpop.f32.mrb[92].mxu0  ;;  %v1085_v12 = vpop.f32.mrb[92].mxu1 }
 0x1a1   : > { %v797_v19 = vrot.slane %v720_v28, 7  ;;  %v8434_v49 = vpop.f32.mrb[93].mxu0  ;;  %v8544_v52 = vpop.f32.mrb[93].mxu1 }
 0x1a2   : > { %v723_v48 = vpop.f32.mrb[94].mxu0  ;;  %v1088_v45 = vpop.f32.mrb[94].mxu1 }
 0x1a3   : > { %v798_v30 = vrot.slane %v723_v48, 7  ;;  %v8435_v60 = vpop.f32.mrb[95].mxu0  ;;  %v815_v31 = vsel %vm807_vm3, %v796_v29, %v797_v19  ;;  %v8545_v14 = vpop.f32.mrb[95].mxu1 }
 0x1a4   : > { %v11180_v17 = vadd.f32 %v1085_v12, %v815_v31 }
 0x1a5   : > { %v814_v27 = vsel %vm807_vm3, %v797_v19, %v798_v30  ;;  %8653 = vmatmul.mubr.msk.bf16.gmra.mrb[200].mxu0 %vm416_vm2, %v10751_v32  ;;  %8763 = vmatmul.mubr.msk.bf16.gmra.mrb[200].mxu1 %vm416_vm2, %v10751_v32 }
 0x1a6   : > { %v11188_v28 = vadd.f32 %v1088_v45, %v814_v27  ;;  %8656 = vmatprep.mubr.msk.bf16.mxu0 %vm10423_vm1, %v14850_v2  ;;  %8766 = vmatprep.mubr.msk.bf16.mxu1 %vm10423_vm1, %v14850_v2 }
 0x1a8   : > { %14890 = vst [vmem:[#allocation5_spill] sm:$0xff] %v11188_v28  ;;  %v728_v29 = vpop.f32.mrb[96].mxu0  ;;  %v1093_v12 = vpop.f32.mrb[96].mxu1 }
 0x1a9   : > { %v8438_v49 = vpop.f32.mrb[97].mxu0  ;;  %v8548_v52 = vpop.f32.mrb[97].mxu1 }
 0x1aa   : > { %v731_v48 = vpop.f32.mrb[98].mxu0  ;;  %v1096_v19 = vpop.f32.mrb[98].mxu1 }
 0x1ab   : > { %v8439_v30 = vpop.f32.mrb[99].mxu0  ;;  %v8549_v60 = vpop.f32.mrb[99].mxu1 }
 0x1ad   : > { %8657 = vmatmul.mubr.msk.bf16.gmra.mrb[204].mxu0 %vm416_vm2, %v10762_v33  ;;  %8767 = vmatmul.mubr.msk.bf16.gmra.mrb[204].mxu1 %vm416_vm2, %v10762_v33 }
 0x1ae   : > { %8660 = vmatprep.mubr.msk.bf16.mxu0 %vm10423_vm1, %v14850_v2  ;;  %8770 = vmatprep.mubr.msk.bf16.mxu1 %vm10423_vm1, %v14850_v2 }
 0x1b0   : > { %v736_v32 = vpop.f32.mrb[100].mxu0  ;;  %v1101_v27 = vpop.f32.mrb[100].mxu1 }
 0x1b1   : > { %v8442_v45 = vpop.f32.mrb[101].mxu0  ;;  %v8552_v31 = vpop.f32.mrb[101].mxu1 }
 0x1b2   : > { %v739_v14 = vpop.f32.mrb[102].mxu0  ;;  %v1104_v29 = vpop.f32.mrb[102].mxu1  ;;  %v14891_v31 = vrot.slane %v10796_v38, 7 }
 0x1b3   : > { %v8443_v12 = vpop.f32.mrb[103].mxu0  ;;  %v8553_v49 = vpop.f32.mrb[103].mxu1 }
 0x1b4   : > { %v7512_v12 = vld [vmem:[%s14844_s1 + $0xc] sm:$0x3] }
 0x1b5   : > { %8661 = vmatmul.mubr.msk.bf16.gmra.mrb[208].mxu0 %vm416_vm2, %v10773_v34  ;;  %8771 = vmatmul.mubr.msk.bf16.gmra.mrb[208].mxu1 %vm416_vm2, %v10773_v34 }
 0x1b6   : > { %8664 = vmatprep.mubr.msk.bf16.mxu0 %vm10423_vm1, %v14850_v2  ;;  %8774 = vmatprep.mubr.msk.bf16.mxu1 %vm10423_vm1, %v14850_v2 }
 0x1b8   : > { %v744_v33 = vpop.f32.mrb[104].mxu0  ;;  %v1109_v52 = vpop.f32.mrb[104].mxu1 }
 0x1b9   : > { %v8446_v48 = vpop.f32.mrb[105].mxu0  ;;  %v8556_v19 = vpop.f32.mrb[105].mxu1 }
 0x1ba   : > { %v747_v30 = vpop.f32.mrb[106].mxu0  ;;  %v1112_v60 = vpop.f32.mrb[106].mxu1 }
 0x1bb   : > { %v804_v32 = vrot.slane %v747_v30, 7  ;;  %v8447_v27 = vpop.f32.mrb[107].mxu0  ;;  %v8557_v45 = vpop.f32.mrb[107].mxu1  ;;  %v2730_v30 = vsel %vm498_vm0, %v7512_v12, 0 }
 0x1bc   : > { %v10357_v27 = vld [vmem:[%s10488_s29] sm:$0xff]  }
 0x1bd   : > { %v861_v34 = vsel %vm807_vm3, %v804_v32, %v14891_v31  ;;  %8665 = vmatmul.mubr.msk.bf16.gmra.mrb[212].mxu0 %vm416_vm2, %v10784_v35  ;;  %8775 = vmatmul.mubr.msk.bf16.gmra.mrb[212].mxu1 %vm416_vm2, %v10784_v35 }
 0x1be   : > { %v1119_v14 = vadd.f32 %v10798_v39, %v861_v34  ;;  %8780 = vmatprep.mubr.msk.bf16.mxu0 %vm10423_vm1, %v14850_v2  ;;  %8890 = vmatprep.mubr.msk.bf16.mxu1 %vm10423_vm1, %v14850_v2 }
 0x1c0   : > { %v1209_v29 = vpop.f32.mrb[108].mxu0  ;;  %v1626_v38 = vpop.f32.mrb[108].mxu1 }
 0x1c1   : > { %v8562_v49 = vpop.f32.mrb[109].mxu0  ;;  %v8672_v33 = vpop.f32.mrb[109].mxu1  ;;  %v1424_v39 = vrot.slane %v1209_v29, 1 }
 0x1c2   : > { %v1212_v52 = vpop.f32.mrb[110].mxu0  ;;  %v1629_v35 = vpop.f32.mrb[110].mxu1 }
 0x1c3   : > { %v1425_v48 = vrot.slane %v1212_v52, 1  ;;  %v8563_v19 = vpop.f32.mrb[111].mxu0  ;;  %v8673_v60 = vpop.f32.mrb[111].mxu1 }
 0x1c5   : > { %v1531_v32 = vsel %vm1478_vm4, %v1424_v39, %v1425_v48  ;;  %8781 = vmatmul.mubr.msk.bf16.vlgmr.msra.gmra.mrb[216].mxu0 %vm416_vm2, %v10357_v27  ;;  %8891 = vmatmul.mubr.msk.bf16.vlgmr.msra.gmra.mrb[216].mxu1 %vm416_vm2, %v10357_v27  ;;  %v10358_v27 = vld [vmem:[%s10488_s29 + $0x8] sm:$0xff]  }
 0x1c6   : > { %8999 = vmatpush3.bf16.msra.mxu0 %v2730_v30  ;;  %8784 = vmatprep.mubr.msk.bf16.mxu0 %vm10423_vm1, %v14850_v2  ;;  %v1536_v45 = vadd.f32 %v1531_v32, %v1119_v14 }
 0x1c7   : > { %8894 = vmatprep.mubr.msk.bf16.mxu1 %vm10423_vm1, %v14850_v2  ;;  %9218 = vmatprep.subr.bf16.mxu0 %v14850_v2 }
 0x1c8   : > { %v1217_v31 = vpop.f32.mrb[112].mxu0  ;;  %v1634_v34 = vpop.f32.mrb[112].mxu1 }
 0x1c9   : > { %v1426_v29 = vrot.slane %v1217_v31, 1  ;;  %v1843_v38 = vrot.slane %v1634_v34, 7  ;;  %v8566_v12 = vpop.f32.mrb[113].mxu0  ;;  %v8676_v49 = vpop.f32.mrb[113].mxu1 }
 0x1ca   : > { %v1220_v33 = vpop.f32.mrb[114].mxu0  ;;  %v1637_v52 = vpop.f32.mrb[114].mxu1 }
 0x1cb   : > { %v1530_v35 = vsel %vm1478_vm4, %v1425_v48, %v1426_v29  ;;  %v1427_v39 = vrot.slane %v1220_v33, 1  ;;  %v1844_v19 = vrot.slane %v1637_v52, 7  ;;  %v8567_v14 = vpop.f32.mrb[115].mxu0  ;;  %v8677_v30 = vpop.f32.mrb[115].mxu1 }
 0x1cc   : > { %v1537_v60 = vadd.f32 %v1530_v35, %v10814_v51 }
 0x1cd   : > { %v1529_v32 = vsel %vm1478_vm4, %v1426_v29, %v1427_v39  ;;  %8785 = vmatmul.mubr.msk.bf16.gmra.mrb[220].mxu0 %vm416_vm2, %v10358_v27  ;;  %8895 = vmatmul.mubr.msk.bf16.gmra.mrb[220].mxu1 %vm416_vm2, %v10358_v27  ;;  %v1945_v31 = vsel %vm807_vm3, %v1843_v38, %v1844_v19 }
 0x1ce   : > { %8788 = vmatprep.mubr.msk.bf16.mxu0 %vm10423_vm1, %v14850_v2  ;;  %8898 = vmatprep.mubr.msk.bf16.mxu1 %vm10423_vm1, %v14850_v2  ;;  %v11252_v48 = vadd.f32 %v1945_v31, %v1536_v45  ;;  %v1538_v51 = vadd.f32 %v1529_v32, %v10823_v63 }
 0x1d0   : > { %v1225_v34 = vpop.f32.mrb[116].mxu0  ;;  %v1642_v29 = vpop.f32.mrb[116].mxu1 }
 0x1d1   : > { %v1428_v12 = vrot.slane %v1225_v34, 1  ;;  %v1845_v49 = vrot.slane %v1642_v29, 7  ;;  %v8570_v33 = vpop.f32.mrb[117].mxu0  ;;  %v8680_v52 = vpop.f32.mrb[117].mxu1  ;;  %v10359_v34 = vld [vmem:[%s10488_s29 + $0x10] sm:$0xff]  }
 0x1d2   : > { %v1228_v35 = vpop.f32.mrb[118].mxu0  ;;  %v1645_v14 = vpop.f32.mrb[118].mxu1 }
 0x1d3   : > { %v1528_v38 = vsel %vm1478_vm4, %v1427_v39, %v1428_v12  ;;  %v1429_v30 = vrot.slane %v1228_v35, 1  ;;  %v1846_v27 = vrot.slane %v1645_v14, 7  ;;  %v8571_v28 = vpop.f32.mrb[119].mxu0  ;;  %v8681_v2 = vpop.f32.mrb[119].mxu1  ;;  %v1944_v45 = vsel %vm807_vm3, %v1844_v19, %v1845_v49 }
 0x1d4   : > { %v11259_v63 = vadd.f32 %v1944_v45, %v1537_v60  ;;  %v1539_v32 = vadd.f32 %v1528_v38, %v10831_v1  ;;  %v14893_v28 = vmov 0.0  }
 0x1d5   : > { %v1527_v31 = vsel %vm1478_vm4, %v1428_v12, %v1429_v30  ;;  %8789 = vmatmul.mubr.msk.bf16.gmra.mrb[224].mxu0 %vm416_vm2, %v10359_v34  ;;  %8899 = vmatmul.mubr.msk.bf16.gmra.mrb[224].mxu1 %vm416_vm2, %v10359_v34  ;;  %v1943_v39 = vsel %vm807_vm3, %v1845_v49, %v1846_v27 }
 0x1d6   : > { %14892 = vst [vmem:[#allocation6_spill] sm:$0xff] %v11259_v63  ;;  %8792 = vmatprep.mubr.msk.bf16.mxu0 %vm10423_vm1, %v14893_v28  ;;  %8902 = vmatprep.mubr.msk.bf16.mxu1 %vm10423_vm1, %v14893_v28  ;;  %v11273_v2 = vadd.f32 %v1943_v39, %v1538_v51  ;;  %v1540_v1 = vadd.f32 %v1527_v31, %v10839_v42 }
 0x1d8   : > { %v1233_v19 = vpop.f32.mrb[120].mxu0  ;;  %v1650_v60 = vpop.f32.mrb[120].mxu1 }
 0x1d9   : > { %v1430_v29 = vrot.slane %v1233_v19, 1  ;;  %v1847_v12 = vrot.slane %v1650_v60, 7  ;;  %v8574_v33 = vpop.f32.mrb[121].mxu0  ;;  %v8684_v52 = vpop.f32.mrb[121].mxu1  ;;  %v10360_v19 = vld [vmem:[%s10488_s29 + $0x18] sm:$0xff]  }
 0x1da   : > { %v1236_v35 = vpop.f32.mrb[122].mxu0  ;;  %v1653_v14 = vpop.f32.mrb[122].mxu1 }
 0x1db   : > { %v1526_v49 = vsel %vm1478_vm4, %v1429_v30, %v1430_v29  ;;  %v1431_v38 = vrot.slane %v1236_v35, 1  ;;  %v1848_v45 = vrot.slane %v1653_v14, 7  ;;  %v8575_v34 = vpop.f32.mrb[123].mxu0  ;;  %v8685_v63 = vpop.f32.mrb[123].mxu1  ;;  %v1942_v51 = vsel %vm807_vm3, %v1846_v27, %v1847_v12 }
 0x1dc   : > { %v11280_v42 = vadd.f32 %v1942_v51, %v1539_v32  ;;  %v1541_v31 = vadd.f32 %v1526_v49, %v10847_v44 }
 0x1dd   : > { %v1525_v39 = vsel %vm1478_vm4, %v1430_v29, %v1431_v38  ;;  %8793 = vmatmul.mubr.msk.bf16.gmra.mrb[228].mxu0 %vm416_vm2, %v10360_v19  ;;  %8903 = vmatmul.mubr.msk.bf16.gmra.mrb[228].mxu1 %vm416_vm2, %v10360_v19  ;;  %v1941_v30 = vsel %vm807_vm3, %v1847_v12, %v1848_v45 }
 0x1de   : > { %8796 = vmatprep.mubr.msk.bf16.mxu0 %vm10423_vm1, %v14893_v28  ;;  %8906 = vmatprep.mubr.msk.bf16.mxu1 %vm10423_vm1, %v14893_v28  ;;  %v11294_v27 = vadd.f32 %v1941_v30, %v1540_v1  ;;  %v1542_v44 = vadd.f32 %v1525_v39, %v10855_v57 }
 0x1e0   : > { %v1241_v63 = vpop.f32.mrb[124].mxu0  ;;  %v1658_v32 = vpop.f32.mrb[124].mxu1 }
 0x1e1   : > { %v1432_v60 = vrot.slane %v1241_v63, 1  ;;  %v1849_v29 = vrot.slane %v1658_v32, 7  ;;  %v8578_v33 = vpop.f32.mrb[125].mxu0  ;;  %v8688_v52 = vpop.f32.mrb[125].mxu1  ;;  %v10361_v63 = vld [vmem:[%s10488_s29 + $0x20] sm:$0xff]  }
 0x1e2   : > { %v1244_v35 = vpop.f32.mrb[126].mxu0  ;;  %v1661_v14 = vpop.f32.mrb[126].mxu1 }
 0x1e3   : > { %v1524_v12 = vsel %vm1478_vm4, %v1431_v38, %v1432_v60  ;;  %v1433_v49 = vrot.slane %v1244_v35, 1  ;;  %v1850_v34 = vrot.slane %v1661_v14, 7  ;;  %v8579_v51 = vpop.f32.mrb[127].mxu0  ;;  %v8689_v19 = vpop.f32.mrb[127].mxu1  ;;  %v1940_v1 = vsel %vm807_vm3, %v1848_v45, %v1849_v29 }
 0x1e4   : > { %v11301_v57 = vadd.f32 %v1940_v1, %v1541_v31  ;;  %v1543_v39 = vadd.f32 %v1524_v12, %v10863_v59 }
 0x1e5   : > { %v1523_v30 = vsel %vm1478_vm4, %v1432_v60, %v1433_v49  ;;  %8797 = vmatmul.mubr.msk.bf16.gmra.mrb[232].mxu0 %vm416_vm2, %v10361_v63  ;;  %8907 = vmatmul.mubr.msk.bf16.gmra.mrb[232].mxu1 %vm416_vm2, %v10361_v63  ;;  %v1939_v38 = vsel %vm807_vm3, %v1849_v29, %v1850_v34 }
 0x1e6   : > { %8800 = vmatprep.mubr.msk.bf16.mxu0 %vm10423_vm1, %v14893_v28  ;;  %8910 = vmatprep.mubr.msk.bf16.mxu1 %vm10423_vm1, %v14893_v28  ;;  %v11315_v45 = vadd.f32 %v1939_v38, %v1542_v44  ;;  %v1544_v59 = vadd.f32 %v1523_v30, %v10871_v20 }
 0x1e8   : > { %v1249_v31 = vpop.f32.mrb[128].mxu0  ;;  %v1666_v32 = vpop.f32.mrb[128].mxu1 }
 0x1e9   : > { %v1434_v60 = vrot.slane %v1249_v31, 1  ;;  %v1851_v33 = vrot.slane %v1666_v32, 7  ;;  %v8582_v52 = vpop.f32.mrb[129].mxu0  ;;  %v8692_v35 = vpop.f32.mrb[129].mxu1  ;;  %v10362_v31 = vld [vmem:[%s10488_s29 + $0x28] sm:$0xff]  }
 0x1ea   : > { %v1252_v14 = vpop.f32.mrb[130].mxu0  ;;  %v1669_v12 = vpop.f32.mrb[130].mxu1 }
 0x1eb   : > { %v1522_v29 = vsel %vm1478_vm4, %v1433_v49, %v1434_v60  ;;  %v1435_v51 = vrot.slane %v1252_v14, 1  ;;  %v1852_v19 = vrot.slane %v1669_v12, 7  ;;  %v8583_v1 = vpop.f32.mrb[131].mxu0  ;;  %v8693_v63 = vpop.f32.mrb[131].mxu1  ;;  %v1938_v44 = vsel %vm807_vm3, %v1850_v34, %v1851_v33 }
 0x1ec   : > { %v11322_v20 = vadd.f32 %v1938_v44, %v1543_v39  ;;  %v1545_v30 = vadd.f32 %v1522_v29, %v10879_v40 }
 0x1ed   : > { %v1521_v38 = vsel %vm1478_vm4, %v1434_v60, %v1435_v51  ;;  %8801 = vmatmul.mubr.msk.bf16.gmra.mrb[236].mxu0 %vm416_vm2, %v10362_v31  ;;  %8911 = vmatmul.mubr.msk.bf16.gmra.mrb[236].mxu1 %vm416_vm2, %v10362_v31  ;;  %v1937_v49 = vsel %vm807_vm3, %v1851_v33, %v1852_v19 }
 0x1ee   : > { %8804 = vmatprep.mubr.msk.bf16.mxu0 %vm10423_vm1, %v14893_v28  ;;  %8914 = vmatprep.mubr.msk.bf16.mxu1 %vm10423_vm1, %v14893_v28  ;;  %v11336_v34 = vadd.f32 %v1937_v49, %v1544_v59  ;;  %v1546_v40 = vadd.f32 %v1521_v38, %v10887_v54 }
 0x1f0   : > { %v1257_v39 = vpop.f32.mrb[132].mxu0  ;;  %v1674_v32 = vpop.f32.mrb[132].mxu1 }
 0x1f1   : > { %v1436_v60 = vrot.slane %v1257_v39, 1  ;;  %v1853_v52 = vrot.slane %v1674_v32, 7  ;;  %v8586_v35 = vpop.f32.mrb[133].mxu0  ;;  %v8696_v14 = vpop.f32.mrb[133].mxu1  ;;  %v10363_v39 = vld [vmem:[%s10488_s29 + $0x30] sm:$0xff]  }
 0x1f2   : > { %v1260_v12 = vpop.f32.mrb[134].mxu0  ;;  %v1677_v29 = vpop.f32.mrb[134].mxu1 }
 0x1f3   : > { %v1520_v33 = vsel %vm1478_vm4, %v1435_v51, %v1436_v60  ;;  %v1437_v1 = vrot.slane %v1260_v12, 1  ;;  %v1854_v63 = vrot.slane %v1677_v29, 7  ;;  %v8587_v44 = vpop.f32.mrb[135].mxu0  ;;  %v8697_v31 = vpop.f32.mrb[135].mxu1  ;;  %v1936_v59 = vsel %vm807_vm3, %v1852_v19, %v1853_v52 }
 0x1f4   : > { %v11343_v54 = vadd.f32 %v1936_v59, %v1545_v30  ;;  %v1547_v38 = vadd.f32 %v1520_v33, %v10895_v9 }
 0x1f5   : > { %v1519_v49 = vsel %vm1478_vm4, %v1436_v60, %v1437_v1  ;;  %8805 = vmatmul.mubr.msk.bf16.gmra.mrb[240].mxu0 %vm416_vm2, %v10363_v39  ;;  %8915 = vmatmul.mubr.msk.bf16.gmra.mrb[240].mxu1 %vm416_vm2, %v10363_v39  ;;  %v1935_v51 = vsel %vm807_vm3, %v1853_v52, %v1854_v63 }
 0x1f6   : > { %8808 = vmatprep.mubr.msk.bf16.mxu0 %vm10423_vm1, %v14893_v28  ;;  %8918 = vmatprep.mubr.msk.bf16.mxu1 %vm10423_vm1, %v14893_v28  ;;  %v11357_v19 = vadd.f32 %v1935_v51, %v1546_v40  ;;  %v1548_v9 = vadd.f32 %v1519_v49, %v10903_v7 }
 0x1f8   : > { %v1265_v30 = vpop.f32.mrb[136].mxu0  ;;  %v1682_v32 = vpop.f32.mrb[136].mxu1 }
 0x1f9   : > { %v1438_v60 = vrot.slane %v1265_v30, 1  ;;  %v1855_v35 = vrot.slane %v1682_v32, 7  ;;  %v8590_v14 = vpop.f32.mrb[137].mxu0  ;;  %v8700_v12 = vpop.f32.mrb[137].mxu1  ;;  %v10364_v30 = vld [vmem:[%s10488_s29 + $0x38] sm:$0xff]  }
 0x1fa   : > { %v1268_v29 = vpop.f32.mrb[138].mxu0  ;;  %v1685_v33 = vpop.f32.mrb[138].mxu1 }
 0x1fb   : > { %v1518_v52 = vsel %vm1478_vm4, %v1437_v1, %v1438_v60  ;;  %v1439_v44 = vrot.slane %v1268_v29, 1  ;;  %v1856_v31 = vrot.slane %v1685_v33, 7  ;;  %v8591_v59 = vpop.f32.mrb[139].mxu0  ;;  %v8701_v39 = vpop.f32.mrb[139].mxu1  ;;  %v1934_v40 = vsel %vm807_vm3, %v1854_v63, %v1855_v35 }
 0x1fc   : > { %v11364_v7 = vadd.f32 %v1934_v40, %v1547_v38  ;;  %v1549_v49 = vadd.f32 %v1518_v52, %v10911_v18 }
 0x1fd   : > { %v1517_v51 = vsel %vm1478_vm4, %v1438_v60, %v1439_v44  ;;  %8809 = vmatmul.mubr.msk.bf16.gmra.mrb[244].mxu0 %vm416_vm2, %v10364_v30  ;;  %8919 = vmatmul.mubr.msk.bf16.gmra.mrb[244].mxu1 %vm416_vm2, %v10364_v30  ;;  %v1933_v1 = vsel %vm807_vm3, %v1855_v35, %v1856_v31 }
 0x1fe   : > { %8812 = vmatprep.mubr.msk.bf16.mxu0 %vm10423_vm1, %v14893_v28  ;;  %8922 = vmatprep.mubr.msk.bf16.mxu1 %vm10423_vm1, %v14893_v28  ;;  %v11378_v63 = vadd.f32 %v1933_v1, %v1548_v9  ;;  %v1550_v18 = vadd.f32 %v1517_v51, %v10919_v11 }
 0x200   : > { %v1273_v38 = vpop.f32.mrb[140].mxu0  ;;  %v1690_v32 = vpop.f32.mrb[140].mxu1 }
 0x201   : > { %v1440_v60 = vrot.slane %v1273_v38, 1  ;;  %v1857_v14 = vrot.slane %v1690_v32, 7  ;;  %v8594_v12 = vpop.f32.mrb[141].mxu0  ;;  %v8704_v29 = vpop.f32.mrb[141].mxu1  ;;  %v10365_v38 = vld [vmem:[%s10488_s29 + $0x40] sm:$0xff]  }
 0x202   : > { %v1276_v33 = vpop.f32.mrb[142].mxu0  ;;  %v1693_v52 = vpop.f32.mrb[142].mxu1 }
 0x203   : > { %v1516_v35 = vsel %vm1478_vm4, %v1439_v44, %v1440_v60  ;;  %v1441_v59 = vrot.slane %v1276_v33, 1  ;;  %v1858_v39 = vrot.slane %v1693_v52, 7  ;;  %v8595_v40 = vpop.f32.mrb[143].mxu0  ;;  %v8705_v30 = vpop.f32.mrb[143].mxu1  ;;  %v1932_v9 = vsel %vm807_vm3, %v1856_v31, %v1857_v14 }
 0x204   : > { %v11385_v11 = vadd.f32 %v1932_v9, %v1549_v49  ;;  %v1551_v51 = vadd.f32 %v1516_v35, %v10927_v55 }
 0x205   : > { %v1515_v1 = vsel %vm1478_vm4, %v1440_v60, %v1441_v59  ;;  %8813 = vmatmul.mubr.msk.bf16.gmra.mrb[248].mxu0 %vm416_vm2, %v10365_v38  ;;  %8923 = vmatmul.mubr.msk.bf16.gmra.mrb[248].mxu1 %vm416_vm2, %v10365_v38  ;;  %v1931_v44 = vsel %vm807_vm3, %v1857_v14, %v1858_v39 }
 0x206   : > { %8816 = vmatprep.mubr.msk.bf16.mxu0 %vm10423_vm1, %v14893_v28  ;;  %8926 = vmatprep.mubr.msk.bf16.mxu1 %vm10423_vm1, %v14893_v28  ;;  %v11399_v31 = vadd.f32 %v1931_v44, %v1550_v18  ;;  %v1552_v55 = vadd.f32 %v1515_v1, %v10935_v6 }
 0x208   : > { %v1281_v49 = vpop.f32.mrb[144].mxu0  ;;  %v1698_v32 = vpop.f32.mrb[144].mxu1 }
 0x209   : > { %v1442_v60 = vrot.slane %v1281_v49, 1  ;;  %v1859_v12 = vrot.slane %v1698_v32, 7  ;;  %v8598_v29 = vpop.f32.mrb[145].mxu0  ;;  %v8708_v33 = vpop.f32.mrb[145].mxu1  ;;  %v10366_v49 = vld [vmem:[%s10488_s29 + $0x48] sm:$0xff]  }
 0x20a   : > { %v1284_v52 = vpop.f32.mrb[146].mxu0  ;;  %v1701_v35 = vpop.f32.mrb[146].mxu1 }
 0x20b   : > { %v1514_v14 = vsel %vm1478_vm4, %v1441_v59, %v1442_v60  ;;  %v1443_v40 = vrot.slane %v1284_v52, 1  ;;  %v1860_v30 = vrot.slane %v1701_v35, 7  ;;  %v8599_v9 = vpop.f32.mrb[147].mxu0  ;;  %v8709_v38 = vpop.f32.mrb[147].mxu1  ;;  %v1930_v18 = vsel %vm807_vm3, %v1858_v39, %v1859_v12 }
 0x20c   : > { %v11406_v6 = vadd.f32 %v1930_v18, %v1551_v51  ;;  %v1553_v1 = vadd.f32 %v1514_v14, %v10943_v36 }
 0x20d   : > { %v1513_v44 = vsel %vm1478_vm4, %v1442_v60, %v1443_v40  ;;  %8817 = vmatmul.mubr.msk.bf16.gmra.mrb[252].mxu0 %vm416_vm2, %v10366_v49  ;;  %8927 = vmatmul.mubr.msk.bf16.gmra.mrb[252].mxu1 %vm416_vm2, %v10366_v49  ;;  %v1929_v59 = vsel %vm807_vm3, %v1859_v12, %v1860_v30 }
 0x20e   : > { %8820 = vmatprep.mubr.msk.bf16.mxu0 %vm10423_vm1, %v14893_v28  ;;  %8930 = vmatprep.mubr.msk.bf16.mxu1 %vm10423_vm1, %v14893_v28  ;;  %v11420_v39 = vadd.f32 %v1929_v59, %v1552_v55  ;;  %v1554_v36 = vadd.f32 %v1513_v44, %v10951_v53 }
 0x210   : > { %v1289_v51 = vpop.f32.mrb[148].mxu0  ;;  %v1706_v32 = vpop.f32.mrb[148].mxu1 }
 0x211   : > { %v1444_v60 = vrot.slane %v1289_v51, 1  ;;  %v1861_v29 = vrot.slane %v1706_v32, 7  ;;  %v8602_v33 = vpop.f32.mrb[149].mxu0  ;;  %v8712_v52 = vpop.f32.mrb[149].mxu1  ;;  %v10367_v51 = vld [vmem:[%s10488_s29 + $0x50] sm:$0xff]  }
 0x212   : > { %v1292_v35 = vpop.f32.mrb[150].mxu0  ;;  %v1709_v14 = vpop.f32.mrb[150].mxu1 }
 0x213   : > { %v1512_v12 = vsel %vm1478_vm4, %v1443_v40, %v1444_v60  ;;  %v1445_v9 = vrot.slane %v1292_v35, 1  ;;  %v1862_v38 = vrot.slane %v1709_v14, 7  ;;  %v8603_v18 = vpop.f32.mrb[151].mxu0  ;;  %v8713_v49 = vpop.f32.mrb[151].mxu1  ;;  %v1928_v55 = vsel %vm807_vm3, %v1860_v30, %v1861_v29 }
 0x214   : > { %v11427_v53 = vadd.f32 %v1928_v55, %v1553_v1  ;;  %v1555_v44 = vadd.f32 %v1512_v12, %v10959_v58 }
 0x215   : > { %v1511_v59 = vsel %vm1478_vm4, %v1444_v60, %v1445_v9  ;;  %8821 = vmatmul.mubr.msk.bf16.gmra.mrb[0].mxu0 %vm416_vm2, %v10367_v51  ;;  %8931 = vmatmul.mubr.msk.bf16.gmra.mrb[0].mxu1 %vm416_vm2, %v10367_v51  ;;  %v1927_v40 = vsel %vm807_vm3, %v1861_v29, %v1862_v38 }
 0x216   : > { %8824 = vmatprep.mubr.msk.bf16.mxu0 %vm10423_vm1, %v14893_v28  ;;  %8934 = vmatprep.mubr.msk.bf16.mxu1 %vm10423_vm1, %v14893_v28  ;;  %v11441_v30 = vadd.f32 %v1927_v40, %v1554_v36  ;;  %v1556_v58 = vadd.f32 %v1511_v59, %v10967_v8 }
 0x218   : > { %v1297_v1 = vpop.f32.mrb[152].mxu0  ;;  %v1714_v32 = vpop.f32.mrb[152].mxu1 }
 0x219   : > { %v1446_v60 = vrot.slane %v1297_v1, 1  ;;  %v1863_v33 = vrot.slane %v1714_v32, 7  ;;  %v8606_v52 = vpop.f32.mrb[153].mxu0  ;;  %v8716_v35 = vpop.f32.mrb[153].mxu1  ;;  %v10368_v1 = vld [vmem:[%s10488_s29 + $0x58] sm:$0xff]  }
 0x21a   : > { %v1300_v14 = vpop.f32.mrb[154].mxu0  ;;  %v1717_v12 = vpop.f32.mrb[154].mxu1 }
 0x21b   : > { %v1510_v29 = vsel %vm1478_vm4, %v1445_v9, %v1446_v60  ;;  %v1447_v18 = vrot.slane %v1300_v14, 1  ;;  %v1864_v49 = vrot.slane %v1717_v12, 7  ;;  %v8607_v55 = vpop.f32.mrb[155].mxu0  ;;  %v8717_v51 = vpop.f32.mrb[155].mxu1  ;;  %v1926_v36 = vsel %vm807_vm3, %v1862_v38, %v1863_v33  ;;  %v7540_v9 = vld [vmem:[%s14844_s1 + $0xe] sm:$0x3] }
 0x21c   : > { %v11448_v8 = vadd.f32 %v1926_v36, %v1555_v44  ;;  %v1557_v59 = vadd.f32 %v1510_v29, %v10975_v43  ;;  %v3146_v43 = vsel %vm498_vm0, %v7540_v9, 0 }
 0x21d   : > { %v1509_v40 = vsel %vm1478_vm4, %v1446_v60, %v1447_v18  ;;  %8825 = vmatmul.mubr.msk.bf16.gmra.mrb[4].mxu0 %vm416_vm2, %v10368_v1  ;;  %8935 = vmatmul.mubr.msk.bf16.gmra.mrb[4].mxu1 %vm416_vm2, %v10368_v1  ;;  %v1925_v32 = vsel %vm807_vm3, %v1863_v33, %v1864_v49 }
 0x21e   : > { %8828 = vmatprep.mubr.msk.bf16.mxu0 %vm10423_vm1, %v14893_v28  ;;  %8938 = vmatprep.mubr.msk.bf16.mxu1 %vm10423_vm1, %v14893_v28  ;;  %v11466_v38 = vadd.f32 %v1925_v32, %v1556_v58  ;;  %v1558_v44 = vadd.f32 %v1509_v40, %v10988_v0 }
 0x21f   : > { %9109 = vmatpush3.bf16.msra.mxu1 %v3146_v43 }
 0x220   : > { %v1305_v60 = vpop.f32.mrb[156].mxu0  ;;  %v1722_v52 = vpop.f32.mrb[156].mxu1  ;;  %9328 = vmatprep.subr.bf16.mxu1 %v14893_v28 }
 0x221   : > { %v1448_v35 = vrot.slane %v1305_v60, 1  ;;  %v1865_v33 = vrot.slane %v1722_v52, 7  ;;  %v8610_v14 = vpop.f32.mrb[157].mxu0  ;;  %v8720_v12 = vpop.f32.mrb[157].mxu1  ;;  %v10369_v60 = vld [vmem:[%s10488_s29 + $0x60] sm:$0xff]  }
 0x222   : > { %v1308_v29 = vpop.f32.mrb[158].mxu0  ;;  %v1725_v55 = vpop.f32.mrb[158].mxu1 }
 0x223   : > { %v1508_v51 = vsel %vm1478_vm4, %v1447_v18, %v1448_v35  ;;  %v1449_v36 = vrot.slane %v1308_v29, 1  ;;  %v1866_v58 = vrot.slane %v1725_v55, 7  ;;  %v8611_v1 = vpop.f32.mrb[159].mxu0  ;;  %v8721_v9 = vpop.f32.mrb[159].mxu1  ;;  %v1924_v0 = vsel %vm807_vm3, %v1864_v49, %v1865_v33 }
 0x224   : > { %v11474_v40 = vadd.f32 %v1924_v0, %v1557_v59  ;;  %v1559_v32 = vadd.f32 %v1508_v51, %v10996_v4 }
 0x225   : > { %v1507_v43 = vsel %vm1478_vm4, %v1448_v35, %v1449_v36  ;;  %8829 = vmatmul.mubr.msk.bf16.gmra.mrb[8].mxu0 %vm416_vm2, %v10369_v60  ;;  %8939 = vmatmul.mubr.msk.bf16.gmra.mrb[8].mxu1 %vm416_vm2, %v10369_v60  ;;  %v1923_v18 = vsel %vm807_vm3, %v1865_v33, %v1866_v58 }
 0x226   : > { %8832 = vmatprep.mubr.msk.bf16.mxu0 %vm10423_vm1, %v14893_v28  ;;  %8942 = vmatprep.mubr.msk.bf16.mxu1 %vm10423_vm1, %v14893_v28  ;;  %v11488_v49 = vadd.f32 %v1923_v18, %v1558_v44  ;;  %v1560_v4 = vadd.f32 %v1507_v43, %v11004_v50 }
 0x228   : > { %v1313_v59 = vpop.f32.mrb[160].mxu0  ;;  %v1730_v52 = vpop.f32.mrb[160].mxu1 }
 0x229   : > { %v1450_v35 = vrot.slane %v1313_v59, 1  ;;  %v1867_v14 = vrot.slane %v1730_v52, 7  ;;  %v8614_v12 = vpop.f32.mrb[161].mxu0  ;;  %v8724_v29 = vpop.f32.mrb[161].mxu1  ;;  %v10370_v59 = vld [vmem:[%s10488_s29 + $0x68] sm:$0xff]  }
 0x22a   : > { %v1316_v55 = vpop.f32.mrb[162].mxu0  ;;  %v1733_v51 = vpop.f32.mrb[162].mxu1 }
 0x22b   : > { %v1506_v33 = vsel %vm1478_vm4, %v1449_v36, %v1450_v35  ;;  %v1451_v1 = vrot.slane %v1316_v55, 1  ;;  %v1868_v9 = vrot.slane %v1733_v51, 7  ;;  %v8615_v0 = vpop.f32.mrb[163].mxu0  ;;  %v8725_v60 = vpop.f32.mrb[163].mxu1  ;;  %v1922_v44 = vsel %vm807_vm3, %v1866_v58, %v1867_v14 }
 0x22c   : > { %v11495_v50 = vadd.f32 %v1922_v44, %v1559_v32  ;;  %v1561_v43 = vadd.f32 %v1506_v33, %v11012_v15 }
 0x22d   : > { %v1505_v18 = vsel %vm1478_vm4, %v1450_v35, %v1451_v1  ;;  %8833 = vmatmul.mubr.msk.bf16.gmra.mrb[12].mxu0 %vm416_vm2, %v10370_v59  ;;  %8943 = vmatmul.mubr.msk.bf16.gmra.mrb[12].mxu1 %vm416_vm2, %v10370_v59  ;;  %v1921_v36 = vsel %vm807_vm3, %v1867_v14, %v1868_v9 }
 0x22e   : > { %8836 = vmatprep.mubr.msk.bf16.mxu0 %vm10423_vm1, %v14893_v28  ;;  %8946 = vmatprep.mubr.msk.bf16.mxu1 %vm10423_vm1, %v14893_v28  ;;  %v11509_v58 = vadd.f32 %v1921_v36, %v1560_v4  ;;  %v1562_v15 = vadd.f32 %v1505_v18, %v11020_v16 }
 0x230   : > { %v1321_v32 = vpop.f32.mrb[164].mxu0  ;;  %v1738_v52 = vpop.f32.mrb[164].mxu1 }
 0x231   : > { %v1452_v35 = vrot.slane %v1321_v32, 1  ;;  %v1869_v12 = vrot.slane %v1738_v52, 7  ;;  %v8618_v29 = vpop.f32.mrb[165].mxu0  ;;  %v8728_v55 = vpop.f32.mrb[165].mxu1  ;;  %v10371_v32 = vld [vmem:[%s10488_s29 + $0x70] sm:$0xff]  }
 0x232   : > { %v1324_v51 = vpop.f32.mrb[166].mxu0  ;;  %v1741_v33 = vpop.f32.mrb[166].mxu1 }
 0x233   : > { %v1504_v14 = vsel %vm1478_vm4, %v1451_v1, %v1452_v35  ;;  %v1453_v0 = vrot.slane %v1324_v51, 1  ;;  %v1870_v60 = vrot.slane %v1741_v33, 7  ;;  %v8619_v44 = vpop.f32.mrb[167].mxu0  ;;  %v8729_v59 = vpop.f32.mrb[167].mxu1  ;;  %v1920_v4 = vsel %vm807_vm3, %v1868_v9, %v1869_v12 }
 0x234   : > { %v11516_v16 = vadd.f32 %v1920_v4, %v1561_v43  ;;  %v1563_v18 = vadd.f32 %v1504_v14, %v11028_v41 }
 0x235   : > { %v1503_v36 = vsel %vm1478_vm4, %v1452_v35, %v1453_v0  ;;  %8837 = vmatmul.mubr.msk.bf16.gmra.mrb[16].mxu0 %vm416_vm2, %v10371_v32  ;;  %8947 = vmatmul.mubr.msk.bf16.gmra.mrb[16].mxu1 %vm416_vm2, %v10371_v32  ;;  %v1919_v1 = vsel %vm807_vm3, %v1869_v12, %v1870_v60 }
 0x236   : > { %8840 = vmatprep.mubr.msk.bf16.mxu0 %vm10423_vm1, %v14893_v28  ;;  %8950 = vmatprep.mubr.msk.bf16.mxu1 %vm10423_vm1, %v14893_v28  ;;  %v11530_v9 = vadd.f32 %v1919_v1, %v1562_v15  ;;  %v1564_v41 = vadd.f32 %v1503_v36, %v11036_v61 }
 0x238   : > { %v1329_v43 = vpop.f32.mrb[168].mxu0  ;;  %v1746_v52 = vpop.f32.mrb[168].mxu1 }
 0x239   : > { %v1454_v35 = vrot.slane %v1329_v43, 1  ;;  %v1871_v29 = vrot.slane %v1746_v52, 7  ;;  %v8622_v55 = vpop.f32.mrb[169].mxu0  ;;  %v8732_v51 = vpop.f32.mrb[169].mxu1  ;;  %v10372_v43 = vld [vmem:[%s10488_s29 + $0x78] sm:$0xff]  }
 0x23a   : > { %v1332_v33 = vpop.f32.mrb[170].mxu0  ;;  %v1749_v14 = vpop.f32.mrb[170].mxu1 }
 0x23b   : > { %v1502_v12 = vsel %vm1478_vm4, %v1453_v0, %v1454_v35  ;;  %v1455_v44 = vrot.slane %v1332_v33, 1  ;;  %v1872_v59 = vrot.slane %v1749_v14, 7  ;;  %v8623_v4 = vpop.f32.mrb[171].mxu0  ;;  %v8733_v32 = vpop.f32.mrb[171].mxu1  ;;  %v1918_v15 = vsel %vm807_vm3, %v1870_v60, %v1871_v29 }
 0x23c   : > { %v11537_v61 = vadd.f32 %v1918_v15, %v1563_v18  ;;  %v1565_v36 = vadd.f32 %v1502_v12, %v11044_v3 }
 0x23d   : > { %v1501_v1 = vsel %vm1478_vm4, %v1454_v35, %v1455_v44  ;;  %8841 = vmatmul.mubr.msk.bf16.gmra.mrb[20].mxu0 %vm416_vm2, %v10372_v43  ;;  %8951 = vmatmul.mubr.msk.bf16.gmra.mrb[20].mxu1 %vm416_vm2, %v10372_v43  ;;  %v1917_v0 = vsel %vm807_vm3, %v1871_v29, %v1872_v59 }
 0x23e   : > { %8844 = vmatprep.mubr.msk.bf16.mxu0 %vm10423_vm1, %v14893_v28  ;;  %8954 = vmatprep.mubr.msk.bf16.mxu1 %vm10423_vm1, %v14893_v28  ;;  %v11551_v60 = vadd.f32 %v1917_v0, %v1564_v41  ;;  %v1566_v3 = vadd.f32 %v1501_v1, %v11052_v13 }
 0x240   : > { %v1337_v18 = vpop.f32.mrb[172].mxu0  ;;  %v1754_v52 = vpop.f32.mrb[172].mxu1 }
 0x241   : > { %v1456_v35 = vrot.slane %v1337_v18, 1  ;;  %v1873_v55 = vrot.slane %v1754_v52, 7  ;;  %v8626_v51 = vpop.f32.mrb[173].mxu0  ;;  %v8736_v33 = vpop.f32.mrb[173].mxu1  ;;  %v10373_v18 = vld [vmem:[%s10488_s29 + $0x80] sm:$0xff]  }
 0x242   : > { %v1340_v14 = vpop.f32.mrb[174].mxu0  ;;  %v1757_v12 = vpop.f32.mrb[174].mxu1 }
 0x243   : > { %v1500_v29 = vsel %vm1478_vm4, %v1455_v44, %v1456_v35  ;;  %v1457_v4 = vrot.slane %v1340_v14, 1  ;;  %v1874_v32 = vrot.slane %v1757_v12, 7  ;;  %v8627_v15 = vpop.f32.mrb[175].mxu0  ;;  %v8737_v43 = vpop.f32.mrb[175].mxu1  ;;  %v1916_v41 = vsel %vm807_vm3, %v1872_v59, %v1873_v55 }
 0x244   : > { %v11558_v13 = vadd.f32 %v1916_v41, %v1565_v36  ;;  %v1567_v1 = vadd.f32 %v1500_v29, %v11060_v56 }
 0x245   : > { %v1499_v0 = vsel %vm1478_vm4, %v1456_v35, %v1457_v4  ;;  %8845 = vmatmul.mubr.msk.bf16.gmra.mrb[24].mxu0 %vm416_vm2, %v10373_v18  ;;  %8955 = vmatmul.mubr.msk.bf16.gmra.mrb[24].mxu1 %vm416_vm2, %v10373_v18  ;;  %v1915_v44 = vsel %vm807_vm3, %v1873_v55, %v1874_v32 }
 0x246   : > { %8848 = vmatprep.mubr.msk.bf16.mxu0 %vm10423_vm1, %v14893_v28  ;;  %8958 = vmatprep.mubr.msk.bf16.mxu1 %vm10423_vm1, %v14893_v28  ;;  %v11572_v59 = vadd.f32 %v1915_v44, %v1566_v3  ;;  %v1568_v56 = vadd.f32 %v1499_v0, %v11068_v47 }
 0x248   : > { %v1345_v36 = vpop.f32.mrb[176].mxu0  ;;  %v1762_v52 = vpop.f32.mrb[176].mxu1 }
 0x249   : > { %v1458_v35 = vrot.slane %v1345_v36, 1  ;;  %v1875_v51 = vrot.slane %v1762_v52, 7  ;;  %v8630_v33 = vpop.f32.mrb[177].mxu0  ;;  %v8740_v14 = vpop.f32.mrb[177].mxu1  ;;  %v10374_v36 = vld [vmem:[%s10488_s29 + $0x88] sm:$0xff]  }
 0x24a   : > { %v1348_v12 = vpop.f32.mrb[178].mxu0  ;;  %v1765_v29 = vpop.f32.mrb[178].mxu1 }
 0x24b   : > { %v1498_v55 = vsel %vm1478_vm4, %v1457_v4, %v1458_v35  ;;  %v1459_v15 = vrot.slane %v1348_v12, 1  ;;  %v1876_v43 = vrot.slane %v1765_v29, 7  ;;  %v8631_v41 = vpop.f32.mrb[179].mxu0  ;;  %v8741_v18 = vpop.f32.mrb[179].mxu1  ;;  %v1914_v3 = vsel %vm807_vm3, %v1874_v32, %v1875_v51 }
 0x24c   : > { %v11579_v47 = vadd.f32 %v1914_v3, %v1567_v1  ;;  %v1569_v0 = vadd.f32 %v1498_v55, %v11076_v23 }
 0x24d   : > { %v1497_v44 = vsel %vm1478_vm4, %v1458_v35, %v1459_v15  ;;  %8849 = vmatmul.mubr.msk.bf16.gmra.mrb[28].mxu0 %vm416_vm2, %v10374_v36  ;;  %8959 = vmatmul.mubr.msk.bf16.gmra.mrb[28].mxu1 %vm416_vm2, %v10374_v36  ;;  %v1913_v4 = vsel %vm807_vm3, %v1875_v51, %v1876_v43 }
 0x24e   : > { %8852 = vmatprep.mubr.msk.bf16.mxu0 %vm10423_vm1, %v14893_v28  ;;  %8962 = vmatprep.mubr.msk.bf16.mxu1 %vm10423_vm1, %v14893_v28  ;;  %v11593_v32 = vadd.f32 %v1913_v4, %v1568_v56  ;;  %v1570_v23 = vadd.f32 %v1497_v44, %v11084_v10 }
 0x250   : > { %v1353_v1 = vpop.f32.mrb[180].mxu0  ;;  %v1770_v52 = vpop.f32.mrb[180].mxu1 }
 0x251   : > { %v1460_v35 = vrot.slane %v1353_v1, 1  ;;  %v1877_v33 = vrot.slane %v1770_v52, 7  ;;  %v8634_v14 = vpop.f32.mrb[181].mxu0  ;;  %v8744_v12 = vpop.f32.mrb[181].mxu1  ;;  %v10375_v1 = vld [vmem:[%s10488_s29 + $0x90] sm:$0xff]  }
 0x252   : > { %v1356_v29 = vpop.f32.mrb[182].mxu0  ;;  %v1773_v55 = vpop.f32.mrb[182].mxu1 }
 0x253   : > { %v1496_v51 = vsel %vm1478_vm4, %v1459_v15, %v1460_v35  ;;  %v1461_v41 = vrot.slane %v1356_v29, 1  ;;  %v1878_v18 = vrot.slane %v1773_v55, 7  ;;  %v8635_v3 = vpop.f32.mrb[183].mxu0  ;;  %v8745_v36 = vpop.f32.mrb[183].mxu1  ;;  %v1912_v56 = vsel %vm807_vm3, %v1876_v43, %v1877_v33 }
 0x254   : > { %v11600_v10 = vadd.f32 %v1912_v56, %v1569_v0  ;;  %v1571_v44 = vadd.f32 %v1496_v51, %v11092_v46 }
 0x255   : > { %v1495_v4 = vsel %vm1478_vm4, %v1460_v35, %v1461_v41  ;;  %8853 = vmatmul.mubr.msk.bf16.gmra.mrb[32].mxu0 %vm416_vm2, %v10375_v1  ;;  %8963 = vmatmul.mubr.msk.bf16.gmra.mrb[32].mxu1 %vm416_vm2, %v10375_v1  ;;  %v1911_v15 = vsel %vm807_vm3, %v1877_v33, %v1878_v18 }
 0x256   : > { %8856 = vmatprep.mubr.msk.bf16.mxu0 %vm10423_vm1, %v14893_v28  ;;  %8966 = vmatprep.mubr.msk.bf16.mxu1 %vm10423_vm1, %v14893_v28  ;;  %v11614_v43 = vadd.f32 %v1911_v15, %v1570_v23  ;;  %v1572_v46 = vadd.f32 %v1495_v4, %v11100_v25 }
 0x258   : > { %v1361_v0 = vpop.f32.mrb[184].mxu0  ;;  %v1778_v52 = vpop.f32.mrb[184].mxu1 }
 0x259   : > { %v1462_v35 = vrot.slane %v1361_v0, 1  ;;  %v1879_v14 = vrot.slane %v1778_v52, 7  ;;  %v8638_v12 = vpop.f32.mrb[185].mxu0  ;;  %v8748_v29 = vpop.f32.mrb[185].mxu1  ;;  %v10376_v0 = vld [vmem:[%s10488_s29 + $0x98] sm:$0xff]  }
 0x25a   : > { %v1364_v55 = vpop.f32.mrb[186].mxu0  ;;  %v1781_v51 = vpop.f32.mrb[186].mxu1 }
 0x25b   : > { %v1494_v33 = vsel %vm1478_vm4, %v1461_v41, %v1462_v35  ;;  %v1463_v3 = vrot.slane %v1364_v55, 1  ;;  %v1880_v36 = vrot.slane %v1781_v51, 7  ;;  %v8639_v56 = vpop.f32.mrb[187].mxu0  ;;  %v8749_v1 = vpop.f32.mrb[187].mxu1  ;;  %v1910_v23 = vsel %vm807_vm3, %v1878_v18, %v1879_v14 }
 0x25c   : > { %v11621_v25 = vadd.f32 %v1910_v23, %v1571_v44  ;;  %v1573_v4 = vadd.f32 %v1494_v33, %v11108_v24 }
 0x25d   : > { %v1493_v15 = vsel %vm1478_vm4, %v1462_v35, %v1463_v3  ;;  %8857 = vmatmul.mubr.msk.bf16.gmra.mrb[36].mxu0 %vm416_vm2, %v10376_v0  ;;  %8967 = vmatmul.mubr.msk.bf16.gmra.mrb[36].mxu1 %vm416_vm2, %v10376_v0  ;;  %v1909_v41 = vsel %vm807_vm3, %v1879_v14, %v1880_v36 }
 0x25e   : > { %8860 = vmatprep.mubr.msk.bf16.mxu0 %vm10423_vm1, %v14893_v28  ;;  %8970 = vmatprep.mubr.msk.bf16.mxu1 %vm10423_vm1, %v14893_v28  ;;  %v11635_v18 = vadd.f32 %v1909_v41, %v1572_v46  ;;  %v1574_v24 = vadd.f32 %v1493_v15, %v11116_v62 }
 0x260   : > { %v1369_v44 = vpop.f32.mrb[188].mxu0  ;;  %v1786_v52 = vpop.f32.mrb[188].mxu1 }
 0x261   : > { %v1464_v35 = vrot.slane %v1369_v44, 1  ;;  %v1881_v12 = vrot.slane %v1786_v52, 7  ;;  %v8642_v29 = vpop.f32.mrb[189].mxu0  ;;  %v8752_v55 = vpop.f32.mrb[189].mxu1  ;;  %v10377_v44 = vld [vmem:[%s10488_s29 + $0xa0] sm:$0xff]  }
 0x262   : > { %v1372_v51 = vpop.f32.mrb[190].mxu0  ;;  %v1789_v33 = vpop.f32.mrb[190].mxu1 }
 0x263   : > { %v1492_v14 = vsel %vm1478_vm4, %v1463_v3, %v1464_v35  ;;  %v1465_v56 = vrot.slane %v1372_v51, 1  ;;  %v1882_v1 = vrot.slane %v1789_v33, 7  ;;  %v8643_v23 = vpop.f32.mrb[191].mxu0  ;;  %v8753_v0 = vpop.f32.mrb[191].mxu1  ;;  %v1908_v46 = vsel %vm807_vm3, %v1880_v36, %v1881_v12 }
 0x264   : > { %v11642_v62 = vadd.f32 %v1908_v46, %v1573_v4  ;;  %v1575_v15 = vadd.f32 %v1492_v14, %v11124_v5 }
 0x265   : > { %v1491_v41 = vsel %vm1478_vm4, %v1464_v35, %v1465_v56  ;;  %8861 = vmatmul.mubr.msk.bf16.gmra.mrb[40].mxu0 %vm416_vm2, %v10377_v44  ;;  %8971 = vmatmul.mubr.msk.bf16.gmra.mrb[40].mxu1 %vm416_vm2, %v10377_v44  ;;  %v1907_v3 = vsel %vm807_vm3, %v1881_v12, %v1882_v1 }
 0x266   : > { %8864 = vmatprep.mubr.msk.bf16.mxu0 %vm10423_vm1, %v14893_v28  ;;  %8974 = vmatprep.mubr.msk.bf16.mxu1 %vm10423_vm1, %v14893_v28  ;;  %v11656_v36 = vadd.f32 %v1907_v3, %v1574_v24  ;;  %v1576_v5 = vadd.f32 %v1491_v41, %v11132_v21  ;;  %v14895_v41 = vld [vmem:[#allocation2_spill] sm:$0xff] }
 0x268   : > { %v1377_v4 = vpop.f32.mrb[192].mxu0  ;;  %v1794_v52 = vpop.f32.mrb[192].mxu1 }
 0x269   : > { %v1466_v35 = vrot.slane %v1377_v4, 1  ;;  %v1883_v29 = vrot.slane %v1794_v52, 7  ;;  %v8646_v55 = vpop.f32.mrb[193].mxu0  ;;  %v8756_v51 = vpop.f32.mrb[193].mxu1  ;;  %v10378_v52 = vld [vmem:[%s10488_s29 + $0xa8] sm:$0xff]  }
 0x26a   : > { %v1380_v33 = vpop.f32.mrb[194].mxu0  ;;  %v1797_v14 = vpop.f32.mrb[194].mxu1 }
 0x26b   : > { %v1490_v12 = vsel %vm1478_vm4, %v1465_v56, %v1466_v35  ;;  %v1467_v23 = vrot.slane %v1380_v33, 1  ;;  %v1884_v0 = vrot.slane %v1797_v14, 7  ;;  %v8647_v46 = vpop.f32.mrb[195].mxu0  ;;  %v8757_v44 = vpop.f32.mrb[195].mxu1  ;;  %v1906_v24 = vsel %vm807_vm3, %v1882_v1, %v1883_v29 }
 0x26c   : > { %v11663_v21 = vadd.f32 %v1906_v24, %v1575_v15  ;;  %v1577_v3 = vadd.f32 %v1490_v12, %v14895_v41 }
 0x26d   : > { %v1489_v4 = vsel %vm1478_vm4, %v1466_v35, %v1467_v23  ;;  %8865 = vmatmul.mubr.msk.bf16.gmra.mrb[44].mxu0 %vm416_vm2, %v10378_v52  ;;  %8975 = vmatmul.mubr.msk.bf16.gmra.mrb[44].mxu1 %vm416_vm2, %v10378_v52  ;;  %v1905_v56 = vsel %vm807_vm3, %v1883_v29, %v1884_v0 }
 0x26e   : > { %14894 = vst [vmem:[#allocation7_spill] sm:$0xff] %v11663_v21  ;;  %8868 = vmatprep.mubr.msk.bf16.mxu0 %vm10423_vm1, %v14893_v28  ;;  %8978 = vmatprep.mubr.msk.bf16.mxu1 %vm10423_vm1, %v14893_v28  ;;  %v11677_v1 = vadd.f32 %v1905_v56, %v1576_v5  ;;  %v1578_v15 = vadd.f32 %v1489_v4, %v11148_v26  ;;  %v14897_v4 = vld [vmem:[#allocation3_spill] sm:$0xff] }
 0x270   : > { %v1385_v55 = vpop.f32.mrb[196].mxu0  ;;  %v1802_v35 = vpop.f32.mrb[196].mxu1 }
 0x271   : > { %v1468_v51 = vrot.slane %v1385_v55, 1  ;;  %v1885_v33 = vrot.slane %v1802_v35, 7  ;;  %v8650_v14 = vpop.f32.mrb[197].mxu0  ;;  %v8760_v12 = vpop.f32.mrb[197].mxu1  ;;  %v10379_v35 = vld [vmem:[%s10488_s29 + $0xb0] sm:$0xff]  }
 0x272   : > { %v1388_v46 = vpop.f32.mrb[198].mxu0  ;;  %v1805_v44 = vpop.f32.mrb[198].mxu1 }
 0x273   : > { %v1488_v29 = vsel %vm1478_vm4, %v1467_v23, %v1468_v51  ;;  %v1469_v24 = vrot.slane %v1388_v46, 1  ;;  %v1886_v41 = vrot.slane %v1805_v44, 7  ;;  %v8651_v52 = vpop.f32.mrb[199].mxu0  ;;  %v8761_v21 = vpop.f32.mrb[199].mxu1  ;;  %v1904_v5 = vsel %vm807_vm3, %v1884_v0, %v1885_v33 }
 0x274   : > { %v11684_v26 = vadd.f32 %v1904_v5, %v1577_v3  ;;  %v1579_v56 = vadd.f32 %v1488_v29, %v14897_v4 }
 0x275   : > { %v1487_v55 = vsel %vm1478_vm4, %v1468_v51, %v1469_v24  ;;  %8869 = vmatmul.mubr.msk.bf16.gmra.mrb[48].mxu0 %vm416_vm2, %v10379_v35  ;;  %8979 = vmatmul.mubr.msk.bf16.gmra.mrb[48].mxu1 %vm416_vm2, %v10379_v35  ;;  %v1903_v23 = vsel %vm807_vm3, %v1885_v33, %v1886_v41 }
 0x276   : > { %14896 = vst [vmem:[#allocation2_spill] sm:$0xff] %v11684_v26  ;;  %8872 = vmatprep.mubr.msk.bf16.mxu0 %vm10423_vm1, %v14893_v28  ;;  %8982 = vmatprep.mubr.msk.bf16.mxu1 %vm10423_vm1, %v14893_v28  ;;  %v11698_v0 = vadd.f32 %v1903_v23, %v1578_v15  ;;  %v1580_v21 = vadd.f32 %v1487_v55, %v11164_v22  ;;  %v14898_v55 = vld [vmem:[#allocation4_spill] sm:$0xff] }
 0x278   : > { %v1393_v3 = vpop.f32.mrb[200].mxu0  ;;  %v1810_v51 = vpop.f32.mrb[200].mxu1 }
 0x279   : > { %v1470_v14 = vrot.slane %v1393_v3, 1  ;;  %v1887_v12 = vrot.slane %v1810_v51, 7  ;;  %v8654_v46 = vpop.f32.mrb[201].mxu0  ;;  %v8764_v44 = vpop.f32.mrb[201].mxu1  ;;  %v10380_v51 = vld [vmem:[%s10488_s29 + $0xb8] sm:$0xff]  }
 0x27a   : > { %v1396_v29 = vpop.f32.mrb[202].mxu0  ;;  %v1813_v52 = vpop.f32.mrb[202].mxu1 }
 0x27b   : > { %v1486_v33 = vsel %vm1478_vm4, %v1469_v24, %v1470_v14  ;;  %v1471_v5 = vrot.slane %v1396_v29, 1  ;;  %v1888_v4 = vrot.slane %v1813_v52, 7  ;;  %v8655_v35 = vpop.f32.mrb[203].mxu0  ;;  %v8765_v26 = vpop.f32.mrb[203].mxu1  ;;  %v1902_v15 = vsel %vm807_vm3, %v1886_v41, %v1887_v12 }
 0x27c   : > { %v11705_v22 = vadd.f32 %v1902_v15, %v1579_v56  ;;  %v1581_v23 = vadd.f32 %v1486_v33, %v14898_v55 }
 0x27d   : > { %v1485_v3 = vsel %vm1478_vm4, %v1470_v14, %v1471_v5  ;;  %8873 = vmatmul.mubr.msk.bf16.gmra.mrb[52].mxu0 %vm416_vm2, %v10380_v51  ;;  %8983 = vmatmul.mubr.msk.bf16.gmra.mrb[52].mxu1 %vm416_vm2, %v10380_v51  ;;  %v1901_v24 = vsel %vm807_vm3, %v1887_v12, %v1888_v4 }
 0x27e   : > { %8876 = vmatprep.mubr.msk.bf16.mxu0 %vm10423_vm1, %v14893_v28  ;;  %8986 = vmatprep.mubr.msk.bf16.mxu1 %vm10423_vm1, %v14893_v28  ;;  %v11719_v41 = vadd.f32 %v1901_v24, %v1580_v21  ;;  %v1582_v26 = vadd.f32 %v1485_v3, %v11180_v17  ;;  %v14900_v17 = vld [vmem:[#allocation5_spill] sm:$0xff] }
 0x280   : > { %14899 = vst [vmem:[#allocation3_spill] sm:$0xff] %v11719_v41  ;;  %v1401_v56 = vpop.f32.mrb[204].mxu0  ;;  %v1818_v14 = vpop.f32.mrb[204].mxu1  ;;  %v10381_v41 = vld [vmem:[%s10488_s29 + $0xc0] sm:$0xff]  }
 0x281   : > { %v1472_v46 = vrot.slane %v1401_v56, 1  ;;  %v1889_v44 = vrot.slane %v1818_v14, 7  ;;  %v8658_v29 = vpop.f32.mrb[205].mxu0  ;;  %v8768_v52 = vpop.f32.mrb[205].mxu1 }
 0x282   : > { %v1404_v33 = vpop.f32.mrb[206].mxu0  ;;  %v1821_v35 = vpop.f32.mrb[206].mxu1 }
 0x283   : > { %v1484_v12 = vsel %vm1478_vm4, %v1471_v5, %v1472_v46  ;;  %v1890_v15 = vrot.slane %v1821_v35, 7  ;;  %v8659_v55 = vpop.f32.mrb[207].mxu0  ;;  %v8769_v51 = vpop.f32.mrb[207].mxu1  ;;  %v1900_v21 = vsel %vm807_vm3, %v1888_v4, %v1889_v44 }
 0x284   : > { %v11726_v24 = vadd.f32 %v1900_v21, %v1581_v23  ;;  %v1583_v3 = vadd.f32 %v1484_v12, %v14900_v17  ;;  %v10382_v55 = vld [vmem:[%s10488_s29 + $0xc8] sm:$0xff]  }
 0x285   : > { %8877 = vmatmul.mubr.msk.bf16.gmra.mrb[56].mxu0 %vm416_vm2, %v10381_v41  ;;  %8987 = vmatmul.mubr.msk.bf16.gmra.mrb[56].mxu1 %vm416_vm2, %v10381_v41  ;;  %v1899_v56 = vsel %vm807_vm3, %v1889_v44, %v1890_v15 }
 0x286   : > { %8880 = vmatprep.mubr.msk.bf16.mxu0 %vm10423_vm1, %v14893_v28  ;;  %8990 = vmatprep.mubr.msk.bf16.mxu1 %vm10423_vm1, %v14893_v28  ;;  %v11738_v5 = vadd.f32 %v1899_v56, %v1582_v26 }
 0x288   : > { %v1409_v4 = vpop.f32.mrb[208].mxu0  ;;  %v1826_v23 = vpop.f32.mrb[208].mxu1 }
 0x289   : > { %v1891_v14 = vrot.slane %v1826_v23, 7  ;;  %v8662_v46 = vpop.f32.mrb[209].mxu0  ;;  %v8772_v29 = vpop.f32.mrb[209].mxu1  ;;  %v10383_v23 = vld [vmem:[%s10488_s29 + $0xd0] sm:$0xff]  }
 0x28a   : > { %v1412_v52 = vpop.f32.mrb[210].mxu0  ;;  %v1829_v33 = vpop.f32.mrb[210].mxu1  ;;  %v7568_v46 = vld [vmem:[%s14844_s1 + $0x10] sm:$0x3] }
 0x28b   : > { %v8663_v41 = vpop.f32.mrb[211].mxu0  ;;  %v8773_v35 = vpop.f32.mrb[211].mxu1  ;;  %v1898_v44 = vsel %vm807_vm3, %v1890_v15, %v1891_v14 }
 0x28c   : > { %v11742_v12 = vadd.f32 %v1898_v44, %v1583_v3 }
 0x28d   : > { %8881 = vmatmul.mubr.msk.bf16.gmra.mrb[60].mxu0 %vm416_vm2, %v10382_v55  ;;  %8991 = vmatmul.mubr.msk.bf16.gmra.mrb[60].mxu1 %vm416_vm2, %v10382_v55  ;;  %v3454_v55 = vsel %vm498_vm0, %v7568_v46, 0 }
 0x28e   : > { %8884 = vmatprep.mubr.msk.bf16.mxu0 %vm10423_vm1, %v14893_v28  ;;  %8994 = vmatprep.mubr.msk.bf16.mxu1 %vm10423_vm1, %v14893_v28 }
 0x290   : > { %v1417_v26 = vpop.f32.mrb[212].mxu0  ;;  %v1834_v51 = vpop.f32.mrb[212].mxu1 }
 0x291   : > { %v8666_v21 = vpop.f32.mrb[213].mxu0  ;;  %v8776_v17 = vpop.f32.mrb[213].mxu1  ;;  %v10384_v51 = vld [vmem:[%s10488_s29] sm:$0xff]  }
 0x292   : > { %v1420_v56 = vpop.f32.mrb[214].mxu0  ;;  %v1837_v4 = vpop.f32.mrb[214].mxu1 }
 0x293   : > { %v8667_v15 = vpop.f32.mrb[215].mxu0  ;;  %v8777_v3 = vpop.f32.mrb[215].mxu1 }
 0x295   : > { %8885 = vmatmul.mubr.msk.bf16.gmra.mrb[64].mxu0 %vm416_vm2, %v10383_v23  ;;  %8995 = vmatmul.mubr.msk.bf16.gmra.mrb[64].mxu1 %vm416_vm2, %v10383_v23 }
 0x296   : > { %9000 = vmatprep.mubr.msk.bf16.mxu0 %vm10423_vm1, %v14893_v28  ;;  %9110 = vmatprep.mubr.msk.bf16.mxu1 %vm10423_vm1, %v14893_v28 }
 0x298   : > { %v2042_v14 = vpop.f32.mrb[216].mxu0  ;;  %v2350_v29 = vpop.f32.mrb[216].mxu1 }
 0x299   : > { %v8782_v52 = vpop.f32.mrb[217].mxu0  ;;  %v8892_v33 = vpop.f32.mrb[217].mxu1  ;;  %v10385_v29 = vld [vmem:[%s10488_s29 + $0x8] sm:$0xff]  }
 0x29a   : > { %v2045_v41 = vpop.f32.mrb[218].mxu0  ;;  %v2353_v35 = vpop.f32.mrb[218].mxu1 }
 0x29b   : > { %v8783_v44 = vpop.f32.mrb[219].mxu0  ;;  %v8893_v26 = vpop.f32.mrb[219].mxu1  ;;  %v14901_v35 = vld [vmem:[#allocation6_spill] sm:$0xff] }
 0x29d   : > { %9001 = vmatmul.mubr.msk.bf16.vlgmr.msra.gmra.mrb[68].mxu0 %vm416_vm2, %v10384_v51  ;;  %9111 = vmatmul.mubr.msk.bf16.vlgmr.msra.gmra.mrb[68].mxu1 %vm416_vm2, %v10384_v51 }
 0x29e   : > { %9219 = vmatpush3.bf16.msra.mxu0 %v3454_v55  ;;  %9004 = vmatprep.mubr.msk.bf16.mxu0 %vm10423_vm1, %v14893_v28 }
 0x29f   : > { %9114 = vmatprep.mubr.msk.bf16.mxu1 %vm10423_vm1, %v14893_v28  ;;  %9438 = vmatprep.subr.bf16.mxu0 %v14893_v28 }
 0x2a0   : > { %v2050_v21 = vpop.f32.mrb[220].mxu0  ;;  %v2358_v17 = vpop.f32.mrb[220].mxu1 }
 0x2a1   : > { %v8786_v56 = vpop.f32.mrb[221].mxu0  ;;  %v8896_v4 = vpop.f32.mrb[221].mxu1 }
 0x2a2   : > { %v2053_v15 = vpop.f32.mrb[222].mxu0  ;;  %v2361_v3 = vpop.f32.mrb[222].mxu1 }
 0x2a3   : > { %v2260_v23 = vadd.f32 %v2053_v15, %v11252_v48  ;;  %v8787_v14 = vpop.f32.mrb[223].mxu0  ;;  %v8897_v46 = vpop.f32.mrb[223].mxu1  ;;  %v2568_v52 = vrot.slane %v2361_v3, 1 }
 0x2a5   : > { %9005 = vmatmul.mubr.msk.bf16.gmra.mrb[72].mxu0 %vm416_vm2, %v10385_v29  ;;  %9115 = vmatmul.mubr.msk.bf16.gmra.mrb[72].mxu1 %vm416_vm2, %v10385_v29  ;;  %v11787_v29 = vld [vmem:[%s10488_s29 + $0x10] sm:$0xff]  }
 0x2a6   : > { %9008 = vmatprep.mubr.msk.bf16.mxu0 %vm10423_vm1, %v14893_v28  ;;  %9118 = vmatprep.mubr.msk.bf16.mxu1 %vm10423_vm1, %v14893_v28 }
 0x2a8   : > { %v2058_v33 = vpop.f32.mrb[224].mxu0  ;;  %v2366_v41 = vpop.f32.mrb[224].mxu1 }
 0x2a9   : > { %v2261_v44 = vadd.f32 %v2058_v33, %v14901_v35  ;;  %v2569_v48 = vrot.slane %v2366_v41, 1  ;;  %v8790_v55 = vpop.f32.mrb[225].mxu0  ;;  %v8900_v26 = vpop.f32.mrb[225].mxu1 }
 0x2aa   : > { %v2061_v51 = vpop.f32.mrb[226].mxu0  ;;  %v2369_v21 = vpop.f32.mrb[226].mxu1 }
 0x2ab   : > { %v2668_v17 = vsel %vm1478_vm4, %v2568_v52, %v2569_v48  ;;  %v2262_v56 = vadd.f32 %v2061_v51, %v11273_v2  ;;  %v2570_v4 = vrot.slane %v2369_v21, 1  ;;  %v8791_v15 = vpop.f32.mrb[227].mxu0  ;;  %v8901_v14 = vpop.f32.mrb[227].mxu1 }
 0x2ac   : > { %v11782_v46 = vadd.f32 %v2668_v17, %v2260_v23 }
 0x2ad   : > { %v2667_v3 = vsel %vm1478_vm4, %v2569_v48, %v2570_v4  ;;  %9009 = vmatmul.mubr.msk.bf16.gmra.mrb[76].mxu0 %vm416_vm2, %v11787_v29  ;;  %9119 = vmatmul.mubr.msk.bf16.gmra.mrb[76].mxu1 %vm416_vm2, %v11787_v29 }
 0x2ae   : > { %9012 = vmatprep.mubr.msk.bf16.mxu0 %vm10423_vm1, %v14893_v28  ;;  %9122 = vmatprep.mubr.msk.bf16.mxu1 %vm10423_vm1, %v14893_v28  ;;  %v11797_v2 = vadd.f32 %v2667_v3, %v2261_v44 }
 0x2b0   : > { %14902 = vst [vmem:[#allocation4_spill] sm:$0xff] %v11797_v2  ;;  %v2066_v23 = vpop.f32.mrb[228].mxu0  ;;  %v2374_v52 = vpop.f32.mrb[228].mxu1  ;;  %v11808_v2 = vld [vmem:[%s10488_s29 + $0x18] sm:$0xff]  }
 0x2b1   : > { %v2263_v33 = vadd.f32 %v2066_v23, %v11280_v42  ;;  %v2571_v41 = vrot.slane %v2374_v52, 1  ;;  %v8794_v35 = vpop.f32.mrb[229].mxu0  ;;  %v8904_v48 = vpop.f32.mrb[229].mxu1 }
 0x2b2   : > { %v2069_v55 = vpop.f32.mrb[230].mxu0  ;;  %v2377_v26 = vpop.f32.mrb[230].mxu1 }
 0x2b3   : > { %v2666_v51 = vsel %vm1478_vm4, %v2570_v4, %v2571_v41  ;;  %v2264_v21 = vadd.f32 %v2069_v55, %v11294_v27  ;;  %v2572_v17 = vrot.slane %v2377_v26, 1  ;;  %v8795_v15 = vpop.f32.mrb[231].mxu0  ;;  %v8905_v14 = vpop.f32.mrb[231].mxu1 }
 0x2b4   : > { %v11803_v44 = vadd.f32 %v2666_v51, %v2262_v56 }
 0x2b5   : > { %v2665_v3 = vsel %vm1478_vm4, %v2571_v41, %v2572_v17  ;;  %9013 = vmatmul.mubr.msk.bf16.gmra.mrb[80].mxu0 %vm416_vm2, %v11808_v2  ;;  %9123 = vmatmul.mubr.msk.bf16.gmra.mrb[80].mxu1 %vm416_vm2, %v11808_v2 }
 0x2b6   : > { %9016 = vmatprep.mubr.msk.bf16.mxu0 %vm10423_vm1, %v14893_v28  ;;  %9126 = vmatprep.mubr.msk.bf16.mxu1 %vm10423_vm1, %v14893_v28  ;;  %v11818_v42 = vadd.f32 %v2665_v3, %v2263_v33 }
 0x2b8   : > { %14903 = vst [vmem:[#allocation5_spill] sm:$0xff] %v11818_v42  ;;  %v2074_v27 = vpop.f32.mrb[232].mxu0  ;;  %v2382_v56 = vpop.f32.mrb[232].mxu1  ;;  %v11829_v42 = vld [vmem:[%s10488_s29 + $0x20] sm:$0xff]  }
 0x2b9   : > { %v2265_v4 = vadd.f32 %v2074_v27, %v11301_v57  ;;  %v2573_v23 = vrot.slane %v2382_v56, 1  ;;  %v8798_v52 = vpop.f32.mrb[233].mxu0  ;;  %v8908_v41 = vpop.f32.mrb[233].mxu1 }
 0x2ba   : > { %v2077_v35 = vpop.f32.mrb[234].mxu0  ;;  %v2385_v48 = vpop.f32.mrb[234].mxu1 }
 0x2bb   : > { %v2664_v55 = vsel %vm1478_vm4, %v2572_v17, %v2573_v23  ;;  %v2266_v26 = vadd.f32 %v2077_v35, %v11315_v45  ;;  %v2574_v51 = vrot.slane %v2385_v48, 1  ;;  %v8799_v15 = vpop.f32.mrb[235].mxu0  ;;  %v8909_v14 = vpop.f32.mrb[235].mxu1 }
 0x2bc   : > { %v11824_v33 = vadd.f32 %v2664_v55, %v2264_v21 }
 0x2bd   : > { %v2663_v3 = vsel %vm1478_vm4, %v2573_v23, %v2574_v51  ;;  %9017 = vmatmul.mubr.msk.bf16.gmra.mrb[84].mxu0 %vm416_vm2, %v11829_v42  ;;  %9127 = vmatmul.mubr.msk.bf16.gmra.mrb[84].mxu1 %vm416_vm2, %v11829_v42 }
 0x2be   : > { %9020 = vmatprep.mubr.msk.bf16.mxu0 %vm10423_vm1, %v14893_v28  ;;  %9130 = vmatprep.mubr.msk.bf16.mxu1 %vm10423_vm1, %v14893_v28  ;;  %v11839_v57 = vadd.f32 %v2663_v3, %v2265_v4 }
 0x2c0   : > { %14904 = vst [vmem:[#allocation6_spill] sm:$0xff] %v11839_v57  ;;  %v2082_v45 = vpop.f32.mrb[236].mxu0  ;;  %v2390_v21 = vpop.f32.mrb[236].mxu1  ;;  %v11850_v57 = vld [vmem:[%s10488_s29 + $0x28] sm:$0xff]  }
 0x2c1   : > { %v2267_v17 = vadd.f32 %v2082_v45, %v11322_v20  ;;  %v2575_v27 = vrot.slane %v2390_v21, 1  ;;  %v8802_v56 = vpop.f32.mrb[237].mxu0  ;;  %v8912_v23 = vpop.f32.mrb[237].mxu1 }
 0x2c2   : > { %v2085_v52 = vpop.f32.mrb[238].mxu0  ;;  %v2393_v41 = vpop.f32.mrb[238].mxu1 }
 0x2c3   : > { %v2662_v35 = vsel %vm1478_vm4, %v2574_v51, %v2575_v27  ;;  %v2268_v48 = vadd.f32 %v2085_v52, %v11336_v34  ;;  %v2576_v55 = vrot.slane %v2393_v41, 1  ;;  %v8803_v15 = vpop.f32.mrb[239].mxu0  ;;  %v8913_v14 = vpop.f32.mrb[239].mxu1 }
 0x2c4   : > { %v11845_v4 = vadd.f32 %v2662_v35, %v2266_v26 }
 0x2c5   : > { %v2661_v3 = vsel %vm1478_vm4, %v2575_v27, %v2576_v55  ;;  %9021 = vmatmul.mubr.msk.bf16.gmra.mrb[88].mxu0 %vm416_vm2, %v11850_v57  ;;  %9131 = vmatmul.mubr.msk.bf16.gmra.mrb[88].mxu1 %vm416_vm2, %v11850_v57 }
 0x2c6   : > { %9024 = vmatprep.mubr.msk.bf16.mxu0 %vm10423_vm1, %v14893_v28  ;;  %9134 = vmatprep.mubr.msk.bf16.mxu1 %vm10423_vm1, %v14893_v28  ;;  %v11860_v20 = vadd.f32 %v2661_v3, %v2267_v17 }
 0x2c8   : > { %14905 = vst [vmem:[#allocation8_spill] sm:$0xff] %v11860_v20  ;;  %v2090_v34 = vpop.f32.mrb[240].mxu0  ;;  %v2398_v26 = vpop.f32.mrb[240].mxu1  ;;  %v11871_v20 = vld [vmem:[%s10488_s29 + $0x30] sm:$0xff]  }
 0x2c9   : > { %v2269_v51 = vadd.f32 %v2090_v34, %v11343_v54  ;;  %v2577_v45 = vrot.slane %v2398_v26, 1  ;;  %v8806_v21 = vpop.f32.mrb[241].mxu0  ;;  %v8916_v27 = vpop.f32.mrb[241].mxu1 }
 0x2ca   : > { %v2093_v56 = vpop.f32.mrb[242].mxu0  ;;  %v2401_v23 = vpop.f32.mrb[242].mxu1 }
 0x2cb   : > { %v2660_v52 = vsel %vm1478_vm4, %v2576_v55, %v2577_v45  ;;  %v2270_v41 = vadd.f32 %v2093_v56, %v11357_v19  ;;  %v2578_v35 = vrot.slane %v2401_v23, 1  ;;  %v8807_v15 = vpop.f32.mrb[243].mxu0  ;;  %v8917_v14 = vpop.f32.mrb[243].mxu1 }
 0x2cc   : > { %v11866_v17 = vadd.f32 %v2660_v52, %v2268_v48 }
 0x2cd   : > { %v2659_v3 = vsel %vm1478_vm4, %v2577_v45, %v2578_v35  ;;  %9025 = vmatmul.mubr.msk.bf16.gmra.mrb[92].mxu0 %vm416_vm2, %v11871_v20  ;;  %9135 = vmatmul.mubr.msk.bf16.gmra.mrb[92].mxu1 %vm416_vm2, %v11871_v20 }
 0x2ce   : > { %9028 = vmatprep.mubr.msk.bf16.mxu0 %vm10423_vm1, %v14893_v28  ;;  %9138 = vmatprep.mubr.msk.bf16.mxu1 %vm10423_vm1, %v14893_v28  ;;  %v11881_v54 = vadd.f32 %v2659_v3, %v2269_v51 }
 0x2d0   : > { %14906 = vst [vmem:[#allocation9_spill] sm:$0xff] %v11881_v54  ;;  %v2098_v19 = vpop.f32.mrb[244].mxu0  ;;  %v2406_v48 = vpop.f32.mrb[244].mxu1  ;;  %v11892_v54 = vld [vmem:[%s10488_s29 + $0x38] sm:$0xff]  }
 0x2d1   : > { %v2271_v55 = vadd.f32 %v2098_v19, %v11364_v7  ;;  %v2579_v34 = vrot.slane %v2406_v48, 1  ;;  %v8810_v26 = vpop.f32.mrb[245].mxu0  ;;  %v8920_v45 = vpop.f32.mrb[245].mxu1 }
 0x2d2   : > { %v2101_v21 = vpop.f32.mrb[246].mxu0  ;;  %v2409_v27 = vpop.f32.mrb[246].mxu1 }
 0x2d3   : > { %v2658_v56 = vsel %vm1478_vm4, %v2578_v35, %v2579_v34  ;;  %v2272_v23 = vadd.f32 %v2101_v21, %v11378_v63  ;;  %v2580_v52 = vrot.slane %v2409_v27, 1  ;;  %v8811_v15 = vpop.f32.mrb[247].mxu0  ;;  %v8921_v14 = vpop.f32.mrb[247].mxu1 }
 0x2d4   : > { %v11887_v51 = vadd.f32 %v2658_v56, %v2270_v41 }
 0x2d5   : > { %v2657_v3 = vsel %vm1478_vm4, %v2579_v34, %v2580_v52  ;;  %9029 = vmatmul.mubr.msk.bf16.gmra.mrb[96].mxu0 %vm416_vm2, %v11892_v54  ;;  %9139 = vmatmul.mubr.msk.bf16.gmra.mrb[96].mxu1 %vm416_vm2, %v11892_v54 }
 0x2d6   : > { %9032 = vmatprep.mubr.msk.bf16.mxu0 %vm10423_vm1, %v14893_v28  ;;  %9142 = vmatprep.mubr.msk.bf16.mxu1 %vm10423_vm1, %v14893_v28  ;;  %v11902_v7 = vadd.f32 %v2657_v3, %v2271_v55 }
 0x2d8   : > { %14907 = vst [vmem:[#allocation10_spill] sm:$0xff] %v11902_v7  ;;  %v2106_v63 = vpop.f32.mrb[248].mxu0  ;;  %v2414_v41 = vpop.f32.mrb[248].mxu1  ;;  %v11913_v7 = vld [vmem:[%s10488_s29 + $0x40] sm:$0xff]  }
 0x2d9   : > { %v2273_v35 = vadd.f32 %v2106_v63, %v11385_v11  ;;  %v2581_v19 = vrot.slane %v2414_v41, 1  ;;  %v8814_v48 = vpop.f32.mrb[249].mxu0  ;;  %v8924_v34 = vpop.f32.mrb[249].mxu1 }
 0x2da   : > { %v2109_v26 = vpop.f32.mrb[250].mxu0  ;;  %v2417_v45 = vpop.f32.mrb[250].mxu1 }
 0x2db   : > { %v2656_v21 = vsel %vm1478_vm4, %v2580_v52, %v2581_v19  ;;  %v2274_v27 = vadd.f32 %v2109_v26, %v11399_v31  ;;  %v2582_v56 = vrot.slane %v2417_v45, 1  ;;  %v8815_v15 = vpop.f32.mrb[251].mxu0  ;;  %v8925_v14 = vpop.f32.mrb[251].mxu1 }
 0x2dc   : > { %v11908_v55 = vadd.f32 %v2656_v21, %v2272_v23 }
 0x2dd   : > { %v2655_v3 = vsel %vm1478_vm4, %v2581_v19, %v2582_v56  ;;  %9033 = vmatmul.mubr.msk.bf16.gmra.mrb[100].mxu0 %vm416_vm2, %v11913_v7  ;;  %9143 = vmatmul.mubr.msk.bf16.gmra.mrb[100].mxu1 %vm416_vm2, %v11913_v7 }
 0x2de   : > { %9036 = vmatprep.mubr.msk.bf16.mxu0 %vm10423_vm1, %v14893_v28  ;;  %9146 = vmatprep.mubr.msk.bf16.mxu1 %vm10423_vm1, %v14893_v28  ;;  %v11923_v11 = vadd.f32 %v2655_v3, %v2273_v35 }
 0x2e0   : > { %14908 = vst [vmem:[#allocation11_spill] sm:$0xff] %v11923_v11  ;;  %v2114_v31 = vpop.f32.mrb[252].mxu0  ;;  %v2422_v23 = vpop.f32.mrb[252].mxu1  ;;  %v11934_v11 = vld [vmem:[%s10488_s29 + $0x48] sm:$0xff]  }
 0x2e1   : > { %v2275_v52 = vadd.f32 %v2114_v31, %v11406_v6  ;;  %v2583_v63 = vrot.slane %v2422_v23, 1  ;;  %v8818_v41 = vpop.f32.mrb[253].mxu0  ;;  %v8928_v19 = vpop.f32.mrb[253].mxu1 }
 0x2e2   : > { %v2117_v48 = vpop.f32.mrb[254].mxu0  ;;  %v2425_v34 = vpop.f32.mrb[254].mxu1 }
 0x2e3   : > { %v2654_v26 = vsel %vm1478_vm4, %v2582_v56, %v2583_v63  ;;  %v2276_v45 = vadd.f32 %v2117_v48, %v11420_v39  ;;  %v2584_v21 = vrot.slane %v2425_v34, 1  ;;  %v8819_v15 = vpop.f32.mrb[255].mxu0  ;;  %v8929_v14 = vpop.f32.mrb[255].mxu1 }
 0x2e4   : > { %v11929_v35 = vadd.f32 %v2654_v26, %v2274_v27 }
 0x2e5   : > { %v2653_v3 = vsel %vm1478_vm4, %v2583_v63, %v2584_v21  ;;  %9037 = vmatmul.mubr.msk.bf16.gmra.mrb[104].mxu0 %vm416_vm2, %v11934_v11  ;;  %9147 = vmatmul.mubr.msk.bf16.gmra.mrb[104].mxu1 %vm416_vm2, %v11934_v11 }
 0x2e6   : > { %9040 = vmatprep.mubr.msk.bf16.mxu0 %vm10423_vm1, %v14893_v28  ;;  %9150 = vmatprep.mubr.msk.bf16.mxu1 %vm10423_vm1, %v14893_v28  ;;  %v11944_v6 = vadd.f32 %v2653_v3, %v2275_v52 }
 0x2e8   : > { %14909 = vst [vmem:[#allocation12_spill] sm:$0xff] %v11944_v6  ;;  %v2122_v39 = vpop.f32.mrb[0].mxu0  ;;  %v2430_v27 = vpop.f32.mrb[0].mxu1  ;;  %v11955_v6 = vld [vmem:[%s10488_s29 + $0x50] sm:$0xff]  }
 0x2e9   : > { %v2277_v56 = vadd.f32 %v2122_v39, %v11427_v53  ;;  %v2585_v31 = vrot.slane %v2430_v27, 1  ;;  %v8822_v23 = vpop.f32.mrb[1].mxu0  ;;  %v8932_v63 = vpop.f32.mrb[1].mxu1 }
 0x2ea   : > { %v2125_v41 = vpop.f32.mrb[2].mxu0  ;;  %v2433_v19 = vpop.f32.mrb[2].mxu1 }
 0x2eb   : > { %v2652_v48 = vsel %vm1478_vm4, %v2584_v21, %v2585_v31  ;;  %v2278_v34 = vadd.f32 %v2125_v41, %v11441_v30  ;;  %v2586_v26 = vrot.slane %v2433_v19, 1  ;;  %v8823_v15 = vpop.f32.mrb[3].mxu0  ;;  %v8933_v14 = vpop.f32.mrb[3].mxu1 }
 0x2ec   : > { %v11950_v52 = vadd.f32 %v2652_v48, %v2276_v45 }
 0x2ed   : > { %v2651_v3 = vsel %vm1478_vm4, %v2585_v31, %v2586_v26  ;;  %9041 = vmatmul.mubr.msk.bf16.gmra.mrb[108].mxu0 %vm416_vm2, %v11955_v6  ;;  %9151 = vmatmul.mubr.msk.bf16.gmra.mrb[108].mxu1 %vm416_vm2, %v11955_v6 }
 0x2ee   : > { %9044 = vmatprep.mubr.msk.bf16.mxu0 %vm10423_vm1, %v14893_v28  ;;  %9154 = vmatprep.mubr.msk.bf16.mxu1 %vm10423_vm1, %v14893_v28  ;;  %v11965_v53 = vadd.f32 %v2651_v3, %v2277_v56 }
 0x2f0   : > { %14910 = vst [vmem:[#allocation13_spill] sm:$0xff] %v11965_v53  ;;  %v2130_v30 = vpop.f32.mrb[4].mxu0  ;;  %v2438_v45 = vpop.f32.mrb[4].mxu1  ;;  %v11976_v53 = vld [vmem:[%s10488_s29 + $0x58] sm:$0xff]  }
 0x2f1   : > { %v2279_v21 = vadd.f32 %v2130_v30, %v11448_v8  ;;  %v2587_v39 = vrot.slane %v2438_v45, 1  ;;  %v8826_v27 = vpop.f32.mrb[5].mxu0  ;;  %v8936_v31 = vpop.f32.mrb[5].mxu1 }
 0x2f2   : > { %v2133_v23 = vpop.f32.mrb[6].mxu0  ;;  %v2441_v63 = vpop.f32.mrb[6].mxu1 }
 0x2f3   : > { %v2650_v41 = vsel %vm1478_vm4, %v2586_v26, %v2587_v39  ;;  %v2280_v19 = vadd.f32 %v2133_v23, %v11466_v38  ;;  %v2588_v48 = vrot.slane %v2441_v63, 1  ;;  %v8827_v15 = vpop.f32.mrb[7].mxu0  ;;  %v8937_v14 = vpop.f32.mrb[7].mxu1 }
 0x2f4   : > { %v11971_v56 = vadd.f32 %v2650_v41, %v2278_v34 }
 0x2f5   : > { %v2649_v3 = vsel %vm1478_vm4, %v2587_v39, %v2588_v48  ;;  %9045 = vmatmul.mubr.msk.bf16.gmra.mrb[112].mxu0 %vm416_vm2, %v11976_v53  ;;  %9155 = vmatmul.mubr.msk.bf16.gmra.mrb[112].mxu1 %vm416_vm2, %v11976_v53 }
 0x2f6   : > { %9048 = vmatprep.mubr.msk.bf16.mxu0 %vm10423_vm1, %v14893_v28  ;;  %9158 = vmatprep.mubr.msk.bf16.mxu1 %vm10423_vm1, %v14893_v28  ;;  %v11986_v8 = vadd.f32 %v2649_v3, %v2279_v21 }
 0x2f8   : > { %14911 = vst [vmem:[#allocation14_spill] sm:$0xff] %v11986_v8  ;;  %v2138_v38 = vpop.f32.mrb[8].mxu0  ;;  %v2446_v34 = vpop.f32.mrb[8].mxu1  ;;  %v11997_v8 = vld [vmem:[%s10488_s29 + $0x60] sm:$0xff]  }
 0x2f9   : > { %v2281_v26 = vadd.f32 %v2138_v38, %v11474_v40  ;;  %v2589_v30 = vrot.slane %v2446_v34, 1  ;;  %v8830_v45 = vpop.f32.mrb[9].mxu0  ;;  %v8940_v39 = vpop.f32.mrb[9].mxu1 }
 0x2fa   : > { %v2141_v27 = vpop.f32.mrb[10].mxu0  ;;  %v2449_v31 = vpop.f32.mrb[10].mxu1 }
 0x2fb   : > { %v2648_v23 = vsel %vm1478_vm4, %v2588_v48, %v2589_v30  ;;  %v2282_v63 = vadd.f32 %v2141_v27, %v11488_v49  ;;  %v2590_v41 = vrot.slane %v2449_v31, 1  ;;  %v8831_v15 = vpop.f32.mrb[11].mxu0  ;;  %v8941_v14 = vpop.f32.mrb[11].mxu1 }
 0x2fc   : > { %v11992_v21 = vadd.f32 %v2648_v23, %v2280_v19 }
 0x2fd   : > { %v2647_v3 = vsel %vm1478_vm4, %v2589_v30, %v2590_v41  ;;  %9049 = vmatmul.mubr.msk.bf16.gmra.mrb[116].mxu0 %vm416_vm2, %v11997_v8  ;;  %9159 = vmatmul.mubr.msk.bf16.gmra.mrb[116].mxu1 %vm416_vm2, %v11997_v8 }
 0x2fe   : > { %9052 = vmatprep.mubr.msk.bf16.mxu0 %vm10423_vm1, %v14893_v28  ;;  %9162 = vmatprep.mubr.msk.bf16.mxu1 %vm10423_vm1, %v14893_v28  ;;  %v12007_v40 = vadd.f32 %v2647_v3, %v2281_v26 }
 0x300   : > { %14912 = vst [vmem:[#allocation15_spill] sm:$0xff] %v12007_v40  ;;  %v2146_v49 = vpop.f32.mrb[12].mxu0  ;;  %v2454_v19 = vpop.f32.mrb[12].mxu1  ;;  %v12018_v40 = vld [vmem:[%s10488_s29 + $0x68] sm:$0xff]  }
 0x301   : > { %v2283_v48 = vadd.f32 %v2146_v49, %v11495_v50  ;;  %v2591_v38 = vrot.slane %v2454_v19, 1  ;;  %v8834_v34 = vpop.f32.mrb[13].mxu0  ;;  %v8944_v30 = vpop.f32.mrb[13].mxu1 }
 0x302   : > { %v2149_v45 = vpop.f32.mrb[14].mxu0  ;;  %v2457_v39 = vpop.f32.mrb[14].mxu1 }
 0x303   : > { %v2646_v27 = vsel %vm1478_vm4, %v2590_v41, %v2591_v38  ;;  %v2284_v31 = vadd.f32 %v2149_v45, %v11509_v58  ;;  %v2592_v23 = vrot.slane %v2457_v39, 1  ;;  %v8835_v15 = vpop.f32.mrb[15].mxu0  ;;  %v8945_v14 = vpop.f32.mrb[15].mxu1 }
 0x304   : > { %v12013_v26 = vadd.f32 %v2646_v27, %v2282_v63 }
 0x305   : > { %v2645_v3 = vsel %vm1478_vm4, %v2591_v38, %v2592_v23  ;;  %9053 = vmatmul.mubr.msk.bf16.gmra.mrb[120].mxu0 %vm416_vm2, %v12018_v40  ;;  %9163 = vmatmul.mubr.msk.bf16.gmra.mrb[120].mxu1 %vm416_vm2, %v12018_v40 }
 0x306   : > { %9056 = vmatprep.mubr.msk.bf16.mxu0 %vm10423_vm1, %v14893_v28  ;;  %9166 = vmatprep.mubr.msk.bf16.mxu1 %vm10423_vm1, %v14893_v28  ;;  %v12028_v50 = vadd.f32 %v2645_v3, %v2283_v48 }
 0x308   : > { %14913 = vst [vmem:[#allocation16_spill] sm:$0xff] %v12028_v50  ;;  %v2154_v58 = vpop.f32.mrb[16].mxu0  ;;  %v2462_v63 = vpop.f32.mrb[16].mxu1  ;;  %v12039_v50 = vld [vmem:[%s10488_s29 + $0x70] sm:$0xff]  }
 0x309   : > { %v2285_v41 = vadd.f32 %v2154_v58, %v11516_v16  ;;  %v2593_v49 = vrot.slane %v2462_v63, 1  ;;  %v8838_v19 = vpop.f32.mrb[17].mxu0  ;;  %v8948_v38 = vpop.f32.mrb[17].mxu1 }
 0x30a   : > { %v2157_v34 = vpop.f32.mrb[18].mxu0  ;;  %v2465_v30 = vpop.f32.mrb[18].mxu1  ;;  %v7597_v19 = vld [vmem:[%s14846_s3 + $0x4] sm:$0xf] }
 0x30b   : > { %v2644_v45 = vsel %vm1478_vm4, %v2592_v23, %v2593_v49  ;;  %v2286_v39 = vadd.f32 %v2157_v34, %v11530_v9  ;;  %v2594_v27 = vrot.slane %v2465_v30, 1  ;;  %v8839_v15 = vpop.f32.mrb[19].mxu0  ;;  %v8949_v14 = vpop.f32.mrb[19].mxu1  ;;  %v4236_v30 = vsel %vm4234_vm5, %v7597_v19, 0 }
 0x30c   : > { %v12034_v48 = vadd.f32 %v2644_v45, %v2284_v31  ;;  %9329 = vmatpush3.bf16.msra.mxu1 %v4236_v30 }
 0x30d   : > { %v2643_v3 = vsel %vm1478_vm4, %v2593_v49, %v2594_v27  ;;  %9057 = vmatmul.mubr.msk.bf16.gmra.mrb[124].mxu0 %vm416_vm2, %v12039_v50  ;;  %9167 = vmatmul.mubr.msk.bf16.gmra.mrb[124].mxu1 %vm416_vm2, %v12039_v50 }
 0x30e   : > { %9060 = vmatprep.mubr.msk.bf16.mxu0 %vm10423_vm1, %v14893_v28  ;;  %9170 = vmatprep.mubr.msk.bf16.mxu1 %vm10423_vm1, %v14893_v28  ;;  %v12049_v16 = vadd.f32 %v2643_v3, %v2285_v41 }
 0x30f   : > { %9548 = vmatprep.subr.bf16.mxu1 %v14893_v28 }
 0x310   : > { %v2162_v9 = vpop.f32.mrb[20].mxu0  ;;  %v2470_v31 = vpop.f32.mrb[20].mxu1 }
 0x311   : > { %v2287_v23 = vadd.f32 %v2162_v9, %v11537_v61  ;;  %v2595_v58 = vrot.slane %v2470_v31, 1  ;;  %v8842_v63 = vpop.f32.mrb[21].mxu0  ;;  %v8952_v49 = vpop.f32.mrb[21].mxu1  ;;  %v12065_v31 = vld [vmem:[%s10488_s29 + $0x78] sm:$0xff]  }
 0x312   : > { %v2165_v38 = vpop.f32.mrb[22].mxu0  ;;  %v2473_v34 = vpop.f32.mrb[22].mxu1 }
 0x313   : > { %v2642_v41 = vsel %vm1478_vm4, %v2594_v27, %v2595_v58  ;;  %v2288_v45 = vadd.f32 %v2165_v38, %v11551_v60  ;;  %v2596_v15 = vrot.slane %v2473_v34, 1  ;;  %v8843_v61 = vpop.f32.mrb[23].mxu0  ;;  %v8953_v14 = vpop.f32.mrb[23].mxu1 }
 0x314   : > { %v12059_v3 = vadd.f32 %v2642_v41, %v2286_v39 }
 0x315   : > { %v2641_v9 = vsel %vm1478_vm4, %v2595_v58, %v2596_v15  ;;  %9061 = vmatmul.mubr.msk.bf16.gmra.mrb[128].mxu0 %vm416_vm2, %v12065_v31  ;;  %9171 = vmatmul.mubr.msk.bf16.gmra.mrb[128].mxu1 %vm416_vm2, %v12065_v31 }
 0x316   : > { %14914 = vst [vmem:[#allocation17_spill] sm:$0xff] %v12059_v3  ;;  %9064 = vmatprep.mubr.msk.bf16.mxu0 %vm10423_vm1, %v14893_v28  ;;  %9174 = vmatprep.mubr.msk.bf16.mxu1 %vm10423_vm1, %v14893_v28  ;;  %v12075_v60 = vadd.f32 %v2641_v9, %v2287_v23 }
 0x318   : > { %14915 = vst [vmem:[#allocation18_spill] sm:$0xff] %v12075_v60  ;;  %v2170_v39 = vpop.f32.mrb[24].mxu0  ;;  %v2478_v27 = vpop.f32.mrb[24].mxu1  ;;  %v12086_v60 = vld [vmem:[%s10488_s29 + $0x80] sm:$0xff]  }
 0x319   : > { %v2289_v58 = vadd.f32 %v2170_v39, %v11558_v13  ;;  %v2597_v63 = vrot.slane %v2478_v27, 1  ;;  %v8846_v49 = vpop.f32.mrb[25].mxu0  ;;  %v8956_v19 = vpop.f32.mrb[25].mxu1 }
 0x31a   : > { %v2173_v38 = vpop.f32.mrb[26].mxu0  ;;  %v2481_v34 = vpop.f32.mrb[26].mxu1 }
 0x31b   : > { %v2640_v30 = vsel %vm1478_vm4, %v2596_v15, %v2597_v63  ;;  %v2290_v41 = vadd.f32 %v2173_v38, %v11572_v59  ;;  %v2598_v61 = vrot.slane %v2481_v34, 1  ;;  %v8847_v14 = vpop.f32.mrb[27].mxu0  ;;  %v8957_v3 = vpop.f32.mrb[27].mxu1 }
 0x31c   : > { %v12081_v23 = vadd.f32 %v2640_v30, %v2288_v45 }
 0x31d   : > { %v2639_v9 = vsel %vm1478_vm4, %v2597_v63, %v2598_v61  ;;  %9065 = vmatmul.mubr.msk.bf16.gmra.mrb[132].mxu0 %vm416_vm2, %v12086_v60  ;;  %9175 = vmatmul.mubr.msk.bf16.gmra.mrb[132].mxu1 %vm416_vm2, %v12086_v60 }
 0x31e   : > { %9068 = vmatprep.mubr.msk.bf16.mxu0 %vm10423_vm1, %v14893_v28  ;;  %9178 = vmatprep.mubr.msk.bf16.mxu1 %vm10423_vm1, %v14893_v28  ;;  %v12096_v13 = vadd.f32 %v2639_v9, %v2289_v58 }
 0x320   : > { %14916 = vst [vmem:[#allocation19_spill] sm:$0xff] %v12096_v13  ;;  %v2178_v59 = vpop.f32.mrb[28].mxu0  ;;  %v2486_v45 = vpop.f32.mrb[28].mxu1  ;;  %v12107_v13 = vld [vmem:[%s10488_s29 + $0x88] sm:$0xff]  }
 0x321   : > { %v2291_v15 = vadd.f32 %v2178_v59, %v11579_v47  ;;  %v2599_v3 = vrot.slane %v2486_v45, 1  ;;  %v8850_v39 = vpop.f32.mrb[29].mxu0  ;;  %v8960_v27 = vpop.f32.mrb[29].mxu1 }
 0x322   : > { %v2181_v63 = vpop.f32.mrb[30].mxu0  ;;  %v2489_v49 = vpop.f32.mrb[30].mxu1 }
 0x323   : > { %v2638_v19 = vsel %vm1478_vm4, %v2598_v61, %v2599_v3  ;;  %v2292_v38 = vadd.f32 %v2181_v63, %v11593_v32  ;;  %v2600_v34 = vrot.slane %v2489_v49, 1  ;;  %v8851_v30 = vpop.f32.mrb[31].mxu0  ;;  %v8961_v14 = vpop.f32.mrb[31].mxu1 }
 0x324   : > { %v12102_v58 = vadd.f32 %v2638_v19, %v2290_v41 }
 0x325   : > { %v2637_v9 = vsel %vm1478_vm4, %v2599_v3, %v2600_v34  ;;  %9069 = vmatmul.mubr.msk.bf16.gmra.mrb[136].mxu0 %vm416_vm2, %v12107_v13  ;;  %9179 = vmatmul.mubr.msk.bf16.gmra.mrb[136].mxu1 %vm416_vm2, %v12107_v13 }
 0x326   : > { %9072 = vmatprep.mubr.msk.bf16.mxu0 %vm10423_vm1, %v14893_v28  ;;  %9182 = vmatprep.mubr.msk.bf16.mxu1 %vm10423_vm1, %v14893_v28  ;;  %v12117_v47 = vadd.f32 %v2637_v9, %v2291_v15 }
 0x328   : > { %14917 = vst [vmem:[#allocation20_spill] sm:$0xff] %v12117_v47  ;;  %v2186_v32 = vpop.f32.mrb[32].mxu0  ;;  %v2494_v41 = vpop.f32.mrb[32].mxu1  ;;  %v12128_v47 = vld [vmem:[%s10488_s29 + $0x90] sm:$0xff]  }
 0x329   : > { %v2293_v61 = vadd.f32 %v2186_v32, %v11600_v10  ;;  %v2601_v59 = vrot.slane %v2494_v41, 1  ;;  %v8854_v45 = vpop.f32.mrb[33].mxu0  ;;  %v8964_v3 = vpop.f32.mrb[33].mxu1 }
 0x32a   : > { %v2189_v39 = vpop.f32.mrb[34].mxu0  ;;  %v2497_v27 = vpop.f32.mrb[34].mxu1 }
 0x32b   : > { %v2636_v63 = vsel %vm1478_vm4, %v2600_v34, %v2601_v59  ;;  %v2294_v49 = vadd.f32 %v2189_v39, %v11614_v43  ;;  %v2602_v19 = vrot.slane %v2497_v27, 1  ;;  %v8855_v30 = vpop.f32.mrb[35].mxu0  ;;  %v8965_v14 = vpop.f32.mrb[35].mxu1 }
 0x32c   : > { %v12123_v15 = vadd.f32 %v2636_v63, %v2292_v38 }
 0x32d   : > { %v2635_v9 = vsel %vm1478_vm4, %v2601_v59, %v2602_v19  ;;  %9073 = vmatmul.mubr.msk.bf16.gmra.mrb[140].mxu0 %vm416_vm2, %v12128_v47  ;;  %9183 = vmatmul.mubr.msk.bf16.gmra.mrb[140].mxu1 %vm416_vm2, %v12128_v47 }
 0x32e   : > { %9076 = vmatprep.mubr.msk.bf16.mxu0 %vm10423_vm1, %v14893_v28  ;;  %9186 = vmatprep.mubr.msk.bf16.mxu1 %vm10423_vm1, %v14893_v28  ;;  %v12138_v10 = vadd.f32 %v2635_v9, %v2293_v61 }
 0x330   : > { %14918 = vst [vmem:[#allocation21_spill] sm:$0xff] %v12138_v10  ;;  %v2194_v43 = vpop.f32.mrb[36].mxu0  ;;  %v2502_v38 = vpop.f32.mrb[36].mxu1  ;;  %v12149_v10 = vld [vmem:[%s10488_s29 + $0x98] sm:$0xff]  }
 0x331   : > { %v2295_v34 = vadd.f32 %v2194_v43, %v11621_v25  ;;  %v2603_v32 = vrot.slane %v2502_v38, 1  ;;  %v8858_v41 = vpop.f32.mrb[37].mxu0  ;;  %v8968_v59 = vpop.f32.mrb[37].mxu1 }
 0x332   : > { %v2197_v45 = vpop.f32.mrb[38].mxu0  ;;  %v2505_v3 = vpop.f32.mrb[38].mxu1 }
 0x333   : > { %v2634_v39 = vsel %vm1478_vm4, %v2602_v19, %v2603_v32  ;;  %v2296_v27 = vadd.f32 %v2197_v45, %v11635_v18  ;;  %v2604_v63 = vrot.slane %v2505_v3, 1  ;;  %v8859_v30 = vpop.f32.mrb[39].mxu0  ;;  %v8969_v14 = vpop.f32.mrb[39].mxu1 }
 0x334   : > { %v12144_v61 = vadd.f32 %v2634_v39, %v2294_v49 }
 0x335   : > { %v2633_v9 = vsel %vm1478_vm4, %v2603_v32, %v2604_v63  ;;  %9077 = vmatmul.mubr.msk.bf16.gmra.mrb[144].mxu0 %vm416_vm2, %v12149_v10  ;;  %9187 = vmatmul.mubr.msk.bf16.gmra.mrb[144].mxu1 %vm416_vm2, %v12149_v10 }
 0x336   : > { %9080 = vmatprep.mubr.msk.bf16.mxu0 %vm10423_vm1, %v14893_v28  ;;  %9190 = vmatprep.mubr.msk.bf16.mxu1 %vm10423_vm1, %v14893_v28  ;;  %v12159_v25 = vadd.f32 %v2633_v9, %v2295_v34 }
 0x338   : > { %14919 = vst [vmem:[#allocation22_spill] sm:$0xff] %v12159_v25  ;;  %v2202_v18 = vpop.f32.mrb[40].mxu0  ;;  %v2510_v49 = vpop.f32.mrb[40].mxu1  ;;  %v12170_v25 = vld [vmem:[%s10488_s29 + $0xa0] sm:$0xff]  }
 0x339   : > { %v2297_v19 = vadd.f32 %v2202_v18, %v11642_v62  ;;  %v2605_v43 = vrot.slane %v2510_v49, 1  ;;  %v8862_v38 = vpop.f32.mrb[41].mxu0  ;;  %v8972_v32 = vpop.f32.mrb[41].mxu1 }
 0x33a   : > { %v2205_v41 = vpop.f32.mrb[42].mxu0  ;;  %v2513_v59 = vpop.f32.mrb[42].mxu1 }
 0x33b   : > { %v2632_v45 = vsel %vm1478_vm4, %v2604_v63, %v2605_v43  ;;  %v2298_v3 = vadd.f32 %v2205_v41, %v11656_v36  ;;  %v2606_v39 = vrot.slane %v2513_v59, 1  ;;  %v8863_v30 = vpop.f32.mrb[43].mxu0  ;;  %v8973_v14 = vpop.f32.mrb[43].mxu1  ;;  %v14922_v63 = vld [vmem:[#allocation7_spill] sm:$0xff] }
 0x33c   : > { %v12165_v34 = vadd.f32 %v2632_v45, %v2296_v27 }
 0x33d   : > { %v2631_v9 = vsel %vm1478_vm4, %v2605_v43, %v2606_v39  ;;  %9081 = vmatmul.mubr.msk.bf16.gmra.mrb[148].mxu0 %vm416_vm2, %v12170_v25  ;;  %9191 = vmatmul.mubr.msk.bf16.gmra.mrb[148].mxu1 %vm416_vm2, %v12170_v25 }
 0x33e   : > { %14920 = vst [vmem:[#allocation23_spill] sm:$0xff] %v12165_v34  ;;  %9084 = vmatprep.mubr.msk.bf16.mxu0 %vm10423_vm1, %v14893_v28  ;;  %9194 = vmatprep.mubr.msk.bf16.mxu1 %vm10423_vm1, %v14893_v28  ;;  %v12180_v62 = vadd.f32 %v2631_v9, %v2297_v19 }
 0x340   : > { %14921 = vst [vmem:[#allocation24_spill] sm:$0xff] %v12180_v62  ;;  %v2210_v36 = vpop.f32.mrb[44].mxu0  ;;  %v2518_v27 = vpop.f32.mrb[44].mxu1  ;;  %v12191_v62 = vld [vmem:[%s10488_s29 + $0xa8] sm:$0xff]  }
 0x341   : > { %v2299_v18 = vadd.f32 %v2210_v36, %v14922_v63  ;;  %v2607_v49 = vrot.slane %v2518_v27, 1  ;;  %v8866_v43 = vpop.f32.mrb[45].mxu0  ;;  %v8976_v38 = vpop.f32.mrb[45].mxu1 }
 0x342   : > { %v2213_v32 = vpop.f32.mrb[46].mxu0  ;;  %v2521_v41 = vpop.f32.mrb[46].mxu1 }
 0x343   : > { %v2630_v59 = vsel %vm1478_vm4, %v2606_v39, %v2607_v49  ;;  %v2300_v45 = vadd.f32 %v2213_v32, %v11677_v1  ;;  %v2608_v30 = vrot.slane %v2521_v41, 1  ;;  %v8867_v14 = vpop.f32.mrb[47].mxu0  ;;  %v8977_v34 = vpop.f32.mrb[47].mxu1 }
 0x344   : > { %v12186_v19 = vadd.f32 %v2630_v59, %v2298_v3  ;;  %v14925_v34 = vld [vmem:[#allocation2_spill] sm:$0xff] }
 0x345   : > { %v2629_v9 = vsel %vm1478_vm4, %v2607_v49, %v2608_v30  ;;  %9085 = vmatmul.mubr.msk.bf16.gmra.mrb[152].mxu0 %vm416_vm2, %v12191_v62  ;;  %9195 = vmatmul.mubr.msk.bf16.gmra.mrb[152].mxu1 %vm416_vm2, %v12191_v62 }
 0x346   : > { %14923 = vst [vmem:[#allocation7_spill] sm:$0xff] %v12186_v19  ;;  %9088 = vmatprep.mubr.msk.bf16.mxu0 %vm10423_vm1, %v14893_v28  ;;  %9198 = vmatprep.mubr.msk.bf16.mxu1 %vm10423_vm1, %v14893_v28  ;;  %v12201_v1 = vadd.f32 %v2629_v9, %v2299_v18 }
 0x348   : > { %14924 = vst [vmem:[#allocation25_spill] sm:$0xff] %v12201_v1  ;;  %v2218_v3 = vpop.f32.mrb[48].mxu0  ;;  %v2526_v39 = vpop.f32.mrb[48].mxu1  ;;  %v12212_v1 = vld [vmem:[%s10488_s29 + $0xb0] sm:$0xff]  }
 0x349   : > { %v2301_v36 = vadd.f32 %v2218_v3, %v14925_v34  ;;  %v2609_v27 = vrot.slane %v2526_v39, 1  ;;  %v8870_v63 = vpop.f32.mrb[49].mxu0  ;;  %v8980_v49 = vpop.f32.mrb[49].mxu1 }
 0x34a   : > { %v2221_v43 = vpop.f32.mrb[50].mxu0  ;;  %v2529_v38 = vpop.f32.mrb[50].mxu1 }
 0x34b   : > { %v2628_v32 = vsel %vm1478_vm4, %v2608_v30, %v2609_v27  ;;  %v2302_v41 = vadd.f32 %v2221_v43, %v11698_v0  ;;  %v2610_v59 = vrot.slane %v2529_v38, 1  ;;  %v8871_v14 = vpop.f32.mrb[51].mxu0  ;;  %v8981_v19 = vpop.f32.mrb[51].mxu1  ;;  %v14928_v43 = vld [vmem:[#allocation3_spill] sm:$0xff] }
 0x34c   : > { %v12207_v18 = vadd.f32 %v2628_v32, %v2300_v45 }
 0x34d   : > { %v2627_v9 = vsel %vm1478_vm4, %v2609_v27, %v2610_v59  ;;  %9089 = vmatmul.mubr.msk.bf16.gmra.mrb[156].mxu0 %vm416_vm2, %v12212_v1  ;;  %9199 = vmatmul.mubr.msk.bf16.gmra.mrb[156].mxu1 %vm416_vm2, %v12212_v1 }
 0x34e   : > { %14926 = vst [vmem:[#allocation2_spill] sm:$0xff] %v12207_v18  ;;  %9092 = vmatprep.mubr.msk.bf16.mxu0 %vm10423_vm1, %v14893_v28  ;;  %9202 = vmatprep.mubr.msk.bf16.mxu1 %vm10423_vm1, %v14893_v28  ;;  %v12222_v0 = vadd.f32 %v2627_v9, %v2301_v36 }
 0x350   : > { %14927 = vst [vmem:[#allocation26_spill] sm:$0xff] %v12222_v0  ;;  %v2226_v45 = vpop.f32.mrb[52].mxu0  ;;  %v2534_v30 = vpop.f32.mrb[52].mxu1  ;;  %v12233_v0 = vld [vmem:[%s10488_s29 + $0xb8] sm:$0xff]  }
 0x351   : > { %v2303_v19 = vadd.f32 %v2226_v45, %v11705_v22  ;;  %v2611_v3 = vrot.slane %v2534_v30, 1  ;;  %v8874_v39 = vpop.f32.mrb[53].mxu0  ;;  %v8984_v34 = vpop.f32.mrb[53].mxu1 }
 0x352   : > { %v2229_v27 = vpop.f32.mrb[54].mxu0  ;;  %v2537_v63 = vpop.f32.mrb[54].mxu1 }
 0x353   : > { %v2626_v49 = vsel %vm1478_vm4, %v2610_v59, %v2611_v3  ;;  %v2304_v38 = vadd.f32 %v2229_v27, %v14928_v43  ;;  %v2612_v32 = vrot.slane %v2537_v63, 1  ;;  %v8875_v14 = vpop.f32.mrb[55].mxu0  ;;  %v8985_v18 = vpop.f32.mrb[55].mxu1 }
 0x354   : > { %v12228_v36 = vadd.f32 %v2626_v49, %v2302_v41 }
 0x355   : > { %v2625_v9 = vsel %vm1478_vm4, %v2611_v3, %v2612_v32  ;;  %9093 = vmatmul.mubr.msk.bf16.gmra.mrb[160].mxu0 %vm416_vm2, %v12233_v0  ;;  %9203 = vmatmul.mubr.msk.bf16.gmra.mrb[160].mxu1 %vm416_vm2, %v12233_v0 }
 0x356   : > { %9096 = vmatprep.mubr.msk.bf16.mxu0 %vm10423_vm1, %v14893_v28  ;;  %9206 = vmatprep.mubr.msk.bf16.mxu1 %vm10423_vm1, %v14893_v28  ;;  %v12243_v22 = vadd.f32 %v2625_v9, %v2303_v19 }
 0x358   : > { %14929 = vst [vmem:[#allocation3_spill] sm:$0xff] %v12243_v22  ;;  %v2234_v41 = vpop.f32.mrb[56].mxu0  ;;  %v2542_v59 = vpop.f32.mrb[56].mxu1  ;;  %v12254_v22 = vld [vmem:[%s10488_s29 + $0xc0] sm:$0xff]  }
 0x359   : > { %v2305_v18 = vadd.f32 %v2234_v41, %v11726_v24  ;;  %v2613_v45 = vrot.slane %v2542_v59, 1  ;;  %v8878_v30 = vpop.f32.mrb[57].mxu0  ;;  %v8988_v3 = vpop.f32.mrb[57].mxu1 }
 0x35a   : > { %v2237_v39 = vpop.f32.mrb[58].mxu0  ;;  %v2545_v34 = vpop.f32.mrb[58].mxu1 }
 0x35b   : > { %v2624_v27 = vsel %vm1478_vm4, %v2612_v32, %v2613_v45  ;;  %v2306_v63 = vadd.f32 %v2237_v39, %v11738_v5  ;;  %v2614_v49 = vrot.slane %v2545_v34, 1  ;;  %v8879_v43 = vpop.f32.mrb[59].mxu0  ;;  %v8989_v14 = vpop.f32.mrb[59].mxu1 }
 0x35c   : > { %v12249_v19 = vadd.f32 %v2624_v27, %v2304_v38 }
 0x35d   : > { %v2623_v9 = vsel %vm1478_vm4, %v2613_v45, %v2614_v49  ;;  %9097 = vmatmul.mubr.msk.bf16.gmra.mrb[164].mxu0 %vm416_vm2, %v12254_v22  ;;  %9207 = vmatmul.mubr.msk.bf16.gmra.mrb[164].mxu1 %vm416_vm2, %v12254_v22 }
 0x35e   : > { %9100 = vmatprep.mubr.msk.bf16.mxu0 %vm10423_vm1, %v14893_v28  ;;  %9210 = vmatprep.mubr.msk.bf16.mxu1 %vm10423_vm1, %v14893_v28  ;;  %v12264_v24 = vadd.f32 %v2623_v9, %v2305_v18  ;;  %v12274_v9 = vld [vmem:[%s10488_s29 + $0xc8] sm:$0xff]  }
 0x360   : > { %v2242_v5 = vpop.f32.mrb[60].mxu0  ;;  %v2550_v38 = vpop.f32.mrb[60].mxu1 }
 0x361   : > { %v2307_v32 = vadd.f32 %v2242_v5, %v11742_v12  ;;  %v2615_v41 = vrot.slane %v2550_v38, 1  ;;  %v8882_v59 = vpop.f32.mrb[61].mxu0  ;;  %v8992_v45 = vpop.f32.mrb[61].mxu1 }
 0x362   : > { %v2245_v30 = vpop.f32.mrb[62].mxu0  ;;  %v2553_v3 = vpop.f32.mrb[62].mxu1 }
 0x363   : > { %v2622_v39 = vsel %vm1478_vm4, %v2614_v49, %v2615_v41  ;;  %v2616_v34 = vrot.slane %v2553_v3, 1  ;;  %v8883_v27 = vpop.f32.mrb[63].mxu0  ;;  %v8993_v43 = vpop.f32.mrb[63].mxu1  ;;  %v12287_v3 = vld [vmem:[%s10488_s29 + $0xd0] sm:$0xff]  }
 0x364   : > { %v12269_v14 = vadd.f32 %v2622_v39, %v2306_v63  ;;  %14931 = vst [vmem:[#allocation28_spill] sm:$0xff] %v12287_v3 }
 0x365   : > { %v2621_v18 = vsel %vm1478_vm4, %v2615_v41, %v2616_v34  ;;  %9101 = vmatmul.mubr.msk.bf16.gmra.mrb[168].mxu0 %vm416_vm2, %v12274_v9  ;;  %9211 = vmatmul.mubr.msk.bf16.gmra.mrb[168].mxu1 %vm416_vm2, %v12274_v9 }
 0x366   : > { %9104 = vmatprep.mubr.msk.bf16.mxu0 %vm10423_vm1, %v14893_v28  ;;  %9214 = vmatprep.mubr.msk.bf16.mxu1 %vm10423_vm1, %v14893_v28  ;;  %v12284_v12 = vadd.f32 %v2621_v18, %v2307_v32 }
 0x368   : > { %14930 = vst [vmem:[#allocation27_spill] sm:$0xff] %v12284_v12  ;;  %v2250_v63 = vpop.f32.mrb[64].mxu0  ;;  %v2558_v49 = vpop.f32.mrb[64].mxu1 }
 0x369   : > { %v8886_v5 = vpop.f32.mrb[65].mxu0  ;;  %v8996_v38 = vpop.f32.mrb[65].mxu1 }
 0x36a   : > { %v2253_v41 = vpop.f32.mrb[66].mxu0  ;;  %v2561_v59 = vpop.f32.mrb[66].mxu1  ;;  %v10411_v5 = vld [vmem:[%s10488_s29] sm:$0xff]  }
 0x36b   : > { %v8887_v45 = vpop.f32.mrb[67].mxu0  ;;  %v8997_v30 = vpop.f32.mrb[67].mxu1 }
 0x36d   : > { %9105 = vmatmul.mubr.msk.bf16.gmra.mrb[172].mxu0 %vm416_vm2, %v12287_v3  ;;  %9215 = vmatmul.mubr.msk.bf16.gmra.mrb[172].mxu1 %vm416_vm2, %v12287_v3 }
 0x36e   : > { %9220 = vmatprep.mubr.msk.bf16.mxu0 %vm10423_vm1, %v14893_v28  ;;  %9330 = vmatprep.mubr.msk.bf16.mxu1 %vm10423_vm1, %v14893_v28 }
 0x370   : > { %v2766_v32 = vpop.f32.mrb[68].mxu0  ;;  %v3182_v39 = vpop.f32.mrb[68].mxu1 }
 0x371   : > { %v9002_v34 = vpop.f32.mrb[69].mxu0  ;;  %v9112_v27 = vpop.f32.mrb[69].mxu1 }
 0x372   : > { %v2769_v43 = vpop.f32.mrb[70].mxu0  ;;  %v3185_v18 = vpop.f32.mrb[70].mxu1  ;;  %v10412_v27 = vld [vmem:[%s10488_s29 + $0x8] sm:$0xff]  }
 0x373   : > { %v9003_v63 = vpop.f32.mrb[71].mxu0  ;;  %v9113_v49 = vpop.f32.mrb[71].mxu1 }
 0x375   : > { %9221 = vmatmul.mubr.msk.bf16.vlgmr.msra.gmra.mrb[176].mxu0 %vm416_vm2, %v10411_v5 }
 0x376   : > { %9224 = vmatprep.mubr.msk.bf16.mxu0 %vm10423_vm1, %v14893_v28 }
 0x378   : > { %v2774_v38 = vpop.f32.mrb[72].mxu0  ;;  %v3190_v41 = vpop.f32.mrb[72].mxu1 }
 0x379   : > { %v9006_v59 = vpop.f32.mrb[73].mxu0  ;;  %v9116_v45 = vpop.f32.mrb[73].mxu1 }
 0x37a   : > { %v2777_v30 = vpop.f32.mrb[74].mxu0  ;;  %v3193_v32 = vpop.f32.mrb[74].mxu1 }
 0x37b   : > { %v9007_v39 = vpop.f32.mrb[75].mxu0  ;;  %v9117_v34 = vpop.f32.mrb[75].mxu1 }
 0x37d   : > { %9225 = vmatmul.mubr.msk.bf16.gmra.mrb[180].mxu0 %vm416_vm2, %v10412_v27 }
 0x37e   : > { %9228 = vmatprep.mubr.msk.bf16.mxu0 %vm10423_vm1, %v14893_v28 }
 0x380   : > { %v2782_v43 = vpop.f32.mrb[76].mxu0  ;;  %v3198_v18 = vpop.f32.mrb[76].mxu1 }
 0x381   : > { %v9010_v63 = vpop.f32.mrb[77].mxu0  ;;  %v9120_v49 = vpop.f32.mrb[77].mxu1 }
 0x382   : > { %v2785_v5 = vpop.f32.mrb[78].mxu0  ;;  %v3201_v12 = vpop.f32.mrb[78].mxu1 }
 0x383   : > { %v9011_v38 = vpop.f32.mrb[79].mxu0  ;;  %v9121_v41 = vpop.f32.mrb[79].mxu1  ;;  %v2986_v30 = vrot.slane %v2785_v5, 7 }
 0x384   : > { %v14932_v41 = vld [vmem:[#allocation4_spill] sm:$0xff] }
 0x385   : > { %9229 = vmatmul.mubr.msk.bf16.gmra.mrb[184].mxu0 %vm416_vm2, %v11787_v29 }
 0x386   : > { %9232 = vmatprep.mubr.msk.bf16.mxu0 %vm10423_vm1, %v14893_v28 }
 0x388   : > { %v2790_v59 = vpop.f32.mrb[80].mxu0  ;;  %v3206_v45 = vpop.f32.mrb[80].mxu1 }
 0x389   : > { %v2987_v32 = vrot.slane %v2790_v59, 7  ;;  %v9014_v39 = vpop.f32.mrb[81].mxu0  ;;  %v9124_v34 = vpop.f32.mrb[81].mxu1 }
 0x38a   : > { %v2793_v27 = vpop.f32.mrb[82].mxu0  ;;  %v3209_v43 = vpop.f32.mrb[82].mxu1 }
 0x38b   : > { %v2988_v18 = vrot.slane %v2793_v27, 7  ;;  %v9015_v63 = vpop.f32.mrb[83].mxu0  ;;  %v3082_v12 = vsel %vm807_vm3, %v2986_v30, %v2987_v32  ;;  %v9125_v49 = vpop.f32.mrb[83].mxu1 }
 0x38c   : > { %v3092_v38 = vadd.f32 %v3082_v12, %v11782_v46 }
 0x38d   : > { %9233 = vmatmul.mubr.msk.bf16.gmra.mrb[188].mxu0 %vm416_vm2, %v11808_v2  ;;  %v3081_v29 = vsel %vm807_vm3, %v2987_v32, %v2988_v18 }
 0x38e   : > { %v12316_v5 = vadd.f32 %v3206_v45, %v3092_v38  ;;  %v3093_v59 = vadd.f32 %v3081_v29, %v14932_v41  ;;  %9236 = vmatprep.mubr.msk.bf16.mxu0 %vm10423_vm1, %v14893_v28  ;;  %v14933_v41 = vld [vmem:[#allocation5_spill] sm:$0xff] }
 0x390   : > { %v12321_v39 = vadd.f32 %v3209_v43, %v3093_v59  ;;  %v2798_v34 = vpop.f32.mrb[84].mxu0  ;;  %v3214_v30 = vpop.f32.mrb[84].mxu1 }
 0x391   : > { %v2989_v27 = vrot.slane %v2798_v34, 7  ;;  %v9018_v63 = vpop.f32.mrb[85].mxu0  ;;  %v9128_v46 = vpop.f32.mrb[85].mxu1 }
 0x392   : > { %v2801_v12 = vpop.f32.mrb[86].mxu0  ;;  %v3217_v49 = vpop.f32.mrb[86].mxu1 }
 0x393   : > { %v2990_v2 = vrot.slane %v2801_v12, 7  ;;  %v9019_v3 = vpop.f32.mrb[87].mxu0  ;;  %v3080_v45 = vsel %vm807_vm3, %v2988_v18, %v2989_v27  ;;  %v9129_v32 = vpop.f32.mrb[87].mxu1 }
 0x394   : > { %v3094_v38 = vadd.f32 %v3080_v45, %v11803_v44 }
 0x395   : > { %9237 = vmatmul.mubr.msk.bf16.gmra.mrb[192].mxu0 %vm416_vm2, %v11829_v42  ;;  %v3079_v43 = vsel %vm807_vm3, %v2989_v27, %v2990_v2 }
 0x396   : > { %v12330_v29 = vadd.f32 %v3214_v30, %v3094_v38  ;;  %v3095_v59 = vadd.f32 %v3079_v43, %v14933_v41  ;;  %9240 = vmatprep.mubr.msk.bf16.mxu0 %vm10423_vm1, %v14893_v28  ;;  %v14934_v41 = vld [vmem:[#allocation6_spill] sm:$0xff] }
 0x398   : > { %v12335_v3 = vadd.f32 %v3217_v49, %v3095_v59  ;;  %v2806_v34 = vpop.f32.mrb[88].mxu0  ;;  %v3222_v18 = vpop.f32.mrb[88].mxu1 }
 0x399   : > { %v2991_v63 = vrot.slane %v2806_v34, 7  ;;  %v9022_v46 = vpop.f32.mrb[89].mxu0  ;;  %v9132_v44 = vpop.f32.mrb[89].mxu1 }
 0x39a   : > { %v2809_v12 = vpop.f32.mrb[90].mxu0  ;;  %v3225_v45 = vpop.f32.mrb[90].mxu1 }
 0x39b   : > { %v2992_v42 = vrot.slane %v2809_v12, 7  ;;  %v9023_v32 = vpop.f32.mrb[91].mxu0  ;;  %v3078_v30 = vsel %vm807_vm3, %v2990_v2, %v2991_v63  ;;  %v9133_v27 = vpop.f32.mrb[91].mxu1 }
 0x39c   : > { %v3096_v38 = vadd.f32 %v3078_v30, %v11824_v33 }
 0x39d   : > { %9241 = vmatmul.mubr.msk.bf16.gmra.mrb[196].mxu0 %vm416_vm2, %v11850_v57  ;;  %v3077_v49 = vsel %vm807_vm3, %v2991_v63, %v2992_v42 }
 0x39e   : > { %v12344_v43 = vadd.f32 %v3222_v18, %v3096_v38  ;;  %v3097_v59 = vadd.f32 %v3077_v49, %v14934_v41  ;;  %9244 = vmatprep.mubr.msk.bf16.mxu0 %vm10423_vm1, %v14893_v28  ;;  %v14935_v41 = vld [vmem:[#allocation8_spill] sm:$0xff] }
 0x3a0   : > { %v12349_v34 = vadd.f32 %v3225_v45, %v3097_v59  ;;  %v2814_v46 = vpop.f32.mrb[92].mxu0  ;;  %v3230_v2 = vpop.f32.mrb[92].mxu1 }
 0x3a1   : > { %v2993_v44 = vrot.slane %v2814_v46, 7  ;;  %v9026_v12 = vpop.f32.mrb[93].mxu0  ;;  %v9136_v33 = vpop.f32.mrb[93].mxu1 }
 0x3a2   : > { %v2817_v32 = vpop.f32.mrb[94].mxu0  ;;  %v3233_v30 = vpop.f32.mrb[94].mxu1 }
 0x3a3   : > { %v2994_v57 = vrot.slane %v2817_v32, 7  ;;  %v9027_v27 = vpop.f32.mrb[95].mxu0  ;;  %v3076_v18 = vsel %vm807_vm3, %v2992_v42, %v2993_v44  ;;  %v9137_v63 = vpop.f32.mrb[95].mxu1 }
 0x3a4   : > { %v3098_v38 = vadd.f32 %v3076_v18, %v11845_v4 }
 0x3a5   : > { %9245 = vmatmul.mubr.msk.bf16.gmra.mrb[200].mxu0 %vm416_vm2, %v11871_v20  ;;  %v3075_v45 = vsel %vm807_vm3, %v2993_v44, %v2994_v57 }
 0x3a6   : > { %v12358_v49 = vadd.f32 %v3230_v2, %v3098_v38  ;;  %v3099_v59 = vadd.f32 %v3075_v45, %v14935_v41  ;;  %9248 = vmatprep.mubr.msk.bf16.mxu0 %vm10423_vm1, %v14893_v28  ;;  %v14936_v41 = vld [vmem:[#allocation9_spill] sm:$0xff] }
 0x3a8   : > { %v12363_v46 = vadd.f32 %v3233_v30, %v3099_v59  ;;  %v2822_v12 = vpop.f32.mrb[96].mxu0  ;;  %v3238_v42 = vpop.f32.mrb[96].mxu1 }
 0x3a9   : > { %v2995_v33 = vrot.slane %v2822_v12, 7  ;;  %v9030_v32 = vpop.f32.mrb[97].mxu0  ;;  %v9140_v4 = vpop.f32.mrb[97].mxu1 }
 0x3aa   : > { %v2825_v27 = vpop.f32.mrb[98].mxu0  ;;  %v3241_v18 = vpop.f32.mrb[98].mxu1 }
 0x3ab   : > { %v2996_v20 = vrot.slane %v2825_v27, 7  ;;  %v9031_v63 = vpop.f32.mrb[99].mxu0  ;;  %v3074_v2 = vsel %vm807_vm3, %v2994_v57, %v2995_v33  ;;  %v9141_v44 = vpop.f32.mrb[99].mxu1 }
 0x3ac   : > { %v3100_v38 = vadd.f32 %v3074_v2, %v11866_v17 }
 0x3ad   : > { %9249 = vmatmul.mubr.msk.bf16.gmra.mrb[204].mxu0 %vm416_vm2, %v11892_v54  ;;  %v3073_v30 = vsel %vm807_vm3, %v2995_v33, %v2996_v20 }
 0x3ae   : > { %v12372_v45 = vadd.f32 %v3238_v42, %v3100_v38  ;;  %v3101_v59 = vadd.f32 %v3073_v30, %v14936_v41  ;;  %9252 = vmatprep.mubr.msk.bf16.mxu0 %vm10423_vm1, %v14893_v28  ;;  %v14937_v41 = vld [vmem:[#allocation10_spill] sm:$0xff] }
 0x3b0   : > { %v12377_v12 = vadd.f32 %v3241_v18, %v3101_v59  ;;  %v2830_v32 = vpop.f32.mrb[100].mxu0  ;;  %v3246_v57 = vpop.f32.mrb[100].mxu1 }
 0x3b1   : > { %v2997_v4 = vrot.slane %v2830_v32, 7  ;;  %v9034_v27 = vpop.f32.mrb[101].mxu0  ;;  %v9144_v17 = vpop.f32.mrb[101].mxu1 }
 0x3b2   : > { %v2833_v63 = vpop.f32.mrb[102].mxu0  ;;  %v3249_v2 = vpop.f32.mrb[102].mxu1 }
 0x3b3   : > { %v2998_v54 = vrot.slane %v2833_v63, 7  ;;  %v9035_v44 = vpop.f32.mrb[103].mxu0  ;;  %v3072_v42 = vsel %vm807_vm3, %v2996_v20, %v2997_v4  ;;  %v9145_v33 = vpop.f32.mrb[103].mxu1 }
 0x3b4   : > { %v3102_v38 = vadd.f32 %v3072_v42, %v11887_v51 }
 0x3b5   : > { %9253 = vmatmul.mubr.msk.bf16.gmra.mrb[208].mxu0 %vm416_vm2, %v11913_v7  ;;  %v3071_v18 = vsel %vm807_vm3, %v2997_v4, %v2998_v54 }
 0x3b6   : > { %v12386_v30 = vadd.f32 %v3246_v57, %v3102_v38  ;;  %v3103_v59 = vadd.f32 %v3071_v18, %v14937_v41  ;;  %9256 = vmatprep.mubr.msk.bf16.mxu0 %vm10423_vm1, %v14893_v28  ;;  %v14938_v41 = vld [vmem:[#allocation11_spill] sm:$0xff] }
 0x3b8   : > { %v12391_v32 = vadd.f32 %v3249_v2, %v3103_v59  ;;  %v2838_v27 = vpop.f32.mrb[104].mxu0  ;;  %v3254_v20 = vpop.f32.mrb[104].mxu1 }
 0x3b9   : > { %v2999_v17 = vrot.slane %v2838_v27, 7  ;;  %v9038_v63 = vpop.f32.mrb[105].mxu0  ;;  %v9148_v51 = vpop.f32.mrb[105].mxu1 }
 0x3ba   : > { %v2841_v44 = vpop.f32.mrb[106].mxu0  ;;  %v3257_v42 = vpop.f32.mrb[106].mxu1 }
 0x3bb   : > { %v3000_v7 = vrot.slane %v2841_v44, 7  ;;  %v9039_v33 = vpop.f32.mrb[107].mxu0  ;;  %v3070_v57 = vsel %vm807_vm3, %v2998_v54, %v2999_v17  ;;  %v9149_v4 = vpop.f32.mrb[107].mxu1 }
 0x3bc   : > { %v3104_v38 = vadd.f32 %v3070_v57, %v11908_v55 }
 0x3bd   : > { %9257 = vmatmul.mubr.msk.bf16.gmra.mrb[212].mxu0 %vm416_vm2, %v11934_v11  ;;  %v3069_v2 = vsel %vm807_vm3, %v2999_v17, %v3000_v7 }
 0x3be   : > { %v12400_v18 = vadd.f32 %v3254_v20, %v3104_v38  ;;  %v3105_v59 = vadd.f32 %v3069_v2, %v14938_v41  ;;  %9260 = vmatprep.mubr.msk.bf16.mxu0 %vm10423_vm1, %v14893_v28  ;;  %v14939_v41 = vld [vmem:[#allocation12_spill] sm:$0xff] }
 0x3c0   : > { %v12405_v27 = vadd.f32 %v3257_v42, %v3105_v59  ;;  %v2846_v63 = vpop.f32.mrb[108].mxu0  ;;  %v3262_v54 = vpop.f32.mrb[108].mxu1 }
 0x3c1   : > { %v3001_v51 = vrot.slane %v2846_v63, 7  ;;  %v9042_v44 = vpop.f32.mrb[109].mxu0  ;;  %v9152_v55 = vpop.f32.mrb[109].mxu1 }
 0x3c2   : > { %v2849_v33 = vpop.f32.mrb[110].mxu0  ;;  %v3265_v57 = vpop.f32.mrb[110].mxu1 }
 0x3c3   : > { %v3002_v11 = vrot.slane %v2849_v33, 7  ;;  %v9043_v4 = vpop.f32.mrb[111].mxu0  ;;  %v3068_v20 = vsel %vm807_vm3, %v3000_v7, %v3001_v51  ;;  %v9153_v17 = vpop.f32.mrb[111].mxu1 }
 0x3c4   : > { %v3106_v38 = vadd.f32 %v3068_v20, %v11929_v35 }
 0x3c5   : > { %9261 = vmatmul.mubr.msk.bf16.gmra.mrb[216].mxu0 %vm416_vm2, %v11955_v6  ;;  %v3067_v42 = vsel %vm807_vm3, %v3001_v51, %v3002_v11 }
 0x3c6   : > { %v12414_v2 = vadd.f32 %v3262_v54, %v3106_v38  ;;  %v3107_v59 = vadd.f32 %v3067_v42, %v14939_v41  ;;  %9264 = vmatprep.mubr.msk.bf16.mxu0 %vm10423_vm1, %v14893_v28  ;;  %v14940_v41 = vld [vmem:[#allocation13_spill] sm:$0xff] }
 0x3c8   : > { %v12419_v63 = vadd.f32 %v3265_v57, %v3107_v59  ;;  %v2854_v44 = vpop.f32.mrb[112].mxu0  ;;  %v3270_v7 = vpop.f32.mrb[112].mxu1 }
 0x3c9   : > { %v3003_v55 = vrot.slane %v2854_v44, 7  ;;  %v9046_v33 = vpop.f32.mrb[113].mxu0  ;;  %v9156_v35 = vpop.f32.mrb[113].mxu1 }
 0x3ca   : > { %v2857_v4 = vpop.f32.mrb[114].mxu0  ;;  %v3273_v20 = vpop.f32.mrb[114].mxu1 }
 0x3cb   : > { %v3004_v6 = vrot.slane %v2857_v4, 7  ;;  %v9047_v17 = vpop.f32.mrb[115].mxu0  ;;  %v3066_v54 = vsel %vm807_vm3, %v3002_v11, %v3003_v55  ;;  %v9157_v51 = vpop.f32.mrb[115].mxu1 }
 0x3cc   : > { %v3108_v38 = vadd.f32 %v3066_v54, %v11950_v52 }
 0x3cd   : > { %9265 = vmatmul.mubr.msk.bf16.gmra.mrb[220].mxu0 %vm416_vm2, %v11976_v53  ;;  %v3065_v57 = vsel %vm807_vm3, %v3003_v55, %v3004_v6 }
 0x3ce   : > { %v12428_v42 = vadd.f32 %v3270_v7, %v3108_v38  ;;  %v3109_v59 = vadd.f32 %v3065_v57, %v14940_v41  ;;  %9268 = vmatprep.mubr.msk.bf16.mxu0 %vm10423_vm1, %v14893_v28  ;;  %v14941_v41 = vld [vmem:[#allocation14_spill] sm:$0xff] }
 0x3d0   : > { %v12433_v44 = vadd.f32 %v3273_v20, %v3109_v59  ;;  %v2862_v33 = vpop.f32.mrb[116].mxu0  ;;  %v3278_v11 = vpop.f32.mrb[116].mxu1 }
 0x3d1   : > { %v3005_v35 = vrot.slane %v2862_v33, 7  ;;  %v9050_v4 = vpop.f32.mrb[117].mxu0  ;;  %v9160_v52 = vpop.f32.mrb[117].mxu1 }
 0x3d2   : > { %v2865_v17 = vpop.f32.mrb[118].mxu0  ;;  %v3281_v54 = vpop.f32.mrb[118].mxu1 }
 0x3d3   : > { %v3006_v53 = vrot.slane %v2865_v17, 7  ;;  %v9051_v51 = vpop.f32.mrb[119].mxu0  ;;  %v3064_v7 = vsel %vm807_vm3, %v3004_v6, %v3005_v35  ;;  %v9161_v55 = vpop.f32.mrb[119].mxu1 }
 0x3d4   : > { %v3110_v38 = vadd.f32 %v3064_v7, %v11971_v56 }
 0x3d5   : > { %9269 = vmatmul.mubr.msk.bf16.gmra.mrb[224].mxu0 %vm416_vm2, %v11997_v8  ;;  %v3063_v20 = vsel %vm807_vm3, %v3005_v35, %v3006_v53 }
 0x3d6   : > { %v12442_v57 = vadd.f32 %v3278_v11, %v3110_v38  ;;  %v3111_v59 = vadd.f32 %v3063_v20, %v14941_v41  ;;  %9272 = vmatprep.mubr.msk.bf16.mxu0 %vm10423_vm1, %v14893_v28  ;;  %v14942_v41 = vld [vmem:[#allocation15_spill] sm:$0xff] }
 0x3d8   : > { %v12447_v33 = vadd.f32 %v3281_v54, %v3111_v59  ;;  %v2870_v4 = vpop.f32.mrb[120].mxu0  ;;  %v3286_v6 = vpop.f32.mrb[120].mxu1 }
 0x3d9   : > { %v3007_v52 = vrot.slane %v2870_v4, 7  ;;  %v9054_v17 = vpop.f32.mrb[121].mxu0  ;;  %v9164_v56 = vpop.f32.mrb[121].mxu1 }
 0x3da   : > { %v2873_v51 = vpop.f32.mrb[122].mxu0  ;;  %v3289_v7 = vpop.f32.mrb[122].mxu1 }
 0x3db   : > { %v3008_v8 = vrot.slane %v2873_v51, 7  ;;  %v9055_v55 = vpop.f32.mrb[123].mxu0  ;;  %v3062_v11 = vsel %vm807_vm3, %v3006_v53, %v3007_v52  ;;  %v9165_v35 = vpop.f32.mrb[123].mxu1 }
 0x3dc   : > { %v3112_v38 = vadd.f32 %v3062_v11, %v11992_v21 }
 0x3dd   : > { %9273 = vmatmul.mubr.msk.bf16.gmra.mrb[228].mxu0 %vm416_vm2, %v12018_v40  ;;  %v3061_v54 = vsel %vm807_vm3, %v3007_v52, %v3008_v8 }
 0x3de   : > { %v12456_v20 = vadd.f32 %v3286_v6, %v3112_v38  ;;  %v3113_v59 = vadd.f32 %v3061_v54, %v14942_v41  ;;  %9276 = vmatprep.mubr.msk.bf16.mxu0 %vm10423_vm1, %v14893_v28 }
 0x3e0   : > { %v12461_v4 = vadd.f32 %v3289_v7, %v3113_v59  ;;  %v2878_v17 = vpop.f32.mrb[124].mxu0  ;;  %v3294_v53 = vpop.f32.mrb[124].mxu1  ;;  %v4149_v7 = vld [vmem:[%s14846_s3] sm:$0xf] }
 0x3e1   : > { %v3009_v56 = vrot.slane %v2878_v17, 7  ;;  %v9058_v51 = vpop.f32.mrb[125].mxu0  ;;  %v9168_v21 = vpop.f32.mrb[125].mxu1  ;;  %v4562_v41 = vsel %vm4234_vm5, %v4149_v7, 0  ;;  %v14943_v17 = vld [vmem:[#allocation16_spill] sm:$0xff] }
 0x3e2   : > { %v2881_v55 = vpop.f32.mrb[126].mxu0  ;;  %v3297_v11 = vpop.f32.mrb[126].mxu1  ;;  %9439 = vmatpush3.bf16.msra.mxu0 %v4562_v41 }
 0x3e3   : > { %v3010_v40 = vrot.slane %v2881_v55, 7  ;;  %v9059_v35 = vpop.f32.mrb[127].mxu0  ;;  %v3060_v6 = vsel %vm807_vm3, %v3008_v8, %v3009_v56  ;;  %v9169_v52 = vpop.f32.mrb[127].mxu1  ;;  %9658 = vmatprep.subr.bf16.mxu0 %v14893_v28 }
 0x3e4   : > { %v3114_v38 = vadd.f32 %v3060_v6, %v12013_v26  ;;  %v14853_v26 = vmov 0.0|0.0  }
 0x3e5   : > { %9277 = vmatmul.mubr.msk.bf16.gmra.mrb[232].mxu0 %vm416_vm2, %v12039_v50  ;;  %v3059_v54 = vsel %vm807_vm3, %v3009_v56, %v3010_v40  ;;  %9331 = vmatmul.mubr.bf16.vlgmr.msra.gmra.mrb[176].mxu1 %v14853_v26 }
 0x3e6   : > { %v12474_v59 = vadd.f32 %v3294_v53, %v3114_v38  ;;  %v3115_v51 = vadd.f32 %v3059_v54, %v14943_v17  ;;  %9280 = vmatprep.mubr.msk.bf16.mxu0 %vm10423_vm1, %v14893_v28  ;;  %9334 = vmatprep.mubr.msk.bf16.mxu1 %vm10423_vm1, %v14893_v28 }
 0x3e8   : > { %v12482_v50 = vadd.f32 %v3297_v11, %v3115_v51  ;;  %v2886_v8 = vpop.f32.mrb[128].mxu0  ;;  %v3302_v56 = vpop.f32.mrb[128].mxu1 }
 0x3e9   : > { %v3011_v53 = vrot.slane %v2886_v8, 7  ;;  %v9062_v21 = vpop.f32.mrb[129].mxu0  ;;  %v9172_v55 = vpop.f32.mrb[129].mxu1 }
 0x3ea   : > { %v2889_v35 = vpop.f32.mrb[130].mxu0  ;;  %v3305_v6 = vpop.f32.mrb[130].mxu1 }
 0x3eb   : > { %v3012_v52 = vrot.slane %v2889_v35, 7  ;;  %v9063_v38 = vpop.f32.mrb[131].mxu0  ;;  %v3058_v7 = vsel %vm807_vm3, %v3010_v40, %v3011_v53  ;;  %v9173_v54 = vpop.f32.mrb[131].mxu1 }
 0x3ec   : > { %v3116_v41 = vadd.f32 %v3058_v7, %v12034_v48 }
 0x3ed   : > { %9281 = vmatmul.mubr.msk.bf16.gmra.mrb[236].mxu0 %vm416_vm2, %v12065_v31  ;;  %v3057_v11 = vsel %vm807_vm3, %v3011_v53, %v3012_v52  ;;  %v7648_v31 = vld [vmem:[%s14846_s3 + $0x8] sm:$0xf] }
 0x3ee   : > { %v12492_v17 = vadd.f32 %v3302_v56, %v3116_v41  ;;  %v3117_v51 = vadd.f32 %v3057_v11, %v12049_v16  ;;  %9284 = vmatprep.mubr.msk.bf16.mxu0 %vm10423_vm1, %v14893_v28  ;;  %v14944_v41 = vld [vmem:[#allocation17_spill] sm:$0xff] }
 0x3f0   : > { %v12497_v8 = vadd.f32 %v3305_v6, %v3117_v51  ;;  %v2894_v21 = vpop.f32.mrb[132].mxu0  ;;  %v3310_v40 = vpop.f32.mrb[132].mxu1  ;;  %v4794_v6 = vsel %vm4234_vm5, %v7648_v31, 0 }
 0x3f1   : > { %v3013_v55 = vrot.slane %v2894_v21, 7  ;;  %v9066_v35 = vpop.f32.mrb[133].mxu0  ;;  %v9176_v48 = vpop.f32.mrb[133].mxu1  ;;  %9549 = vmatpush3.bf16.msra.mxu1 %v4794_v6 }
 0x3f2   : > { %v2897_v38 = vpop.f32.mrb[134].mxu0  ;;  %v3313_v7 = vpop.f32.mrb[134].mxu1  ;;  %9768 = vmatprep.subr.bf16.mxu1 %v14893_v28  ;;  %v14945_v35 = vld [vmem:[#allocation18_spill] sm:$0xff] }
 0x3f3   : > { %v3014_v56 = vrot.slane %v2897_v38, 7  ;;  %v9067_v53 = vpop.f32.mrb[135].mxu0  ;;  %v3056_v16 = vsel %vm807_vm3, %v3012_v52, %v3013_v55  ;;  %v9177_v54 = vpop.f32.mrb[135].mxu1 }
 0x3f4   : > { %v3118_v11 = vadd.f32 %v3056_v16, %v14944_v41 }
 0x3f5   : > { %9285 = vmatmul.mubr.msk.bf16.gmra.mrb[240].mxu0 %vm416_vm2, %v12086_v60  ;;  %v3055_v51 = vsel %vm807_vm3, %v3013_v55, %v3014_v56 }
 0x3f6   : > { %v12511_v21 = vadd.f32 %v3310_v40, %v3118_v11  ;;  %v3119_v48 = vadd.f32 %v3055_v51, %v14945_v35  ;;  %9288 = vmatprep.mubr.msk.bf16.mxu0 %vm10423_vm1, %v14893_v28 }
 0x3f8   : > { %v12516_v52 = vadd.f32 %v3313_v7, %v3119_v48  ;;  %v2902_v38 = vpop.f32.mrb[136].mxu0  ;;  %v3318_v31 = vpop.f32.mrb[136].mxu1  ;;  %v14946_v48 = vld [vmem:[#allocation19_spill] sm:$0xff] }
 0x3f9   : > { %v3015_v53 = vrot.slane %v2902_v38, 7  ;;  %v9070_v16 = vpop.f32.mrb[137].mxu0  ;;  %v9180_v54 = vpop.f32.mrb[137].mxu1 }
 0x3fa   : > { %v2905_v60 = vpop.f32.mrb[138].mxu0  ;;  %v3321_v6 = vpop.f32.mrb[138].mxu1 }
 0x3fb   : > { %v3016_v41 = vrot.slane %v2905_v60, 7  ;;  %v9071_v55 = vpop.f32.mrb[139].mxu0  ;;  %v3054_v40 = vsel %vm807_vm3, %v3014_v56, %v3015_v53  ;;  %v9181_v11 = vpop.f32.mrb[139].mxu1 }
 0x3fc   : > { %v3120_v51 = vadd.f32 %v3054_v40, %v12081_v23 }
 0x3fd   : > { %9289 = vmatmul.mubr.msk.bf16.gmra.mrb[244].mxu0 %vm416_vm2, %v12107_v13  ;;  %v3053_v7 = vsel %vm807_vm3, %v3015_v53, %v3016_v41 }
 0x3fe   : > { %v12525_v35 = vadd.f32 %v3318_v31, %v3120_v51  ;;  %v3121_v38 = vadd.f32 %v3053_v7, %v14946_v48  ;;  %9292 = vmatprep.mubr.msk.bf16.mxu0 %vm10423_vm1, %v14893_v28  ;;  %v14947_v48 = vld [vmem:[#allocation20_spill] sm:$0xff] }
 0x400   : > { %v12530_v16 = vadd.f32 %v3321_v6, %v3121_v38  ;;  %v2910_v54 = vpop.f32.mrb[140].mxu0  ;;  %v3326_v56 = vpop.f32.mrb[140].mxu1 }
 0x401   : > { %v3017_v60 = vrot.slane %v2910_v54, 7  ;;  %v9074_v55 = vpop.f32.mrb[141].mxu0  ;;  %v9184_v23 = vpop.f32.mrb[141].mxu1 }
 0x402   : > { %v2913_v40 = vpop.f32.mrb[142].mxu0  ;;  %v3329_v11 = vpop.f32.mrb[142].mxu1 }
 0x403   : > { %v3018_v13 = vrot.slane %v2913_v40, 7  ;;  %v9075_v26 = vpop.f32.mrb[143].mxu0  ;;  %v3052_v31 = vsel %vm807_vm3, %v3016_v41, %v3017_v60  ;;  %v9185_v53 = vpop.f32.mrb[143].mxu1 }
 0x404   : > { %v3122_v51 = vadd.f32 %v3052_v31, %v12102_v58 }
 0x405   : > { %9293 = vmatmul.mubr.msk.bf16.gmra.mrb[248].mxu0 %vm416_vm2, %v12128_v47  ;;  %v3051_v6 = vsel %vm807_vm3, %v3017_v60, %v3018_v13 }
 0x406   : > { %v12539_v7 = vadd.f32 %v3326_v56, %v3122_v51  ;;  %v3123_v38 = vadd.f32 %v3051_v6, %v14947_v48  ;;  %9296 = vmatprep.mubr.msk.bf16.mxu0 %vm10423_vm1, %v14893_v28  ;;  %v14948_v48 = vld [vmem:[#allocation21_spill] sm:$0xff] }
 0x408   : > { %v12544_v26 = vadd.f32 %v3329_v11, %v3123_v38  ;;  %v2918_v54 = vpop.f32.mrb[144].mxu0  ;;  %v3334_v41 = vpop.f32.mrb[144].mxu1 }
 0x409   : > { %v3019_v55 = vrot.slane %v2918_v54, 7  ;;  %v9078_v23 = vpop.f32.mrb[145].mxu0  ;;  %v9188_v58 = vpop.f32.mrb[145].mxu1 }
 0x40a   : > { %v2921_v40 = vpop.f32.mrb[146].mxu0  ;;  %v3337_v31 = vpop.f32.mrb[146].mxu1 }
 0x40b   : > { %v3020_v47 = vrot.slane %v2921_v40, 7  ;;  %v9079_v53 = vpop.f32.mrb[147].mxu0  ;;  %v3050_v56 = vsel %vm807_vm3, %v3018_v13, %v3019_v55  ;;  %v9189_v60 = vpop.f32.mrb[147].mxu1 }
 0x40c   : > { %v3124_v51 = vadd.f32 %v3050_v56, %v12123_v15 }
 0x40d   : > { %9297 = vmatmul.mubr.msk.bf16.gmra.mrb[252].mxu0 %vm416_vm2, %v12149_v10  ;;  %v3049_v11 = vsel %vm807_vm3, %v3019_v55, %v3020_v47 }
 0x40e   : > { %v12553_v6 = vadd.f32 %v3334_v41, %v3124_v51  ;;  %v3125_v38 = vadd.f32 %v3049_v11, %v14948_v48  ;;  %9300 = vmatprep.mubr.msk.bf16.mxu0 %vm10423_vm1, %v14893_v28  ;;  %v14949_v48 = vld [vmem:[#allocation22_spill] sm:$0xff] }
 0x410   : > { %v12558_v54 = vadd.f32 %v3337_v31, %v3125_v38  ;;  %v2926_v23 = vpop.f32.mrb[148].mxu0  ;;  %v3342_v13 = vpop.f32.mrb[148].mxu1 }
 0x411   : > { %v3021_v58 = vrot.slane %v2926_v23, 7  ;;  %v9082_v40 = vpop.f32.mrb[149].mxu0  ;;  %v9192_v15 = vpop.f32.mrb[149].mxu1 }
 0x412   : > { %v2929_v53 = vpop.f32.mrb[150].mxu0  ;;  %v3345_v56 = vpop.f32.mrb[150].mxu1 }
 0x413   : > { %v3022_v10 = vrot.slane %v2929_v53, 7  ;;  %v9083_v60 = vpop.f32.mrb[151].mxu0  ;;  %v3048_v41 = vsel %vm807_vm3, %v3020_v47, %v3021_v58  ;;  %v9193_v55 = vpop.f32.mrb[151].mxu1 }
 0x414   : > { %v3126_v51 = vadd.f32 %v3048_v41, %v12144_v61 }
 0x415   : > { %9301 = vmatmul.mubr.msk.bf16.gmra.mrb[0].mxu0 %vm416_vm2, %v12170_v25  ;;  %v3047_v31 = vsel %vm807_vm3, %v3021_v58, %v3022_v10 }
 0x416   : > { %v12567_v11 = vadd.f32 %v3342_v13, %v3126_v51  ;;  %v3127_v38 = vadd.f32 %v3047_v31, %v14949_v48  ;;  %9304 = vmatprep.mubr.msk.bf16.mxu0 %vm10423_vm1, %v14893_v28  ;;  %v14951_v51 = vld [vmem:[#allocation23_spill] sm:$0xff] }
 0x418   : > { %v12572_v23 = vadd.f32 %v3345_v56, %v3127_v38  ;;  %v2934_v40 = vpop.f32.mrb[152].mxu0  ;;  %v3350_v47 = vpop.f32.mrb[152].mxu1  ;;  %v14952_v38 = vld [vmem:[#allocation24_spill] sm:$0xff] }
 0x419   : > { %v3023_v15 = vrot.slane %v2934_v40, 7  ;;  %v9086_v53 = vpop.f32.mrb[153].mxu0  ;;  %v9196_v61 = vpop.f32.mrb[153].mxu1 }
 0x41a   : > { %14950 = vst [vmem:[#allocation4_spill] sm:$0xff] %v12572_v23  ;;  %v2937_v60 = vpop.f32.mrb[154].mxu0  ;;  %v3353_v41 = vpop.f32.mrb[154].mxu1 }
 0x41b   : > { %v3024_v25 = vrot.slane %v2937_v60, 7  ;;  %v9087_v55 = vpop.f32.mrb[155].mxu0  ;;  %v3046_v13 = vsel %vm807_vm3, %v3022_v10, %v3023_v15  ;;  %v9197_v58 = vpop.f32.mrb[155].mxu1 }
 0x41c   : > { %v3128_v31 = vadd.f32 %v3046_v13, %v14951_v51 }
 0x41d   : > { %9305 = vmatmul.mubr.msk.bf16.gmra.mrb[4].mxu0 %vm416_vm2, %v12191_v62  ;;  %v3045_v56 = vsel %vm807_vm3, %v3023_v15, %v3024_v25 }
 0x41e   : > { %v12581_v48 = vadd.f32 %v3350_v47, %v3128_v31  ;;  %v3129_v40 = vadd.f32 %v3045_v56, %v14952_v38  ;;  %9308 = vmatprep.mubr.msk.bf16.mxu0 %vm10423_vm1, %v14893_v28  ;;  %v14954_v31 = vld [vmem:[#allocation7_spill] sm:$0xff] }
 0x420   : > { %v12586_v53 = vadd.f32 %v3353_v41, %v3129_v40  ;;  %v2942_v61 = vpop.f32.mrb[156].mxu0  ;;  %v3358_v10 = vpop.f32.mrb[156].mxu1  ;;  %v14955_v40 = vld [vmem:[#allocation25_spill] sm:$0xff] }
 0x421   : > { %v3025_v60 = vrot.slane %v2942_v61, 7  ;;  %v9090_v55 = vpop.f32.mrb[157].mxu0  ;;  %v9200_v13 = vpop.f32.mrb[157].mxu1 }
 0x422   : > { %14953 = vst [vmem:[#allocation5_spill] sm:$0xff] %v12586_v53  ;;  %v2945_v58 = vpop.f32.mrb[158].mxu0  ;;  %v3361_v51 = vpop.f32.mrb[158].mxu1 }
 0x423   : > { %v3026_v62 = vrot.slane %v2945_v58, 7  ;;  %v9091_v23 = vpop.f32.mrb[159].mxu0  ;;  %v3044_v47 = vsel %vm807_vm3, %v3024_v25, %v3025_v60  ;;  %v9201_v15 = vpop.f32.mrb[159].mxu1 }
 0x424   : > { %v3130_v56 = vadd.f32 %v3044_v47, %v14954_v31 }
 0x425   : > { %9309 = vmatmul.mubr.msk.bf16.gmra.mrb[8].mxu0 %vm416_vm2, %v12212_v1  ;;  %v3043_v41 = vsel %vm807_vm3, %v3025_v60, %v3026_v62 }
 0x426   : > { %v12595_v38 = vadd.f32 %v3358_v10, %v3130_v56  ;;  %v3131_v61 = vadd.f32 %v3043_v41, %v14955_v40  ;;  %9312 = vmatprep.mubr.msk.bf16.mxu0 %vm10423_vm1, %v14893_v28  ;;  %v14957_v56 = vld [vmem:[#allocation2_spill] sm:$0xff] }
 0x428   : > { %v12600_v23 = vadd.f32 %v3361_v51, %v3131_v61  ;;  %v2950_v55 = vpop.f32.mrb[160].mxu0  ;;  %v3366_v25 = vpop.f32.mrb[160].mxu1  ;;  %v14958_v61 = vld [vmem:[#allocation26_spill] sm:$0xff] }
 0x429   : > { %v3027_v13 = vrot.slane %v2950_v55, 7  ;;  %v9094_v58 = vpop.f32.mrb[161].mxu0  ;;  %v9204_v47 = vpop.f32.mrb[161].mxu1 }
 0x42a   : > { %14956 = vst [vmem:[#allocation6_spill] sm:$0xff] %v12600_v23  ;;  %v2953_v15 = vpop.f32.mrb[162].mxu0  ;;  %v3369_v31 = vpop.f32.mrb[162].mxu1 }
 0x42b   : > { %v3028_v1 = vrot.slane %v2953_v15, 7  ;;  %v9095_v53 = vpop.f32.mrb[163].mxu0  ;;  %v3042_v10 = vsel %vm807_vm3, %v3026_v62, %v3027_v13  ;;  %v9205_v60 = vpop.f32.mrb[163].mxu1 }
 0x42c   : > { %v3132_v41 = vadd.f32 %v3042_v10, %v14957_v56 }
 0x42d   : > { %9313 = vmatmul.mubr.msk.bf16.gmra.mrb[12].mxu0 %vm416_vm2, %v12233_v0  ;;  %v3041_v51 = vsel %vm807_vm3, %v3027_v13, %v3028_v1 }
 0x42e   : > { %v12609_v40 = vadd.f32 %v3366_v25, %v3132_v41  ;;  %v3133_v55 = vadd.f32 %v3041_v51, %v14958_v61  ;;  %9316 = vmatprep.mubr.msk.bf16.mxu0 %vm10423_vm1, %v14893_v28  ;;  %v14959_v61 = vld [vmem:[#allocation3_spill] sm:$0xff] }
 0x430   : > { %v12614_v53 = vadd.f32 %v3369_v31, %v3133_v55  ;;  %v2958_v58 = vpop.f32.mrb[164].mxu0  ;;  %v3374_v62 = vpop.f32.mrb[164].mxu1 }
 0x431   : > { %v3029_v47 = vrot.slane %v2958_v58, 7  ;;  %v9098_v15 = vpop.f32.mrb[165].mxu0  ;;  %v9208_v10 = vpop.f32.mrb[165].mxu1 }
 0x432   : > { %v2961_v60 = vpop.f32.mrb[166].mxu0  ;;  %v3377_v56 = vpop.f32.mrb[166].mxu1 }
 0x433   : > { %v3030_v0 = vrot.slane %v2961_v60, 7  ;;  %v9099_v23 = vpop.f32.mrb[167].mxu0  ;;  %v3040_v25 = vsel %vm807_vm3, %v3028_v1, %v3029_v47  ;;  %v9209_v13 = vpop.f32.mrb[167].mxu1 }
 0x434   : > { %v3134_v41 = vadd.f32 %v3040_v25, %v12228_v36 }
 0x435   : > { %9317 = vmatmul.mubr.msk.bf16.gmra.mrb[16].mxu0 %vm416_vm2, %v12254_v22  ;;  %v3039_v31 = vsel %vm807_vm3, %v3029_v47, %v3030_v0 }
 0x436   : > { %v12623_v51 = vadd.f32 %v3374_v62, %v3134_v41  ;;  %v3135_v55 = vadd.f32 %v3039_v31, %v14959_v61  ;;  %9320 = vmatprep.mubr.msk.bf16.mxu0 %vm10423_vm1, %v14893_v28 }
 0x438   : > { %v12628_v23 = vadd.f32 %v3377_v56, %v3135_v55  ;;  %v2966_v58 = vpop.f32.mrb[168].mxu0  ;;  %v3382_v1 = vpop.f32.mrb[168].mxu1 }
 0x439   : > { %v3031_v15 = vrot.slane %v2966_v58, 7  ;;  %v9102_v10 = vpop.f32.mrb[169].mxu0  ;;  %v9212_v36 = vpop.f32.mrb[169].mxu1 }
 0x43a   : > { %v2969_v60 = vpop.f32.mrb[170].mxu0  ;;  %v3385_v25 = vpop.f32.mrb[170].mxu1 }
 0x43b   : > { %v3032_v22 = vrot.slane %v2969_v60, 7  ;;  %v9103_v13 = vpop.f32.mrb[171].mxu0  ;;  %v3038_v62 = vsel %vm807_vm3, %v3030_v0, %v3031_v15  ;;  %v9213_v47 = vpop.f32.mrb[171].mxu1 }
 0x43c   : > { %v3136_v41 = vadd.f32 %v3038_v62, %v12249_v19  ;;  %v14960_v47 = vld [vmem:[#allocation28_spill] sm:$0xff] }
 0x43d   : > { %9321 = vmatmul.mubr.msk.bf16.gmra.mrb[20].mxu0 %vm416_vm2, %v12274_v9  ;;  %v3037_v56 = vsel %vm807_vm3, %v3031_v15, %v3032_v22 }
 0x43e   : > { %v12637_v31 = vadd.f32 %v3382_v1, %v3136_v41  ;;  %v3137_v61 = vadd.f32 %v3037_v56, %v12264_v24  ;;  %9324 = vmatprep.mubr.msk.bf16.mxu0 %vm10423_vm1, %v14893_v28  ;;  %v14962_v56 = vld [vmem:[#allocation27_spill] sm:$0xff] }
 0x440   : > { %v12642_v55 = vadd.f32 %v3385_v25, %v3137_v61  ;;  %v2974_v58 = vpop.f32.mrb[172].mxu0  ;;  %v3390_v0 = vpop.f32.mrb[172].mxu1 }
 0x441   : > { %v3033_v10 = vrot.slane %v2974_v58, 7  ;;  %v9106_v36 = vpop.f32.mrb[173].mxu0  ;;  %v9216_v19 = vpop.f32.mrb[173].mxu1 }
 0x442   : > { %v2977_v60 = vpop.f32.mrb[174].mxu0  ;;  %v3393_v13 = vpop.f32.mrb[174].mxu1 }
 0x443   : > { %v3034_v9 = vrot.slane %v2977_v60, 7  ;;  %v9107_v62 = vpop.f32.mrb[175].mxu0  ;;  %v3036_v1 = vsel %vm807_vm3, %v3032_v22, %v3033_v10  ;;  %v9217_v15 = vpop.f32.mrb[175].mxu1  ;;  %v14964_v60 = vmov 0.0|0.0  }
 0x444   : > { %v3138_v24 = vadd.f32 %v3036_v1, %v12269_v14 }
 0x445   : > { %9325 = vmatmul.mubr.msk.bf16.gmra.mrb[24].mxu0 %vm416_vm2, %v14960_v47  ;;  %v3035_v25 = vsel %vm807_vm3, %v3033_v10, %v3034_v9 }
 0x446   : > { %v12651_v41 = vadd.f32 %v3390_v0, %v3138_v24  ;;  %v3139_v61 = vadd.f32 %v3035_v25, %v14962_v56  ;;  %9440 = vmatprep.mubr.msk.bf16.mxu0 %vm10423_vm1, %v14893_v28 }
 0x448   : > { %14961 = vst [vmem:[#allocation8_spill] sm:$0xff] %v12651_v41  ;;  %v12656_v58 = vadd.f32 %v3393_v13, %v3139_v61  ;;  %v12658_v36 = vpop.f32.mrb[176].mxu0 }
 0x449   : > { %v9222_v22 = vpop.f32.mrb[177].mxu0 }
 0x44a   : > { %14963 = vst [vmem:[#allocation9_spill] sm:$0xff] %v12656_v58  ;;  %v3493_v19 = vpop.f32.mrb[178].mxu0 }
 0x44b   : > { %v9223_v14 = vpop.f32.mrb[179].mxu0 }
 0x44d   : > { %9441 = vmatmul.mubr.bf16.vlgmr.msra.gmra.mrb[28].mxu0 %v14964_v60 }
 0x44e   : > { %9444 = vmatprep.mubr.msk.bf16.mxu0 %vm10423_vm1, %v14893_v28 }
 0x450   : > { %v3498_v10 = vpop.f32.mrb[180].mxu0 }
 0x451   : > { %v9226_v0 = vpop.f32.mrb[181].mxu0  ;;  %v12668_v10 = vld [vmem:[%s14845_s2] ss:$0 sm:$0xff] }
 0x452   : > { %v3501_v9 = vpop.f32.mrb[182].mxu0 }
 0x453   : > { %v9227_v62 = vpop.f32.mrb[183].mxu0 }
 0x458   : > { %v3506_v1 = vpop.f32.mrb[184].mxu0 }
 0x459   : > { %v9230_v15 = vpop.f32.mrb[185].mxu0 }
 0x45a   : > { %v3509_v24 = vpop.f32.mrb[186].mxu0 }
 0x45b   : > { %v9231_v47 = vpop.f32.mrb[187].mxu0 }
 0x460   : > { %v3514_v13 = vpop.f32.mrb[188].mxu0 }
 0x461   : > { %v9234_v25 = vpop.f32.mrb[189].mxu0  ;;  %v3711_v61 = vrot.slane %v3514_v13, 1 }
 0x462   : > { %v3517_v56 = vpop.f32.mrb[190].mxu0 }
 0x463   : > { %v3712_v22 = vrot.slane %v3517_v56, 1  ;;  %v9235_v19 = vpop.f32.mrb[191].mxu0 }
 0x465   : > { %v3805_v14 = vsel %vm1478_vm4, %v3711_v61, %v3712_v22 }
 0x466   : > { %v3816_v0 = vadd.f32 %v3805_v14, %v12316_v5 }
 0x468   : > { %v3877_v9 = vadd.f32 %v12668_v10, %v3816_v0  ;;  %v3522_v62 = vpop.f32.mrb[192].mxu0 }
 0x469   : > { %v3713_v1 = vrot.slane %v3522_v62, 1  ;;  %v9238_v15 = vpop.f32.mrb[193].mxu0 }
 0x46a   : > { %v3931_v24 = vmul.f32 0.2, %v3877_v9  ;;  %v3525_v47 = vpop.f32.mrb[194].mxu0 }
 0x46b   : > { %v3804_v13 = vsel %vm1478_vm4, %v3712_v22, %v3713_v1  ;;  %v3714_v25 = vrot.slane %v3525_v47, 1  ;;  %v9239_v56 = vpop.f32.mrb[195].mxu0  ;;  %v12686_v22 = vadd.s32 16, %v10794_v37 }
 0x46c   : > { %v3985_v61 = vmax.f32 %v3877_v9, %v3931_v24  ;;  %v3817_v19 = vadd.f32 %v3804_v13, %v12321_v39 }
 0x46d   : > { %v3803_v5 = vsel %vm1478_vm4, %v3713_v1, %v3714_v25  ;;  %vm4049_vm8 = vcmp.le.s32.totalorder %v12686_v22, 16  ;;  %v7700_v22 = vld [vmem:[%s14846_s3 + $0x10] sm:$0xf] }
 0x46e   : > { %v4071_v14 = vsel %vm4038_vm6, %v3985_v61, 0.0  ;;  %v3878_v0 = vadd.f32 %v12668_v10, %v3817_v19  ;;  %v3818_v62 = vadd.f32 %v3803_v5, %v12330_v29 }
 0x46f   : > { %v12683_v15 = vpack.c.bf16 %v4071_v14, %v14893_v28 }
 0x470   : > { %v3879_v9 = vadd.f32 %v12668_v10, %v3818_v62  ;;  %v3530_v39 = vpop.f32.mrb[196].mxu0  ;;  %v3932_v24 = vmul.f32 0.2, %v3878_v0 }
 0x471   : > { %14965 = vst [vmem:[#allocation10_spill] sm:$0xff] %v12683_v15  ;;  %v3715_v47 = vrot.slane %v3530_v39, 1  ;;  %v9242_v1 = vpop.f32.mrb[197].mxu0  ;;  %9335 = vmatmul.mubr.msk.bf16.gmra.mrb[180].mxu1 %vm4152_vm7, %v12683_v15  ;;  %9445 = vmatmul.mubr.msk.bf16.gmra.mrb[32].mxu0 %vm4152_vm7, %v12683_v15 }
 0x472   : > { %v3933_v29 = vmul.f32 0.2, %v3879_v9  ;;  %v3533_v13 = vpop.f32.mrb[198].mxu0  ;;  %9338 = vmatprep.mubr.msk.bf16.mxu1 %vm10423_vm1, %v14893_v28  ;;  %9448 = vmatprep.mubr.msk.bf16.mxu0 %vm10423_vm1, %v14893_v28  ;;  %v3986_v62 = vmax.f32 %v3878_v0, %v3932_v24 }
 0x473   : > { %v3802_v56 = vsel %vm1478_vm4, %v3714_v25, %v3715_v47  ;;  %v3716_v61 = vrot.slane %v3533_v13, 1  ;;  %v9243_v19 = vpop.f32.mrb[199].mxu0 }
 0x474   : > { %v3987_v5 = vmax.f32 %v3879_v9, %v3933_v29  ;;  %v3819_v14 = vadd.f32 %v3802_v56, %v12335_v3 }
 0x475   : > { %v3801_v39 = vsel %vm1478_vm4, %v3715_v47, %v3716_v61 }
 0x476   : > { %v4073_v1 = vsel %vm4049_vm8, %v3987_v5, 0.0  ;;  %v3880_v15 = vadd.f32 %v12668_v10, %v3819_v14  ;;  %v3820_v60 = vadd.f32 %v3801_v39, %v12344_v43 }
 0x477   : > { %v12707_v58 = vpack.c.bf16 %v4073_v1, %v3986_v62 }
 0x478   : > { %v3934_v41 = vmul.f32 0.2, %v3880_v15  ;;  %v3881_v25 = vadd.f32 %v12668_v10, %v3820_v60  ;;  %v3538_v13 = vpop.f32.mrb[200].mxu0 }
 0x479   : > { %v3717_v9 = vrot.slane %v3538_v13, 1  ;;  %v9246_v29 = vpop.f32.mrb[201].mxu0  ;;  %9339 = vmatmul.mubr.msk.bf16.gmra.mrb[184].mxu1 %vm4152_vm7, %v12707_v58  ;;  %9449 = vmatmul.mubr.msk.bf16.gmra.mrb[36].mxu0 %vm4152_vm7, %v12707_v58 }
 0x47a   : > { %v3988_v3 = vmax.f32 %v3880_v15, %v3934_v41  ;;  %v3935_v0 = vmul.f32 0.2, %v3881_v25  ;;  %v3541_v24 = vpop.f32.mrb[202].mxu0  ;;  %9342 = vmatprep.mubr.msk.bf16.mxu1 %vm10423_vm1, %v14893_v28  ;;  %9452 = vmatprep.mubr.msk.bf16.mxu0 %vm10423_vm1, %v14893_v28 }
 0x47b   : > { %v3800_v43 = vsel %vm1478_vm4, %v3716_v61, %v3717_v9  ;;  %v3718_v60 = vrot.slane %v3541_v24, 1  ;;  %v9247_v47 = vpop.f32.mrb[203].mxu0 }
 0x47c   : > { %v4074_v56 = vsel %vm4038_vm6, %v3988_v3, 0.0  ;;  %v3989_v19 = vmax.f32 %v3881_v25, %v3935_v0  ;;  %v3821_v5 = vadd.f32 %v3800_v43, %v12349_v34 }
 0x47d   : > { %v3799_v41 = vsel %vm1478_vm4, %v3717_v9, %v3718_v60 }
 0x47e   : > { %v12725_v15 = vpack.c.bf16 %v3989_v19, %v4074_v56  ;;  %v3882_v14 = vadd.f32 %v12668_v10, %v3821_v5  ;;  %v3822_v62 = vadd.f32 %v3799_v41, %v12358_v49 }
 0x480   : > { %v3936_v39 = vmul.f32 0.2, %v3882_v14  ;;  %v3883_v61 = vadd.f32 %v12668_v10, %v3822_v62  ;;  %v3546_v1 = vpop.f32.mrb[204].mxu0 }
 0x481   : > { %v3719_v13 = vrot.slane %v3546_v1, 1  ;;  %v9250_v29 = vpop.f32.mrb[205].mxu0  ;;  %9343 = vmatmul.mubr.msk.bf16.gmra.mrb[188].mxu1 %vm4152_vm7, %v12725_v15  ;;  %9453 = vmatmul.mubr.msk.bf16.gmra.mrb[40].mxu0 %vm4152_vm7, %v12725_v15 }
 0x482   : > { %v3990_v34 = vmax.f32 %v3882_v14, %v3936_v39  ;;  %v3937_v25 = vmul.f32 0.2, %v3883_v61  ;;  %v3549_v9 = vpop.f32.mrb[206].mxu0  ;;  %9346 = vmatprep.mubr.msk.bf16.mxu1 %vm10423_vm1, %v14893_v28  ;;  %9456 = vmatprep.mubr.msk.bf16.mxu0 %vm10423_vm1, %v14893_v28 }
 0x483   : > { %v3798_v49 = vsel %vm1478_vm4, %v3718_v60, %v3719_v13  ;;  %v3720_v3 = vrot.slane %v3549_v9, 1  ;;  %v9251_v0 = vpop.f32.mrb[207].mxu0 }
 0x484   : > { %v3991_v24 = vmax.f32 %v3883_v61, %v3937_v25  ;;  %v3823_v43 = vadd.f32 %v3798_v49, %v12363_v46  ;;  %v4076_v56 = vsel %vm4049_vm8, %v3990_v34, 0.0 }
 0x485   : > { %v3797_v47 = vsel %vm1478_vm4, %v3719_v13, %v3720_v3 }
 0x486   : > { %v4077_v19 = vsel %vm4038_vm6, %v3991_v24, 0.0  ;;  %v3884_v5 = vadd.f32 %v12668_v10, %v3823_v43  ;;  %v3824_v41 = vadd.f32 %v3797_v47, %v12372_v45 }
 0x487   : > { %v12749_v14 = vpack.c.bf16 %v4077_v19, %v4076_v56 }
 0x488   : > { %v3885_v60 = vadd.f32 %v12668_v10, %v3824_v41  ;;  %v3554_v62 = vpop.f32.mrb[208].mxu0  ;;  %v3938_v39 = vmul.f32 0.2, %v3884_v5 }
 0x489   : > { %v3721_v46 = vrot.slane %v3554_v62, 1  ;;  %v9254_v61 = vpop.f32.mrb[209].mxu0  ;;  %9347 = vmatmul.mubr.msk.bf16.gmra.mrb[192].mxu1 %vm4152_vm7, %v12749_v14  ;;  %9457 = vmatmul.mubr.msk.bf16.gmra.mrb[44].mxu0 %vm4152_vm7, %v12749_v14 }
 0x48a   : > { %v3939_v1 = vmul.f32 0.2, %v3885_v60  ;;  %v3557_v13 = vpop.f32.mrb[210].mxu0  ;;  %9350 = vmatprep.mubr.msk.bf16.mxu1 %vm10423_vm1, %v14893_v28  ;;  %9460 = vmatprep.mubr.msk.bf16.mxu0 %vm10423_vm1, %v14893_v28  ;;  %v3992_v49 = vmax.f32 %v3884_v5, %v3938_v39 }
 0x48b   : > { %v3796_v45 = vsel %vm1478_vm4, %v3720_v3, %v3721_v46  ;;  %v3722_v29 = vrot.slane %v3557_v13, 1  ;;  %v9255_v34 = vpop.f32.mrb[211].mxu0 }
 0x48c   : > { %v3993_v25 = vmax.f32 %v3885_v60, %v3939_v1  ;;  %v3825_v9 = vadd.f32 %v3796_v45, %v12377_v12 }
 0x48d   : > { %v3795_v0 = vsel %vm1478_vm4, %v3721_v46, %v3722_v29 }
 0x48e   : > { %v4079_v24 = vsel %vm4049_vm8, %v3993_v25, 0.0  ;;  %v3886_v43 = vadd.f32 %v12668_v10, %v3825_v9  ;;  %v3826_v47 = vadd.f32 %v3795_v0, %v12386_v30 }
 0x48f   : > { %v12769_v56 = vpack.c.bf16 %v4079_v24, %v3992_v49 }
 0x490   : > { %v3940_v19 = vmul.f32 0.2, %v3886_v43  ;;  %v3887_v3 = vadd.f32 %v12668_v10, %v3826_v47  ;;  %v3562_v41 = vpop.f32.mrb[212].mxu0 }
 0x491   : > { %v3723_v60 = vrot.slane %v3562_v41, 1  ;;  %v9258_v62 = vpop.f32.mrb[213].mxu0  ;;  %9351 = vmatmul.mubr.msk.bf16.gmra.mrb[196].mxu1 %vm4152_vm7, %v12769_v56  ;;  %9461 = vmatmul.mubr.msk.bf16.gmra.mrb[48].mxu0 %vm4152_vm7, %v12769_v56 }
 0x492   : > { %v3994_v12 = vmax.f32 %v3886_v43, %v3940_v19  ;;  %v3941_v5 = vmul.f32 0.2, %v3887_v3  ;;  %v3565_v39 = vpop.f32.mrb[214].mxu0  ;;  %9354 = vmatprep.mubr.msk.bf16.mxu1 %vm10423_vm1, %v14893_v28  ;;  %9464 = vmatprep.mubr.msk.bf16.mxu0 %vm10423_vm1, %v14893_v28 }
 0x493   : > { %v3794_v30 = vsel %vm1478_vm4, %v3722_v29, %v3723_v60  ;;  %v3724_v46 = vrot.slane %v3565_v39, 1  ;;  %v9259_v61 = vpop.f32.mrb[215].mxu0 }
 0x494   : > { %v4080_v1 = vsel %vm4038_vm6, %v3994_v12, 0.0  ;;  %v3995_v13 = vmax.f32 %v3887_v3, %v3941_v5  ;;  %v3827_v45 = vadd.f32 %v3794_v30, %v12391_v32 }
 0x495   : > { %v3793_v34 = vsel %vm1478_vm4, %v3723_v60, %v3724_v46 }
 0x496   : > { %v12787_v25 = vpack.c.bf16 %v3995_v13, %v4080_v1  ;;  %v3888_v9 = vadd.f32 %v12668_v10, %v3827_v45  ;;  %v3828_v49 = vadd.f32 %v3793_v34, %v12400_v18 }
 0x498   : > { %v3942_v0 = vmul.f32 0.2, %v3888_v9  ;;  %v3889_v29 = vadd.f32 %v12668_v10, %v3828_v49  ;;  %v3570_v24 = vpop.f32.mrb[216].mxu0 }
 0x499   : > { %v3725_v43 = vrot.slane %v3570_v24, 1  ;;  %v9262_v47 = vpop.f32.mrb[217].mxu0  ;;  %9355 = vmatmul.mubr.msk.bf16.gmra.mrb[200].mxu1 %vm4152_vm7, %v12787_v25  ;;  %9465 = vmatmul.mubr.msk.bf16.gmra.mrb[52].mxu0 %vm4152_vm7, %v12787_v25 }
 0x49a   : > { %v3996_v32 = vmax.f32 %v3888_v9, %v3942_v0  ;;  %v3943_v19 = vmul.f32 0.2, %v3889_v29  ;;  %v3573_v3 = vpop.f32.mrb[218].mxu0  ;;  %9358 = vmatprep.mubr.msk.bf16.mxu1 %vm10423_vm1, %v14893_v28  ;;  %9468 = vmatprep.mubr.msk.bf16.mxu0 %vm10423_vm1, %v14893_v28 }
 0x49b   : > { %v3792_v18 = vsel %vm1478_vm4, %v3724_v46, %v3725_v43  ;;  %v3726_v41 = vrot.slane %v3573_v3, 1  ;;  %v9263_v60 = vpop.f32.mrb[219].mxu0 }
 0x49c   : > { %v3997_v62 = vmax.f32 %v3889_v29, %v3943_v19  ;;  %v3829_v12 = vadd.f32 %v3792_v18, %v12405_v27  ;;  %v4082_v39 = vsel %vm4049_vm8, %v3996_v32, 0.0 }
 0x49d   : > { %v3791_v5 = vsel %vm1478_vm4, %v3725_v43, %v3726_v41 }
 0x49e   : > { %v4083_v30 = vsel %vm4038_vm6, %v3997_v62, 0.0  ;;  %v3890_v61 = vadd.f32 %v12668_v10, %v3829_v12  ;;  %v3830_v1 = vadd.f32 %v3791_v5, %v12414_v2 }
 0x49f   : > { %v12811_v13 = vpack.c.bf16 %v4083_v30, %v4082_v39 }
 0x4a0   : > { %v3891_v46 = vadd.f32 %v12668_v10, %v3830_v1  ;;  %v3578_v45 = vpop.f32.mrb[220].mxu0  ;;  %v3944_v34 = vmul.f32 0.2, %v3890_v61 }
 0x4a1   : > { %v3727_v27 = vrot.slane %v3578_v45, 1  ;;  %v9266_v9 = vpop.f32.mrb[221].mxu0  ;;  %9359 = vmatmul.mubr.msk.bf16.gmra.mrb[204].mxu1 %vm4152_vm7, %v12811_v13  ;;  %9469 = vmatmul.mubr.msk.bf16.gmra.mrb[56].mxu0 %vm4152_vm7, %v12811_v13 }
 0x4a2   : > { %v3945_v49 = vmul.f32 0.2, %v3891_v46  ;;  %v3581_v0 = vpop.f32.mrb[222].mxu0  ;;  %9362 = vmatprep.mubr.msk.bf16.mxu1 %vm10423_vm1, %v14893_v28  ;;  %9472 = vmatprep.mubr.msk.bf16.mxu0 %vm10423_vm1, %v14893_v28  ;;  %v3998_v32 = vmax.f32 %v3890_v61, %v3944_v34 }
 0x4a3   : > { %v3790_v2 = vsel %vm1478_vm4, %v3726_v41, %v3727_v27  ;;  %v3728_v29 = vrot.slane %v3581_v0, 1  ;;  %v9267_v24 = vpop.f32.mrb[223].mxu0 }
 0x4a4   : > { %v3999_v43 = vmax.f32 %v3891_v46, %v3945_v49  ;;  %v3831_v47 = vadd.f32 %v3790_v2, %v12419_v63 }
 0x4a5   : > { %v3789_v19 = vsel %vm1478_vm4, %v3727_v27, %v3728_v29 }
 0x4a6   : > { %v4085_v3 = vsel %vm4049_vm8, %v3999_v43, 0.0  ;;  %v3892_v18 = vadd.f32 %v12668_v10, %v3831_v47  ;;  %v3832_v60 = vadd.f32 %v3789_v19, %v12428_v42 }
 0x4a7   : > { %v12831_v62 = vpack.c.bf16 %v4085_v3, %v3998_v32 }
 0x4a8   : > { %v3946_v12 = vmul.f32 0.2, %v3892_v18  ;;  %v3893_v41 = vadd.f32 %v12668_v10, %v3832_v60  ;;  %v3586_v5 = vpop.f32.mrb[224].mxu0 }
 0x4a9   : > { %v3729_v39 = vrot.slane %v3586_v5, 1  ;;  %v9270_v30 = vpop.f32.mrb[225].mxu0  ;;  %9363 = vmatmul.mubr.msk.bf16.gmra.mrb[208].mxu1 %vm4152_vm7, %v12831_v62  ;;  %9473 = vmatmul.mubr.msk.bf16.gmra.mrb[60].mxu0 %vm4152_vm7, %v12831_v62 }
 0x4aa   : > { %v4000_v63 = vmax.f32 %v3892_v18, %v3946_v12  ;;  %v3947_v61 = vmul.f32 0.2, %v3893_v41  ;;  %v3589_v1 = vpop.f32.mrb[226].mxu0  ;;  %9366 = vmatprep.mubr.msk.bf16.mxu1 %vm10423_vm1, %v14893_v28  ;;  %9476 = vmatprep.mubr.msk.bf16.mxu0 %vm10423_vm1, %v14893_v28 }
 0x4ab   : > { %v3788_v42 = vsel %vm1478_vm4, %v3728_v29, %v3729_v39  ;;  %v3730_v46 = vrot.slane %v3589_v1, 1  ;;  %v9271_v45 = vpop.f32.mrb[227].mxu0 }
 0x4ac   : > { %v4086_v34 = vsel %vm4038_vm6, %v4000_v63, 0.0  ;;  %v4001_v27 = vmax.f32 %v3893_v41, %v3947_v61  ;;  %v3833_v9 = vadd.f32 %v3788_v42, %v12433_v44 }
 0x4ad   : > { %v3787_v49 = vsel %vm1478_vm4, %v3729_v39, %v3730_v46 }
 0x4ae   : > { %v12849_v0 = vpack.c.bf16 %v4001_v27, %v4086_v34  ;;  %v3894_v2 = vadd.f32 %v12668_v10, %v3833_v9  ;;  %v3834_v24 = vadd.f32 %v3787_v49, %v12442_v57  ;;  %v7674_v49 = vld [vmem:[%s14846_s3 + $0xc] sm:$0xf] }
 0x4b0   : > { %v3948_v43 = vmul.f32 0.2, %v3894_v2  ;;  %v3895_v29 = vadd.f32 %v12668_v10, %v3834_v24  ;;  %v3594_v47 = vpop.f32.mrb[228].mxu0 }
 0x4b1   : > { %v3731_v32 = vrot.slane %v3594_v47, 1  ;;  %v9274_v19 = vpop.f32.mrb[229].mxu0  ;;  %9367 = vmatmul.mubr.msk.bf16.gmra.mrb[212].mxu1 %vm4152_vm7, %v12849_v0  ;;  %9477 = vmatmul.mubr.msk.bf16.gmra.mrb[64].mxu0 %vm4152_vm7, %v12849_v0 }
 0x4b2   : > { %v4002_v44 = vmax.f32 %v3894_v2, %v3948_v43  ;;  %v3949_v3 = vmul.f32 0.2, %v3895_v29  ;;  %v3597_v18 = vpop.f32.mrb[230].mxu0  ;;  %9370 = vmatprep.mubr.msk.bf16.mxu1 %vm10423_vm1, %v14893_v28  ;;  %9480 = vmatprep.mubr.msk.bf16.mxu0 %vm10423_vm1, %v14893_v28 }
 0x4b3   : > { %v3786_v57 = vsel %vm1478_vm4, %v3730_v46, %v3731_v32  ;;  %v3732_v60 = vrot.slane %v3597_v18, 1  ;;  %v9275_v12 = vpop.f32.mrb[231].mxu0 }
 0x4b4   : > { %v4003_v41 = vmax.f32 %v3895_v29, %v3949_v3  ;;  %v3835_v5 = vadd.f32 %v3786_v57, %v12447_v33  ;;  %v4088_v30 = vsel %vm4049_vm8, %v4002_v44, 0.0  ;;  %v5155_v29 = vsel %vm4234_vm5, %v7674_v49, 0 }
 0x4b5   : > { %v3785_v39 = vsel %vm1478_vm4, %v3731_v32, %v3732_v60  ;;  %9659 = vmatpush3.bf16.msra.mxu0 %v5155_v29 }
 0x4b6   : > { %v4089_v63 = vsel %vm4038_vm6, %v4003_v41, 0.0  ;;  %v3896_v61 = vadd.f32 %v12668_v10, %v3835_v5  ;;  %v3836_v1 = vadd.f32 %v3785_v39, %v12456_v20  ;;  %9878 = vmatprep.subr.bf16.mxu0 %v14893_v28 }
 0x4b7   : > { %v12873_v42 = vpack.c.bf16 %v4089_v63, %v4088_v30 }
 0x4b8   : > { %v3950_v46 = vmul.f32 0.2, %v3896_v61  ;;  %v3897_v45 = vadd.f32 %v12668_v10, %v3836_v1  ;;  %v3602_v34 = vpop.f32.mrb[232].mxu0  ;;  %v4272_v9 = vpop.f32.mrb[176].mxu1 }
 0x4b9   : > { %14966 = vst [vmem:[#allocation11_spill] sm:$0xff] %v12873_v42  ;;  %v3733_v33 = vrot.slane %v3602_v34, 1  ;;  %v9278_v27 = vpop.f32.mrb[233].mxu0  ;;  %9371 = vmatmul.mubr.msk.bf16.gmra.mrb[216].mxu1 %vm4152_vm7, %v12873_v42  ;;  %9481 = vmatmul.mubr.msk.bf16.gmra.mrb[68].mxu0 %vm4152_vm7, %v12873_v42  ;;  %v4481_v24 = vrot.slane %v4272_v9, 1  ;;  %v9332_v43 = vpop.f32.mrb[177].mxu1 }
 0x4ba   : > { %v3951_v20 = vmul.f32 0.2, %v3897_v45  ;;  %v3605_v2 = vpop.f32.mrb[234].mxu0  ;;  %9374 = vmatprep.mubr.msk.bf16.mxu1 %vm10423_vm1, %v14893_v28  ;;  %9484 = vmatprep.mubr.msk.bf16.mxu0 %vm10423_vm1, %v14893_v28  ;;  %v12890_v44 = vpop.f32.mrb[178].mxu1  ;;  %v4004_v41 = vmax.f32 %v3896_v61, %v3950_v46 }
 0x4bb   : > { %v3784_v47 = vsel %vm1478_vm4, %v3732_v60, %v3733_v33  ;;  %v3734_v32 = vrot.slane %v3605_v2, 1  ;;  %v9279_v19 = vpop.f32.mrb[235].mxu0  ;;  %v4482_v57 = vrot.slane %v12890_v44, 1  ;;  %v9333_v12 = vpop.f32.mrb[179].mxu1 }
 0x4bc   : > { %v4005_v3 = vmax.f32 %v3897_v45, %v3951_v20  ;;  %v3837_v18 = vadd.f32 %v3784_v47, %v12461_v4 }
 0x4bd   : > { %v3783_v5 = vsel %vm1478_vm4, %v3733_v33, %v3734_v32  ;;  %v12905_v4 = vsel %vm1478_vm4, %v4481_v24, %v4482_v57 }
 0x4be   : > { %v4091_v60 = vsel %vm4049_vm8, %v4005_v3, 0.0  ;;  %v3898_v39 = vadd.f32 %v12668_v10, %v3837_v18  ;;  %v3838_v30 = vadd.f32 %v3783_v5, %v12474_v59 }
 0x4bf   : > { %v12907_v63 = vpack.c.bf16 %v4091_v60, %v4004_v41 }
 0x4c0   : > { %v3952_v1 = vmul.f32 0.2, %v3898_v39  ;;  %v3899_v61 = vadd.f32 %v12668_v10, %v3838_v30  ;;  %v3610_v46 = vpop.f32.mrb[236].mxu0 }
 0x4c1   : > { %v3735_v45 = vrot.slane %v3610_v46, 1  ;;  %v9282_v34 = vpop.f32.mrb[237].mxu0  ;;  %9375 = vmatmul.mubr.msk.bf16.gmra.mrb[220].mxu1 %vm4152_vm7, %v12907_v63  ;;  %9485 = vmatmul.mubr.msk.bf16.gmra.mrb[72].mxu0 %vm4152_vm7, %v12907_v63 }
 0x4c2   : > { %v4006_v59 = vmax.f32 %v3898_v39, %v3952_v1  ;;  %v3953_v33 = vmul.f32 0.2, %v3899_v61  ;;  %v3613_v27 = vpop.f32.mrb[238].mxu0  ;;  %9378 = vmatprep.mubr.msk.bf16.mxu1 %vm10423_vm1, %v14893_v28  ;;  %9488 = vmatprep.mubr.msk.bf16.mxu0 %vm10423_vm1, %v14893_v28 }
 0x4c3   : > { %v3782_v9 = vsel %vm1478_vm4, %v3734_v32, %v3735_v45  ;;  %v3736_v49 = vrot.slane %v3613_v27, 1  ;;  %v9283_v20 = vpop.f32.mrb[239].mxu0 }
 0x4c4   : > { %v4092_v2 = vsel %vm4038_vm6, %v4006_v59, 0.0  ;;  %v4007_v24 = vmax.f32 %v3899_v61, %v3953_v33  ;;  %v3839_v43 = vadd.f32 %v3782_v9, %v12482_v50 }
 0x4c5   : > { %v3781_v29 = vsel %vm1478_vm4, %v3735_v45, %v3736_v49 }
 0x4c6   : > { %v12925_v47 = vpack.c.bf16 %v4007_v24, %v4092_v2  ;;  %v3900_v19 = vadd.f32 %v12668_v10, %v3839_v43  ;;  %v3840_v3 = vadd.f32 %v3781_v29, %v12492_v17 }
 0x4c8   : > { %v3954_v18 = vmul.f32 0.2, %v3900_v19  ;;  %v3901_v32 = vadd.f32 %v12668_v10, %v3840_v3  ;;  %v3618_v12 = vpop.f32.mrb[240].mxu0 }
 0x4c9   : > { %v3737_v41 = vrot.slane %v3618_v12, 1  ;;  %v9286_v5 = vpop.f32.mrb[241].mxu0  ;;  %9379 = vmatmul.mubr.msk.bf16.gmra.mrb[224].mxu1 %vm4152_vm7, %v12925_v47  ;;  %9489 = vmatmul.mubr.msk.bf16.gmra.mrb[76].mxu0 %vm4152_vm7, %v12925_v47 }
 0x4ca   : > { %v4008_v50 = vmax.f32 %v3900_v19, %v3954_v18  ;;  %v3955_v60 = vmul.f32 0.2, %v3901_v32  ;;  %v3621_v39 = vpop.f32.mrb[242].mxu0  ;;  %9382 = vmatprep.mubr.msk.bf16.mxu1 %vm10423_vm1, %v14893_v28  ;;  %9492 = vmatprep.mubr.msk.bf16.mxu0 %vm10423_vm1, %v14893_v28 }
 0x4cb   : > { %v3780_v17 = vsel %vm1478_vm4, %v3736_v49, %v3737_v41  ;;  %v3738_v30 = vrot.slane %v3621_v39, 1  ;;  %v9287_v1 = vpop.f32.mrb[243].mxu0 }
 0x4cc   : > { %v4009_v61 = vmax.f32 %v3901_v32, %v3955_v60  ;;  %v3841_v46 = vadd.f32 %v3780_v17, %v12497_v8  ;;  %v4094_v34 = vsel %vm4049_vm8, %v4008_v50, 0.0 }
 0x4cd   : > { %v3779_v45 = vsel %vm1478_vm4, %v3737_v41, %v3738_v30 }
 0x4ce   : > { %v4095_v59 = vsel %vm4038_vm6, %v4009_v61, 0.0  ;;  %v3902_v33 = vadd.f32 %v12668_v10, %v3841_v46  ;;  %v3842_v27 = vadd.f32 %v3779_v45, %v12511_v21 }
 0x4cf   : > { %v12949_v9 = vpack.c.bf16 %v4095_v59, %v4094_v34 }
 0x4d0   : > { %v3903_v49 = vadd.f32 %v12668_v10, %v3842_v27  ;;  %v3626_v20 = vpop.f32.mrb[244].mxu0  ;;  %v3956_v2 = vmul.f32 0.2, %v3902_v33 }
 0x4d1   : > { %v3739_v8 = vrot.slane %v3626_v20, 1  ;;  %v9290_v24 = vpop.f32.mrb[245].mxu0  ;;  %9383 = vmatmul.mubr.msk.bf16.gmra.mrb[228].mxu1 %vm4152_vm7, %v12949_v9  ;;  %9493 = vmatmul.mubr.msk.bf16.gmra.mrb[80].mxu0 %vm4152_vm7, %v12949_v9 }
 0x4d2   : > { %v3957_v43 = vmul.f32 0.2, %v3903_v49  ;;  %v3629_v29 = vpop.f32.mrb[246].mxu0  ;;  %9386 = vmatprep.mubr.msk.bf16.mxu1 %vm10423_vm1, %v14893_v28  ;;  %9496 = vmatprep.mubr.msk.bf16.mxu0 %vm10423_vm1, %v14893_v28  ;;  %v4010_v12 = vmax.f32 %v3902_v33, %v3956_v2 }
 0x4d3   : > { %v3778_v21 = vsel %vm1478_vm4, %v3738_v30, %v3739_v8  ;;  %v3740_v19 = vrot.slane %v3629_v29, 1  ;;  %v9291_v3 = vpop.f32.mrb[247].mxu0 }
 0x4d4   : > { %v4011_v18 = vmax.f32 %v3903_v49, %v3957_v43  ;;  %v3843_v32 = vadd.f32 %v3778_v21, %v12516_v52 }
 0x4d5   : > { %v3777_v41 = vsel %vm1478_vm4, %v3739_v8, %v3740_v19 }
 0x4d6   : > { %v4097_v5 = vsel %vm4049_vm8, %v4011_v18, 0.0  ;;  %v3904_v50 = vadd.f32 %v12668_v10, %v3843_v32  ;;  %v3844_v60 = vadd.f32 %v3777_v41, %v12525_v35 }
 0x4d7   : > { %v12969_v39 = vpack.c.bf16 %v4097_v5, %v4010_v12 }
 0x4d8   : > { %v3958_v17 = vmul.f32 0.2, %v3904_v50  ;;  %v3905_v30 = vadd.f32 %v12668_v10, %v3844_v60  ;;  %v3634_v1 = vpop.f32.mrb[248].mxu0 }
 0x4d9   : > { %v3741_v61 = vrot.slane %v3634_v1, 1  ;;  %v9294_v46 = vpop.f32.mrb[249].mxu0  ;;  %9387 = vmatmul.mubr.msk.bf16.gmra.mrb[232].mxu1 %vm4152_vm7, %v12969_v39  ;;  %9497 = vmatmul.mubr.msk.bf16.gmra.mrb[84].mxu0 %vm4152_vm7, %v12969_v39 }
 0x4da   : > { %v4012_v52 = vmax.f32 %v3904_v50, %v3958_v17  ;;  %v3959_v45 = vmul.f32 0.2, %v3905_v30  ;;  %v3637_v34 = vpop.f32.mrb[250].mxu0  ;;  %9390 = vmatprep.mubr.msk.bf16.mxu1 %vm10423_vm1, %v14893_v28  ;;  %9500 = vmatprep.mubr.msk.bf16.mxu0 %vm10423_vm1, %v14893_v28 }
 0x4db   : > { %v3776_v35 = vsel %vm1478_vm4, %v3740_v19, %v3741_v61  ;;  %v3742_v59 = vrot.slane %v3637_v34, 1  ;;  %v9295_v33 = vpop.f32.mrb[251].mxu0 }
 0x4dc   : > { %v4098_v27 = vsel %vm4038_vm6, %v4012_v52, 0.0  ;;  %v4013_v49 = vmax.f32 %v3905_v30, %v3959_v45  ;;  %v3845_v20 = vadd.f32 %v3776_v35, %v12530_v16 }
 0x4dd   : > { %v3775_v2 = vsel %vm1478_vm4, %v3741_v61, %v3742_v59 }
 0x4de   : > { %v12987_v8 = vpack.c.bf16 %v4013_v49, %v4098_v27  ;;  %v3906_v24 = vadd.f32 %v12668_v10, %v3845_v20  ;;  %v3846_v43 = vadd.f32 %v3775_v2, %v12539_v7 }
 0x4e0   : > { %v3960_v29 = vmul.f32 0.2, %v3906_v24  ;;  %v3907_v21 = vadd.f32 %v12668_v10, %v3846_v43  ;;  %v3642_v19 = vpop.f32.mrb[252].mxu0 }
 0x4e1   : > { %v3743_v3 = vrot.slane %v3642_v19, 1  ;;  %v9298_v18 = vpop.f32.mrb[253].mxu0  ;;  %9391 = vmatmul.mubr.msk.bf16.gmra.mrb[236].mxu1 %vm4152_vm7, %v12987_v8  ;;  %9501 = vmatmul.mubr.msk.bf16.gmra.mrb[88].mxu0 %vm4152_vm7, %v12987_v8 }
 0x4e2   : > { %v4014_v16 = vmax.f32 %v3906_v24, %v3960_v29  ;;  %v3961_v32 = vmul.f32 0.2, %v3907_v21  ;;  %v3645_v12 = vpop.f32.mrb[254].mxu0  ;;  %9394 = vmatprep.mubr.msk.bf16.mxu1 %vm10423_vm1, %v14893_v28  ;;  %9504 = vmatprep.mubr.msk.bf16.mxu0 %vm10423_vm1, %v14893_v28 }
 0x4e3   : > { %v3774_v7 = vsel %vm1478_vm4, %v3742_v59, %v3743_v3  ;;  %v3744_v41 = vrot.slane %v3645_v12, 1  ;;  %v9299_v5 = vpop.f32.mrb[255].mxu0 }
 0x4e4   : > { %v4015_v50 = vmax.f32 %v3907_v21, %v3961_v32  ;;  %v3847_v60 = vadd.f32 %v3774_v7, %v12544_v26  ;;  %v4100_v30 = vsel %vm4049_vm8, %v4014_v16, 0.0 }
 0x4e5   : > { %v3773_v17 = vsel %vm1478_vm4, %v3743_v3, %v3744_v41 }
 0x4e6   : > { %v4101_v1 = vsel %vm4038_vm6, %v4015_v50, 0.0  ;;  %v3908_v61 = vadd.f32 %v12668_v10, %v3847_v60  ;;  %v3848_v46 = vadd.f32 %v3773_v17, %v12553_v6 }
 0x4e7   : > { %v13011_v52 = vpack.c.bf16 %v4101_v1, %v4100_v30 }
 0x4e8   : > { %v3909_v45 = vadd.f32 %v12668_v10, %v3848_v46  ;;  %v3650_v34 = vpop.f32.mrb[0].mxu0  ;;  %v3962_v35 = vmul.f32 0.2, %v3908_v61 }
 0x4e9   : > { %14967 = vst [vmem:[#allocation12_spill] sm:$0xff] %v13011_v52  ;;  %v3745_v26 = vrot.slane %v3650_v34, 1  ;;  %v9302_v59 = vpop.f32.mrb[1].mxu0  ;;  %9395 = vmatmul.mubr.msk.bf16.gmra.mrb[240].mxu1 %vm4152_vm7, %v13011_v52  ;;  %9505 = vmatmul.mubr.msk.bf16.gmra.mrb[92].mxu0 %vm4152_vm7, %v13011_v52 }
 0x4ea   : > { %v3963_v33 = vmul.f32 0.2, %v3909_v45  ;;  %v3653_v27 = vpop.f32.mrb[2].mxu0  ;;  %9398 = vmatprep.mubr.msk.bf16.mxu1 %vm10423_vm1, %v14893_v28  ;;  %9508 = vmatprep.mubr.msk.bf16.mxu0 %vm10423_vm1, %v14893_v28  ;;  %v4016_v43 = vmax.f32 %v3908_v61, %v3962_v35  ;;  %v14969_v61 = vld [vmem:[#allocation4_spill] sm:$0xff] }
 0x4eb   : > { %v3772_v6 = vsel %vm1478_vm4, %v3744_v41, %v3745_v26  ;;  %v3746_v49 = vrot.slane %v3653_v27, 1  ;;  %v9303_v20 = vpop.f32.mrb[3].mxu0 }
 0x4ec   : > { %v4017_v2 = vmax.f32 %v3909_v45, %v3963_v33  ;;  %v3849_v24 = vadd.f32 %v3772_v6, %v12558_v54 }
 0x4ed   : > { %v3771_v29 = vsel %vm1478_vm4, %v3745_v26, %v3746_v49 }
 0x4ee   : > { %v4103_v21 = vsel %vm4049_vm8, %v4017_v2, 0.0  ;;  %v3910_v19 = vadd.f32 %v12668_v10, %v3849_v24  ;;  %v3850_v3 = vadd.f32 %v3771_v29, %v12567_v11 }
 0x4ef   : > { %v13031_v18 = vpack.c.bf16 %v4103_v21, %v4016_v43 }
 0x4f0   : > { %v3964_v16 = vmul.f32 0.2, %v3910_v19  ;;  %v3911_v32 = vadd.f32 %v12668_v10, %v3850_v3  ;;  %v3658_v12 = vpop.f32.mrb[4].mxu0 }
 0x4f1   : > { %14968 = vst [vmem:[#allocation13_spill] sm:$0xff] %v13031_v18  ;;  %v3747_v7 = vrot.slane %v3658_v12, 1  ;;  %v9306_v41 = vpop.f32.mrb[5].mxu0  ;;  %9399 = vmatmul.mubr.msk.bf16.gmra.mrb[244].mxu1 %vm4152_vm7, %v13031_v18  ;;  %9509 = vmatmul.mubr.msk.bf16.gmra.mrb[96].mxu0 %vm4152_vm7, %v13031_v18 }
 0x4f2   : > { %v4018_v54 = vmax.f32 %v3910_v19, %v3964_v16  ;;  %v3965_v5 = vmul.f32 0.2, %v3911_v32  ;;  %v3661_v50 = vpop.f32.mrb[6].mxu0  ;;  %9402 = vmatprep.mubr.msk.bf16.mxu1 %vm10423_vm1, %v14893_v28  ;;  %9512 = vmatprep.mubr.msk.bf16.mxu0 %vm10423_vm1, %v14893_v28  ;;  %v14971_v19 = vld [vmem:[#allocation5_spill] sm:$0xff] }
 0x4f3   : > { %v3770_v11 = vsel %vm1478_vm4, %v3746_v49, %v3747_v7  ;;  %v3748_v60 = vrot.slane %v3661_v50, 1  ;;  %v9307_v17 = vpop.f32.mrb[7].mxu0 }
 0x4f4   : > { %v4104_v30 = vsel %vm4038_vm6, %v4018_v54, 0.0  ;;  %v4019_v1 = vmax.f32 %v3911_v32, %v3965_v5  ;;  %v3851_v46 = vadd.f32 %v3770_v11, %v14969_v61 }
 0x4f5   : > { %v3769_v45 = vsel %vm1478_vm4, %v3747_v7, %v3748_v60 }
 0x4f6   : > { %v13049_v34 = vpack.c.bf16 %v4019_v1, %v4104_v30  ;;  %v3912_v35 = vadd.f32 %v12668_v10, %v3851_v46  ;;  %v3852_v26 = vadd.f32 %v3769_v45, %v12581_v48 }
 0x4f8   : > { %14970 = vst [vmem:[#allocation14_spill] sm:$0xff] %v13049_v34  ;;  %v3966_v59 = vmul.f32 0.2, %v3912_v35  ;;  %v3913_v33 = vadd.f32 %v12668_v10, %v3852_v26  ;;  %v3666_v27 = vpop.f32.mrb[8].mxu0 }
 0x4f9   : > { %v3749_v6 = vrot.slane %v3666_v27, 1  ;;  %v9310_v49 = vpop.f32.mrb[9].mxu0  ;;  %9403 = vmatmul.mubr.msk.bf16.gmra.mrb[248].mxu1 %vm4152_vm7, %v13049_v34  ;;  %9513 = vmatmul.mubr.msk.bf16.gmra.mrb[100].mxu0 %vm4152_vm7, %v13049_v34 }
 0x4fa   : > { %v4020_v20 = vmax.f32 %v3912_v35, %v3966_v59  ;;  %v3967_v2 = vmul.f32 0.2, %v3913_v33  ;;  %v3669_v24 = vpop.f32.mrb[10].mxu0  ;;  %9406 = vmatprep.mubr.msk.bf16.mxu1 %vm10423_vm1, %v14893_v28  ;;  %9516 = vmatprep.mubr.msk.bf16.mxu0 %vm10423_vm1, %v14893_v28  ;;  %v14973_v35 = vld [vmem:[#allocation6_spill] sm:$0xff] }
 0x4fb   : > { %v3768_v48 = vsel %vm1478_vm4, %v3748_v60, %v3749_v6  ;;  %v3750_v43 = vrot.slane %v3669_v24, 1  ;;  %v9311_v29 = vpop.f32.mrb[11].mxu0 }
 0x4fc   : > { %v4021_v21 = vmax.f32 %v3913_v33, %v3967_v2  ;;  %v3853_v3 = vadd.f32 %v3768_v48, %v14971_v19  ;;  %v4106_v32 = vsel %vm4049_vm8, %v4020_v20, 0.0 }
 0x4fd   : > { %v3767_v16 = vsel %vm1478_vm4, %v3749_v6, %v3750_v43 }
 0x4fe   : > { %v4107_v12 = vsel %vm4038_vm6, %v4021_v21, 0.0  ;;  %v3914_v7 = vadd.f32 %v12668_v10, %v3853_v3  ;;  %v3854_v41 = vadd.f32 %v3767_v16, %v12595_v38 }
 0x4ff   : > { %v13073_v54 = vpack.c.bf16 %v4107_v12, %v4106_v32 }
 0x500   : > { %v3915_v5 = vadd.f32 %v12668_v10, %v3854_v41  ;;  %v3674_v50 = vpop.f32.mrb[12].mxu0  ;;  %v3968_v11 = vmul.f32 0.2, %v3914_v7 }
 0x501   : > { %14972 = vst [vmem:[#allocation15_spill] sm:$0xff] %v13073_v54  ;;  %v3751_v60 = vrot.slane %v3674_v50, 1  ;;  %v9314_v17 = vpop.f32.mrb[13].mxu0  ;;  %9407 = vmatmul.mubr.msk.bf16.gmra.mrb[252].mxu1 %vm4152_vm7, %v13073_v54  ;;  %9517 = vmatmul.mubr.msk.bf16.gmra.mrb[104].mxu0 %vm4152_vm7, %v13073_v54 }
 0x502   : > { %v3969_v30 = vmul.f32 0.2, %v3915_v5  ;;  %v3677_v1 = vpop.f32.mrb[14].mxu0  ;;  %9410 = vmatprep.mubr.msk.bf16.mxu1 %vm10423_vm1, %v14893_v28  ;;  %9520 = vmatprep.mubr.msk.bf16.mxu0 %vm10423_vm1, %v14893_v28  ;;  %v4022_v59 = vmax.f32 %v3914_v7, %v3968_v11 }
 0x503   : > { %v3766_v38 = vsel %vm1478_vm4, %v3750_v43, %v3751_v60  ;;  %v3752_v61 = vrot.slane %v3677_v1, 1  ;;  %v9315_v46 = vpop.f32.mrb[15].mxu0 }
 0x504   : > { %v4023_v45 = vmax.f32 %v3915_v5, %v3969_v30  ;;  %v3855_v26 = vadd.f32 %v3766_v38, %v14973_v35 }
 0x505   : > { %v3765_v33 = vsel %vm1478_vm4, %v3751_v60, %v3752_v61 }
 0x506   : > { %v4109_v27 = vsel %vm4049_vm8, %v4023_v45, 0.0  ;;  %v3916_v6 = vadd.f32 %v12668_v10, %v3855_v26  ;;  %v3856_v49 = vadd.f32 %v3765_v33, %v12609_v40 }
 0x507   : > { %v13093_v20 = vpack.c.bf16 %v4109_v27, %v4022_v59 }
 0x508   : > { %v3970_v2 = vmul.f32 0.2, %v3916_v6  ;;  %v3917_v24 = vadd.f32 %v12668_v10, %v3856_v49  ;;  %v3682_v48 = vpop.f32.mrb[16].mxu0 }
 0x509   : > { %14974 = vst [vmem:[#allocation16_spill] sm:$0xff] %v13093_v20  ;;  %v3753_v43 = vrot.slane %v3682_v48, 1  ;;  %v9318_v29 = vpop.f32.mrb[17].mxu0  ;;  %9411 = vmatmul.mubr.msk.bf16.gmra.mrb[0].mxu1 %vm4152_vm7, %v13093_v20  ;;  %9521 = vmatmul.mubr.msk.bf16.gmra.mrb[108].mxu0 %vm4152_vm7, %v13093_v20 }
 0x50a   : > { %v4024_v21 = vmax.f32 %v3916_v6, %v3970_v2  ;;  %v3971_v19 = vmul.f32 0.2, %v3917_v24  ;;  %v3685_v3 = vpop.f32.mrb[18].mxu0  ;;  %9414 = vmatprep.mubr.msk.bf16.mxu1 %vm10423_vm1, %v14893_v28  ;;  %9524 = vmatprep.mubr.msk.bf16.mxu0 %vm10423_vm1, %v14893_v28 }
 0x50b   : > { %v3764_v40 = vsel %vm1478_vm4, %v3752_v61, %v3753_v43  ;;  %v3754_v16 = vrot.slane %v3685_v3, 1  ;;  %v9319_v32 = vpop.f32.mrb[19].mxu0 }
 0x50c   : > { %v4110_v12 = vsel %vm4038_vm6, %v4024_v21, 0.0  ;;  %v4025_v7 = vmax.f32 %v3917_v24, %v3971_v19  ;;  %v3857_v41 = vadd.f32 %v3764_v40, %v12614_v53 }
 0x50d   : > { %v3763_v5 = vsel %vm1478_vm4, %v3753_v43, %v3754_v16 }
 0x50e   : > { %v13111_v50 = vpack.c.bf16 %v4025_v7, %v4110_v12  ;;  %v3918_v11 = vadd.f32 %v12668_v10, %v3857_v41  ;;  %v3858_v60 = vadd.f32 %v3763_v5, %v12623_v51 }
 0x510   : > { %14975 = vst [vmem:[#allocation17_spill] sm:$0xff] %v13111_v50  ;;  %v3972_v17 = vmul.f32 0.2, %v3918_v11  ;;  %v3919_v30 = vadd.f32 %v12668_v10, %v3858_v60  ;;  %v3690_v1 = vpop.f32.mrb[20].mxu0 }
 0x511   : > { %v3755_v38 = vrot.slane %v3690_v1, 1  ;;  %v9322_v61 = vpop.f32.mrb[21].mxu0  ;;  %9415 = vmatmul.mubr.msk.bf16.gmra.mrb[4].mxu1 %vm4152_vm7, %v13111_v50  ;;  %9525 = vmatmul.mubr.msk.bf16.gmra.mrb[112].mxu0 %vm4152_vm7, %v13111_v50 }
 0x512   : > { %v4026_v53 = vmax.f32 %v3918_v11, %v3972_v17  ;;  %v3973_v46 = vmul.f32 0.2, %v3919_v30  ;;  %v3693_v45 = vpop.f32.mrb[22].mxu0  ;;  %9418 = vmatprep.mubr.msk.bf16.mxu1 %vm10423_vm1, %v14893_v28  ;;  %9528 = vmatprep.mubr.msk.bf16.mxu0 %vm10423_vm1, %v14893_v28 }
 0x513   : > { %v3762_v51 = vsel %vm1478_vm4, %v3754_v16, %v3755_v38  ;;  %v3756_v35 = vrot.slane %v3693_v45, 1  ;;  %v9323_v26 = vpop.f32.mrb[23].mxu0 }
 0x514   : > { %v4027_v59 = vmax.f32 %v3919_v30, %v3973_v46  ;;  %v3859_v33 = vadd.f32 %v3762_v51, %v12628_v23  ;;  %v4112_v6 = vsel %vm4049_vm8, %v4026_v53, 0.0  ;;  %v14977_v30 = vld [vmem:[#allocation8_spill] sm:$0xff] }
 0x515   : > { %v3761_v27 = vsel %vm1478_vm4, %v3755_v38, %v3756_v35  ;;  %v14978_v38 = vld [vmem:[#allocation9_spill] sm:$0xff] }
 0x516   : > { %v4113_v49 = vsel %vm4038_vm6, %v4027_v59, 0.0  ;;  %v3920_v2 = vadd.f32 %v12668_v10, %v3859_v33  ;;  %v3860_v24 = vadd.f32 %v3761_v27, %v12637_v31  ;;  %v3705_v31 = vrot.slane %v12658_v36, 1  ;;  %v10413_v36 = vld [vmem:[%s14845_s2] ss:$0 sm:$0xff] }
 0x517   : > { %v13135_v48 = vpack.c.bf16 %v4113_v49, %v4112_v6 }
 0x518   : > { %v3921_v43 = vadd.f32 %v12668_v10, %v3860_v24  ;;  %v3698_v29 = vpop.f32.mrb[24].mxu0  ;;  %v3974_v21 = vmul.f32 0.2, %v3920_v2 }
 0x519   : > { %14976 = vst [vmem:[#allocation18_spill] sm:$0xff] %v13135_v48  ;;  %v3757_v23 = vrot.slane %v3698_v29, 1  ;;  %v9326_v19 = vpop.f32.mrb[25].mxu0  ;;  %9419 = vmatmul.mubr.msk.bf16.gmra.mrb[8].mxu1 %vm4152_vm7, %v13135_v48  ;;  %9529 = vmatmul.mubr.msk.bf16.gmra.mrb[116].mxu0 %vm4152_vm7, %v13135_v48 }
 0x51a   : > { %v3975_v3 = vmul.f32 0.2, %v3921_v43  ;;  %v3701_v40 = vpop.f32.mrb[26].mxu0  ;;  %9422 = vmatprep.mubr.msk.bf16.mxu1 %vm10423_vm1, %v14893_v28  ;;  %9532 = vmatprep.mubr.msk.bf16.mxu0 %vm10423_vm1, %v14893_v28  ;;  %v4028_v41 = vmax.f32 %v3920_v2, %v3974_v21  ;;  %v5419_v19 = vsel %vm4234_vm5, %v7700_v22, 0 }
 0x51b   : > { %v3760_v10 = vsel %vm1478_vm4, %v3756_v35, %v3757_v23  ;;  %v3758_v16 = vrot.slane %v3701_v40, 1  ;;  %v9327_v32 = vpop.f32.mrb[27].mxu0 }
 0x51c   : > { %v4029_v12 = vmax.f32 %v3921_v43, %v3975_v3  ;;  %v3861_v7 = vadd.f32 %v3760_v10, %v12642_v55 }
 0x51d   : > { %v3759_v5 = vsel %vm1478_vm4, %v3757_v23, %v3758_v16  ;;  %v3812_v11 = vsel %vm1478_vm4, %v3758_v16, %v3705_v31  ;;  %v14981_v23 = vmov 0.0|0.0  }
 0x51e   : > { %v4115_v60 = vsel %vm4049_vm8, %v4029_v12, 0.0  ;;  %v3922_v17 = vadd.f32 %v10413_v36, %v3861_v7  ;;  %v3862_v1 = vadd.f32 %v3759_v5, %v14977_v30  ;;  %v3863_v61 = vadd.f32 %v3812_v11, %v14978_v38 }
 0x51f   : > { %v13161_v55 = vpack.c.bf16 %v4115_v60, %v4028_v41  ;;  %v14982_v60 = vld [vmem:[#allocation10_spill] sm:$0xff] }
 0x520   : > { %v3976_v53 = vmul.f32 0.2, %v3922_v17  ;;  %v3923_v46 = vadd.f32 %v10413_v36, %v3862_v1  ;;  %v3924_v45 = vadd.f32 %v10413_v36, %v3863_v61  ;;  %v4598_v51 = vpop.f32.mrb[28].mxu0 }
 0x521   : > { %9423 = vmatmul.mubr.msk.bf16.gmra.mrb[12].mxu1 %vm4152_vm7, %v13161_v55  ;;  %9533 = vmatmul.mubr.msk.bf16.gmra.mrb[120].mxu0 %vm4152_vm7, %v13161_v55  ;;  %v13168_v35 = vadd.f32 %v4598_v51, %v12905_v4  ;;  %v9442_v26 = vpop.f32.mrb[29].mxu0 }
 0x522   : > { %v4030_v59 = vmax.f32 %v3922_v17, %v3976_v53  ;;  %v3977_v33 = vmul.f32 0.2, %v3923_v46  ;;  %9426 = vmatprep.mubr.msk.bf16.mxu1 %vm10423_vm1, %v14893_v28  ;;  %9536 = vmatprep.mubr.msk.bf16.mxu0 %vm10423_vm1, %v14893_v28  ;;  %v4601_v27 = vpop.f32.mrb[30].mxu0  ;;  %v3978_v2 = vmul.f32 0.2, %v3924_v45 }
 0x523   : > { %v9443_v6 = vpop.f32.mrb[31].mxu0 }
 0x524   : > { %v4116_v49 = vsel %vm4038_vm6, %v4030_v59, 0.0  ;;  %v4031_v24 = vmax.f32 %v3923_v46, %v3977_v33  ;;  %v4032_v4 = vmax.f32 %v3924_v45, %v3978_v2 }
 0x526   : > { %v13176_v43 = vpack.c.bf16 %v4031_v24, %v4116_v49  ;;  %v4118_v29 = vsel %vm4049_vm8, %v4032_v4, 0.0 }
 0x527   : > { %v13189_v21 = vpack.c.bf16 %v14893_v28, %v4118_v29 }
 0x528   : > { %14979 = vst [vmem:[#allocation19_spill] sm:$0xff] %v13176_v43 }
 0x529   : > { %9427 = vmatmul.mubr.msk.bf16.gmra.mrb[16].mxu1 %vm4152_vm7, %v13176_v43  ;;  %9537 = vmatmul.mubr.msk.bf16.gmra.mrb[124].mxu0 %vm4152_vm7, %v13176_v43  ;;  %14980 = vst [vmem:[#allocation20_spill] sm:$0xff] %v13189_v21 }
 0x52a   : > { %9430 = vmatprep.mubr.msk.bf16.mxu1 %vm10423_vm1, %v14893_v28  ;;  %9540 = vmatprep.mubr.msk.bf16.mxu0 %vm10423_vm1, %v14893_v28 }
 0x531   : > { %9431 = vmatmul.mubr.msk.bf16.gmra.mrb[20].mxu1 %vm4152_vm7, %v13189_v21  ;;  %9541 = vmatmul.mubr.msk.bf16.gmra.mrb[128].mxu0 %vm4152_vm7, %v13189_v21 }
 0x532   : > { %9434 = vmatprep.mubr.msk.bf16.mxu1 %vm10423_vm1, %v14893_v28  ;;  %9544 = vmatprep.mubr.msk.bf16.mxu0 %vm10423_vm1, %v14893_v28 }
 0x539   : > { %9435 = vmatmul.mubr.bf16.gmra.mrb[24].mxu1 %v14981_v23  ;;  %9545 = vmatmul.mubr.bf16.gmra.mrb[132].mxu0 %v14981_v23 }
 0x53a   : > { %9550 = vmatprep.mubr.msk.bf16.mxu1 %vm10423_vm1, %v14893_v28  ;;  %9660 = vmatprep.mubr.msk.bf16.mxu0 %vm10423_vm1, %v14893_v28 }
 0x541   : > { %9551 = vmatmul.mubr.bf16.vlgmr.msra.gmra.mrb[28].mxu1 %v14981_v23  ;;  %9661 = vmatmul.mubr.bf16.vlgmr.msra.gmra.mrb[136].mxu0 %v14981_v23 }
 0x542   : > { %9769 = vmatpush3.bf16.msra.mxu1 %v5419_v19  ;;  %9554 = vmatprep.mubr.msk.bf16.mxu1 %vm10423_vm1, %v14893_v28 }
 0x543   : > { %9664 = vmatprep.mubr.msk.bf16.mxu0 %vm10423_vm1, %v14893_v28  ;;  %9988 = vmatprep.subr.bf16.mxu1 %v14893_v28 }
 0x544   : > { %v4280_v3 = vpop.f32.mrb[180].mxu1  ;;  %v4606_v40 = vpop.f32.mrb[32].mxu0 }
 0x545   : > { %v4483_v31 = vrot.slane %v4280_v3, 1  ;;  %v9336_v10 = vpop.f32.mrb[181].mxu1  ;;  %v9446_v16 = vpop.f32.mrb[33].mxu0 }
 0x546   : > { %v4283_v32 = vpop.f32.mrb[182].mxu1  ;;  %v4608_v12 = vpop.f32.mrb[34].mxu0 }
 0x547   : > { %v4559_v7 = vsel %vm1478_vm4, %v4482_v57, %v4483_v31  ;;  %v9337_v41 = vpop.f32.mrb[183].mxu1  ;;  %v9447_v5 = vpop.f32.mrb[35].mxu0  ;;  %v4484_v17 = vrot.slane %v4283_v32, 1 }
 0x548   : > { %v13220_v11 = vadd.f32 %v4601_v27, %v4559_v7 }
 0x549   : > { %9555 = vmatmul.mubr.msk.bf16.gmra.mrb[32].mxu1 %vm4152_vm7, %v14982_v60  ;;  %9665 = vmatmul.mubr.msk.bf16.gmra.mrb[140].mxu0 %vm4152_vm7, %v14982_v60 }
 0x54a   : > { %9558 = vmatprep.mubr.msk.bf16.mxu1 %vm10423_vm1, %v14893_v28  ;;  %9668 = vmatprep.mubr.msk.bf16.mxu0 %vm10423_vm1, %v14893_v28 }
 0x54c   : > { %v4288_v44 = vpop.f32.mrb[184].mxu1  ;;  %v4613_v36 = vpop.f32.mrb[36].mxu0 }
 0x54d   : > { %v4485_v57 = vrot.slane %v4288_v44, 1  ;;  %v9340_v30 = vpop.f32.mrb[185].mxu1  ;;  %v9450_v1 = vpop.f32.mrb[37].mxu0 }
 0x54e   : > { %v4291_v38 = vpop.f32.mrb[186].mxu1  ;;  %v4616_v61 = vpop.f32.mrb[38].mxu0 }
 0x54f   : > { %v4558_v53 = vsel %vm1478_vm4, %v4484_v17, %v4485_v57  ;;  %v4486_v46 = vrot.slane %v4291_v38, 1  ;;  %v9341_v45 = vpop.f32.mrb[187].mxu1  ;;  %v9451_v51 = vpop.f32.mrb[39].mxu0 }
 0x550   : > { %v13232_v26 = vadd.f32 %v4608_v12, %v4558_v53 }
 0x551   : > { %v4557_v59 = vsel %vm1478_vm4, %v4485_v57, %v4486_v46  ;;  %9559 = vmatmul.mubr.msk.bf16.gmra.mrb[36].mxu1 %vm4152_vm7, %v12707_v58  ;;  %9669 = vmatmul.mubr.msk.bf16.gmra.mrb[144].mxu0 %vm4152_vm7, %v12707_v58 }
 0x552   : > { %9562 = vmatprep.mubr.msk.bf16.mxu1 %vm10423_vm1, %v14893_v28  ;;  %9672 = vmatprep.mubr.msk.bf16.mxu0 %vm10423_vm1, %v14893_v28  ;;  %v13244_v33 = vadd.f32 %v4613_v36, %v4557_v59 }
 0x554   : > { %v4296_v27 = vpop.f32.mrb[188].mxu1  ;;  %v4620_v6 = vpop.f32.mrb[40].mxu0 }
 0x555   : > { %v9344_v49 = vpop.f32.mrb[189].mxu1  ;;  %v9454_v2 = vpop.f32.mrb[41].mxu0  ;;  %v4487_v29 = vrot.slane %v4296_v27, 1 }
 0x556   : > { %v4299_v24 = vpop.f32.mrb[190].mxu1  ;;  %v4623_v4 = vpop.f32.mrb[42].mxu0 }
 0x557   : > { %v4488_v22 = vrot.slane %v4299_v24, 1  ;;  %v9345_v19 = vpop.f32.mrb[191].mxu1  ;;  %v9455_v3 = vpop.f32.mrb[43].mxu0 }
 0x559   : > { %v4556_v40 = vsel %vm1478_vm4, %v4487_v29, %v4488_v22  ;;  %9563 = vmatmul.mubr.msk.bf16.gmra.mrb[40].mxu1 %vm4152_vm7, %v12725_v15  ;;  %9673 = vmatmul.mubr.msk.bf16.gmra.mrb[148].mxu0 %vm4152_vm7, %v12725_v15 }
 0x55a   : > { %9566 = vmatprep.mubr.msk.bf16.mxu1 %vm10423_vm1, %v14893_v28  ;;  %9676 = vmatprep.mubr.msk.bf16.mxu0 %vm10423_vm1, %v14893_v28  ;;  %v13256_v31 = vadd.f32 %v4620_v6, %v4556_v40 }
 0x55c   : > { %v4304_v10 = vpop.f32.mrb[192].mxu1  ;;  %v4628_v16 = vpop.f32.mrb[44].mxu0 }
 0x55d   : > { %v4489_v32 = vrot.slane %v4304_v10, 1  ;;  %v9348_v12 = vpop.f32.mrb[193].mxu1  ;;  %v9458_v7 = vpop.f32.mrb[45].mxu0 }
 0x55e   : > { %v4307_v41 = vpop.f32.mrb[194].mxu1  ;;  %v4630_v5 = vpop.f32.mrb[46].mxu0 }
 0x55f   : > { %v4555_v44 = vsel %vm1478_vm4, %v4488_v22, %v4489_v32  ;;  %v9349_v36 = vpop.f32.mrb[195].mxu1  ;;  %v9459_v17 = vpop.f32.mrb[47].mxu0  ;;  %v4490_v38 = vrot.slane %v4307_v41, 1 }
 0x560   : > { %v13260_v57 = vadd.f32 %v4623_v4, %v4555_v44 }
 0x561   : > { %9567 = vmatmul.mubr.msk.bf16.gmra.mrb[44].mxu1 %vm4152_vm7, %v12749_v14  ;;  %9677 = vmatmul.mubr.msk.bf16.gmra.mrb[152].mxu0 %vm4152_vm7, %v12749_v14 }
 0x562   : > { %9570 = vmatprep.mubr.msk.bf16.mxu1 %vm10423_vm1, %v14893_v28  ;;  %9680 = vmatprep.mubr.msk.bf16.mxu0 %vm10423_vm1, %v14893_v28 }
 0x564   : > { %v4312_v30 = vpop.f32.mrb[196].mxu1  ;;  %v4635_v1 = vpop.f32.mrb[48].mxu0 }
 0x565   : > { %v4491_v61 = vrot.slane %v4312_v30, 1  ;;  %v9352_v53 = vpop.f32.mrb[197].mxu1  ;;  %v9462_v46 = vpop.f32.mrb[49].mxu0 }
 0x566   : > { %v4315_v45 = vpop.f32.mrb[198].mxu1  ;;  %v4638_v51 = vpop.f32.mrb[50].mxu0 }
 0x567   : > { %v4554_v59 = vsel %vm1478_vm4, %v4490_v38, %v4491_v61  ;;  %v4492_v27 = vrot.slane %v4315_v45, 1  ;;  %v9353_v6 = vpop.f32.mrb[199].mxu1  ;;  %v9463_v49 = vpop.f32.mrb[51].mxu0 }
 0x568   : > { %v13272_v2 = vadd.f32 %v4630_v5, %v4554_v59 }
 0x569   : > { %v4553_v24 = vsel %vm1478_vm4, %v4491_v61, %v4492_v27  ;;  %9571 = vmatmul.mubr.msk.bf16.gmra.mrb[48].mxu1 %vm4152_vm7, %v12769_v56  ;;  %9681 = vmatmul.mubr.msk.bf16.gmra.mrb[156].mxu0 %vm4152_vm7, %v12769_v56 }
 0x56a   : > { %9574 = vmatprep.mubr.msk.bf16.mxu1 %vm10423_vm1, %v14893_v28  ;;  %9684 = vmatprep.mubr.msk.bf16.mxu0 %vm10423_vm1, %v14893_v28  ;;  %v13284_v4 = vadd.f32 %v4635_v1, %v4553_v24 }
 0x56c   : > { %v4320_v29 = vpop.f32.mrb[200].mxu1  ;;  %v4642_v22 = vpop.f32.mrb[52].mxu0 }
 0x56d   : > { %v9356_v19 = vpop.f32.mrb[201].mxu1  ;;  %v9466_v3 = vpop.f32.mrb[53].mxu0  ;;  %v4493_v16 = vrot.slane %v4320_v29, 1 }
 0x56e   : > { %v4323_v40 = vpop.f32.mrb[202].mxu1  ;;  %v4645_v10 = vpop.f32.mrb[54].mxu0 }
 0x56f   : > { %v4494_v32 = vrot.slane %v4323_v40, 1  ;;  %v9357_v12 = vpop.f32.mrb[203].mxu1  ;;  %v9467_v7 = vpop.f32.mrb[55].mxu0 }
 0x571   : > { %v4552_v41 = vsel %vm1478_vm4, %v4493_v16, %v4494_v32  ;;  %9575 = vmatmul.mubr.msk.bf16.gmra.mrb[52].mxu1 %vm4152_vm7, %v12787_v25  ;;  %9685 = vmatmul.mubr.msk.bf16.gmra.mrb[160].mxu0 %vm4152_vm7, %v12787_v25 }
 0x572   : > { %9578 = vmatprep.mubr.msk.bf16.mxu1 %vm10423_vm1, %v14893_v28  ;;  %9688 = vmatprep.mubr.msk.bf16.mxu0 %vm10423_vm1, %v14893_v28  ;;  %v13296_v5 = vadd.f32 %v4642_v22, %v4552_v41 }
 0x574   : > { %v4328_v44 = vpop.f32.mrb[204].mxu1  ;;  %v4650_v36 = vpop.f32.mrb[56].mxu0 }
 0x575   : > { %v4495_v17 = vrot.slane %v4328_v44, 1  ;;  %v9360_v30 = vpop.f32.mrb[205].mxu1  ;;  %v9470_v1 = vpop.f32.mrb[57].mxu0 }
 0x576   : > { %v4331_v38 = vpop.f32.mrb[206].mxu1  ;;  %v4652_v61 = vpop.f32.mrb[58].mxu0 }
 0x577   : > { %v4551_v53 = vsel %vm1478_vm4, %v4494_v32, %v4495_v17  ;;  %v9361_v46 = vpop.f32.mrb[207].mxu1  ;;  %v9471_v45 = vpop.f32.mrb[59].mxu0  ;;  %v4496_v6 = vrot.slane %v4331_v38, 1 }
 0x578   : > { %v13300_v51 = vadd.f32 %v4645_v10, %v4551_v53 }
 0x579   : > { %9579 = vmatmul.mubr.msk.bf16.gmra.mrb[56].mxu1 %vm4152_vm7, %v12811_v13  ;;  %9689 = vmatmul.mubr.msk.bf16.gmra.mrb[164].mxu0 %vm4152_vm7, %v12811_v13 }
 0x57a   : > { %9582 = vmatprep.mubr.msk.bf16.mxu1 %vm10423_vm1, %v14893_v28  ;;  %9692 = vmatprep.mubr.msk.bf16.mxu0 %vm10423_vm1, %v14893_v28 }
 0x57c   : > { %v4336_v59 = vpop.f32.mrb[208].mxu1  ;;  %v4657_v27 = vpop.f32.mrb[60].mxu0 }
 0x57d   : > { %v4497_v49 = vrot.slane %v4336_v59, 1  ;;  %v9364_v24 = vpop.f32.mrb[209].mxu1  ;;  %v9474_v29 = vpop.f32.mrb[61].mxu0 }
 0x57e   : > { %v4339_v22 = vpop.f32.mrb[210].mxu1  ;;  %v4660_v19 = vpop.f32.mrb[62].mxu0 }
 0x57f   : > { %v4550_v3 = vsel %vm1478_vm4, %v4496_v6, %v4497_v49  ;;  %v4498_v40 = vrot.slane %v4339_v22, 1  ;;  %v9365_v10 = vpop.f32.mrb[211].mxu1  ;;  %v9475_v16 = vpop.f32.mrb[63].mxu0 }
 0x580   : > { %v13312_v32 = vadd.f32 %v4652_v61, %v4550_v3 }
 0x581   : > { %v4549_v12 = vsel %vm1478_vm4, %v4497_v49, %v4498_v40  ;;  %9583 = vmatmul.mubr.msk.bf16.gmra.mrb[60].mxu1 %vm4152_vm7, %v12831_v62  ;;  %9693 = vmatmul.mubr.msk.bf16.gmra.mrb[168].mxu0 %vm4152_vm7, %v12831_v62 }
 0x582   : > { %9586 = vmatprep.mubr.msk.bf16.mxu1 %vm10423_vm1, %v14893_v28  ;;  %9696 = vmatprep.mubr.msk.bf16.mxu0 %vm10423_vm1, %v14893_v28  ;;  %v13324_v7 = vadd.f32 %v4657_v27, %v4549_v12 }
 0x584   : > { %v4344_v41 = vpop.f32.mrb[212].mxu1  ;;  %v4664_v44 = vpop.f32.mrb[64].mxu0 }
 0x585   : > { %v9368_v36 = vpop.f32.mrb[213].mxu1  ;;  %v9478_v17 = vpop.f32.mrb[65].mxu0  ;;  %v4499_v38 = vrot.slane %v4344_v41, 1 }
 0x586   : > { %v4347_v30 = vpop.f32.mrb[214].mxu1  ;;  %v4667_v1 = vpop.f32.mrb[66].mxu0 }
 0x587   : > { %v4500_v61 = vrot.slane %v4347_v30, 1  ;;  %v9369_v53 = vpop.f32.mrb[215].mxu1  ;;  %v9479_v46 = vpop.f32.mrb[67].mxu0 }
 0x589   : > { %v4548_v45 = vsel %vm1478_vm4, %v4499_v38, %v4500_v61  ;;  %9587 = vmatmul.mubr.msk.bf16.gmra.mrb[64].mxu1 %vm4152_vm7, %v12849_v0  ;;  %9697 = vmatmul.mubr.msk.bf16.gmra.mrb[172].mxu0 %vm4152_vm7, %v12849_v0 }
 0x58a   : > { %9590 = vmatprep.mubr.msk.bf16.mxu1 %vm10423_vm1, %v14893_v28  ;;  %9700 = vmatprep.mubr.msk.bf16.mxu0 %vm10423_vm1, %v14893_v28  ;;  %v13336_v59 = vadd.f32 %v4664_v44, %v4548_v45  ;;  %v7726_v44 = vld [vmem:[%s14846_s3 + $0x14] sm:$0xf] }
 0x58b   : > { %v5779_v38 = vsel %vm4234_vm5, %v7726_v44, 0 }
 0x58c   : > { %v4352_v27 = vpop.f32.mrb[216].mxu1  ;;  %v4672_v6 = vpop.f32.mrb[68].mxu0  ;;  %9879 = vmatpush3.bf16.msra.mxu0 %v5779_v38 }
 0x58d   : > { %v4501_v49 = vrot.slane %v4352_v27, 1  ;;  %v9372_v24 = vpop.f32.mrb[217].mxu1  ;;  %v9482_v29 = vpop.f32.mrb[69].mxu0  ;;  %10098 = vmatprep.subr.bf16.mxu0 %v14893_v28 }
 0x58e   : > { %v4355_v22 = vpop.f32.mrb[218].mxu1  ;;  %v4674_v19 = vpop.f32.mrb[70].mxu0 }
 0x58f   : > { %v4547_v3 = vsel %vm1478_vm4, %v4500_v61, %v4501_v49  ;;  %v9373_v40 = vpop.f32.mrb[219].mxu1  ;;  %v9483_v10 = vpop.f32.mrb[71].mxu0  ;;  %v4502_v36 = vrot.slane %v4355_v22, 1 }
 0x590   : > { %v13340_v16 = vadd.f32 %v4667_v1, %v4547_v3 }
 0x591   : > { %9591 = vmatmul.mubr.msk.bf16.gmra.mrb[68].mxu1 %vm4152_vm7, %v12873_v42  ;;  %9701 = vmatmul.mubr.msk.bf16.gmra.mrb[176].mxu0 %vm4152_vm7, %v12873_v42 }
 0x592   : > { %9594 = vmatprep.mubr.msk.bf16.mxu1 %vm10423_vm1, %v14893_v28  ;;  %9704 = vmatprep.mubr.msk.bf16.mxu0 %vm10423_vm1, %v14893_v28 }
 0x594   : > { %v4360_v12 = vpop.f32.mrb[220].mxu1  ;;  %v4679_v41 = vpop.f32.mrb[72].mxu0 }
 0x595   : > { %v4503_v17 = vrot.slane %v4360_v12, 1  ;;  %v9376_v30 = vpop.f32.mrb[221].mxu1  ;;  %v9486_v1 = vpop.f32.mrb[73].mxu0 }
 0x596   : > { %v4363_v61 = vpop.f32.mrb[222].mxu1  ;;  %v4682_v53 = vpop.f32.mrb[74].mxu0 }
 0x597   : > { %v4546_v46 = vsel %vm1478_vm4, %v4502_v36, %v4503_v17  ;;  %v4504_v45 = vrot.slane %v4363_v61, 1  ;;  %v9377_v27 = vpop.f32.mrb[223].mxu1  ;;  %v9487_v6 = vpop.f32.mrb[75].mxu0 }
 0x598   : > { %v13357_v49 = vadd.f32 %v4674_v19, %v4546_v46 }
 0x599   : > { %v4545_v24 = vsel %vm1478_vm4, %v4503_v17, %v4504_v45  ;;  %9595 = vmatmul.mubr.msk.bf16.gmra.mrb[72].mxu1 %vm4152_vm7, %v12907_v63  ;;  %9705 = vmatmul.mubr.msk.bf16.gmra.mrb[180].mxu0 %vm4152_vm7, %v12907_v63 }
 0x59a   : > { %9598 = vmatprep.mubr.msk.bf16.mxu1 %vm10423_vm1, %v14893_v28  ;;  %9708 = vmatprep.mubr.msk.bf16.mxu0 %vm10423_vm1, %v14893_v28  ;;  %v13369_v29 = vadd.f32 %v4679_v41, %v4545_v24 }
 0x59c   : > { %v4368_v22 = vpop.f32.mrb[224].mxu1  ;;  %v4686_v19 = vpop.f32.mrb[76].mxu0 }
 0x59d   : > { %v9380_v3 = vpop.f32.mrb[225].mxu1  ;;  %v9490_v40 = vpop.f32.mrb[77].mxu0  ;;  %v4505_v44 = vrot.slane %v4368_v22, 1 }
 0x59e   : > { %v4371_v10 = vpop.f32.mrb[226].mxu1  ;;  %v4689_v12 = vpop.f32.mrb[78].mxu0 }
 0x59f   : > { %v4506_v36 = vrot.slane %v4371_v10, 1  ;;  %v9381_v17 = vpop.f32.mrb[227].mxu1  ;;  %v9491_v30 = vpop.f32.mrb[79].mxu0 }
 0x5a1   : > { %v4544_v1 = vsel %vm1478_vm4, %v4505_v44, %v4506_v36  ;;  %9599 = vmatmul.mubr.msk.bf16.gmra.mrb[76].mxu1 %vm4152_vm7, %v12925_v47  ;;  %9709 = vmatmul.mubr.msk.bf16.gmra.mrb[184].mxu0 %vm4152_vm7, %v12925_v47 }
 0x5a2   : > { %9602 = vmatprep.mubr.msk.bf16.mxu1 %vm10423_vm1, %v14893_v28  ;;  %9712 = vmatprep.mubr.msk.bf16.mxu0 %vm10423_vm1, %v14893_v28  ;;  %v13381_v41 = vadd.f32 %v4686_v19, %v4544_v1 }
 0x5a4   : > { %v4376_v38 = vpop.f32.mrb[228].mxu1  ;;  %v4694_v61 = vpop.f32.mrb[80].mxu0 }
 0x5a5   : > { %v4507_v53 = vrot.slane %v4376_v38, 1  ;;  %v9384_v46 = vpop.f32.mrb[229].mxu1  ;;  %v9494_v45 = vpop.f32.mrb[81].mxu0 }
 0x5a6   : > { %v4379_v27 = vpop.f32.mrb[230].mxu1  ;;  %v4696_v6 = vpop.f32.mrb[82].mxu0 }
 0x5a7   : > { %v4543_v24 = vsel %vm1478_vm4, %v4506_v36, %v4507_v53  ;;  %v9385_v22 = vpop.f32.mrb[231].mxu1  ;;  %v9495_v3 = vpop.f32.mrb[83].mxu0  ;;  %v4508_v44 = vrot.slane %v4379_v27, 1 }
 0x5a8   : > { %v13385_v40 = vadd.f32 %v4689_v12, %v4543_v24 }
 0x5a9   : > { %9603 = vmatmul.mubr.msk.bf16.gmra.mrb[80].mxu1 %vm4152_vm7, %v12949_v9  ;;  %9713 = vmatmul.mubr.msk.bf16.gmra.mrb[188].mxu0 %vm4152_vm7, %v12949_v9 }
 0x5aa   : > { %9606 = vmatprep.mubr.msk.bf16.mxu1 %vm10423_vm1, %v14893_v28  ;;  %9716 = vmatprep.mubr.msk.bf16.mxu0 %vm10423_vm1, %v14893_v28 }
 0x5ac   : > { %v4384_v19 = vpop.f32.mrb[232].mxu1  ;;  %v4701_v10 = vpop.f32.mrb[84].mxu0 }
 0x5ad   : > { %v4509_v36 = vrot.slane %v4384_v19, 1  ;;  %v9388_v17 = vpop.f32.mrb[233].mxu1  ;;  %v9498_v30 = vpop.f32.mrb[85].mxu0 }
 0x5ae   : > { %v4387_v12 = vpop.f32.mrb[234].mxu1  ;;  %v4704_v1 = vpop.f32.mrb[86].mxu0 }
 0x5af   : > { %v4542_v38 = vsel %vm1478_vm4, %v4508_v44, %v4509_v36  ;;  %v4510_v61 = vrot.slane %v4387_v12, 1  ;;  %v9389_v53 = vpop.f32.mrb[235].mxu1  ;;  %v9499_v46 = vpop.f32.mrb[87].mxu0 }
 0x5b0   : > { %v13397_v45 = vadd.f32 %v4696_v6, %v4542_v38 }
 0x5b1   : > { %v4541_v24 = vsel %vm1478_vm4, %v4509_v36, %v4510_v61  ;;  %9607 = vmatmul.mubr.msk.bf16.gmra.mrb[84].mxu1 %vm4152_vm7, %v12969_v39  ;;  %9717 = vmatmul.mubr.msk.bf16.gmra.mrb[192].mxu0 %vm4152_vm7, %v12969_v39 }
 0x5b2   : > { %9610 = vmatprep.mubr.msk.bf16.mxu1 %vm10423_vm1, %v14893_v28  ;;  %9720 = vmatprep.mubr.msk.bf16.mxu0 %vm10423_vm1, %v14893_v28  ;;  %v13409_v27 = vadd.f32 %v4701_v10, %v4541_v24 }
 0x5b4   : > { %v4392_v22 = vpop.f32.mrb[236].mxu1  ;;  %v4708_v6 = vpop.f32.mrb[88].mxu0 }
 0x5b5   : > { %v9392_v3 = vpop.f32.mrb[237].mxu1  ;;  %v9502_v19 = vpop.f32.mrb[89].mxu0  ;;  %v4511_v17 = vrot.slane %v4392_v22, 1 }
 0x5b6   : > { %v4395_v44 = vpop.f32.mrb[238].mxu1  ;;  %v4711_v36 = vpop.f32.mrb[90].mxu0 }
 0x5b7   : > { %v4512_v30 = vrot.slane %v4395_v44, 1  ;;  %v9393_v12 = vpop.f32.mrb[239].mxu1  ;;  %v9503_v1 = vpop.f32.mrb[91].mxu0 }
 0x5b9   : > { %v4540_v38 = vsel %vm1478_vm4, %v4511_v17, %v4512_v30  ;;  %9611 = vmatmul.mubr.msk.bf16.gmra.mrb[88].mxu1 %vm4152_vm7, %v12987_v8  ;;  %9721 = vmatmul.mubr.msk.bf16.gmra.mrb[196].mxu0 %vm4152_vm7, %v12987_v8 }
 0x5ba   : > { %9614 = vmatprep.mubr.msk.bf16.mxu1 %vm10423_vm1, %v14893_v28  ;;  %9724 = vmatprep.mubr.msk.bf16.mxu0 %vm10423_vm1, %v14893_v28  ;;  %v13421_v10 = vadd.f32 %v4708_v6, %v4540_v38 }
 0x5bc   : > { %v4400_v61 = vpop.f32.mrb[240].mxu1  ;;  %v4716_v53 = vpop.f32.mrb[92].mxu0 }
 0x5bd   : > { %v4513_v46 = vrot.slane %v4400_v61, 1  ;;  %v9396_v24 = vpop.f32.mrb[241].mxu1  ;;  %v9506_v22 = vpop.f32.mrb[93].mxu0 }
 0x5be   : > { %v4403_v3 = vpop.f32.mrb[242].mxu1  ;;  %v4718_v19 = vpop.f32.mrb[94].mxu0 }
 0x5bf   : > { %v9397_v44 = vpop.f32.mrb[243].mxu1  ;;  %v9507_v17 = vpop.f32.mrb[95].mxu0  ;;  %v4539_v12 = vsel %vm1478_vm4, %v4512_v30, %v4513_v46  ;;  %v4514_v61 = vrot.slane %v4403_v3, 1 }
 0x5c0   : > { %v13425_v1 = vadd.f32 %v4711_v36, %v4539_v12 }
 0x5c1   : > { %9615 = vmatmul.mubr.msk.bf16.gmra.mrb[92].mxu1 %vm4152_vm7, %v13011_v52  ;;  %9725 = vmatmul.mubr.msk.bf16.gmra.mrb[200].mxu0 %vm4152_vm7, %v13011_v52 }
 0x5c2   : > { %9618 = vmatprep.mubr.msk.bf16.mxu1 %vm10423_vm1, %v14893_v28  ;;  %9728 = vmatprep.mubr.msk.bf16.mxu0 %vm10423_vm1, %v14893_v28 }
 0x5c4   : > { %v4408_v6 = vpop.f32.mrb[244].mxu1  ;;  %v4723_v38 = vpop.f32.mrb[96].mxu0 }
 0x5c5   : > { %v4515_v53 = vrot.slane %v4408_v6, 1  ;;  %v9400_v24 = vpop.f32.mrb[245].mxu1  ;;  %v9510_v30 = vpop.f32.mrb[97].mxu0 }
 0x5c6   : > { %v4411_v36 = vpop.f32.mrb[246].mxu1  ;;  %v4726_v46 = vpop.f32.mrb[98].mxu0 }
 0x5c7   : > { %v4516_v22 = vrot.slane %v4411_v36, 1  ;;  %v9401_v44 = vpop.f32.mrb[247].mxu1  ;;  %v9511_v17 = vpop.f32.mrb[99].mxu0  ;;  %v4538_v12 = vsel %vm1478_vm4, %v4514_v61, %v4515_v53 }
 0x5c8   : > { %v13437_v52 = vadd.f32 %v4718_v19, %v4538_v12 }
 0x5c9   : > { %9619 = vmatmul.mubr.msk.bf16.gmra.mrb[96].mxu1 %vm4152_vm7, %v13031_v18  ;;  %9729 = vmatmul.mubr.msk.bf16.gmra.mrb[204].mxu0 %vm4152_vm7, %v13031_v18  ;;  %v4537_v3 = vsel %vm1478_vm4, %v4515_v53, %v4516_v22 }
 0x5ca   : > { %9622 = vmatprep.mubr.msk.bf16.mxu1 %vm10423_vm1, %v14893_v28  ;;  %9732 = vmatprep.mubr.msk.bf16.mxu0 %vm10423_vm1, %v14893_v28  ;;  %v13449_v6 = vadd.f32 %v4723_v38, %v4537_v3 }
 0x5cc   : > { %14983 = vst [vmem:[#allocation21_spill] sm:$0xff] %v13449_v6  ;;  %v4416_v61 = vpop.f32.mrb[248].mxu1  ;;  %v4730_v19 = vpop.f32.mrb[100].mxu0 }
 0x5cd   : > { %v9404_v24 = vpop.f32.mrb[249].mxu1  ;;  %v9514_v30 = vpop.f32.mrb[101].mxu0  ;;  %v4517_v44 = vrot.slane %v4416_v61, 1 }
 0x5ce   : > { %v4419_v36 = vpop.f32.mrb[250].mxu1  ;;  %v4733_v46 = vpop.f32.mrb[102].mxu0 }
 0x5cf   : > { %v4518_v17 = vrot.slane %v4419_v36, 1  ;;  %v9405_v12 = vpop.f32.mrb[251].mxu1  ;;  %v9515_v18 = vpop.f32.mrb[103].mxu0 }
 0x5d1   : > { %9623 = vmatmul.mubr.msk.bf16.gmra.mrb[100].mxu1 %vm4152_vm7, %v13049_v34  ;;  %9733 = vmatmul.mubr.msk.bf16.gmra.mrb[208].mxu0 %vm4152_vm7, %v13049_v34  ;;  %v4536_v38 = vsel %vm1478_vm4, %v4517_v44, %v4518_v17 }
 0x5d2   : > { %9626 = vmatprep.mubr.msk.bf16.mxu1 %vm10423_vm1, %v14893_v28  ;;  %9736 = vmatprep.mubr.msk.bf16.mxu0 %vm10423_vm1, %v14893_v28  ;;  %v13461_v53 = vadd.f32 %v4730_v19, %v4536_v38 }
 0x5d4   : > { %v4424_v22 = vpop.f32.mrb[252].mxu1  ;;  %v4738_v3 = vpop.f32.mrb[104].mxu0 }
 0x5d5   : > { %v4519_v18 = vrot.slane %v4424_v22, 1  ;;  %v9408_v61 = vpop.f32.mrb[253].mxu1  ;;  %v9518_v24 = vpop.f32.mrb[105].mxu0 }
 0x5d6   : > { %v4427_v30 = vpop.f32.mrb[254].mxu1  ;;  %v4740_v36 = vpop.f32.mrb[106].mxu0 }
 0x5d7   : > { %v9409_v12 = vpop.f32.mrb[255].mxu1  ;;  %v9519_v34 = vpop.f32.mrb[107].mxu0  ;;  %v4535_v44 = vsel %vm1478_vm4, %v4518_v17, %v4519_v18 }
 0x5d8   : > { %v13465_v6 = vadd.f32 %v4733_v46, %v4535_v44  ;;  %v4520_v34 = vrot.slane %v4427_v30, 1 }
 0x5d9   : > { %9627 = vmatmul.mubr.msk.bf16.gmra.mrb[104].mxu1 %vm4152_vm7, %v13073_v54  ;;  %9737 = vmatmul.mubr.msk.bf16.gmra.mrb[212].mxu0 %vm4152_vm7, %v13073_v54 }
 0x5da   : > { %9630 = vmatprep.mubr.msk.bf16.mxu1 %vm10423_vm1, %v14893_v28  ;;  %9740 = vmatprep.mubr.msk.bf16.mxu0 %vm10423_vm1, %v14893_v28 }
 0x5dc   : > { %v4432_v19 = vpop.f32.mrb[0].mxu1  ;;  %v4745_v38 = vpop.f32.mrb[108].mxu0 }
 0x5dd   : > { %v4521_v22 = vrot.slane %v4432_v19, 1  ;;  %v9412_v3 = vpop.f32.mrb[1].mxu1  ;;  %v9522_v17 = vpop.f32.mrb[109].mxu0 }
 0x5de   : > { %v4435_v46 = vpop.f32.mrb[2].mxu1  ;;  %v4748_v18 = vpop.f32.mrb[110].mxu0 }
 0x5df   : > { %v4522_v61 = vrot.slane %v4435_v46, 1  ;;  %v9413_v24 = vpop.f32.mrb[3].mxu1  ;;  %v9523_v12 = vpop.f32.mrb[111].mxu0  ;;  %v4534_v44 = vsel %vm1478_vm4, %v4520_v34, %v4521_v22 }
 0x5e0   : > { %v13477_v54 = vadd.f32 %v4740_v36, %v4534_v44 }
 0x5e1   : > { %9631 = vmatmul.mubr.msk.bf16.gmra.mrb[108].mxu1 %vm4152_vm7, %v13093_v20  ;;  %9741 = vmatmul.mubr.msk.bf16.gmra.mrb[216].mxu0 %vm4152_vm7, %v13093_v20  ;;  %v4533_v30 = vsel %vm1478_vm4, %v4521_v22, %v4522_v61 }
 0x5e2   : > { %9634 = vmatprep.mubr.msk.bf16.mxu1 %vm10423_vm1, %v14893_v28  ;;  %9744 = vmatprep.mubr.msk.bf16.mxu0 %vm10423_vm1, %v14893_v28  ;;  %v13489_v19 = vadd.f32 %v4745_v38, %v4533_v30 }
 0x5e4   : > { %14984 = vst [vmem:[#allocation22_spill] sm:$0xff] %v13489_v19  ;;  %v4440_v34 = vpop.f32.mrb[4].mxu1  ;;  %v4752_v36 = vpop.f32.mrb[112].mxu0 }
 0x5e5   : > { %v9416_v3 = vpop.f32.mrb[5].mxu1  ;;  %v9526_v17 = vpop.f32.mrb[113].mxu0  ;;  %v4523_v24 = vrot.slane %v4440_v34, 1 }
 0x5e6   : > { %v4443_v46 = vpop.f32.mrb[6].mxu1  ;;  %v4755_v18 = vpop.f32.mrb[114].mxu0 }
 0x5e7   : > { %v4524_v12 = vrot.slane %v4443_v46, 1  ;;  %v9417_v44 = vpop.f32.mrb[7].mxu1  ;;  %v9527_v20 = vpop.f32.mrb[115].mxu0 }
 0x5e9   : > { %9635 = vmatmul.mubr.msk.bf16.gmra.mrb[112].mxu1 %vm4152_vm7, %v13111_v50  ;;  %9745 = vmatmul.mubr.msk.bf16.gmra.mrb[220].mxu0 %vm4152_vm7, %v13111_v50  ;;  %v4532_v38 = vsel %vm1478_vm4, %v4523_v24, %v4524_v12 }
 0x5ea   : > { %9638 = vmatprep.mubr.msk.bf16.mxu1 %vm10423_vm1, %v14893_v28  ;;  %9748 = vmatprep.mubr.msk.bf16.mxu0 %vm10423_vm1, %v14893_v28  ;;  %v13501_v22 = vadd.f32 %v4752_v36, %v4532_v38 }
 0x5ec   : > { %v4448_v61 = vpop.f32.mrb[8].mxu1  ;;  %v4760_v30 = vpop.f32.mrb[116].mxu0 }
 0x5ed   : > { %v4525_v20 = vrot.slane %v4448_v61, 1  ;;  %v9420_v34 = vpop.f32.mrb[9].mxu1  ;;  %v9530_v3 = vpop.f32.mrb[117].mxu0 }
 0x5ee   : > { %v4451_v17 = vpop.f32.mrb[10].mxu1  ;;  %v4762_v46 = vpop.f32.mrb[118].mxu0 }
 0x5ef   : > { %v9421_v44 = vpop.f32.mrb[11].mxu1  ;;  %v9531_v50 = vpop.f32.mrb[119].mxu0  ;;  %v4531_v24 = vsel %vm1478_vm4, %v4524_v12, %v4525_v20 }
 0x5f0   : > { %v13505_v19 = vadd.f32 %v4755_v18, %v4531_v24  ;;  %v4526_v50 = vrot.slane %v4451_v17, 1 }
 0x5f1   : > { %9639 = vmatmul.mubr.msk.bf16.gmra.mrb[116].mxu1 %vm4152_vm7, %v13135_v48  ;;  %9749 = vmatmul.mubr.msk.bf16.gmra.mrb[224].mxu0 %vm4152_vm7, %v13135_v48 }
 0x5f2   : > { %9642 = vmatprep.mubr.msk.bf16.mxu1 %vm10423_vm1, %v14893_v28  ;;  %9752 = vmatprep.mubr.msk.bf16.mxu0 %vm10423_vm1, %v14893_v28 }
 0x5f4   : > { %v4456_v36 = vpop.f32.mrb[12].mxu1  ;;  %v4767_v38 = vpop.f32.mrb[120].mxu0 }
 0x5f5   : > { %v4527_v61 = vrot.slane %v4456_v36, 1  ;;  %v9424_v30 = vpop.f32.mrb[13].mxu1  ;;  %v9534_v12 = vpop.f32.mrb[121].mxu0 }
 0x5f6   : > { %v4459_v18 = vpop.f32.mrb[14].mxu1  ;;  %v4770_v20 = vpop.f32.mrb[122].mxu0 }
 0x5f7   : > { %v4528_v34 = vrot.slane %v4459_v18, 1  ;;  %v9425_v3 = vpop.f32.mrb[15].mxu1  ;;  %v9535_v44 = vpop.f32.mrb[123].mxu0  ;;  %v4530_v24 = vsel %vm1478_vm4, %v4526_v50, %v4527_v61 }
 0x5f8   : > { %v13517_v48 = vadd.f32 %v4762_v46, %v4530_v24 }
 0x5f9   : > { %9643 = vmatmul.mubr.msk.bf16.gmra.mrb[120].mxu1 %vm4152_vm7, %v13161_v55  ;;  %9753 = vmatmul.mubr.msk.bf16.gmra.mrb[228].mxu0 %vm4152_vm7, %v13161_v55  ;;  %v4529_v17 = vsel %vm1478_vm4, %v4527_v61, %v4528_v34 }
 0x5fa   : > { %9646 = vmatprep.mubr.msk.bf16.mxu1 %vm10423_vm1, %v14893_v28  ;;  %9756 = vmatprep.mubr.msk.bf16.mxu0 %vm10423_vm1, %v14893_v28  ;;  %v13529_v36 = vadd.f32 %v4767_v38, %v4529_v17 }
 0x5fc   : > { %v4464_v50 = vpop.f32.mrb[16].mxu1  ;;  %v4774_v46 = vpop.f32.mrb[124].mxu0 }
 0x5fd   : > { %v9428_v30 = vpop.f32.mrb[17].mxu1  ;;  %v9538_v12 = vpop.f32.mrb[125].mxu0 }
 0x5fe   : > { %v4466_v18 = vpop.f32.mrb[18].mxu1  ;;  %v4776_v20 = vpop.f32.mrb[126].mxu0 }
 0x5ff   : > { %v9429_v3 = vpop.f32.mrb[19].mxu1  ;;  %v9539_v44 = vpop.f32.mrb[127].mxu0 }
 0x601   : > { %9647 = vmatmul.mubr.msk.bf16.gmra.mrb[124].mxu1 %vm4152_vm7, %v13176_v43  ;;  %9757 = vmatmul.mubr.msk.bf16.gmra.mrb[232].mxu0 %vm4152_vm7, %v13176_v43 }
 0x602   : > { %9650 = vmatprep.mubr.msk.bf16.mxu1 %vm10423_vm1, %v14893_v28  ;;  %9760 = vmatprep.mubr.msk.bf16.mxu0 %vm10423_vm1, %v14893_v28 }
 0x604   : > { %v4470_v38 = vpop.f32.mrb[20].mxu1  ;;  %v4780_v61 = vpop.f32.mrb[128].mxu0 }
 0x605   : > { %v9432_v34 = vpop.f32.mrb[21].mxu1  ;;  %v9542_v24 = vpop.f32.mrb[129].mxu0 }
 0x606   : > { %v4472_v17 = vpop.f32.mrb[22].mxu1  ;;  %v4782_v50 = vpop.f32.mrb[130].mxu0 }
 0x607   : > { %v9433_v46 = vpop.f32.mrb[23].mxu1  ;;  %v9543_v30 = vpop.f32.mrb[131].mxu0  ;;  %v7752_v50 = vld [vmem:[%s14846_s3 + $0x18] sm:$0xf] }
 0x609   : > { %9651 = vmatmul.mubr.msk.bf16.gmra.mrb[128].mxu1 %vm4152_vm7, %v13189_v21  ;;  %9761 = vmatmul.mubr.msk.bf16.gmra.mrb[236].mxu0 %vm4152_vm7, %v13189_v21 }
 0x60a   : > { %9654 = vmatprep.mubr.msk.bf16.mxu1 %vm10423_vm1, %v14893_v28  ;;  %9764 = vmatprep.mubr.msk.bf16.mxu0 %vm10423_vm1, %v14893_v28 }
 0x60c   : > { %v4476_v12 = vpop.f32.mrb[24].mxu1  ;;  %v4786_v18 = vpop.f32.mrb[132].mxu0 }
 0x60d   : > { %v9436_v20 = vpop.f32.mrb[25].mxu1  ;;  %v9546_v3 = vpop.f32.mrb[133].mxu0 }
 0x60e   : > { %v4478_v44 = vpop.f32.mrb[26].mxu1  ;;  %v4788_v38 = vpop.f32.mrb[134].mxu0 }
 0x60f   : > { %v9437_v61 = vpop.f32.mrb[27].mxu1  ;;  %v9547_v34 = vpop.f32.mrb[135].mxu0  ;;  %v6139_v38 = vsel %vm4234_vm5, %v7752_v50, 0 }
 0x611   : > { %9655 = vmatmul.mubr.bf16.gmra.mrb[132].mxu1 %v14981_v23  ;;  %9765 = vmatmul.mubr.bf16.gmra.mrb[240].mxu0 %v14981_v23 }
 0x612   : > { %9770 = vmatprep.mubr.msk.bf16.mxu1 %vm10423_vm1, %v14893_v28  ;;  %9880 = vmatprep.mubr.msk.bf16.mxu0 %vm10423_vm1, %v14893_v28 }
 0x614   : > { %v4830_v24 = vpop.f32.mrb[28].mxu1  ;;  %v5191_v17 = vpop.f32.mrb[136].mxu0 }
 0x615   : > { %v9552_v46 = vpop.f32.mrb[29].mxu1  ;;  %v9662_v30 = vpop.f32.mrb[137].mxu0  ;;  %v5039_v20 = vrot.slane %v4830_v24, 2 }
 0x616   : > { %v4833_v12 = vpop.f32.mrb[30].mxu1  ;;  %v5193_v18 = vpop.f32.mrb[138].mxu0 }
 0x617   : > { %v5040_v3 = vrot.slane %v4833_v12, 2  ;;  %v9553_v44 = vpop.f32.mrb[31].mxu1  ;;  %v9663_v61 = vpop.f32.mrb[139].mxu0 }
 0x619   : > { %9771 = vmatmul.mubr.bf16.vlgmr.msra.gmra.mrb[136].mxu1 %v14981_v23  ;;  %9881 = vmatmul.mubr.bf16.vlgmr.msra.gmra.mrb[244].mxu0 %v14981_v23  ;;  %v5119_v34 = vsel %vm5087_vm9, %v5039_v20, %v5040_v3 }
 0x61a   : > { %9989 = vmatpush3.bf16.msra.mxu1 %v6139_v38  ;;  %v5120_v17 = vadd.f32 %v5119_v34, %v13168_v35  ;;  %9774 = vmatprep.mubr.msk.bf16.mxu1 %vm10423_vm1, %v14893_v28 }
 0x61b   : > { %9884 = vmatprep.mubr.msk.bf16.mxu0 %vm10423_vm1, %v14893_v28  ;;  %10208 = vmatprep.subr.bf16.mxu1 %v14893_v28 }
 0x61c   : > { %v4838_v24 = vpop.f32.mrb[32].mxu1  ;;  %v5197_v50 = vpop.f32.mrb[140].mxu0 }
 0x61d   : > { %v5041_v46 = vrot.slane %v4838_v24, 2  ;;  %v9556_v30 = vpop.f32.mrb[33].mxu1  ;;  %v9666_v12 = vpop.f32.mrb[141].mxu0 }
 0x61e   : > { %v4841_v18 = vpop.f32.mrb[34].mxu1  ;;  %v5199_v44 = vpop.f32.mrb[142].mxu0 }
 0x61f   : > { %v13568_v61 = vadd.f32 %v5199_v44, %v5120_v17  ;;  %v9557_v20 = vpop.f32.mrb[35].mxu1  ;;  %v9667_v38 = vpop.f32.mrb[143].mxu0  ;;  %v5118_v35 = vsel %vm5087_vm9, %v5040_v3, %v5041_v46  ;;  %v5042_v50 = vrot.slane %v4841_v18, 2 }
 0x620   : > { %v5121_v34 = vadd.f32 %v5118_v35, %v13220_v11 }
 0x621   : > { %14985 = vst [vmem:[#allocation23_spill] sm:$0xff] %v13568_v61  ;;  %9775 = vmatmul.mubr.msk.bf16.gmra.mrb[140].mxu1 %vm4152_vm7, %v14982_v60  ;;  %9885 = vmatmul.mubr.msk.bf16.gmra.mrb[248].mxu0 %vm4152_vm7, %v14982_v60 }
 0x622   : > { %9778 = vmatprep.mubr.msk.bf16.mxu1 %vm10423_vm1, %v14893_v28  ;;  %9888 = vmatprep.mubr.msk.bf16.mxu0 %vm10423_vm1, %v14893_v28 }
 0x624   : > { %v4846_v17 = vpop.f32.mrb[36].mxu1  ;;  %v5204_v24 = vpop.f32.mrb[144].mxu0 }
 0x625   : > { %v5043_v30 = vrot.slane %v4846_v17, 2  ;;  %v13581_v12 = vadd.f32 %v5204_v24, %v5121_v34  ;;  %v9560_v3 = vpop.f32.mrb[37].mxu1  ;;  %v9670_v11 = vpop.f32.mrb[145].mxu0 }
 0x626   : > { %v4849_v46 = vpop.f32.mrb[38].mxu1  ;;  %v5207_v44 = vpop.f32.mrb[146].mxu0 }
 0x627   : > { %v5044_v20 = vrot.slane %v4849_v46, 2  ;;  %v9561_v38 = vpop.f32.mrb[39].mxu1  ;;  %v9671_v35 = vpop.f32.mrb[147].mxu0  ;;  %v5117_v61 = vsel %vm5087_vm9, %v5042_v50, %v5043_v30 }
 0x628   : > { %v5122_v60 = vadd.f32 %v5117_v61, %v13232_v26 }
 0x629   : > { %9779 = vmatmul.mubr.msk.bf16.gmra.mrb[144].mxu1 %vm4152_vm7, %v12707_v58  ;;  %9889 = vmatmul.mubr.msk.bf16.gmra.mrb[252].mxu0 %vm4152_vm7, %v12707_v58  ;;  %v5116_v18 = vsel %vm5087_vm9, %v5043_v30, %v5044_v20 }
 0x62a   : > { %v5123_v34 = vadd.f32 %v5116_v18, %v13244_v33  ;;  %9782 = vmatprep.mubr.msk.bf16.mxu1 %vm10423_vm1, %v14893_v28  ;;  %9892 = vmatprep.mubr.msk.bf16.mxu0 %vm10423_vm1, %v14893_v28 }
 0x62c   : > { %v4854_v17 = vpop.f32.mrb[40].mxu1  ;;  %v5211_v24 = vpop.f32.mrb[148].mxu0 }
 0x62d   : > { %v13597_v26 = vadd.f32 %v5211_v24, %v5122_v60  ;;  %v9564_v61 = vpop.f32.mrb[41].mxu1  ;;  %v9674_v50 = vpop.f32.mrb[149].mxu0  ;;  %v5045_v46 = vrot.slane %v4854_v17, 2 }
 0x62e   : > { %v4857_v3 = vpop.f32.mrb[42].mxu1  ;;  %v5214_v11 = vpop.f32.mrb[150].mxu0 }
 0x62f   : > { %v5046_v44 = vrot.slane %v4857_v3, 2  ;;  %v13599_v38 = vadd.f32 %v5214_v11, %v5123_v34  ;;  %v9565_v30 = vpop.f32.mrb[43].mxu1  ;;  %v9675_v33 = vpop.f32.mrb[151].mxu0 }
 0x631   : > { %9783 = vmatmul.mubr.msk.bf16.gmra.mrb[148].mxu1 %vm4152_vm7, %v12725_v15  ;;  %9893 = vmatmul.mubr.msk.bf16.gmra.mrb[0].mxu0 %vm4152_vm7, %v12725_v15  ;;  %v5115_v60 = vsel %vm5087_vm9, %v5045_v46, %v5046_v44 }
 0x632   : > { %v5124_v20 = vadd.f32 %v5115_v60, %v13256_v31  ;;  %9786 = vmatprep.mubr.msk.bf16.mxu1 %vm10423_vm1, %v14893_v28  ;;  %9896 = vmatprep.mubr.msk.bf16.mxu0 %vm10423_vm1, %v14893_v28 }
 0x634   : > { %v4862_v35 = vpop.f32.mrb[44].mxu1  ;;  %v5219_v18 = vpop.f32.mrb[152].mxu0 }
 0x635   : > { %v5047_v34 = vrot.slane %v4862_v35, 2  ;;  %v9568_v17 = vpop.f32.mrb[45].mxu1  ;;  %v9678_v24 = vpop.f32.mrb[153].mxu0 }
 0x636   : > { %v4865_v61 = vpop.f32.mrb[46].mxu1  ;;  %v5221_v50 = vpop.f32.mrb[154].mxu0 }
 0x637   : > { %v13612_v3 = vadd.f32 %v5221_v50, %v5124_v20  ;;  %v9569_v11 = vpop.f32.mrb[47].mxu1  ;;  %v9679_v30 = vpop.f32.mrb[155].mxu0  ;;  %v5114_v31 = vsel %vm5087_vm9, %v5046_v44, %v5047_v34  ;;  %v5048_v20 = vrot.slane %v4865_v61, 2 }
 0x638   : > { %v5125_v46 = vadd.f32 %v5114_v31, %v13260_v57 }
 0x639   : > { %9787 = vmatmul.mubr.msk.bf16.gmra.mrb[152].mxu1 %vm4152_vm7, %v12749_v14  ;;  %9897 = vmatmul.mubr.msk.bf16.gmra.mrb[4].mxu0 %vm4152_vm7, %v12749_v14 }
 0x63a   : > { %9790 = vmatprep.mubr.msk.bf16.mxu1 %vm10423_vm1, %v14893_v28  ;;  %9900 = vmatprep.mubr.msk.bf16.mxu0 %vm10423_vm1, %v14893_v28 }
 0x63c   : > { %v4870_v33 = vpop.f32.mrb[48].mxu1  ;;  %v5226_v60 = vpop.f32.mrb[156].mxu0 }
 0x63d   : > { %v5049_v35 = vrot.slane %v4870_v33, 2  ;;  %v13625_v18 = vadd.f32 %v5226_v60, %v5125_v46  ;;  %v9572_v44 = vpop.f32.mrb[49].mxu1  ;;  %v9682_v57 = vpop.f32.mrb[157].mxu0 }
 0x63e   : > { %v4873_v34 = vpop.f32.mrb[50].mxu1  ;;  %v5229_v17 = vpop.f32.mrb[158].mxu0 }
 0x63f   : > { %v5050_v24 = vrot.slane %v4873_v34, 2  ;;  %v9573_v50 = vpop.f32.mrb[51].mxu1  ;;  %v9683_v11 = vpop.f32.mrb[159].mxu0  ;;  %v5113_v30 = vsel %vm5087_vm9, %v5048_v20, %v5049_v35 }
 0x640   : > { %v5126_v31 = vadd.f32 %v5113_v30, %v13272_v2 }
 0x641   : > { %9791 = vmatmul.mubr.msk.bf16.gmra.mrb[156].mxu1 %vm4152_vm7, %v12769_v56  ;;  %9901 = vmatmul.mubr.msk.bf16.gmra.mrb[8].mxu0 %vm4152_vm7, %v12769_v56  ;;  %v5112_v61 = vsel %vm5087_vm9, %v5049_v35, %v5050_v24 }
 0x642   : > { %v5127_v46 = vadd.f32 %v5112_v61, %v13284_v4  ;;  %9794 = vmatprep.mubr.msk.bf16.mxu1 %vm10423_vm1, %v14893_v28  ;;  %9904 = vmatprep.mubr.msk.bf16.mxu0 %vm10423_vm1, %v14893_v28 }
 0x644   : > { %v4878_v33 = vpop.f32.mrb[52].mxu1  ;;  %v5233_v60 = vpop.f32.mrb[160].mxu0 }
 0x645   : > { %v13641_v2 = vadd.f32 %v5233_v60, %v5126_v31  ;;  %v9576_v20 = vpop.f32.mrb[53].mxu1  ;;  %v9686_v44 = vpop.f32.mrb[161].mxu0  ;;  %v5051_v17 = vrot.slane %v4878_v33, 2 }
 0x646   : > { %v4881_v57 = vpop.f32.mrb[54].mxu1  ;;  %v5236_v34 = vpop.f32.mrb[162].mxu0 }
 0x647   : > { %v5052_v50 = vrot.slane %v4881_v57, 2  ;;  %v13643_v11 = vadd.f32 %v5236_v34, %v5127_v46  ;;  %v9577_v35 = vpop.f32.mrb[55].mxu1  ;;  %v9687_v4 = vpop.f32.mrb[163].mxu0 }
 0x649   : > { %9795 = vmatmul.mubr.msk.bf16.gmra.mrb[160].mxu1 %vm4152_vm7, %v12787_v25  ;;  %9905 = vmatmul.mubr.msk.bf16.gmra.mrb[12].mxu0 %vm4152_vm7, %v12787_v25  ;;  %v5111_v24 = vsel %vm5087_vm9, %v5051_v17, %v5052_v50 }
 0x64a   : > { %v5128_v30 = vadd.f32 %v5111_v24, %v13296_v5  ;;  %9798 = vmatprep.mubr.msk.bf16.mxu1 %vm10423_vm1, %v14893_v28  ;;  %9908 = vmatprep.mubr.msk.bf16.mxu0 %vm10423_vm1, %v14893_v28 }
 0x64c   : > { %v4886_v31 = vpop.f32.mrb[56].mxu1  ;;  %v5241_v61 = vpop.f32.mrb[164].mxu0 }
 0x64d   : > { %v5053_v46 = vrot.slane %v4886_v31, 2  ;;  %v9580_v33 = vpop.f32.mrb[57].mxu1  ;;  %v9690_v60 = vpop.f32.mrb[165].mxu0 }
 0x64e   : > { %v4889_v20 = vpop.f32.mrb[58].mxu1  ;;  %v5243_v44 = vpop.f32.mrb[166].mxu0 }
 0x64f   : > { %v13656_v57 = vadd.f32 %v5243_v44, %v5128_v30  ;;  %v9581_v34 = vpop.f32.mrb[59].mxu1  ;;  %v9691_v35 = vpop.f32.mrb[167].mxu0  ;;  %v5110_v5 = vsel %vm5087_vm9, %v5052_v50, %v5053_v46  ;;  %v5054_v30 = vrot.slane %v4889_v20, 2 }
 0x650   : > { %v5129_v17 = vadd.f32 %v5110_v5, %v13300_v51 }
 0x651   : > { %9799 = vmatmul.mubr.msk.bf16.gmra.mrb[164].mxu1 %vm4152_vm7, %v12811_v13  ;;  %9909 = vmatmul.mubr.msk.bf16.gmra.mrb[16].mxu0 %vm4152_vm7, %v12811_v13 }
 0x652   : > { %9802 = vmatprep.mubr.msk.bf16.mxu1 %vm10423_vm1, %v14893_v28  ;;  %9912 = vmatprep.mubr.msk.bf16.mxu0 %vm10423_vm1, %v14893_v28 }
 0x654   : > { %v4894_v4 = vpop.f32.mrb[60].mxu1  ;;  %v5248_v24 = vpop.f32.mrb[168].mxu0 }
 0x655   : > { %v5055_v31 = vrot.slane %v4894_v4, 2  ;;  %v13669_v61 = vadd.f32 %v5248_v24, %v5129_v17  ;;  %v9584_v50 = vpop.f32.mrb[61].mxu1  ;;  %v9694_v51 = vpop.f32.mrb[169].mxu0 }
 0x656   : > { %v4897_v46 = vpop.f32.mrb[62].mxu1  ;;  %v5251_v33 = vpop.f32.mrb[170].mxu0 }
 0x657   : > { %v5056_v60 = vrot.slane %v4897_v46, 2  ;;  %v9585_v44 = vpop.f32.mrb[63].mxu1  ;;  %v9695_v34 = vpop.f32.mrb[171].mxu0  ;;  %v5109_v35 = vsel %vm5087_vm9, %v5054_v30, %v5055_v31 }
 0x658   : > { %v5130_v5 = vadd.f32 %v5109_v35, %v13312_v32 }
 0x659   : > { %9803 = vmatmul.mubr.msk.bf16.gmra.mrb[168].mxu1 %vm4152_vm7, %v12831_v62  ;;  %9913 = vmatmul.mubr.msk.bf16.gmra.mrb[20].mxu0 %vm4152_vm7, %v12831_v62  ;;  %v5108_v20 = vsel %vm5087_vm9, %v5055_v31, %v5056_v60 }
 0x65a   : > { %v5131_v17 = vadd.f32 %v5108_v20, %v13324_v7  ;;  %9806 = vmatprep.mubr.msk.bf16.mxu1 %vm10423_vm1, %v14893_v28  ;;  %9916 = vmatprep.mubr.msk.bf16.mxu0 %vm10423_vm1, %v14893_v28 }
 0x65c   : > { %v4902_v4 = vpop.f32.mrb[64].mxu1  ;;  %v5255_v24 = vpop.f32.mrb[172].mxu0 }
 0x65d   : > { %v13685_v32 = vadd.f32 %v5255_v24, %v5130_v5  ;;  %v9588_v30 = vpop.f32.mrb[65].mxu1  ;;  %v9698_v50 = vpop.f32.mrb[173].mxu0  ;;  %v5057_v33 = vrot.slane %v4902_v4, 2 }
 0x65e   : > { %v4905_v51 = vpop.f32.mrb[66].mxu1  ;;  %v5258_v46 = vpop.f32.mrb[174].mxu0 }
 0x65f   : > { %v5058_v44 = vrot.slane %v4905_v51, 2  ;;  %v13687_v34 = vadd.f32 %v5258_v46, %v5131_v17  ;;  %v9589_v31 = vpop.f32.mrb[67].mxu1  ;;  %v9699_v7 = vpop.f32.mrb[175].mxu0 }
 0x661   : > { %9807 = vmatmul.mubr.msk.bf16.gmra.mrb[172].mxu1 %vm4152_vm7, %v12849_v0  ;;  %9917 = vmatmul.mubr.msk.bf16.gmra.mrb[24].mxu0 %vm4152_vm7, %v12849_v0  ;;  %v5107_v60 = vsel %vm5087_vm9, %v5057_v33, %v5058_v44 }
 0x662   : > { %v5132_v35 = vadd.f32 %v5107_v60, %v13336_v59  ;;  %9810 = vmatprep.mubr.msk.bf16.mxu1 %vm10423_vm1, %v14893_v28  ;;  %9920 = vmatprep.mubr.msk.bf16.mxu0 %vm10423_vm1, %v14893_v28 }
 0x664   : > { %v4910_v5 = vpop.f32.mrb[68].mxu1  ;;  %v5263_v20 = vpop.f32.mrb[176].mxu0 }
 0x665   : > { %v5059_v17 = vrot.slane %v4910_v5, 2  ;;  %v9592_v4 = vpop.f32.mrb[69].mxu1  ;;  %v9702_v24 = vpop.f32.mrb[177].mxu0 }
 0x666   : > { %v4913_v30 = vpop.f32.mrb[70].mxu1  ;;  %v5265_v50 = vpop.f32.mrb[178].mxu0 }
 0x667   : > { %v13700_v51 = vadd.f32 %v5265_v50, %v5132_v35  ;;  %v9593_v46 = vpop.f32.mrb[71].mxu1  ;;  %v9703_v31 = vpop.f32.mrb[179].mxu0  ;;  %v5106_v59 = vsel %vm5087_vm9, %v5058_v44, %v5059_v17  ;;  %v7778_v44 = vld [vmem:[%s14846_s3 + $0x1c] sm:$0xf]  ;;  %v5060_v35 = vrot.slane %v4913_v30, 2 }
 0x668   : > { %v5133_v33 = vadd.f32 %v5106_v59, %v13340_v16  ;;  %v6403_v4 = vsel %vm4234_vm5, %v7778_v44, 0 }
 0x669   : > { %14986 = vst [vmem:[#allocation24_spill] sm:$0xff] %v13700_v51  ;;  %9811 = vmatmul.mubr.msk.bf16.gmra.mrb[176].mxu1 %vm4152_vm7, %v12873_v42  ;;  %9921 = vmatmul.mubr.msk.bf16.gmra.mrb[28].mxu0 %vm4152_vm7, %v12873_v42 }
 0x66a   : > { %9814 = vmatprep.mubr.msk.bf16.mxu1 %vm10423_vm1, %v14893_v28  ;;  %9924 = vmatprep.mubr.msk.bf16.mxu0 %vm10423_vm1, %v14893_v28 }
 0x66b   : > { %10099 = vmatpush3.bf16.msra.mxu0 %v6403_v4 }
 0x66c   : > { %v4918_v7 = vpop.f32.mrb[72].mxu1  ;;  %v5270_v60 = vpop.f32.mrb[180].mxu0 }
 0x66d   : > { %v5061_v16 = vrot.slane %v4918_v7, 2  ;;  %v13716_v5 = vadd.f32 %v5270_v60, %v5133_v33  ;;  %v9596_v20 = vpop.f32.mrb[73].mxu1  ;;  %v9706_v17 = vpop.f32.mrb[181].mxu0 }
 0x66e   : > { %v4921_v24 = vpop.f32.mrb[74].mxu1  ;;  %v5273_v50 = vpop.f32.mrb[182].mxu0 }
 0x66f   : > { %v5062_v46 = vrot.slane %v4921_v24, 2  ;;  %v9597_v31 = vpop.f32.mrb[75].mxu1  ;;  %v9707_v59 = vpop.f32.mrb[183].mxu0  ;;  %v5105_v51 = vsel %vm5087_vm9, %v5060_v35, %v5061_v16 }
 0x670   : > { %v5134_v42 = vadd.f32 %v5105_v51, %v13357_v49 }
 0x671   : > { %9815 = vmatmul.mubr.msk.bf16.gmra.mrb[180].mxu1 %vm4152_vm7, %v12907_v63  ;;  %9925 = vmatmul.mubr.msk.bf16.gmra.mrb[32].mxu0 %vm4152_vm7, %v12907_v63  ;;  %v5104_v30 = vsel %vm5087_vm9, %v5061_v16, %v5062_v46 }
 0x672   : > { %v5135_v33 = vadd.f32 %v5104_v30, %v13369_v29  ;;  %9818 = vmatprep.mubr.msk.bf16.mxu1 %vm10423_vm1, %v14893_v28  ;;  %9928 = vmatprep.mubr.msk.bf16.mxu0 %vm10423_vm1, %v14893_v28 }
 0x674   : > { %v4926_v7 = vpop.f32.mrb[76].mxu1  ;;  %v5277_v60 = vpop.f32.mrb[184].mxu0 }
 0x675   : > { %v13733_v49 = vadd.f32 %v5277_v60, %v5134_v42  ;;  %v9600_v51 = vpop.f32.mrb[77].mxu1  ;;  %v9710_v44 = vpop.f32.mrb[185].mxu0  ;;  %v5063_v17 = vrot.slane %v4926_v7, 2 }
 0x676   : > { %v4929_v35 = vpop.f32.mrb[78].mxu1  ;;  %v5280_v20 = vpop.f32.mrb[186].mxu0 }
 0x677   : > { %v5064_v4 = vrot.slane %v4929_v35, 2  ;;  %v13735_v24 = vadd.f32 %v5280_v20, %v5135_v33  ;;  %v9601_v16 = vpop.f32.mrb[79].mxu1  ;;  %v9711_v29 = vpop.f32.mrb[187].mxu0 }
 0x679   : > { %9819 = vmatmul.mubr.msk.bf16.gmra.mrb[184].mxu1 %vm4152_vm7, %v12925_v47  ;;  %9929 = vmatmul.mubr.msk.bf16.gmra.mrb[36].mxu0 %vm4152_vm7, %v12925_v47  ;;  %v5103_v42 = vsel %vm5087_vm9, %v5063_v17, %v5064_v4 }
 0x67a   : > { %v5136_v50 = vadd.f32 %v5103_v42, %v13381_v41  ;;  %9822 = vmatprep.mubr.msk.bf16.mxu1 %vm10423_vm1, %v14893_v28  ;;  %9932 = vmatprep.mubr.msk.bf16.mxu0 %vm10423_vm1, %v14893_v28 }
 0x67c   : > { %v4934_v46 = vpop.f32.mrb[80].mxu1  ;;  %v5285_v31 = vpop.f32.mrb[188].mxu0 }
 0x67d   : > { %v5065_v59 = vrot.slane %v4934_v46, 2  ;;  %v9604_v30 = vpop.f32.mrb[81].mxu1  ;;  %v9714_v33 = vpop.f32.mrb[189].mxu0 }
 0x67e   : > { %v4937_v7 = vpop.f32.mrb[82].mxu1  ;;  %v5287_v60 = vpop.f32.mrb[190].mxu0 }
 0x67f   : > { %v13748_v51 = vadd.f32 %v5287_v60, %v5136_v50  ;;  %v9605_v44 = vpop.f32.mrb[83].mxu1  ;;  %v9715_v35 = vpop.f32.mrb[191].mxu0  ;;  %v5102_v41 = vsel %vm5087_vm9, %v5064_v4, %v5065_v59  ;;  %v5066_v29 = vrot.slane %v4937_v7, 2 }
 0x680   : > { %v5137_v20 = vadd.f32 %v5102_v41, %v13385_v40 }
 0x681   : > { %9823 = vmatmul.mubr.msk.bf16.gmra.mrb[188].mxu1 %vm4152_vm7, %v12949_v9  ;;  %9933 = vmatmul.mubr.msk.bf16.gmra.mrb[40].mxu0 %vm4152_vm7, %v12949_v9 }
 0x682   : > { %9826 = vmatprep.mubr.msk.bf16.mxu1 %vm10423_vm1, %v14893_v28  ;;  %9936 = vmatprep.mubr.msk.bf16.mxu0 %vm10423_vm1, %v14893_v28 }
 0x684   : > { %v4942_v17 = vpop.f32.mrb[84].mxu1  ;;  %v5292_v16 = vpop.f32.mrb[192].mxu0 }
 0x685   : > { %v5067_v42 = vrot.slane %v4942_v17, 2  ;;  %v13761_v50 = vadd.f32 %v5292_v16, %v5137_v20  ;;  %v9608_v4 = vpop.f32.mrb[85].mxu1  ;;  %v9718_v40 = vpop.f32.mrb[193].mxu0 }
 0x686   : > { %v4945_v46 = vpop.f32.mrb[86].mxu1  ;;  %v5295_v31 = vpop.f32.mrb[194].mxu0 }
 0x687   : > { %v5068_v59 = vrot.slane %v4945_v46, 2  ;;  %v9609_v30 = vpop.f32.mrb[87].mxu1  ;;  %v9719_v33 = vpop.f32.mrb[195].mxu0  ;;  %v5101_v60 = vsel %vm5087_vm9, %v5066_v29, %v5067_v42 }
 0x688   : > { %v5138_v44 = vadd.f32 %v5101_v60, %v13397_v45 }
 0x689   : > { %9827 = vmatmul.mubr.msk.bf16.gmra.mrb[192].mxu1 %vm4152_vm7, %v12969_v39  ;;  %9937 = vmatmul.mubr.msk.bf16.gmra.mrb[44].mxu0 %vm4152_vm7, %v12969_v39  ;;  %v5100_v7 = vsel %vm5087_vm9, %v5067_v42, %v5068_v59 }
 0x68a   : > { %v5139_v35 = vadd.f32 %v5100_v7, %v13409_v27  ;;  %9830 = vmatprep.mubr.msk.bf16.mxu1 %vm10423_vm1, %v14893_v28  ;;  %9940 = vmatprep.mubr.msk.bf16.mxu0 %vm10423_vm1, %v14893_v28 }
 0x68c   : > { %v4950_v41 = vpop.f32.mrb[88].mxu1  ;;  %v5299_v20 = vpop.f32.mrb[196].mxu0 }
 0x68d   : > { %v13777_v45 = vadd.f32 %v5299_v20, %v5138_v44  ;;  %v9612_v17 = vpop.f32.mrb[89].mxu1  ;;  %v9722_v16 = vpop.f32.mrb[197].mxu0  ;;  %v5069_v40 = vrot.slane %v4950_v41, 2 }
 0x68e   : > { %v4953_v29 = vpop.f32.mrb[90].mxu1  ;;  %v5302_v4 = vpop.f32.mrb[198].mxu0 }
 0x68f   : > { %v5070_v46 = vrot.slane %v4953_v29, 2  ;;  %v13779_v31 = vadd.f32 %v5302_v4, %v5139_v35  ;;  %v9613_v42 = vpop.f32.mrb[91].mxu1  ;;  %v9723_v27 = vpop.f32.mrb[199].mxu0 }
 0x691   : > { %9831 = vmatmul.mubr.msk.bf16.gmra.mrb[196].mxu1 %vm4152_vm7, %v12987_v8  ;;  %9941 = vmatmul.mubr.msk.bf16.gmra.mrb[48].mxu0 %vm4152_vm7, %v12987_v8  ;;  %v5099_v59 = vsel %vm5087_vm9, %v5069_v40, %v5070_v46  ;;  %v14987_v40 = vld [vmem:[#allocation12_spill] sm:$0xff] }
 0x692   : > { %v5140_v30 = vadd.f32 %v5099_v59, %v13421_v10  ;;  %9834 = vmatprep.mubr.msk.bf16.mxu1 %vm10423_vm1, %v14893_v28  ;;  %9944 = vmatprep.mubr.msk.bf16.mxu0 %vm10423_vm1, %v14893_v28 }
 0x694   : > { %v4958_v33 = vpop.f32.mrb[92].mxu1  ;;  %v5307_v60 = vpop.f32.mrb[200].mxu0 }
 0x695   : > { %v5071_v44 = vrot.slane %v4958_v33, 2  ;;  %v9616_v7 = vpop.f32.mrb[93].mxu1  ;;  %v9726_v35 = vpop.f32.mrb[201].mxu0 }
 0x696   : > { %v4961_v41 = vpop.f32.mrb[94].mxu1  ;;  %v5309_v20 = vpop.f32.mrb[202].mxu0 }
 0x697   : > { %v13792_v17 = vadd.f32 %v5309_v20, %v5140_v30  ;;  %v9617_v16 = vpop.f32.mrb[95].mxu1  ;;  %v9727_v29 = vpop.f32.mrb[203].mxu0  ;;  %v5098_v10 = vsel %vm5087_vm9, %v5070_v46, %v5071_v44  ;;  %v5072_v59 = vrot.slane %v4961_v41, 2 }
 0x698   : > { %v5141_v4 = vadd.f32 %v5098_v10, %v13425_v1  ;;  %v14988_v10 = vld [vmem:[#allocation13_spill] sm:$0xff] }
 0x699   : > { %9835 = vmatmul.mubr.msk.bf16.gmra.mrb[200].mxu1 %vm4152_vm7, %v14987_v40  ;;  %9945 = vmatmul.mubr.msk.bf16.gmra.mrb[52].mxu0 %vm4152_vm7, %v14987_v40 }
 0x69a   : > { %9838 = vmatprep.mubr.msk.bf16.mxu1 %vm10423_vm1, %v14893_v28  ;;  %9948 = vmatprep.mubr.msk.bf16.mxu0 %vm10423_vm1, %v14893_v28 }
 0x69c   : > { %v4966_v42 = vpop.f32.mrb[96].mxu1  ;;  %v5314_v27 = vpop.f32.mrb[204].mxu0 }
 0x69d   : > { %v5073_v30 = vrot.slane %v4966_v42, 2  ;;  %v13805_v33 = vadd.f32 %v5314_v27, %v5141_v4  ;;  %v9620_v46 = vpop.f32.mrb[97].mxu1  ;;  %v9730_v1 = vpop.f32.mrb[205].mxu0  ;;  %v14989_v4 = vld [vmem:[#allocation21_spill] sm:$0xff] }
 0x69e   : > { %v4969_v60 = vpop.f32.mrb[98].mxu1  ;;  %v5317_v44 = vpop.f32.mrb[206].mxu0 }
 0x69f   : > { %v5074_v7 = vrot.slane %v4969_v60, 2  ;;  %v9621_v35 = vpop.f32.mrb[99].mxu1  ;;  %v9731_v20 = vpop.f32.mrb[207].mxu0  ;;  %v5097_v16 = vsel %vm5087_vm9, %v5072_v59, %v5073_v30 }
 0x6a0   : > { %v5142_v29 = vadd.f32 %v5097_v16, %v13437_v52 }
 0x6a1   : > { %9839 = vmatmul.mubr.msk.bf16.gmra.mrb[204].mxu1 %vm4152_vm7, %v14988_v10  ;;  %9949 = vmatmul.mubr.msk.bf16.gmra.mrb[56].mxu0 %vm4152_vm7, %v14988_v10  ;;  %v5096_v41 = vsel %vm5087_vm9, %v5073_v30, %v5074_v7 }
 0x6a2   : > { %v5143_v42 = vadd.f32 %v5096_v41, %v14989_v4  ;;  %9842 = vmatprep.mubr.msk.bf16.mxu1 %vm10423_vm1, %v14893_v28  ;;  %9952 = vmatprep.mubr.msk.bf16.mxu0 %vm10423_vm1, %v14893_v28  ;;  %v14992_v41 = vld [vmem:[#allocation14_spill] sm:$0xff] }
 0x6a4   : > { %v4974_v27 = vpop.f32.mrb[100].mxu1  ;;  %v5321_v59 = vpop.f32.mrb[208].mxu0 }
 0x6a5   : > { %v13821_v52 = vadd.f32 %v5321_v59, %v5142_v29  ;;  %v9624_v46 = vpop.f32.mrb[101].mxu1  ;;  %v9734_v1 = vpop.f32.mrb[209].mxu0  ;;  %v5075_v35 = vrot.slane %v4974_v27, 2 }
 0x6a6   : > { %v4977_v60 = vpop.f32.mrb[102].mxu1  ;;  %v5324_v44 = vpop.f32.mrb[210].mxu0 }
 0x6a7   : > { %14990 = vst [vmem:[#allocation7_spill] sm:$0xff] %v13821_v52  ;;  %v5076_v20 = vrot.slane %v4977_v60, 2  ;;  %v13823_v16 = vadd.f32 %v5324_v44, %v5143_v42  ;;  %v9625_v30 = vpop.f32.mrb[103].mxu1  ;;  %v9735_v7 = vpop.f32.mrb[211].mxu0  ;;  %v14995_v52 = vld [vmem:[#allocation16_spill] sm:$0xff] }
 0x6a9   : > { %14991 = vst [vmem:[#allocation25_spill] sm:$0xff] %v13823_v16  ;;  %9843 = vmatmul.mubr.msk.bf16.gmra.mrb[208].mxu1 %vm4152_vm7, %v14992_v41  ;;  %9953 = vmatmul.mubr.msk.bf16.gmra.mrb[60].mxu0 %vm4152_vm7, %v14992_v41  ;;  %v5095_v29 = vsel %vm5087_vm9, %v5075_v35, %v5076_v20 }
 0x6aa   : > { %v5144_v4 = vadd.f32 %v5095_v29, %v13461_v53  ;;  %9846 = vmatprep.mubr.msk.bf16.mxu1 %vm10423_vm1, %v14893_v28  ;;  %9956 = vmatprep.mubr.msk.bf16.mxu0 %vm10423_vm1, %v14893_v28  ;;  %v14994_v29 = vld [vmem:[#allocation15_spill] sm:$0xff] }
 0x6ac   : > { %v4982_v42 = vpop.f32.mrb[104].mxu1  ;;  %v5329_v27 = vpop.f32.mrb[212].mxu0 }
 0x6ad   : > { %v5077_v59 = vrot.slane %v4982_v42, 2  ;;  %v9628_v46 = vpop.f32.mrb[105].mxu1  ;;  %v9738_v1 = vpop.f32.mrb[213].mxu0 }
 0x6ae   : > { %v4985_v60 = vpop.f32.mrb[106].mxu1  ;;  %v5331_v44 = vpop.f32.mrb[214].mxu0 }
 0x6af   : > { %v13836_v30 = vadd.f32 %v5331_v44, %v5144_v4  ;;  %v9629_v7 = vpop.f32.mrb[107].mxu1  ;;  %v9739_v16 = vpop.f32.mrb[215].mxu0  ;;  %v5094_v53 = vsel %vm5087_vm9, %v5076_v20, %v5077_v59 }
 0x6b0   : > { %v5145_v35 = vadd.f32 %v5094_v53, %v13465_v6  ;;  %v5078_v16 = vrot.slane %v4985_v60, 2 }
 0x6b1   : > { %14993 = vst [vmem:[#allocation2_spill] sm:$0xff] %v13836_v30  ;;  %9847 = vmatmul.mubr.msk.bf16.gmra.mrb[212].mxu1 %vm4152_vm7, %v14994_v29  ;;  %9957 = vmatmul.mubr.msk.bf16.gmra.mrb[64].mxu0 %vm4152_vm7, %v14994_v29 }
 0x6b2   : > { %9850 = vmatprep.mubr.msk.bf16.mxu1 %vm10423_vm1, %v14893_v28  ;;  %9960 = vmatprep.mubr.msk.bf16.mxu0 %vm10423_vm1, %v14893_v28 }
 0x6b4   : > { %v4990_v4 = vpop.f32.mrb[108].mxu1  ;;  %v5336_v42 = vpop.f32.mrb[216].mxu0 }
 0x6b5   : > { %v5079_v27 = vrot.slane %v4990_v4, 2  ;;  %v13849_v46 = vadd.f32 %v5336_v42, %v5145_v35  ;;  %v9632_v20 = vpop.f32.mrb[109].mxu1  ;;  %v9742_v6 = vpop.f32.mrb[217].mxu0  ;;  %v14996_v35 = vld [vmem:[#allocation22_spill] sm:$0xff] }
 0x6b6   : > { %v4993_v59 = vpop.f32.mrb[110].mxu1  ;;  %v5339_v1 = vpop.f32.mrb[218].mxu0 }
 0x6b7   : > { %v5080_v44 = vrot.slane %v4993_v59, 2  ;;  %v9633_v7 = vpop.f32.mrb[111].mxu1  ;;  %v9743_v53 = vpop.f32.mrb[219].mxu0  ;;  %v5093_v30 = vsel %vm5087_vm9, %v5078_v16, %v5079_v27 }
 0x6b8   : > { %v5146_v29 = vadd.f32 %v5093_v30, %v13477_v54 }
 0x6b9   : > { %9851 = vmatmul.mubr.msk.bf16.gmra.mrb[216].mxu1 %vm4152_vm7, %v14995_v52  ;;  %9961 = vmatmul.mubr.msk.bf16.gmra.mrb[68].mxu0 %vm4152_vm7, %v14995_v52  ;;  %v5092_v60 = vsel %vm5087_vm9, %v5079_v27, %v5080_v44 }
 0x6ba   : > { %v5147_v4 = vadd.f32 %v5092_v60, %v14996_v35  ;;  %9854 = vmatprep.mubr.msk.bf16.mxu1 %vm10423_vm1, %v14893_v28  ;;  %9964 = vmatprep.mubr.msk.bf16.mxu0 %vm10423_vm1, %v14893_v28  ;;  %v14998_v60 = vld [vmem:[#allocation17_spill] sm:$0xff] }
 0x6bc   : > { %v4998_v42 = vpop.f32.mrb[112].mxu1  ;;  %v5343_v16 = vpop.f32.mrb[220].mxu0 }
 0x6bd   : > { %v13865_v54 = vadd.f32 %v5343_v16, %v5146_v29  ;;  %v9636_v30 = vpop.f32.mrb[113].mxu1  ;;  %v9746_v20 = vpop.f32.mrb[221].mxu0  ;;  %v5081_v1 = vrot.slane %v4998_v42, 2 }
 0x6be   : > { %v5001_v6 = vpop.f32.mrb[114].mxu1  ;;  %v5346_v59 = vpop.f32.mrb[222].mxu0 }
 0x6bf   : > { %v5082_v7 = vrot.slane %v5001_v6, 2  ;;  %v13867_v53 = vadd.f32 %v5346_v59, %v5147_v4  ;;  %v9637_v27 = vpop.f32.mrb[115].mxu1  ;;  %v9747_v44 = vpop.f32.mrb[223].mxu0 }
 0x6c1   : > { %14997 = vst [vmem:[#allocation26_spill] sm:$0xff] %v13867_v53  ;;  %9855 = vmatmul.mubr.msk.bf16.gmra.mrb[220].mxu1 %vm4152_vm7, %v14998_v60  ;;  %9965 = vmatmul.mubr.msk.bf16.gmra.mrb[72].mxu0 %vm4152_vm7, %v14998_v60  ;;  %v5091_v29 = vsel %vm5087_vm9, %v5081_v1, %v5082_v7 }
 0x6c2   : > { %v5148_v35 = vadd.f32 %v5091_v29, %v13501_v22  ;;  %9858 = vmatprep.mubr.msk.bf16.mxu1 %vm10423_vm1, %v14893_v28  ;;  %9968 = vmatprep.mubr.msk.bf16.mxu0 %vm10423_vm1, %v14893_v28  ;;  %v15000_v29 = vld [vmem:[#allocation18_spill] sm:$0xff] }
 0x6c4   : > { %v5006_v4 = vpop.f32.mrb[116].mxu1  ;;  %v5351_v42 = vpop.f32.mrb[224].mxu0 }
 0x6c5   : > { %v5083_v16 = vrot.slane %v5006_v4, 2  ;;  %v9640_v30 = vpop.f32.mrb[117].mxu1  ;;  %v9750_v20 = vpop.f32.mrb[225].mxu0 }
 0x6c6   : > { %v5009_v6 = vpop.f32.mrb[118].mxu1  ;;  %v5353_v59 = vpop.f32.mrb[226].mxu0 }
 0x6c7   : > { %v13880_v27 = vadd.f32 %v5353_v59, %v5148_v35  ;;  %v9641_v44 = vpop.f32.mrb[119].mxu1  ;;  %v9751_v53 = vpop.f32.mrb[227].mxu0  ;;  %v5090_v22 = vsel %vm5087_vm9, %v5082_v7, %v5083_v16 }
 0x6c8   : > { %v5149_v1 = vadd.f32 %v5090_v22, %v13505_v19  ;;  %v5084_v53 = vrot.slane %v5009_v6, 2 }
 0x6c9   : > { %14999 = vst [vmem:[#allocation3_spill] sm:$0xff] %v13880_v27  ;;  %9859 = vmatmul.mubr.msk.bf16.gmra.mrb[224].mxu1 %vm4152_vm7, %v15000_v29  ;;  %9969 = vmatmul.mubr.msk.bf16.gmra.mrb[76].mxu0 %vm4152_vm7, %v15000_v29 }
 0x6ca   : > { %9862 = vmatprep.mubr.msk.bf16.mxu1 %vm10423_vm1, %v14893_v28  ;;  %9972 = vmatprep.mubr.msk.bf16.mxu0 %vm10423_vm1, %v14893_v28 }
 0x6cc   : > { %v5014_v35 = vpop.f32.mrb[120].mxu1  ;;  %v5358_v4 = vpop.f32.mrb[228].mxu0 }
 0x6cd   : > { %v5085_v42 = vrot.slane %v5014_v35, 2  ;;  %v13893_v30 = vadd.f32 %v5358_v4, %v5149_v1  ;;  %v9644_v7 = vpop.f32.mrb[121].mxu1  ;;  %v9754_v19 = vpop.f32.mrb[229].mxu0 }
 0x6ce   : > { %v5017_v16 = vpop.f32.mrb[122].mxu1  ;;  %v5361_v20 = vpop.f32.mrb[230].mxu0 }
 0x6cf   : > { %v5086_v59 = vrot.slane %v5017_v16, 2  ;;  %v9645_v44 = vpop.f32.mrb[123].mxu1  ;;  %v9755_v22 = vpop.f32.mrb[231].mxu0  ;;  %v5089_v27 = vsel %vm5087_vm9, %v5084_v53, %v5085_v42 }
 0x6d0   : > { %v5150_v29 = vadd.f32 %v5089_v27, %v13517_v48 }
 0x6d1   : > { %9863 = vmatmul.mubr.msk.bf16.gmra.mrb[228].mxu1 %vm4152_vm7, %v13161_v55  ;;  %9973 = vmatmul.mubr.msk.bf16.gmra.mrb[80].mxu0 %vm4152_vm7, %v13161_v55  ;;  %v5088_v6 = vsel %vm5087_vm9, %v5085_v42, %v5086_v59 }
 0x6d2   : > { %v5151_v1 = vadd.f32 %v5088_v6, %v13529_v36  ;;  %9866 = vmatprep.mubr.msk.bf16.mxu1 %vm10423_vm1, %v14893_v28  ;;  %9976 = vmatprep.mubr.msk.bf16.mxu0 %vm10423_vm1, %v14893_v28 }
 0x6d4   : > { %v5022_v35 = vpop.f32.mrb[124].mxu1  ;;  %v5365_v4 = vpop.f32.mrb[232].mxu0 }
 0x6d5   : > { %v13909_v48 = vadd.f32 %v5365_v4, %v5150_v29  ;;  %v9648_v27 = vpop.f32.mrb[125].mxu1  ;;  %v9758_v53 = vpop.f32.mrb[233].mxu0 }
 0x6d6   : > { %v5024_v7 = vpop.f32.mrb[126].mxu1  ;;  %v5368_v19 = vpop.f32.mrb[234].mxu0 }
 0x6d7   : > { %15001 = vst [vmem:[#allocation28_spill] sm:$0xff] %v13909_v48  ;;  %v13911_v16 = vadd.f32 %v5368_v19, %v5151_v1  ;;  %v9649_v20 = vpop.f32.mrb[127].mxu1  ;;  %v9759_v42 = vpop.f32.mrb[235].mxu0  ;;  %v15004_v48 = vld [vmem:[#allocation23_spill] sm:$0xff] }
 0x6d9   : > { %15002 = vst [vmem:[#allocation27_spill] sm:$0xff] %v13911_v16  ;;  %9867 = vmatmul.mubr.msk.bf16.gmra.mrb[232].mxu1 %vm4152_vm7, %v13176_v43  ;;  %9977 = vmatmul.mubr.msk.bf16.gmra.mrb[84].mxu0 %vm4152_vm7, %v13176_v43 }
 0x6da   : > { %9870 = vmatprep.mubr.msk.bf16.mxu1 %vm10423_vm1, %v14893_v28  ;;  %9980 = vmatprep.mubr.msk.bf16.mxu0 %vm10423_vm1, %v14893_v28 }
 0x6dc   : > { %v5028_v36 = vpop.f32.mrb[128].mxu1  ;;  %v5373_v29 = vpop.f32.mrb[236].mxu0 }
 0x6dd   : > { %v9652_v59 = vpop.f32.mrb[129].mxu1  ;;  %v9762_v44 = vpop.f32.mrb[237].mxu0 }
 0x6de   : > { %v5030_v22 = vpop.f32.mrb[130].mxu1  ;;  %v5375_v6 = vpop.f32.mrb[238].mxu0  ;;  %v7804_v44 = vld [vmem:[%s14846_s3 + $0x20] sm:$0xf] }
 0x6df   : > { %v9653_v1 = vpop.f32.mrb[131].mxu1  ;;  %v9763_v35 = vpop.f32.mrb[239].mxu0 }
 0x6e1   : > { %9871 = vmatmul.mubr.msk.bf16.gmra.mrb[236].mxu1 %vm4152_vm7, %v13189_v21  ;;  %9981 = vmatmul.mubr.msk.bf16.gmra.mrb[88].mxu0 %vm4152_vm7, %v13189_v21 }
 0x6e2   : > { %9874 = vmatprep.mubr.msk.bf16.mxu1 %vm10423_vm1, %v14893_v28  ;;  %9984 = vmatprep.mubr.msk.bf16.mxu0 %vm10423_vm1, %v14893_v28 }
 0x6e4   : > { %v5034_v4 = vpop.f32.mrb[132].mxu1  ;;  %v5379_v27 = vpop.f32.mrb[240].mxu0 }
 0x6e5   : > { %v9656_v53 = vpop.f32.mrb[133].mxu1  ;;  %v9766_v7 = vpop.f32.mrb[241].mxu0  ;;  %v6763_v27 = vsel %vm4234_vm5, %v7804_v44, 0 }
 0x6e6   : > { %v5036_v19 = vpop.f32.mrb[134].mxu1  ;;  %v5381_v20 = vpop.f32.mrb[242].mxu0 }
 0x6e7   : > { %v9657_v42 = vpop.f32.mrb[135].mxu1  ;;  %v9767_v36 = vpop.f32.mrb[243].mxu0 }
 0x6e9   : > { %9875 = vmatmul.mubr.bf16.gmra.mrb[240].mxu1 %v14981_v23  ;;  %9985 = vmatmul.mubr.bf16.gmra.mrb[92].mxu0 %v14981_v23 }
 0x6ea   : > { %9990 = vmatprep.mubr.msk.bf16.mxu1 %vm10423_vm1, %v14893_v28  ;;  %10100 = vmatprep.mubr.msk.bf16.mxu0 %vm10423_vm1, %v14893_v28 }
 0x6ec   : > { %v5455_v29 = vpop.f32.mrb[136].mxu1  ;;  %v5815_v59 = vpop.f32.mrb[244].mxu0 }
 0x6ed   : > { %v9772_v22 = vpop.f32.mrb[137].mxu1  ;;  %v9882_v6 = vpop.f32.mrb[245].mxu0 }
 0x6ee   : > { %v5457_v1 = vpop.f32.mrb[138].mxu1  ;;  %v5817_v35 = vpop.f32.mrb[246].mxu0  ;;  %v15003_v22 = vld [vmem:[#allocation10_spill] sm:$0xff] }
 0x6ef   : > { %v9773_v4 = vpop.f32.mrb[139].mxu1  ;;  %v9883_v53 = vpop.f32.mrb[247].mxu0 }
 0x6f1   : > { %9991 = vmatmul.mubr.bf16.vlgmr.msra.gmra.mrb[244].mxu1 %v14981_v23  ;;  %10101 = vmatmul.mubr.bf16.vlgmr.msra.gmra.mrb[96].mxu0 %v14981_v23 }
 0x6f2   : > { %10209 = vmatpush3.bf16.msra.mxu1 %v6763_v27  ;;  %9994 = vmatprep.mubr.msk.bf16.mxu1 %vm10423_vm1, %v14893_v28 }
 0x6f3   : > { %10104 = vmatprep.mubr.msk.bf16.mxu0 %vm10423_vm1, %v14893_v28 }
 0x6f4   : > { %v5461_v7 = vpop.f32.mrb[140].mxu1  ;;  %v5821_v19 = vpop.f32.mrb[248].mxu0 }
 0x6f5   : > { %v9776_v20 = vpop.f32.mrb[141].mxu1  ;;  %v9886_v42 = vpop.f32.mrb[249].mxu0 }
 0x6f6   : > { %v5463_v36 = vpop.f32.mrb[142].mxu1  ;;  %v5823_v29 = vpop.f32.mrb[250].mxu0 }
 0x6f7   : > { %v9777_v59 = vpop.f32.mrb[143].mxu1  ;;  %v9887_v44 = vpop.f32.mrb[251].mxu0  ;;  %v5664_v35 = vrot.slane %v5463_v36, 1  ;;  %v6024_v4 = vrot.slane %v5823_v29, 2 }
 0x6f9   : > { %9995 = vmatmul.mubr.msk.bf16.gmra.mrb[248].mxu1 %vm4152_vm7, %v15003_v22  ;;  %10105 = vmatmul.mubr.msk.bf16.gmra.mrb[100].mxu0 %vm4152_vm7, %v15003_v22 }
 0x6fa   : > { %9998 = vmatprep.mubr.msk.bf16.mxu1 %vm10423_vm1, %v14893_v28  ;;  %10108 = vmatprep.mubr.msk.bf16.mxu0 %vm10423_vm1, %v14893_v28 }
 0x6fc   : > { %v5468_v6 = vpop.f32.mrb[144].mxu1  ;;  %v5828_v1 = vpop.f32.mrb[252].mxu0 }
 0x6fd   : > { %v5665_v27 = vrot.slane %v5468_v6, 1  ;;  %v6025_v53 = vrot.slane %v5828_v1, 2  ;;  %v9780_v7 = vpop.f32.mrb[145].mxu1  ;;  %v9890_v19 = vpop.f32.mrb[253].mxu0 }
 0x6fe   : > { %v5471_v20 = vpop.f32.mrb[146].mxu1  ;;  %v5831_v42 = vpop.f32.mrb[254].mxu0 }
 0x6ff   : > { %v5666_v59 = vrot.slane %v5471_v20, 1  ;;  %v6026_v44 = vrot.slane %v5831_v42, 2  ;;  %v9781_v23 = vpop.f32.mrb[147].mxu1  ;;  %v9891_v22 = vpop.f32.mrb[255].mxu0  ;;  %v5743_v21 = vsel %vm1478_vm4, %v5664_v35, %v5665_v27  ;;  %v6103_v16 = vsel %vm5087_vm9, %v6024_v4, %v6025_v53 }
 0x700   : > { %v5744_v43 = vadd.f32 %v5743_v21, %v15004_v48 }
 0x701   : > { %9999 = vmatmul.mubr.msk.bf16.gmra.mrb[252].mxu1 %vm4152_vm7, %v12707_v58  ;;  %10109 = vmatmul.mubr.msk.bf16.gmra.mrb[104].mxu0 %vm4152_vm7, %v12707_v58  ;;  %v5742_v36 = vsel %vm1478_vm4, %v5665_v27, %v5666_v59  ;;  %v6102_v23 = vsel %vm5087_vm9, %v6025_v53, %v6026_v44 }
 0x702   : > { %10002 = vmatprep.mubr.msk.bf16.mxu1 %vm10423_vm1, %v14893_v28  ;;  %10112 = vmatprep.mubr.msk.bf16.mxu0 %vm10423_vm1, %v14893_v28  ;;  %v13970_v29 = vadd.f32 %v6103_v16, %v5744_v43  ;;  %v5745_v21 = vadd.f32 %v5742_v36, %v13581_v12 }
 0x704   : > { %v5476_v48 = vpop.f32.mrb[148].mxu1  ;;  %v5836_v22 = vpop.f32.mrb[0].mxu0  ;;  %v13973_v6 = vadd.f32 %v6102_v23, %v5745_v21 }
 0x705   : > { %v9784_v1 = vpop.f32.mrb[149].mxu1  ;;  %v9894_v35 = vpop.f32.mrb[1].mxu0  ;;  %v5667_v7 = vrot.slane %v5476_v48, 1  ;;  %v6027_v53 = vrot.slane %v5836_v22, 2 }
 0x706   : > { %v5479_v4 = vpop.f32.mrb[150].mxu1  ;;  %v5839_v27 = vpop.f32.mrb[2].mxu0 }
 0x707   : > { %v5668_v19 = vrot.slane %v5479_v4, 1  ;;  %v6028_v20 = vrot.slane %v5839_v27, 2  ;;  %v9785_v42 = vpop.f32.mrb[151].mxu1  ;;  %v9895_v59 = vpop.f32.mrb[3].mxu0 }
 0x709   : > { %10003 = vmatmul.mubr.msk.bf16.gmra.mrb[0].mxu1 %vm4152_vm7, %v12725_v15  ;;  %10113 = vmatmul.mubr.msk.bf16.gmra.mrb[108].mxu0 %vm4152_vm7, %v12725_v15  ;;  %v5741_v43 = vsel %vm1478_vm4, %v5667_v7, %v5668_v19  ;;  %v6101_v12 = vsel %vm5087_vm9, %v6027_v53, %v6028_v20 }
 0x70a   : > { %10006 = vmatprep.mubr.msk.bf16.mxu1 %vm10423_vm1, %v14893_v28  ;;  %10116 = vmatprep.mubr.msk.bf16.mxu0 %vm10423_vm1, %v14893_v28  ;;  %v5746_v16 = vadd.f32 %v5741_v43, %v13597_v26 }
 0x70c   : > { %v5484_v44 = vpop.f32.mrb[152].mxu1  ;;  %v5844_v36 = vpop.f32.mrb[4].mxu0  ;;  %v13988_v23 = vadd.f32 %v6101_v12, %v5746_v16 }
 0x70d   : > { %v5669_v21 = vrot.slane %v5484_v44, 1  ;;  %v6029_v48 = vrot.slane %v5844_v36, 2  ;;  %v9788_v22 = vpop.f32.mrb[153].mxu1  ;;  %v9898_v1 = vpop.f32.mrb[5].mxu0 }
 0x70e   : > { %v5487_v35 = vpop.f32.mrb[154].mxu1  ;;  %v5847_v4 = vpop.f32.mrb[6].mxu0 }
 0x70f   : > { %v9789_v27 = vpop.f32.mrb[155].mxu1  ;;  %v9899_v7 = vpop.f32.mrb[7].mxu0  ;;  %v5740_v53 = vsel %vm1478_vm4, %v5668_v19, %v5669_v21  ;;  %v6100_v42 = vsel %vm5087_vm9, %v6028_v20, %v6029_v48  ;;  %v5670_v12 = vrot.slane %v5487_v35, 1  ;;  %v6030_v20 = vrot.slane %v5847_v4, 2 }
 0x710   : > { %v5747_v26 = vadd.f32 %v5740_v53, %v13599_v38 }
 0x711   : > { %10007 = vmatmul.mubr.msk.bf16.gmra.mrb[4].mxu1 %vm4152_vm7, %v12749_v14  ;;  %10117 = vmatmul.mubr.msk.bf16.gmra.mrb[112].mxu0 %vm4152_vm7, %v12749_v14 }
 0x712   : > { %10010 = vmatprep.mubr.msk.bf16.mxu1 %vm10423_vm1, %v14893_v28  ;;  %10120 = vmatprep.mubr.msk.bf16.mxu0 %vm10423_vm1, %v14893_v28  ;;  %v14003_v59 = vadd.f32 %v6100_v42, %v5747_v26 }
 0x714   : > { %v5492_v19 = vpop.f32.mrb[156].mxu1  ;;  %v5852_v43 = vpop.f32.mrb[8].mxu0 }
 0x715   : > { %v5671_v16 = vrot.slane %v5492_v19, 1  ;;  %v6031_v38 = vrot.slane %v5852_v43, 2  ;;  %v9792_v44 = vpop.f32.mrb[157].mxu1  ;;  %v9902_v36 = vpop.f32.mrb[9].mxu0 }
 0x716   : > { %v5495_v21 = vpop.f32.mrb[158].mxu1  ;;  %v5855_v48 = vpop.f32.mrb[10].mxu0 }
 0x717   : > { %v5672_v22 = vrot.slane %v5495_v21, 1  ;;  %v6032_v1 = vrot.slane %v5855_v48, 2  ;;  %v9793_v27 = vpop.f32.mrb[159].mxu1  ;;  %v9903_v7 = vpop.f32.mrb[11].mxu0  ;;  %v5739_v53 = vsel %vm1478_vm4, %v5670_v12, %v5671_v16  ;;  %v6099_v42 = vsel %vm5087_vm9, %v6030_v20, %v6031_v38 }
 0x718   : > { %v5748_v26 = vadd.f32 %v5739_v53, %v13612_v3 }
 0x719   : > { %10011 = vmatmul.mubr.msk.bf16.gmra.mrb[8].mxu1 %vm4152_vm7, %v12769_v56  ;;  %10121 = vmatmul.mubr.msk.bf16.gmra.mrb[116].mxu0 %vm4152_vm7, %v12769_v56  ;;  %v5738_v35 = vsel %vm1478_vm4, %v5671_v16, %v5672_v22  ;;  %v6098_v4 = vsel %vm5087_vm9, %v6031_v38, %v6032_v1 }
 0x71a   : > { %10014 = vmatprep.mubr.msk.bf16.mxu1 %vm10423_vm1, %v14893_v28  ;;  %10124 = vmatprep.mubr.msk.bf16.mxu0 %vm10423_vm1, %v14893_v28  ;;  %v14022_v19 = vadd.f32 %v6099_v42, %v5748_v26  ;;  %v5749_v3 = vadd.f32 %v5738_v35, %v13625_v18 }
 0x71c   : > { %v5500_v43 = vpop.f32.mrb[160].mxu1  ;;  %v5860_v12 = vpop.f32.mrb[12].mxu0  ;;  %v14025_v20 = vadd.f32 %v6098_v4, %v5749_v3 }
 0x71d   : > { %v9796_v44 = vpop.f32.mrb[161].mxu1  ;;  %v9906_v36 = vpop.f32.mrb[13].mxu0  ;;  %v5673_v48 = vrot.slane %v5500_v43, 1  ;;  %v6033_v38 = vrot.slane %v5860_v12, 2 }
 0x71e   : > { %v5503_v16 = vpop.f32.mrb[162].mxu1  ;;  %v5863_v21 = vpop.f32.mrb[14].mxu0 }
 0x71f   : > { %v5674_v22 = vrot.slane %v5503_v16, 1  ;;  %v6034_v1 = vrot.slane %v5863_v21, 2  ;;  %v9797_v27 = vpop.f32.mrb[163].mxu1  ;;  %v9907_v7 = vpop.f32.mrb[15].mxu0 }
 0x721   : > { %10015 = vmatmul.mubr.msk.bf16.gmra.mrb[12].mxu1 %vm4152_vm7, %v12787_v25  ;;  %10125 = vmatmul.mubr.msk.bf16.gmra.mrb[120].mxu0 %vm4152_vm7, %v12787_v25  ;;  %v5737_v18 = vsel %vm1478_vm4, %v5673_v48, %v5674_v22  ;;  %v6097_v53 = vsel %vm5087_vm9, %v6033_v38, %v6034_v1 }
 0x722   : > { %10018 = vmatprep.mubr.msk.bf16.mxu1 %vm10423_vm1, %v14893_v28  ;;  %10128 = vmatprep.mubr.msk.bf16.mxu0 %vm10423_vm1, %v14893_v28  ;;  %v5750_v42 = vadd.f32 %v5737_v18, %v13641_v2 }
 0x724   : > { %v5508_v26 = vpop.f32.mrb[164].mxu1  ;;  %v5868_v35 = vpop.f32.mrb[16].mxu0  ;;  %v14040_v4 = vadd.f32 %v6097_v53, %v5750_v42 }
 0x725   : > { %v5675_v3 = vrot.slane %v5508_v26, 1  ;;  %v6035_v43 = vrot.slane %v5868_v35, 2  ;;  %v9800_v12 = vpop.f32.mrb[165].mxu1  ;;  %v9910_v44 = vpop.f32.mrb[17].mxu0 }
 0x726   : > { %v5511_v36 = vpop.f32.mrb[166].mxu1  ;;  %v5871_v16 = vpop.f32.mrb[18].mxu0 }
 0x727   : > { %v9801_v21 = vpop.f32.mrb[167].mxu1  ;;  %v9911_v48 = vpop.f32.mrb[19].mxu0  ;;  %v5736_v38 = vsel %vm1478_vm4, %v5674_v22, %v5675_v3  ;;  %v6096_v27 = vsel %vm5087_vm9, %v6034_v1, %v6035_v43  ;;  %v5676_v53 = vrot.slane %v5511_v36, 1  ;;  %v6036_v1 = vrot.slane %v5871_v16, 2 }
 0x728   : > { %v5751_v2 = vadd.f32 %v5736_v38, %v13643_v11 }
 0x729   : > { %10019 = vmatmul.mubr.msk.bf16.gmra.mrb[16].mxu1 %vm4152_vm7, %v12811_v13  ;;  %10129 = vmatmul.mubr.msk.bf16.gmra.mrb[124].mxu0 %vm4152_vm7, %v12811_v13 }
 0x72a   : > { %10022 = vmatprep.mubr.msk.bf16.mxu1 %vm10423_vm1, %v14893_v28  ;;  %10132 = vmatprep.mubr.msk.bf16.mxu0 %vm10423_vm1, %v14893_v28  ;;  %v14055_v7 = vadd.f32 %v6096_v27, %v5751_v2 }
 0x72c   : > { %v5516_v22 = vpop.f32.mrb[168].mxu1  ;;  %v5876_v18 = vpop.f32.mrb[20].mxu0 }
 0x72d   : > { %v5677_v42 = vrot.slane %v5516_v22, 1  ;;  %v6037_v11 = vrot.slane %v5876_v18, 2  ;;  %v9804_v26 = vpop.f32.mrb[169].mxu1  ;;  %v9914_v35 = vpop.f32.mrb[21].mxu0 }
 0x72e   : > { %v5519_v3 = vpop.f32.mrb[170].mxu1  ;;  %v5879_v43 = vpop.f32.mrb[22].mxu0 }
 0x72f   : > { %v5678_v12 = vrot.slane %v5519_v3, 1  ;;  %v6038_v44 = vrot.slane %v5879_v43, 2  ;;  %v9805_v21 = vpop.f32.mrb[171].mxu1  ;;  %v9915_v48 = vpop.f32.mrb[23].mxu0  ;;  %v5735_v38 = vsel %vm1478_vm4, %v5676_v53, %v5677_v42  ;;  %v6095_v27 = vsel %vm5087_vm9, %v6036_v1, %v6037_v11 }
 0x730   : > { %v5752_v2 = vadd.f32 %v5735_v38, %v13656_v57 }
 0x731   : > { %10023 = vmatmul.mubr.msk.bf16.gmra.mrb[20].mxu1 %vm4152_vm7, %v12831_v62  ;;  %10133 = vmatmul.mubr.msk.bf16.gmra.mrb[128].mxu0 %vm4152_vm7, %v12831_v62  ;;  %v5734_v36 = vsel %vm1478_vm4, %v5677_v42, %v5678_v12  ;;  %v6094_v16 = vsel %vm5087_vm9, %v6037_v11, %v6038_v44 }
 0x732   : > { %10026 = vmatprep.mubr.msk.bf16.mxu1 %vm10423_vm1, %v14893_v28  ;;  %10136 = vmatprep.mubr.msk.bf16.mxu0 %vm10423_vm1, %v14893_v28  ;;  %v14074_v22 = vadd.f32 %v6095_v27, %v5752_v2  ;;  %v5753_v57 = vadd.f32 %v5734_v36, %v13669_v61 }
 0x734   : > { %v5524_v18 = vpop.f32.mrb[172].mxu1  ;;  %v5884_v53 = vpop.f32.mrb[24].mxu0  ;;  %v14077_v1 = vadd.f32 %v6094_v16, %v5753_v57 }
 0x735   : > { %v9808_v26 = vpop.f32.mrb[173].mxu1  ;;  %v9918_v35 = vpop.f32.mrb[25].mxu0  ;;  %v5679_v43 = vrot.slane %v5524_v18, 1  ;;  %v6039_v11 = vrot.slane %v5884_v53, 2 }
 0x736   : > { %v5527_v42 = vpop.f32.mrb[174].mxu1  ;;  %v5887_v3 = vpop.f32.mrb[26].mxu0 }
 0x737   : > { %v5680_v12 = vrot.slane %v5527_v42, 1  ;;  %v6040_v44 = vrot.slane %v5887_v3, 2  ;;  %v9809_v21 = vpop.f32.mrb[175].mxu1  ;;  %v9919_v48 = vpop.f32.mrb[27].mxu0 }
 0x738   : > { %v15005_v48 = vld [vmem:[#allocation11_spill] sm:$0xff] }
 0x739   : > { %10027 = vmatmul.mubr.msk.bf16.gmra.mrb[24].mxu1 %vm4152_vm7, %v12849_v0  ;;  %10137 = vmatmul.mubr.msk.bf16.gmra.mrb[132].mxu0 %vm4152_vm7, %v12849_v0  ;;  %v5733_v61 = vsel %vm1478_vm4, %v5679_v43, %v5680_v12  ;;  %v6093_v38 = vsel %vm5087_vm9, %v6039_v11, %v6040_v44 }
 0x73a   : > { %10030 = vmatprep.mubr.msk.bf16.mxu1 %vm10423_vm1, %v14893_v28  ;;  %10140 = vmatprep.mubr.msk.bf16.mxu0 %vm10423_vm1, %v14893_v28  ;;  %v5754_v27 = vadd.f32 %v5733_v61, %v13685_v32 }
 0x73c   : > { %v5532_v2 = vpop.f32.mrb[176].mxu1  ;;  %v5892_v36 = vpop.f32.mrb[28].mxu0  ;;  %v14092_v16 = vadd.f32 %v6093_v38, %v5754_v27 }
 0x73d   : > { %v5681_v57 = vrot.slane %v5532_v2, 1  ;;  %v6041_v18 = vrot.slane %v5892_v36, 2  ;;  %v9812_v53 = vpop.f32.mrb[177].mxu1  ;;  %v9922_v26 = vpop.f32.mrb[29].mxu0 }
 0x73e   : > { %v5535_v35 = vpop.f32.mrb[178].mxu1  ;;  %v5895_v42 = vpop.f32.mrb[30].mxu0 }
 0x73f   : > { %v9813_v3 = vpop.f32.mrb[179].mxu1  ;;  %v9923_v43 = vpop.f32.mrb[31].mxu0  ;;  %v5732_v11 = vsel %vm1478_vm4, %v5680_v12, %v5681_v57  ;;  %v6092_v21 = vsel %vm5087_vm9, %v6040_v44, %v6041_v18  ;;  %v5682_v27 = vrot.slane %v5535_v35, 1  ;;  %v6042_v44 = vrot.slane %v5895_v42, 2 }
 0x740   : > { %v5755_v32 = vadd.f32 %v5732_v11, %v13687_v34 }
 0x741   : > { %10031 = vmatmul.mubr.msk.bf16.gmra.mrb[28].mxu1 %vm4152_vm7, %v15005_v48  ;;  %10141 = vmatmul.mubr.msk.bf16.gmra.mrb[136].mxu0 %vm4152_vm7, %v15005_v48 }
 0x742   : > { %10034 = vmatprep.mubr.msk.bf16.mxu1 %vm10423_vm1, %v14893_v28  ;;  %10144 = vmatprep.mubr.msk.bf16.mxu0 %vm10423_vm1, %v14893_v28  ;;  %v14107_v61 = vadd.f32 %v6092_v21, %v5755_v32  ;;  %v15007_v32 = vld [vmem:[#allocation24_spill] sm:$0xff] }
 0x744   : > { %15006 = vst [vmem:[#allocation4_spill] sm:$0xff] %v14107_v61  ;;  %v5540_v12 = vpop.f32.mrb[180].mxu1  ;;  %v5900_v38 = vpop.f32.mrb[32].mxu0 }
 0x745   : > { %v5683_v2 = vrot.slane %v5540_v12, 1  ;;  %v6043_v34 = vrot.slane %v5900_v38, 2  ;;  %v9816_v36 = vpop.f32.mrb[181].mxu1  ;;  %v9926_v57 = vpop.f32.mrb[33].mxu0 }
 0x746   : > { %v5543_v18 = vpop.f32.mrb[182].mxu1  ;;  %v5903_v53 = vpop.f32.mrb[34].mxu0 }
 0x747   : > { %v5684_v26 = vrot.slane %v5543_v18, 1  ;;  %v6044_v3 = vrot.slane %v5903_v53, 2  ;;  %v9817_v43 = vpop.f32.mrb[183].mxu1  ;;  %v9927_v11 = vpop.f32.mrb[35].mxu0  ;;  %v5731_v48 = vsel %vm1478_vm4, %v5682_v27, %v5683_v2  ;;  %v6091_v21 = vsel %vm5087_vm9, %v6042_v44, %v6043_v34 }
 0x748   : > { %v5756_v61 = vadd.f32 %v5731_v48, %v15007_v32 }
 0x749   : > { %10035 = vmatmul.mubr.msk.bf16.gmra.mrb[32].mxu1 %vm4152_vm7, %v12907_v63  ;;  %10145 = vmatmul.mubr.msk.bf16.gmra.mrb[140].mxu0 %vm4152_vm7, %v12907_v63  ;;  %v5730_v35 = vsel %vm1478_vm4, %v5683_v2, %v5684_v26  ;;  %v6090_v42 = vsel %vm5087_vm9, %v6043_v34, %v6044_v3 }
 0x74a   : > { %10038 = vmatprep.mubr.msk.bf16.mxu1 %vm10423_vm1, %v14893_v28  ;;  %10148 = vmatprep.mubr.msk.bf16.mxu0 %vm10423_vm1, %v14893_v28  ;;  %v14126_v12 = vadd.f32 %v6091_v21, %v5756_v61  ;;  %v5757_v48 = vadd.f32 %v5730_v35, %v13716_v5 }
 0x74c   : > { %v5548_v38 = vpop.f32.mrb[184].mxu1  ;;  %v5908_v27 = vpop.f32.mrb[36].mxu0  ;;  %v14129_v44 = vadd.f32 %v6090_v42, %v5757_v48 }
 0x74d   : > { %v9820_v36 = vpop.f32.mrb[185].mxu1  ;;  %v9930_v57 = vpop.f32.mrb[37].mxu0  ;;  %v5685_v53 = vrot.slane %v5548_v38, 1  ;;  %v6045_v34 = vrot.slane %v5908_v27, 2 }
 0x74e   : > { %v5551_v2 = vpop.f32.mrb[186].mxu1  ;;  %v5911_v18 = vpop.f32.mrb[38].mxu0 }
 0x74f   : > { %v5686_v26 = vrot.slane %v5551_v2, 1  ;;  %v6046_v3 = vrot.slane %v5911_v18, 2  ;;  %v9821_v43 = vpop.f32.mrb[187].mxu1  ;;  %v9931_v11 = vpop.f32.mrb[39].mxu0 }
 0x751   : > { %10039 = vmatmul.mubr.msk.bf16.gmra.mrb[36].mxu1 %vm4152_vm7, %v12925_v47  ;;  %10149 = vmatmul.mubr.msk.bf16.gmra.mrb[144].mxu0 %vm4152_vm7, %v12925_v47  ;;  %v5729_v5 = vsel %vm1478_vm4, %v5685_v53, %v5686_v26  ;;  %v6089_v61 = vsel %vm5087_vm9, %v6045_v34, %v6046_v3 }
 0x752   : > { %10042 = vmatprep.mubr.msk.bf16.mxu1 %vm10423_vm1, %v14893_v28  ;;  %10152 = vmatprep.mubr.msk.bf16.mxu0 %vm10423_vm1, %v14893_v28  ;;  %v5758_v21 = vadd.f32 %v5729_v5, %v13733_v49 }
 0x754   : > { %v5556_v32 = vpop.f32.mrb[188].mxu1  ;;  %v5916_v35 = vpop.f32.mrb[40].mxu0  ;;  %v14144_v42 = vadd.f32 %v6089_v61, %v5758_v21 }
 0x755   : > { %v5687_v48 = vrot.slane %v5556_v32, 1  ;;  %v6047_v38 = vrot.slane %v5916_v35, 2  ;;  %v9824_v27 = vpop.f32.mrb[189].mxu1  ;;  %v9934_v36 = vpop.f32.mrb[41].mxu0 }
 0x756   : > { %v5559_v57 = vpop.f32.mrb[190].mxu1  ;;  %v5919_v2 = vpop.f32.mrb[42].mxu0 }
 0x757   : > { %v9825_v18 = vpop.f32.mrb[191].mxu1  ;;  %v9935_v53 = vpop.f32.mrb[43].mxu0  ;;  %v5728_v34 = vsel %vm1478_vm4, %v5686_v26, %v5687_v48  ;;  %v6088_v43 = vsel %vm5087_vm9, %v6046_v3, %v6047_v38  ;;  %v5688_v61 = vrot.slane %v5559_v57, 1  ;;  %v6048_v3 = vrot.slane %v5919_v2, 2 }
 0x758   : > { %v5759_v49 = vadd.f32 %v5728_v34, %v13735_v24 }
 0x759   : > { %10043 = vmatmul.mubr.msk.bf16.gmra.mrb[40].mxu1 %vm4152_vm7, %v12949_v9  ;;  %10153 = vmatmul.mubr.msk.bf16.gmra.mrb[148].mxu0 %vm4152_vm7, %v12949_v9 }
 0x75a   : > { %10046 = vmatprep.mubr.msk.bf16.mxu1 %vm10423_vm1, %v14893_v28  ;;  %10156 = vmatprep.mubr.msk.bf16.mxu0 %vm10423_vm1, %v14893_v28  ;;  %v14159_v11 = vadd.f32 %v6088_v43, %v5759_v49 }
 0x75c   : > { %v5564_v26 = vpop.f32.mrb[192].mxu1  ;;  %v5924_v5 = vpop.f32.mrb[44].mxu0 }
 0x75d   : > { %v5689_v21 = vrot.slane %v5564_v26, 1  ;;  %v6049_v24 = vrot.slane %v5924_v5, 2  ;;  %v9828_v32 = vpop.f32.mrb[193].mxu1  ;;  %v9938_v35 = vpop.f32.mrb[45].mxu0 }
 0x75e   : > { %v5567_v48 = vpop.f32.mrb[194].mxu1  ;;  %v5927_v38 = vpop.f32.mrb[46].mxu0 }
 0x75f   : > { %v5690_v27 = vrot.slane %v5567_v48, 1  ;;  %v6050_v36 = vrot.slane %v5927_v38, 2  ;;  %v9829_v18 = vpop.f32.mrb[195].mxu1  ;;  %v9939_v53 = vpop.f32.mrb[47].mxu0  ;;  %v5727_v34 = vsel %vm1478_vm4, %v5688_v61, %v5689_v21  ;;  %v6087_v43 = vsel %vm5087_vm9, %v6048_v3, %v6049_v24 }
 0x760   : > { %v5760_v49 = vadd.f32 %v5727_v34, %v13748_v51 }
 0x761   : > { %10047 = vmatmul.mubr.msk.bf16.gmra.mrb[44].mxu1 %vm4152_vm7, %v12969_v39  ;;  %10157 = vmatmul.mubr.msk.bf16.gmra.mrb[152].mxu0 %vm4152_vm7, %v12969_v39  ;;  %v5726_v57 = vsel %vm1478_vm4, %v5689_v21, %v5690_v27  ;;  %v6086_v2 = vsel %vm5087_vm9, %v6049_v24, %v6050_v36 }
 0x762   : > { %10050 = vmatprep.mubr.msk.bf16.mxu1 %vm10423_vm1, %v14893_v28  ;;  %10160 = vmatprep.mubr.msk.bf16.mxu0 %vm10423_vm1, %v14893_v28  ;;  %v14178_v26 = vadd.f32 %v6087_v43, %v5760_v49  ;;  %v5761_v51 = vadd.f32 %v5726_v57, %v13761_v50 }
 0x764   : > { %v5572_v5 = vpop.f32.mrb[196].mxu1  ;;  %v5932_v61 = vpop.f32.mrb[48].mxu0  ;;  %v14181_v3 = vadd.f32 %v6086_v2, %v5761_v51 }
 0x765   : > { %v9832_v32 = vpop.f32.mrb[197].mxu1  ;;  %v9942_v35 = vpop.f32.mrb[49].mxu0  ;;  %v5691_v38 = vrot.slane %v5572_v5, 1  ;;  %v6051_v24 = vrot.slane %v5932_v61, 2 }
 0x766   : > { %v5575_v21 = vpop.f32.mrb[198].mxu1  ;;  %v5935_v48 = vpop.f32.mrb[50].mxu0 }
 0x767   : > { %v5692_v27 = vrot.slane %v5575_v21, 1  ;;  %v6052_v36 = vrot.slane %v5935_v48, 2  ;;  %v9833_v18 = vpop.f32.mrb[199].mxu1  ;;  %v9943_v53 = vpop.f32.mrb[51].mxu0 }
 0x769   : > { %10051 = vmatmul.mubr.msk.bf16.gmra.mrb[48].mxu1 %vm4152_vm7, %v12987_v8  ;;  %10161 = vmatmul.mubr.msk.bf16.gmra.mrb[156].mxu0 %vm4152_vm7, %v12987_v8  ;;  %v5725_v50 = vsel %vm1478_vm4, %v5691_v38, %v5692_v27  ;;  %v6085_v34 = vsel %vm5087_vm9, %v6051_v24, %v6052_v36 }
 0x76a   : > { %10054 = vmatprep.mubr.msk.bf16.mxu1 %vm10423_vm1, %v14893_v28  ;;  %10164 = vmatprep.mubr.msk.bf16.mxu0 %vm10423_vm1, %v14893_v28  ;;  %v5762_v43 = vadd.f32 %v5725_v50, %v13777_v45 }
 0x76c   : > { %v5580_v49 = vpop.f32.mrb[200].mxu1  ;;  %v5940_v57 = vpop.f32.mrb[52].mxu0  ;;  %v14196_v2 = vadd.f32 %v6085_v34, %v5762_v43 }
 0x76d   : > { %v5693_v51 = vrot.slane %v5580_v49, 1  ;;  %v6053_v5 = vrot.slane %v5940_v57, 2  ;;  %v9836_v61 = vpop.f32.mrb[201].mxu1  ;;  %v9946_v32 = vpop.f32.mrb[53].mxu0 }
 0x76e   : > { %v5583_v35 = vpop.f32.mrb[202].mxu1  ;;  %v5943_v21 = vpop.f32.mrb[54].mxu0 }
 0x76f   : > { %v9837_v48 = vpop.f32.mrb[203].mxu1  ;;  %v9947_v38 = vpop.f32.mrb[55].mxu0  ;;  %v5724_v24 = vsel %vm1478_vm4, %v5692_v27, %v5693_v51  ;;  %v6084_v18 = vsel %vm5087_vm9, %v6052_v36, %v6053_v5  ;;  %v5694_v34 = vrot.slane %v5583_v35, 1  ;;  %v6054_v36 = vrot.slane %v5943_v21, 2 }
 0x770   : > { %v5763_v45 = vadd.f32 %v5724_v24, %v13779_v31 }
 0x771   : > { %10055 = vmatmul.mubr.msk.bf16.gmra.mrb[52].mxu1 %vm4152_vm7, %v14987_v40  ;;  %10165 = vmatmul.mubr.msk.bf16.gmra.mrb[160].mxu0 %vm4152_vm7, %v14987_v40 }
 0x772   : > { %10058 = vmatprep.mubr.msk.bf16.mxu1 %vm10423_vm1, %v14893_v28  ;;  %10168 = vmatprep.mubr.msk.bf16.mxu0 %vm10423_vm1, %v14893_v28  ;;  %v14211_v53 = vadd.f32 %v6084_v18, %v5763_v45 }
 0x774   : > { %v5588_v27 = vpop.f32.mrb[204].mxu1  ;;  %v5948_v50 = vpop.f32.mrb[56].mxu0 }
 0x775   : > { %v5695_v43 = vrot.slane %v5588_v27, 1  ;;  %v6055_v31 = vrot.slane %v5948_v50, 2  ;;  %v9840_v49 = vpop.f32.mrb[205].mxu1  ;;  %v9950_v57 = vpop.f32.mrb[57].mxu0 }
 0x776   : > { %v5591_v51 = vpop.f32.mrb[206].mxu1  ;;  %v5951_v5 = vpop.f32.mrb[58].mxu0 }
 0x777   : > { %v5723_v61 = vsel %vm1478_vm4, %v5694_v34, %v5695_v43  ;;  %v5696_v32 = vrot.slane %v5591_v51, 1  ;;  %v6056_v48 = vrot.slane %v5951_v5, 2  ;;  %v9841_v38 = vpop.f32.mrb[207].mxu1  ;;  %v9951_v24 = vpop.f32.mrb[59].mxu0  ;;  %v6083_v18 = vsel %vm5087_vm9, %v6054_v36, %v6055_v31 }
 0x778   : > { %v5764_v45 = vadd.f32 %v5723_v61, %v13792_v17 }
 0x779   : > { %v5722_v35 = vsel %vm1478_vm4, %v5695_v43, %v5696_v32  ;;  %10059 = vmatmul.mubr.msk.bf16.gmra.mrb[56].mxu1 %vm4152_vm7, %v14988_v10  ;;  %10169 = vmatmul.mubr.msk.bf16.gmra.mrb[164].mxu0 %vm4152_vm7, %v14988_v10  ;;  %v6082_v21 = vsel %vm5087_vm9, %v6055_v31, %v6056_v48 }
 0x77a   : > { %10062 = vmatprep.mubr.msk.bf16.mxu1 %vm10423_vm1, %v14893_v28  ;;  %10172 = vmatprep.mubr.msk.bf16.mxu0 %vm10423_vm1, %v14893_v28  ;;  %v14230_v27 = vadd.f32 %v6083_v18, %v5764_v45  ;;  %v5765_v17 = vadd.f32 %v5722_v35, %v13805_v33  ;;  %v15008_v18 = vld [vmem:[#allocation7_spill] sm:$0xff] }
 0x77c   : > { %v5596_v50 = vpop.f32.mrb[208].mxu1  ;;  %v5956_v34 = vpop.f32.mrb[60].mxu0  ;;  %v14233_v36 = vadd.f32 %v6082_v21, %v5765_v17 }
 0x77d   : > { %v9844_v43 = vpop.f32.mrb[209].mxu1  ;;  %v9954_v49 = vpop.f32.mrb[61].mxu0  ;;  %v5697_v5 = vrot.slane %v5596_v50, 1  ;;  %v6057_v31 = vrot.slane %v5956_v34, 2 }
 0x77e   : > { %v5599_v57 = vpop.f32.mrb[210].mxu1  ;;  %v5959_v51 = vpop.f32.mrb[62].mxu0 }
 0x77f   : > { %v5698_v61 = vrot.slane %v5599_v57, 1  ;;  %v6058_v32 = vrot.slane %v5959_v51, 2  ;;  %v9845_v48 = vpop.f32.mrb[211].mxu1  ;;  %v9955_v38 = vpop.f32.mrb[63].mxu0 }
 0x781   : > { %v5721_v24 = vsel %vm1478_vm4, %v5697_v5, %v5698_v61  ;;  %10063 = vmatmul.mubr.msk.bf16.gmra.mrb[60].mxu1 %vm4152_vm7, %v14992_v41  ;;  %10173 = vmatmul.mubr.msk.bf16.gmra.mrb[168].mxu0 %vm4152_vm7, %v14992_v41  ;;  %v6081_v33 = vsel %vm5087_vm9, %v6057_v31, %v6058_v32  ;;  %v15010_v41 = vld [vmem:[#allocation25_spill] sm:$0xff] }
 0x782   : > { %10066 = vmatprep.mubr.msk.bf16.mxu1 %vm10423_vm1, %v14893_v28  ;;  %10176 = vmatprep.mubr.msk.bf16.mxu0 %vm10423_vm1, %v14893_v28  ;;  %v5766_v45 = vadd.f32 %v5721_v24, %v15008_v18  ;;  %v15011_v18 = vld [vmem:[#allocation15_spill] sm:$0xff] }
 0x784   : > { %v5604_v35 = vpop.f32.mrb[212].mxu1  ;;  %v5964_v21 = vpop.f32.mrb[64].mxu0  ;;  %v14248_v17 = vadd.f32 %v6081_v33, %v5766_v45 }
 0x785   : > { %v5699_v50 = vrot.slane %v5604_v35, 1  ;;  %v6059_v34 = vrot.slane %v5964_v21, 2  ;;  %v9848_v43 = vpop.f32.mrb[213].mxu1  ;;  %v9958_v49 = vpop.f32.mrb[65].mxu0 }
 0x786   : > { %15009 = vst [vmem:[#allocation5_spill] sm:$0xff] %v14248_v17  ;;  %v5607_v57 = vpop.f32.mrb[214].mxu1  ;;  %v5967_v51 = vpop.f32.mrb[66].mxu0 }
 0x787   : > { %v5720_v5 = vsel %vm1478_vm4, %v5698_v61, %v5699_v50  ;;  %v9849_v31 = vpop.f32.mrb[215].mxu1  ;;  %v9959_v48 = vpop.f32.mrb[67].mxu0  ;;  %v6080_v38 = vsel %vm5087_vm9, %v6058_v32, %v6059_v34  ;;  %v5700_v35 = vrot.slane %v5607_v57, 1  ;;  %v6060_v32 = vrot.slane %v5967_v51, 2 }
 0x788   : > { %v5767_v24 = vadd.f32 %v5720_v5, %v15010_v41 }
 0x789   : > { %10067 = vmatmul.mubr.msk.bf16.gmra.mrb[64].mxu1 %vm4152_vm7, %v15011_v18  ;;  %10177 = vmatmul.mubr.msk.bf16.gmra.mrb[172].mxu0 %vm4152_vm7, %v15011_v18 }
 0x78a   : > { %10070 = vmatprep.mubr.msk.bf16.mxu1 %vm10423_vm1, %v14893_v28  ;;  %10180 = vmatprep.mubr.msk.bf16.mxu0 %vm10423_vm1, %v14893_v28  ;;  %v14263_v61 = vadd.f32 %v6080_v38, %v5767_v24  ;;  %v15013_v24 = vld [vmem:[#allocation2_spill] sm:$0xff] }
 0x78c   : > { %15012 = vst [vmem:[#allocation6_spill] sm:$0xff] %v14263_v61  ;;  %v5612_v33 = vpop.f32.mrb[216].mxu1  ;;  %v5972_v45 = vpop.f32.mrb[68].mxu0 }
 0x78d   : > { %v5701_v21 = vrot.slane %v5612_v33, 1  ;;  %v6061_v41 = vrot.slane %v5972_v45, 2  ;;  %v9852_v50 = vpop.f32.mrb[217].mxu1  ;;  %v9962_v34 = vpop.f32.mrb[69].mxu0 }
 0x78e   : > { %v5615_v43 = vpop.f32.mrb[218].mxu1  ;;  %v5975_v49 = vpop.f32.mrb[70].mxu0 }
 0x78f   : > { %v5719_v5 = vsel %vm1478_vm4, %v5700_v35, %v5701_v21  ;;  %v5702_v31 = vrot.slane %v5615_v43, 1  ;;  %v6062_v48 = vrot.slane %v5975_v49, 2  ;;  %v9853_v18 = vpop.f32.mrb[219].mxu1  ;;  %v9963_v17 = vpop.f32.mrb[71].mxu0  ;;  %v6079_v38 = vsel %vm5087_vm9, %v6060_v32, %v6061_v41 }
 0x790   : > { %v5768_v61 = vadd.f32 %v5719_v5, %v15013_v24 }
 0x791   : > { %v5718_v57 = vsel %vm1478_vm4, %v5701_v21, %v5702_v31  ;;  %10071 = vmatmul.mubr.msk.bf16.gmra.mrb[68].mxu1 %vm4152_vm7, %v14995_v52  ;;  %10181 = vmatmul.mubr.msk.bf16.gmra.mrb[176].mxu0 %vm4152_vm7, %v14995_v52  ;;  %v6078_v51 = vsel %vm5087_vm9, %v6061_v41, %v6062_v48 }
 0x792   : > { %10074 = vmatprep.mubr.msk.bf16.mxu1 %vm10423_vm1, %v14893_v28  ;;  %10184 = vmatprep.mubr.msk.bf16.mxu0 %vm10423_vm1, %v14893_v28  ;;  %v14282_v17 = vadd.f32 %v6079_v38, %v5768_v61  ;;  %v5769_v18 = vadd.f32 %v5718_v57, %v13849_v46 }
 0x794   : > { %v5620_v33 = vpop.f32.mrb[220].mxu1  ;;  %v5980_v45 = vpop.f32.mrb[72].mxu0  ;;  %v14285_v35 = vadd.f32 %v6078_v51, %v5769_v18 }
 0x795   : > { %v9856_v32 = vpop.f32.mrb[221].mxu1  ;;  %v9966_v21 = vpop.f32.mrb[73].mxu0  ;;  %v5703_v43 = vrot.slane %v5620_v33, 1  ;;  %v6063_v41 = vrot.slane %v5980_v45, 2 }
 0x796   : > { %v5623_v50 = vpop.f32.mrb[222].mxu1  ;;  %v5983_v34 = vpop.f32.mrb[74].mxu0 }
 0x797   : > { %v5704_v49 = vrot.slane %v5623_v50, 1  ;;  %v6064_v5 = vrot.slane %v5983_v34, 2  ;;  %v9857_v31 = vpop.f32.mrb[223].mxu1  ;;  %v9967_v48 = vpop.f32.mrb[75].mxu0 }
 0x798   : > { %v15015_v48 = vld [vmem:[#allocation26_spill] sm:$0xff] }
 0x799   : > { %v5717_v61 = vsel %vm1478_vm4, %v5703_v43, %v5704_v49  ;;  %10075 = vmatmul.mubr.msk.bf16.gmra.mrb[72].mxu1 %vm4152_vm7, %v14998_v60  ;;  %10185 = vmatmul.mubr.msk.bf16.gmra.mrb[180].mxu0 %vm4152_vm7, %v14998_v60  ;;  %v6077_v46 = vsel %vm5087_vm9, %v6063_v41, %v6064_v5 }
 0x79a   : > { %10078 = vmatprep.mubr.msk.bf16.mxu1 %vm10423_vm1, %v14893_v28  ;;  %10188 = vmatprep.mubr.msk.bf16.mxu0 %vm10423_vm1, %v14893_v28  ;;  %v5770_v38 = vadd.f32 %v5717_v61, %v13865_v54  ;;  %v15016_v61 = vld [vmem:[#allocation18_spill] sm:$0xff] }
 0x79c   : > { %v5628_v24 = vpop.f32.mrb[224].mxu1  ;;  %v5988_v57 = vpop.f32.mrb[76].mxu0  ;;  %v14300_v51 = vadd.f32 %v6077_v46, %v5770_v38 }
 0x79d   : > { %v5705_v18 = vrot.slane %v5628_v24, 1  ;;  %v6065_v33 = vrot.slane %v5988_v57, 2  ;;  %v9860_v45 = vpop.f32.mrb[225].mxu1  ;;  %v9970_v32 = vpop.f32.mrb[77].mxu0 }
 0x79e   : > { %15014 = vst [vmem:[#allocation8_spill] sm:$0xff] %v14300_v51  ;;  %v5631_v21 = vpop.f32.mrb[226].mxu1  ;;  %v5991_v50 = vpop.f32.mrb[78].mxu0 }
 0x79f   : > { %v5716_v34 = vsel %vm1478_vm4, %v5704_v49, %v5705_v18  ;;  %v9861_v43 = vpop.f32.mrb[227].mxu1  ;;  %v9971_v41 = vpop.f32.mrb[79].mxu0  ;;  %v6076_v31 = vsel %vm5087_vm9, %v6064_v5, %v6065_v33  ;;  %v5706_v24 = vrot.slane %v5631_v21, 1  ;;  %v6066_v5 = vrot.slane %v5991_v50, 2 }
 0x7a0   : > { %v5771_v54 = vadd.f32 %v5716_v34, %v15015_v48 }
 0x7a1   : > { %10079 = vmatmul.mubr.msk.bf16.gmra.mrb[76].mxu1 %vm4152_vm7, %v15016_v61  ;;  %10189 = vmatmul.mubr.msk.bf16.gmra.mrb[184].mxu0 %vm4152_vm7, %v15016_v61 }
 0x7a2   : > { %10082 = vmatprep.mubr.msk.bf16.mxu1 %vm10423_vm1, %v14893_v28  ;;  %10192 = vmatprep.mubr.msk.bf16.mxu0 %vm10423_vm1, %v14893_v28  ;;  %v14315_v49 = vadd.f32 %v6076_v31, %v5771_v54  ;;  %v15018_v54 = vld [vmem:[#allocation3_spill] sm:$0xff] }
 0x7a4   : > { %15017 = vst [vmem:[#allocation9_spill] sm:$0xff] %v14315_v49  ;;  %v5636_v46 = vpop.f32.mrb[228].mxu1  ;;  %v5996_v38 = vpop.f32.mrb[80].mxu0 }
 0x7a5   : > { %v5707_v57 = vrot.slane %v5636_v46, 1  ;;  %v6067_v18 = vrot.slane %v5996_v38, 2  ;;  %v9864_v33 = vpop.f32.mrb[229].mxu1  ;;  %v9974_v45 = vpop.f32.mrb[81].mxu0 }
 0x7a6   : > { %v5639_v32 = vpop.f32.mrb[230].mxu1  ;;  %v5999_v34 = vpop.f32.mrb[82].mxu0 }
 0x7a7   : > { %v5715_v43 = vsel %vm1478_vm4, %v5706_v24, %v5707_v57  ;;  %v5708_v41 = vrot.slane %v5639_v32, 1  ;;  %v6068_v48 = vrot.slane %v5999_v34, 2  ;;  %v9865_v61 = vpop.f32.mrb[231].mxu1  ;;  %v9975_v51 = vpop.f32.mrb[83].mxu0  ;;  %v6075_v31 = vsel %vm5087_vm9, %v6066_v5, %v6067_v18 }
 0x7a8   : > { %v5772_v49 = vadd.f32 %v5715_v43, %v15018_v54  ;;  %v15021_v54 = vld [vmem:[#allocation28_spill] sm:$0xff] }
 0x7a9   : > { %v5714_v21 = vsel %vm1478_vm4, %v5707_v57, %v5708_v41  ;;  %10083 = vmatmul.mubr.msk.bf16.gmra.mrb[80].mxu1 %vm4152_vm7, %v13161_v55  ;;  %10193 = vmatmul.mubr.msk.bf16.gmra.mrb[188].mxu0 %vm4152_vm7, %v13161_v55  ;;  %v6074_v50 = vsel %vm5087_vm9, %v6067_v18, %v6068_v48 }
 0x7aa   : > { %10086 = vmatprep.mubr.msk.bf16.mxu1 %vm10423_vm1, %v14893_v28  ;;  %10196 = vmatprep.mubr.msk.bf16.mxu0 %vm10423_vm1, %v14893_v28  ;;  %v14334_v51 = vadd.f32 %v6075_v31, %v5772_v49  ;;  %v5773_v61 = vadd.f32 %v5714_v21, %v13893_v30  ;;  %v15020_v31 = vld [vmem:[#allocation19_spill] sm:$0xff] }
 0x7ac   : > { %v5644_v46 = vpop.f32.mrb[232].mxu1  ;;  %v6004_v38 = vpop.f32.mrb[84].mxu0  ;;  %v14337_v24 = vadd.f32 %v6074_v50, %v5773_v61 }
 0x7ad   : > { %v9868_v5 = vpop.f32.mrb[233].mxu1  ;;  %v9978_v57 = vpop.f32.mrb[85].mxu0  ;;  %v5709_v32 = vrot.slane %v5644_v46, 1  ;;  %v6069_v18 = vrot.slane %v6004_v38, 2 }
 0x7ae   : > { %15019 = vst [vmem:[#allocation12_spill] sm:$0xff] %v14337_v24  ;;  %v5647_v33 = vpop.f32.mrb[234].mxu1  ;;  %v6007_v45 = vpop.f32.mrb[86].mxu0  ;;  %v15022_v24 = vld [vmem:[#allocation27_spill] sm:$0xff] }
 0x7af   : > { %v5710_v34 = vrot.slane %v5647_v33, 1  ;;  %v6070_v43 = vrot.slane %v6007_v45, 2  ;;  %v9869_v41 = vpop.f32.mrb[235].mxu1  ;;  %v9979_v48 = vpop.f32.mrb[87].mxu0 }
 0x7b1   : > { %v5713_v49 = vsel %vm1478_vm4, %v5709_v32, %v5710_v34  ;;  %10087 = vmatmul.mubr.msk.bf16.gmra.mrb[84].mxu1 %vm4152_vm7, %v15020_v31  ;;  %10197 = vmatmul.mubr.msk.bf16.gmra.mrb[192].mxu0 %vm4152_vm7, %v15020_v31  ;;  %v6073_v30 = vsel %vm5087_vm9, %v6069_v18, %v6070_v43 }
 0x7b2   : > { %10090 = vmatprep.mubr.msk.bf16.mxu1 %vm10423_vm1, %v14893_v28  ;;  %10200 = vmatprep.mubr.msk.bf16.mxu0 %vm10423_vm1, %v14893_v28  ;;  %v5774_v21 = vadd.f32 %v5713_v49, %v15021_v54  ;;  %v15023_v54 = vld [vmem:[#allocation20_spill] sm:$0xff] }
 0x7b4   : > { %v5652_v50 = vpop.f32.mrb[236].mxu1  ;;  %v6012_v61 = vpop.f32.mrb[88].mxu0  ;;  %v14352_v46 = vadd.f32 %v6073_v30, %v5774_v21 }
 0x7b5   : > { %v5711_v38 = vrot.slane %v5652_v50, 1  ;;  %v6071_v5 = vrot.slane %v6012_v61, 2  ;;  %v9872_v57 = vpop.f32.mrb[237].mxu1  ;;  %v9982_v33 = vpop.f32.mrb[89].mxu0 }
 0x7b6   : > { %v5655_v45 = vpop.f32.mrb[238].mxu1  ;;  %v6015_v32 = vpop.f32.mrb[90].mxu0  ;;  %v15024_v57 = vmov 0.0|0.0  }
 0x7b7   : > { %v5712_v18 = vsel %vm1478_vm4, %v5710_v34, %v5711_v38  ;;  %v9873_v41 = vpop.f32.mrb[239].mxu1  ;;  %v9983_v48 = vpop.f32.mrb[91].mxu0  ;;  %v6072_v31 = vsel %vm5087_vm9, %v6070_v43, %v6071_v5 }
 0x7b8   : > { %v5775_v49 = vadd.f32 %v5712_v18, %v15022_v24 }
 0x7b9   : > { %10091 = vmatmul.mubr.msk.bf16.gmra.mrb[88].mxu1 %vm4152_vm7, %v15023_v54  ;;  %10201 = vmatmul.mubr.msk.bf16.gmra.mrb[196].mxu0 %vm4152_vm7, %v15023_v54 }
 0x7ba   : > { %10094 = vmatprep.mubr.msk.bf16.mxu1 %vm10423_vm1, %v14893_v28  ;;  %10204 = vmatprep.mubr.msk.bf16.mxu0 %vm10423_vm1, %v14893_v28  ;;  %v14367_v34 = vadd.f32 %v6072_v31, %v5775_v49 }
 0x7bc   : > { %v5659_v30 = vpop.f32.mrb[240].mxu1  ;;  %v6019_v21 = vpop.f32.mrb[92].mxu0 }
 0x7bd   : > { %v9876_v50 = vpop.f32.mrb[241].mxu1  ;;  %v9986_v43 = vpop.f32.mrb[93].mxu0 }
 0x7be   : > { %v5661_v61 = vpop.f32.mrb[242].mxu1  ;;  %v6021_v24 = vpop.f32.mrb[94].mxu0 }
 0x7bf   : > { %v9877_v38 = vpop.f32.mrb[243].mxu1  ;;  %v9987_v5 = vpop.f32.mrb[95].mxu0 }
 0x7c1   : > { %10095 = vmatmul.mubr.bf16.gmra.mrb[92].mxu1 %v15024_v57  ;;  %10205 = vmatmul.mubr.bf16.gmra.mrb[200].mxu0 %v15024_v57 }
 0x7c2   : > { %10210 = vmatprep.mubr.msk.bf16.mxu1 %vm10423_vm1, %v14893_v28 }
 0x7c4   : > { %v6175_v33 = vpop.f32.mrb[244].mxu1  ;;  %v6439_v45 = vpop.f32.mrb[96].mxu0 }
 0x7c5   : > { %v9992_v32 = vpop.f32.mrb[245].mxu1  ;;  %v10102_v31 = vpop.f32.mrb[97].mxu0  ;;  %v15025_v33 = vld [vmem:[#allocation10_spill] sm:$0xff] }
 0x7c6   : > { %v6177_v18 = vpop.f32.mrb[246].mxu1  ;;  %v6441_v41 = vpop.f32.mrb[98].mxu0 }
 0x7c7   : > { %v9993_v48 = vpop.f32.mrb[247].mxu1  ;;  %v10103_v49 = vpop.f32.mrb[99].mxu0 }
 0x7c9   : > { %10211 = vmatmul.mubr.bf16.vlgmr.msra.gmra.mrb[96].mxu1 %v15024_v57 }
 0x7ca   : > { %10214 = vmatprep.mubr.msk.bf16.mxu1 %vm10423_vm1, %v14893_v28 }
 0x7cc   : > { %v6181_v30 = vpop.f32.mrb[248].mxu1  ;;  %v6445_v21 = vpop.f32.mrb[100].mxu0 }
 0x7cd   : > { %v9996_v50 = vpop.f32.mrb[249].mxu1  ;;  %v10106_v43 = vpop.f32.mrb[101].mxu0 }
 0x7ce   : > { %v6183_v61 = vpop.f32.mrb[250].mxu1  ;;  %v6447_v24 = vpop.f32.mrb[102].mxu0 }
 0x7cf   : > { %v9997_v38 = vpop.f32.mrb[251].mxu1  ;;  %v10107_v5 = vpop.f32.mrb[103].mxu0 }
 0x7d1   : > { %10215 = vmatmul.mubr.msk.bf16.gmra.mrb[100].mxu1 %vm4152_vm7, %v15025_v33 }
 0x7d2   : > { %10218 = vmatprep.mubr.msk.bf16.mxu1 %vm10423_vm1, %v14893_v28 }
 0x7d4   : > { %v6187_v45 = vpop.f32.mrb[252].mxu1  ;;  %v6451_v32 = vpop.f32.mrb[104].mxu0 }
 0x7d5   : > { %v10000_v31 = vpop.f32.mrb[253].mxu1  ;;  %v10110_v18 = vpop.f32.mrb[105].mxu0 }
 0x7d6   : > { %v6189_v41 = vpop.f32.mrb[254].mxu1  ;;  %v6453_v48 = vpop.f32.mrb[106].mxu0 }
 0x7d7   : > { %v10001_v49 = vpop.f32.mrb[255].mxu1  ;;  %v10111_v30 = vpop.f32.mrb[107].mxu0 }
 0x7d9   : > { %10219 = vmatmul.mubr.msk.bf16.gmra.mrb[104].mxu1 %vm4152_vm7, %v12707_v58 }
 0x7da   : > { %10222 = vmatprep.mubr.msk.bf16.mxu1 %vm10423_vm1, %v14893_v28 }
 0x7dc   : > { %v6193_v21 = vpop.f32.mrb[0].mxu1  ;;  %v6457_v50 = vpop.f32.mrb[108].mxu0 }
 0x7dd   : > { %v6368_v43 = vadd.f32 %v6193_v21, %v13970_v29  ;;  %v10004_v61 = vpop.f32.mrb[1].mxu1  ;;  %v10114_v24 = vpop.f32.mrb[109].mxu0  ;;  %v6648_v33 = vrot.slane %v6457_v50, 1 }
 0x7de   : > { %v6196_v38 = vpop.f32.mrb[2].mxu1  ;;  %v6460_v5 = vpop.f32.mrb[110].mxu0 }
 0x7df   : > { %v6369_v45 = vadd.f32 %v6196_v38, %v13973_v6  ;;  %v6649_v32 = vrot.slane %v6460_v5, 1  ;;  %v10005_v31 = vpop.f32.mrb[3].mxu1  ;;  %v10115_v18 = vpop.f32.mrb[111].mxu0 }
 0x7e1   : > { %v6727_v58 = vsel %vm1478_vm4, %v6648_v33, %v6649_v32  ;;  %10223 = vmatmul.mubr.msk.bf16.gmra.mrb[108].mxu1 %vm4152_vm7, %v12725_v15 }
 0x7e2   : > { %v14390_v41 = vadd.f32 %v6727_v58, %v6368_v43  ;;  %10226 = vmatprep.mubr.msk.bf16.mxu1 %vm10423_vm1, %v14893_v28 }
 0x7e4   : > { %v6201_v29 = vpop.f32.mrb[4].mxu1  ;;  %v6465_v48 = vpop.f32.mrb[112].mxu0 }
 0x7e5   : > { %v6650_v49 = vrot.slane %v6465_v48, 1  ;;  %v10008_v30 = vpop.f32.mrb[5].mxu1  ;;  %v10118_v21 = vpop.f32.mrb[113].mxu0 }
 0x7e6   : > { %v6203_v6 = vpop.f32.mrb[6].mxu1  ;;  %v6468_v50 = vpop.f32.mrb[114].mxu0 }
 0x7e7   : > { %v6726_v61 = vsel %vm1478_vm4, %v6649_v32, %v6650_v49  ;;  %v6370_v24 = vadd.f32 %v6203_v6, %v13988_v23  ;;  %v10009_v38 = vpop.f32.mrb[7].mxu1  ;;  %v10119_v5 = vpop.f32.mrb[115].mxu0  ;;  %v6651_v31 = vrot.slane %v6468_v50, 1 }
 0x7e8   : > { %v14397_v15 = vadd.f32 %v6726_v61, %v6369_v45 }
 0x7e9   : > { %10227 = vmatmul.mubr.msk.bf16.gmra.mrb[112].mxu1 %vm4152_vm7, %v12749_v14 }
 0x7ea   : > { %10230 = vmatprep.mubr.msk.bf16.mxu1 %vm10423_vm1, %v14893_v28 }
 0x7ec   : > { %v6208_v43 = vpop.f32.mrb[8].mxu1  ;;  %v6473_v33 = vpop.f32.mrb[116].mxu0 }
 0x7ed   : > { %v6371_v18 = vadd.f32 %v6208_v43, %v14003_v59  ;;  %v6652_v58 = vrot.slane %v6473_v33, 1  ;;  %v10012_v29 = vpop.f32.mrb[9].mxu1  ;;  %v10122_v32 = vpop.f32.mrb[117].mxu0 }
 0x7ee   : > { %v6211_v48 = vpop.f32.mrb[10].mxu1  ;;  %v6476_v23 = vpop.f32.mrb[118].mxu0 }
 0x7ef   : > { %v6725_v45 = vsel %vm1478_vm4, %v6651_v31, %v6652_v58  ;;  %v6653_v49 = vrot.slane %v6476_v23, 1  ;;  %v10013_v30 = vpop.f32.mrb[11].mxu1  ;;  %v10123_v21 = vpop.f32.mrb[119].mxu0 }
 0x7f0   : > { %v14406_v14 = vadd.f32 %v6725_v45, %v6370_v24 }
 0x7f1   : > { %v6724_v6 = vsel %vm1478_vm4, %v6652_v58, %v6653_v49  ;;  %10231 = vmatmul.mubr.msk.bf16.gmra.mrb[116].mxu1 %vm4152_vm7, %v12769_v56 }
 0x7f2   : > { %v14412_v59 = vadd.f32 %v6724_v6, %v6371_v18  ;;  %10234 = vmatprep.mubr.msk.bf16.mxu1 %vm10423_vm1, %v14893_v28 }
 0x7f4   : > { %v6215_v50 = vpop.f32.mrb[12].mxu1  ;;  %v6481_v61 = vpop.f32.mrb[120].mxu0 }
 0x7f5   : > { %v6372_v38 = vadd.f32 %v6215_v50, %v14022_v19  ;;  %v10016_v5 = vpop.f32.mrb[13].mxu1  ;;  %v10126_v43 = vpop.f32.mrb[121].mxu0  ;;  %v6654_v31 = vrot.slane %v6481_v61, 1 }
 0x7f6   : > { %v6218_v33 = vpop.f32.mrb[14].mxu1  ;;  %v6484_v24 = vpop.f32.mrb[122].mxu0 }
 0x7f7   : > { %v6373_v29 = vadd.f32 %v6218_v33, %v14025_v20  ;;  %v6655_v58 = vrot.slane %v6484_v24, 1  ;;  %v10017_v32 = vpop.f32.mrb[15].mxu1  ;;  %v10127_v48 = vpop.f32.mrb[123].mxu0 }
 0x7f9   : > { %v6723_v56 = vsel %vm1478_vm4, %v6654_v31, %v6655_v58  ;;  %10235 = vmatmul.mubr.msk.bf16.gmra.mrb[120].mxu1 %vm4152_vm7, %v12787_v25 }
 0x7fa   : > { %v14422_v18 = vadd.f32 %v6723_v56, %v6372_v38  ;;  %10238 = vmatprep.mubr.msk.bf16.mxu1 %vm10423_vm1, %v14893_v28 }
 0x7fc   : > { %v6223_v19 = vpop.f32.mrb[16].mxu1  ;;  %v6489_v23 = vpop.f32.mrb[124].mxu0 }
 0x7fd   : > { %v6656_v45 = vrot.slane %v6489_v23, 1  ;;  %v10020_v49 = vpop.f32.mrb[17].mxu1  ;;  %v10130_v30 = vpop.f32.mrb[125].mxu0 }
 0x7fe   : > { %v6225_v20 = vpop.f32.mrb[18].mxu1  ;;  %v6492_v21 = vpop.f32.mrb[126].mxu0 }
 0x7ff   : > { %v6722_v6 = vsel %vm1478_vm4, %v6655_v58, %v6656_v45  ;;  %v6374_v50 = vadd.f32 %v6225_v20, %v14040_v4  ;;  %v10021_v61 = vpop.f32.mrb[19].mxu1  ;;  %v10131_v5 = vpop.f32.mrb[127].mxu0  ;;  %v6657_v33 = vrot.slane %v6492_v21, 1 }
 0x800   : > { %v14429_v25 = vadd.f32 %v6722_v6, %v6373_v29 }
 0x801   : > { %10239 = vmatmul.mubr.msk.bf16.gmra.mrb[124].mxu1 %vm4152_vm7, %v12811_v13 }
 0x802   : > { %10242 = vmatprep.mubr.msk.bf16.mxu1 %vm10423_vm1, %v14893_v28 }
 0x804   : > { %v6230_v38 = vpop.f32.mrb[20].mxu1  ;;  %v6497_v43 = vpop.f32.mrb[128].mxu0 }
 0x805   : > { %v6375_v24 = vadd.f32 %v6230_v38, %v14055_v7  ;;  %v6658_v31 = vrot.slane %v6497_v43, 1  ;;  %v10024_v32 = vpop.f32.mrb[21].mxu1  ;;  %v10134_v58 = vpop.f32.mrb[129].mxu0 }
 0x806   : > { %v6233_v48 = vpop.f32.mrb[22].mxu1  ;;  %v6500_v4 = vpop.f32.mrb[130].mxu0 }
 0x807   : > { %v6721_v29 = vsel %vm1478_vm4, %v6657_v33, %v6658_v31  ;;  %v6659_v56 = vrot.slane %v6500_v4, 1  ;;  %v10025_v19 = vpop.f32.mrb[23].mxu1  ;;  %v10135_v23 = vpop.f32.mrb[131].mxu0 }
 0x808   : > { %v14438_v13 = vadd.f32 %v6721_v29, %v6374_v50 }
 0x809   : > { %v6720_v45 = vsel %vm1478_vm4, %v6658_v31, %v6659_v56  ;;  %10243 = vmatmul.mubr.msk.bf16.gmra.mrb[128].mxu1 %vm4152_vm7, %v12831_v62 }
 0x80a   : > { %v14444_v7 = vadd.f32 %v6720_v45, %v6375_v24  ;;  %10246 = vmatprep.mubr.msk.bf16.mxu1 %vm10423_vm1, %v14893_v28 }
 0x80c   : > { %v6237_v49 = vpop.f32.mrb[24].mxu1  ;;  %v6505_v30 = vpop.f32.mrb[132].mxu0 }
 0x80d   : > { %v6376_v20 = vadd.f32 %v6237_v49, %v14074_v22  ;;  %v10028_v21 = vpop.f32.mrb[25].mxu1  ;;  %v10138_v6 = vpop.f32.mrb[133].mxu0  ;;  %v6660_v5 = vrot.slane %v6505_v30, 1  ;;  %v15026_v49 = vld [vmem:[#allocation11_spill] sm:$0xff] }
 0x80e   : > { %v6240_v61 = vpop.f32.mrb[26].mxu1  ;;  %v6508_v50 = vpop.f32.mrb[134].mxu0  ;;  %v15027_v6 = vld [vmem:[#allocation4_spill] sm:$0xff] }
 0x80f   : > { %v6377_v38 = vadd.f32 %v6240_v61, %v14077_v1  ;;  %v6661_v43 = vrot.slane %v6508_v50, 1  ;;  %v10029_v33 = vpop.f32.mrb[27].mxu1  ;;  %v10139_v31 = vpop.f32.mrb[135].mxu0 }
 0x811   : > { %v6719_v62 = vsel %vm1478_vm4, %v6660_v5, %v6661_v43  ;;  %10247 = vmatmul.mubr.msk.bf16.gmra.mrb[132].mxu1 %vm4152_vm7, %v12849_v0 }
 0x812   : > { %v14454_v24 = vadd.f32 %v6719_v62, %v6376_v20  ;;  %10250 = vmatprep.mubr.msk.bf16.mxu1 %vm10423_vm1, %v14893_v28 }
 0x814   : > { %v6245_v22 = vpop.f32.mrb[28].mxu1  ;;  %v6513_v32 = vpop.f32.mrb[136].mxu0 }
 0x815   : > { %v6662_v58 = vrot.slane %v6513_v32, 1  ;;  %v10032_v48 = vpop.f32.mrb[29].mxu1  ;;  %v10142_v4 = vpop.f32.mrb[137].mxu0 }
 0x816   : > { %v6247_v1 = vpop.f32.mrb[30].mxu1  ;;  %v6516_v29 = vpop.f32.mrb[138].mxu0 }
 0x817   : > { %v6718_v56 = vsel %vm1478_vm4, %v6661_v43, %v6662_v58  ;;  %v6378_v19 = vadd.f32 %v6247_v1, %v14092_v16  ;;  %v10033_v23 = vpop.f32.mrb[31].mxu1  ;;  %v10143_v45 = vpop.f32.mrb[139].mxu0  ;;  %v6663_v21 = vrot.slane %v6516_v29, 1 }
 0x818   : > { %v14461_v0 = vadd.f32 %v6718_v56, %v6377_v38 }
 0x819   : > { %10251 = vmatmul.mubr.msk.bf16.gmra.mrb[136].mxu1 %vm4152_vm7, %v15026_v49 }
 0x81a   : > { %10254 = vmatprep.mubr.msk.bf16.mxu1 %vm10423_vm1, %v14893_v28 }
 0x81c   : > { %v6252_v30 = vpop.f32.mrb[32].mxu1  ;;  %v6521_v20 = vpop.f32.mrb[140].mxu0 }
 0x81d   : > { %v6379_v61 = vadd.f32 %v6252_v30, %v15027_v6  ;;  %v6664_v50 = vrot.slane %v6521_v20, 1  ;;  %v10036_v5 = vpop.f32.mrb[33].mxu1  ;;  %v10146_v43 = vpop.f32.mrb[141].mxu0 }
 0x81e   : > { %v6255_v33 = vpop.f32.mrb[34].mxu1  ;;  %v6524_v16 = vpop.f32.mrb[142].mxu0 }
 0x81f   : > { %v6717_v38 = vsel %vm1478_vm4, %v6663_v21, %v6664_v50  ;;  %v6665_v31 = vrot.slane %v6524_v16, 1  ;;  %v10037_v62 = vpop.f32.mrb[35].mxu1  ;;  %v10147_v22 = vpop.f32.mrb[143].mxu0 }
 0x820   : > { %v14470_v32 = vadd.f32 %v6717_v38, %v6378_v19 }
 0x821   : > { %v6716_v58 = vsel %vm1478_vm4, %v6664_v50, %v6665_v31  ;;  %10255 = vmatmul.mubr.msk.bf16.gmra.mrb[140].mxu1 %vm4152_vm7, %v12907_v63 }
 0x822   : > { %v14476_v48 = vadd.f32 %v6716_v58, %v6379_v61  ;;  %10258 = vmatprep.mubr.msk.bf16.mxu1 %vm10423_vm1, %v14893_v28 }
 0x824   : > { %v6259_v4 = vpop.f32.mrb[36].mxu1  ;;  %v6529_v1 = vpop.f32.mrb[144].mxu0 }
 0x825   : > { %v6380_v29 = vadd.f32 %v6259_v4, %v14126_v12  ;;  %v10040_v56 = vpop.f32.mrb[37].mxu1  ;;  %v10150_v23 = vpop.f32.mrb[145].mxu0  ;;  %v6666_v49 = vrot.slane %v6529_v1, 1 }
 0x826   : > { %v6262_v45 = vpop.f32.mrb[38].mxu1  ;;  %v6532_v19 = vpop.f32.mrb[146].mxu0 }
 0x827   : > { %v6381_v30 = vadd.f32 %v6262_v45, %v14129_v44  ;;  %v6667_v20 = vrot.slane %v6532_v19, 1  ;;  %v10041_v21 = vpop.f32.mrb[39].mxu1  ;;  %v10151_v6 = vpop.f32.mrb[147].mxu0 }
 0x829   : > { %v6715_v63 = vsel %vm1478_vm4, %v6666_v49, %v6667_v20  ;;  %10259 = vmatmul.mubr.msk.bf16.gmra.mrb[144].mxu1 %vm4152_vm7, %v12925_v47 }
 0x82a   : > { %v14486_v61 = vadd.f32 %v6715_v63, %v6380_v29  ;;  %10262 = vmatprep.mubr.msk.bf16.mxu1 %vm10423_vm1, %v14893_v28 }
 0x82c   : > { %v6267_v12 = vpop.f32.mrb[40].mxu1  ;;  %v6537_v50 = vpop.f32.mrb[148].mxu0 }
 0x82d   : > { %v6668_v5 = vrot.slane %v6537_v50, 1  ;;  %v10044_v43 = vpop.f32.mrb[41].mxu1  ;;  %v10154_v33 = vpop.f32.mrb[149].mxu0 }
 0x82e   : > { %v6269_v44 = vpop.f32.mrb[42].mxu1  ;;  %v6540_v16 = vpop.f32.mrb[150].mxu0 }
 0x82f   : > { %v6714_v38 = vsel %vm1478_vm4, %v6667_v20, %v6668_v5  ;;  %v6382_v31 = vadd.f32 %v6269_v44, %v14144_v42  ;;  %v10045_v62 = vpop.f32.mrb[43].mxu1  ;;  %v10155_v22 = vpop.f32.mrb[151].mxu0  ;;  %v6669_v1 = vrot.slane %v6540_v16, 1 }
 0x830   : > { %v14493_v47 = vadd.f32 %v6714_v38, %v6381_v30 }
 0x831   : > { %10263 = vmatmul.mubr.msk.bf16.gmra.mrb[148].mxu1 %vm4152_vm7, %v12949_v9 }
 0x832   : > { %10266 = vmatprep.mubr.msk.bf16.mxu1 %vm10423_vm1, %v14893_v28 }
 0x834   : > { %v6274_v58 = vpop.f32.mrb[44].mxu1  ;;  %v6545_v4 = vpop.f32.mrb[152].mxu0 }
 0x835   : > { %v6383_v29 = vadd.f32 %v6274_v58, %v14159_v11  ;;  %v6670_v56 = vrot.slane %v6545_v4, 1  ;;  %v10048_v23 = vpop.f32.mrb[45].mxu1  ;;  %v10158_v45 = vpop.f32.mrb[153].mxu0 }
 0x836   : > { %v6277_v19 = vpop.f32.mrb[46].mxu1  ;;  %v6548_v42 = vpop.f32.mrb[154].mxu0 }
 0x837   : > { %v6713_v49 = vsel %vm1478_vm4, %v6669_v1, %v6670_v56  ;;  %v6671_v30 = vrot.slane %v6548_v42, 1  ;;  %v10049_v20 = vpop.f32.mrb[47].mxu1  ;;  %v10159_v21 = vpop.f32.mrb[155].mxu0 }
 0x838   : > { %v14502_v9 = vadd.f32 %v6713_v49, %v6382_v31 }
 0x839   : > { %v6712_v6 = vsel %vm1478_vm4, %v6670_v56, %v6671_v30  ;;  %10267 = vmatmul.mubr.msk.bf16.gmra.mrb[152].mxu1 %vm4152_vm7, %v12969_v39 }
 0x83a   : > { %v14508_v11 = vadd.f32 %v6712_v6, %v6383_v29  ;;  %10270 = vmatprep.mubr.msk.bf16.mxu1 %vm10423_vm1, %v14893_v28 }
 0x83c   : > { %v6281_v63 = vpop.f32.mrb[48].mxu1  ;;  %v6553_v12 = vpop.f32.mrb[156].mxu0 }
 0x83d   : > { %v6384_v50 = vadd.f32 %v6281_v63, %v14178_v26  ;;  %v10052_v5 = vpop.f32.mrb[49].mxu1  ;;  %v10162_v43 = vpop.f32.mrb[157].mxu0  ;;  %v6672_v16 = vrot.slane %v6553_v12, 1 }
 0x83e   : > { %v6284_v33 = vpop.f32.mrb[50].mxu1  ;;  %v6556_v44 = vpop.f32.mrb[158].mxu0 }
 0x83f   : > { %v6385_v38 = vadd.f32 %v6284_v33, %v14181_v3  ;;  %v6673_v31 = vrot.slane %v6556_v44, 1  ;;  %v10053_v62 = vpop.f32.mrb[51].mxu1  ;;  %v10163_v22 = vpop.f32.mrb[159].mxu0 }
 0x841   : > { %v6711_v39 = vsel %vm1478_vm4, %v6672_v16, %v6673_v31  ;;  %10271 = vmatmul.mubr.msk.bf16.gmra.mrb[156].mxu1 %vm4152_vm7, %v12987_v8 }
 0x842   : > { %v14518_v58 = vadd.f32 %v6711_v39, %v6384_v50  ;;  %10274 = vmatprep.mubr.msk.bf16.mxu1 %vm10423_vm1, %v14893_v28 }
 0x844   : > { %v6289_v26 = vpop.f32.mrb[52].mxu1  ;;  %v6561_v4 = vpop.f32.mrb[160].mxu0 }
 0x845   : > { %v6674_v1 = vrot.slane %v6561_v4, 1  ;;  %v10056_v29 = vpop.f32.mrb[53].mxu1  ;;  %v10166_v56 = vpop.f32.mrb[161].mxu0 }
 0x846   : > { %v6291_v3 = vpop.f32.mrb[54].mxu1  ;;  %v6564_v23 = vpop.f32.mrb[162].mxu0 }
 0x847   : > { %v6710_v45 = vsel %vm1478_vm4, %v6673_v31, %v6674_v1  ;;  %v6386_v19 = vadd.f32 %v6291_v3, %v14196_v2  ;;  %v10057_v42 = vpop.f32.mrb[55].mxu1  ;;  %v10167_v49 = vpop.f32.mrb[163].mxu0  ;;  %v6675_v21 = vrot.slane %v6564_v23, 1 }
 0x848   : > { %v14525_v8 = vadd.f32 %v6710_v45, %v6385_v38 }
 0x849   : > { %10275 = vmatmul.mubr.msk.bf16.gmra.mrb[160].mxu1 %vm4152_vm7, %v14987_v40 }
 0x84a   : > { %10278 = vmatprep.mubr.msk.bf16.mxu1 %vm10423_vm1, %v14893_v28 }
 0x84c   : > { %v6296_v30 = vpop.f32.mrb[56].mxu1  ;;  %v6569_v20 = vpop.f32.mrb[164].mxu0 }
 0x84d   : > { %v6387_v6 = vadd.f32 %v6296_v30, %v14211_v53  ;;  %v6676_v63 = vrot.slane %v6569_v20, 1  ;;  %v10060_v12 = vpop.f32.mrb[57].mxu1  ;;  %v10170_v50 = vpop.f32.mrb[165].mxu0 }
 0x84e   : > { %v6299_v5 = vpop.f32.mrb[58].mxu1  ;;  %v6572_v2 = vpop.f32.mrb[166].mxu0  ;;  %v15029_v12 = vld [vmem:[#allocation5_spill] sm:$0xff] }
 0x84f   : > { %v6709_v43 = vsel %vm1478_vm4, %v6675_v21, %v6676_v63  ;;  %v6677_v33 = vrot.slane %v6572_v2, 1  ;;  %v10061_v44 = vpop.f32.mrb[59].mxu1  ;;  %v10171_v16 = vpop.f32.mrb[167].mxu0 }
 0x850   : > { %v14534_v40 = vadd.f32 %v6709_v43, %v6386_v19  ;;  %v15028_v19 = vld [vmem:[#allocation14_spill] sm:$0xff] }
 0x851   : > { %v6708_v38 = vsel %vm1478_vm4, %v6676_v63, %v6677_v33  ;;  %10279 = vmatmul.mubr.msk.bf16.gmra.mrb[164].mxu1 %vm4152_vm7, %v14988_v10  ;;  %v15030_v33 = vld [vmem:[#allocation15_spill] sm:$0xff] }
 0x852   : > { %v14540_v53 = vadd.f32 %v6708_v38, %v6387_v6  ;;  %10282 = vmatprep.mubr.msk.bf16.mxu1 %vm10423_vm1, %v14893_v28 }
 0x854   : > { %v6303_v31 = vpop.f32.mrb[60].mxu1  ;;  %v6577_v62 = vpop.f32.mrb[168].mxu0 }
 0x855   : > { %v6388_v22 = vadd.f32 %v6303_v31, %v14230_v27  ;;  %v10064_v39 = vpop.f32.mrb[61].mxu1  ;;  %v10174_v26 = vpop.f32.mrb[169].mxu0  ;;  %v6678_v29 = vrot.slane %v6577_v62, 1  ;;  %v15031_v31 = vld [vmem:[#allocation6_spill] sm:$0xff] }
 0x856   : > { %v6306_v4 = vpop.f32.mrb[62].mxu1  ;;  %v6580_v1 = vpop.f32.mrb[170].mxu0 }
 0x857   : > { %v6389_v56 = vadd.f32 %v6306_v4, %v14233_v36  ;;  %v6679_v3 = vrot.slane %v6580_v1, 1  ;;  %v10065_v23 = vpop.f32.mrb[63].mxu1  ;;  %v10175_v45 = vpop.f32.mrb[171].mxu0 }
 0x859   : > { %v6707_v10 = vsel %vm1478_vm4, %v6678_v29, %v6679_v3  ;;  %10283 = vmatmul.mubr.msk.bf16.gmra.mrb[168].mxu1 %vm4152_vm7, %v15028_v19 }
 0x85a   : > { %v14550_v42 = vadd.f32 %v6707_v10, %v6388_v22  ;;  %10286 = vmatprep.mubr.msk.bf16.mxu1 %vm10423_vm1, %v14893_v28 }
 0x85c   : > { %v6311_v27 = vpop.f32.mrb[64].mxu1  ;;  %v6585_v49 = vpop.f32.mrb[172].mxu0 }
 0x85d   : > { %v6680_v30 = vrot.slane %v6585_v49, 1  ;;  %v10068_v20 = vpop.f32.mrb[65].mxu1  ;;  %v10178_v21 = vpop.f32.mrb[173].mxu0 }
 0x85e   : > { %v6313_v36 = vpop.f32.mrb[66].mxu1  ;;  %v6588_v6 = vpop.f32.mrb[174].mxu0 }
 0x85f   : > { %v6706_v63 = vsel %vm1478_vm4, %v6679_v3, %v6680_v30  ;;  %v6390_v50 = vadd.f32 %v6313_v36, %v15029_v12  ;;  %v10069_v5 = vpop.f32.mrb[67].mxu1  ;;  %v10179_v2 = vpop.f32.mrb[175].mxu0  ;;  %v6681_v38 = vrot.slane %v6588_v6, 1 }
 0x860   : > { %v14557_v43 = vadd.f32 %v6706_v63, %v6389_v56 }
 0x861   : > { %10287 = vmatmul.mubr.msk.bf16.gmra.mrb[172].mxu1 %vm4152_vm7, %v15030_v33 }
 0x862   : > { %10290 = vmatprep.mubr.msk.bf16.mxu1 %vm10423_vm1, %v14893_v28 }
 0x864   : > { %v6318_v44 = vpop.f32.mrb[68].mxu1  ;;  %v6593_v16 = vpop.f32.mrb[176].mxu0 }
 0x865   : > { %v6391_v62 = vadd.f32 %v6318_v44, %v15031_v31  ;;  %v6682_v22 = vrot.slane %v6593_v16, 1  ;;  %v10072_v39 = vpop.f32.mrb[69].mxu1  ;;  %v10182_v26 = vpop.f32.mrb[177].mxu0 }
 0x866   : > { %v6321_v4 = vpop.f32.mrb[70].mxu1  ;;  %v6596_v1 = vpop.f32.mrb[178].mxu0  ;;  %v15032_v39 = vld [vmem:[#allocation8_spill] sm:$0xff] }
 0x867   : > { %v6705_v29 = vsel %vm1478_vm4, %v6681_v38, %v6682_v22  ;;  %v6683_v56 = vrot.slane %v6596_v1, 1  ;;  %v10073_v3 = vpop.f32.mrb[71].mxu1  ;;  %v10183_v23 = vpop.f32.mrb[179].mxu0 }
 0x868   : > { %v14566_v45 = vadd.f32 %v6705_v29, %v6390_v50  ;;  %v15033_v29 = vld [vmem:[#allocation18_spill] sm:$0xff] }
 0x869   : > { %v6704_v10 = vsel %vm1478_vm4, %v6682_v22, %v6683_v56  ;;  %10291 = vmatmul.mubr.msk.bf16.gmra.mrb[176].mxu1 %vm4152_vm7, %v14995_v52 }
 0x86a   : > { %v14572_v19 = vadd.f32 %v6704_v10, %v6391_v62  ;;  %10294 = vmatprep.mubr.msk.bf16.mxu1 %vm10423_vm1, %v14893_v28  ;;  %v15034_v10 = vld [vmem:[#allocation9_spill] sm:$0xff] }
 0x86c   : > { %v6325_v27 = vpop.f32.mrb[72].mxu1  ;;  %v6601_v49 = vpop.f32.mrb[180].mxu0 }
 0x86d   : > { %v6392_v30 = vadd.f32 %v6325_v27, %v14282_v17  ;;  %v10076_v20 = vpop.f32.mrb[73].mxu1  ;;  %v10186_v21 = vpop.f32.mrb[181].mxu0  ;;  %v6684_v63 = vrot.slane %v6601_v49, 1 }
 0x86e   : > { %v6328_v36 = vpop.f32.mrb[74].mxu1  ;;  %v6604_v6 = vpop.f32.mrb[182].mxu0 }
 0x86f   : > { %v6393_v12 = vadd.f32 %v6328_v36, %v14285_v35  ;;  %v6685_v50 = vrot.slane %v6604_v6, 1  ;;  %v10077_v5 = vpop.f32.mrb[75].mxu1  ;;  %v10187_v2 = vpop.f32.mrb[183].mxu0 }
 0x871   : > { %v6703_v52 = vsel %vm1478_vm4, %v6684_v63, %v6685_v50  ;;  %10295 = vmatmul.mubr.msk.bf16.gmra.mrb[180].mxu1 %vm4152_vm7, %v14998_v60 }
 0x872   : > { %v14582_v33 = vadd.f32 %v6703_v52, %v6392_v30  ;;  %10298 = vmatprep.mubr.msk.bf16.mxu1 %vm10423_vm1, %v14893_v28 }
 0x874   : > { %v6333_v17 = vpop.f32.mrb[76].mxu1  ;;  %v6609_v44 = vpop.f32.mrb[184].mxu0 }
 0x875   : > { %v6686_v16 = vrot.slane %v6609_v44, 1  ;;  %v10080_v38 = vpop.f32.mrb[77].mxu1  ;;  %v10190_v31 = vpop.f32.mrb[185].mxu0 }
 0x876   : > { %v6335_v35 = vpop.f32.mrb[78].mxu1  ;;  %v6612_v62 = vpop.f32.mrb[186].mxu0 }
 0x877   : > { %v6702_v22 = vsel %vm1478_vm4, %v6685_v50, %v6686_v16  ;;  %v6394_v26 = vadd.f32 %v6335_v35, %v15032_v39  ;;  %v10081_v4 = vpop.f32.mrb[79].mxu1  ;;  %v10191_v1 = vpop.f32.mrb[187].mxu0  ;;  %v6687_v23 = vrot.slane %v6612_v62, 1  ;;  %v15035_v39 = vld [vmem:[#allocation12_spill] sm:$0xff] }
 0x878   : > { %v14589_v60 = vadd.f32 %v6702_v22, %v6393_v12 }
 0x879   : > { %10299 = vmatmul.mubr.msk.bf16.gmra.mrb[184].mxu1 %vm4152_vm7, %v15033_v29 }
 0x87a   : > { %10302 = vmatprep.mubr.msk.bf16.mxu1 %vm10423_vm1, %v14893_v28 }
 0x87c   : > { %v6340_v56 = vpop.f32.mrb[80].mxu1  ;;  %v6617_v3 = vpop.f32.mrb[188].mxu0 }
 0x87d   : > { %v6395_v27 = vadd.f32 %v6340_v56, %v15034_v10  ;;  %v6688_v49 = vrot.slane %v6617_v3, 1  ;;  %v10084_v30 = vpop.f32.mrb[81].mxu1  ;;  %v10194_v20 = vpop.f32.mrb[189].mxu0  ;;  %v15036_v56 = vld [vmem:[#allocation19_spill] sm:$0xff] }
 0x87e   : > { %v6343_v21 = vpop.f32.mrb[82].mxu1  ;;  %v6620_v36 = vpop.f32.mrb[190].mxu0 }
 0x87f   : > { %v6701_v6 = vsel %vm1478_vm4, %v6687_v23, %v6688_v49  ;;  %v6689_v63 = vrot.slane %v6620_v36, 1  ;;  %v10085_v12 = vpop.f32.mrb[83].mxu1  ;;  %v10195_v50 = vpop.f32.mrb[191].mxu0 }
 0x880   : > { %v14598_v5 = vadd.f32 %v6701_v6, %v6394_v26 }
 0x881   : > { %v6700_v2 = vsel %vm1478_vm4, %v6688_v49, %v6689_v63  ;;  %10303 = vmatmul.mubr.msk.bf16.gmra.mrb[188].mxu1 %vm4152_vm7, %v13161_v55 }
 0x882   : > { %v14604_v52 = vadd.f32 %v6700_v2, %v6395_v27  ;;  %10306 = vmatprep.mubr.msk.bf16.mxu1 %vm10423_vm1, %v14893_v28 }
 0x884   : > { %v6347_v17 = vpop.f32.mrb[84].mxu1  ;;  %v6625_v44 = vpop.f32.mrb[192].mxu0 }
 0x885   : > { %v6396_v16 = vadd.f32 %v6347_v17, %v14334_v51  ;;  %v10088_v38 = vpop.f32.mrb[85].mxu1  ;;  %v10198_v31 = vpop.f32.mrb[193].mxu0  ;;  %v6690_v22 = vrot.slane %v6625_v44, 1 }
 0x886   : > { %v6350_v35 = vpop.f32.mrb[86].mxu1  ;;  %v6628_v62 = vpop.f32.mrb[194].mxu0 }
 0x887   : > { %v6397_v26 = vadd.f32 %v6350_v35, %v15035_v39  ;;  %v6691_v4 = vrot.slane %v6628_v62, 1  ;;  %v10089_v1 = vpop.f32.mrb[87].mxu1  ;;  %v10199_v29 = vpop.f32.mrb[195].mxu0 }
 0x889   : > { %v6699_v55 = vsel %vm1478_vm4, %v6690_v22, %v6691_v4  ;;  %10307 = vmatmul.mubr.msk.bf16.gmra.mrb[192].mxu1 %vm4152_vm7, %v15036_v56 }
 0x88a   : > { %v14614_v3 = vadd.f32 %v6699_v55, %v6396_v16  ;;  %10310 = vmatprep.mubr.msk.bf16.mxu1 %vm10423_vm1, %v14893_v28 }
 0x88c   : > { %v6355_v51 = vpop.f32.mrb[88].mxu1  ;;  %v6633_v23 = vpop.f32.mrb[196].mxu0 }
 0x88d   : > { %v6692_v10 = vrot.slane %v6633_v23, 1  ;;  %v10092_v27 = vpop.f32.mrb[89].mxu1  ;;  %v10202_v49 = vpop.f32.mrb[197].mxu0 }
 0x88e   : > { %v6357_v30 = vpop.f32.mrb[90].mxu1  ;;  %v6636_v20 = vpop.f32.mrb[198].mxu0 }
 0x88f   : > { %v6698_v21 = vsel %vm1478_vm4, %v6691_v4, %v6692_v10  ;;  %v6398_v36 = vadd.f32 %v6357_v30, %v14352_v46  ;;  %v10093_v6 = vpop.f32.mrb[91].mxu1  ;;  %v10203_v63 = vpop.f32.mrb[199].mxu0  ;;  %v6693_v17 = vrot.slane %v6636_v20, 1 }
 0x890   : > { %v14621_v12 = vadd.f32 %v6698_v21, %v6397_v26 }
 0x891   : > { %10311 = vmatmul.mubr.msk.bf16.gmra.mrb[196].mxu1 %vm4152_vm7, %v15023_v54 }
 0x892   : > { %10314 = vmatprep.mubr.msk.bf16.mxu1 %vm10423_vm1, %v14893_v28 }
 0x894   : > { %v6362_v50 = vpop.f32.mrb[92].mxu1  ;;  %v6641_v2 = vpop.f32.mrb[200].mxu0 }
 0x895   : > { %v6399_v44 = vadd.f32 %v6362_v50, %v14367_v34  ;;  %v6694_v16 = vrot.slane %v6641_v2, 1  ;;  %v10096_v38 = vpop.f32.mrb[93].mxu1  ;;  %v10206_v31 = vpop.f32.mrb[201].mxu0 }
 0x896   : > { %v6365_v35 = vpop.f32.mrb[94].mxu1  ;;  %v6644_v46 = vpop.f32.mrb[202].mxu0 }
 0x897   : > { %v6697_v62 = vsel %vm1478_vm4, %v6693_v17, %v6694_v16  ;;  %v6695_v22 = vrot.slane %v6644_v46, 1  ;;  %v10097_v39 = vpop.f32.mrb[95].mxu1  ;;  %v10207_v26 = vpop.f32.mrb[203].mxu0  ;;  %v14642_v17 = vld [vmem:[%s14847_s4] ss:$0 sm:$0xff] }
 0x898   : > { %v14630_v54 = vadd.f32 %v6697_v62, %v6398_v36 }
 0x899   : > { %v6696_v28 = vsel %vm1478_vm4, %v6694_v16, %v6695_v22  ;;  %10315 = vmatmul.mubr.bf16.gmra.mrb[200].mxu1 %v15024_v57 }
 0x89a   : > { %v14635_v4 = vadd.f32 %v6696_v28, %v6399_v44 }
 0x89c   : > { %v6799_v34 = vpop.f32.mrb[96].mxu1 }
 0x89d   : > { %v10212_v1 = vpop.f32.mrb[97].mxu1 }
 0x89e   : > { %v6801_v29 = vpop.f32.mrb[98].mxu1 }
 0x89f   : > { %v10213_v55 = vpop.f32.mrb[99].mxu1 }
 0x8a4   : > { %v6805_v56 = vpop.f32.mrb[100].mxu1 }
 0x8a5   : > { %v10216_v51 = vpop.f32.mrb[101].mxu1 }
 0x8a6   : > { %v6807_v23 = vpop.f32.mrb[102].mxu1 }
 0x8a7   : > { %v10217_v10 = vpop.f32.mrb[103].mxu1 }
 0x8ac   : > { %v6811_v27 = vpop.f32.mrb[104].mxu1 }
 0x8ad   : > { %v10220_v49 = vpop.f32.mrb[105].mxu1 }
 0x8ae   : > { %v6813_v30 = vpop.f32.mrb[106].mxu1 }
 0x8af   : > { %v10221_v20 = vpop.f32.mrb[107].mxu1 }
 0x8b4   : > { %v6817_v21 = vpop.f32.mrb[108].mxu1 }
 0x8b5   : > { %v10224_v36 = vpop.f32.mrb[109].mxu1  ;;  %v7008_v63 = vrot.slane %v6817_v21, 2 }
 0x8b6   : > { %v6820_v6 = vpop.f32.mrb[110].mxu1 }
 0x8b7   : > { %v7009_v57 = vrot.slane %v6820_v6, 2  ;;  %v10225_v50 = vpop.f32.mrb[111].mxu1 }
 0x8b9   : > { %v7087_v2 = vsel %vm5087_vm9, %v7008_v63, %v7009_v57 }
 0x8ba   : > { %v7088_v44 = vadd.f32 %v7087_v2, %v14390_v41 }
 0x8bc   : > { %v7127_v16 = vadd.f32 %v14642_v17, %v7088_v44  ;;  %v6825_v38 = vpop.f32.mrb[112].mxu1 }
 0x8bd   : > { %v7010_v31 = vrot.slane %v6825_v38, 2  ;;  %v10228_v35 = vpop.f32.mrb[113].mxu1 }
 0x8be   : > { %v7159_v46 = vmul.f32 0.2, %v7127_v16  ;;  %v6828_v62 = vpop.f32.mrb[114].mxu1 }
 0x8bf   : > { %v7086_v22 = vsel %vm5087_vm9, %v7009_v57, %v7010_v31  ;;  %v10229_v39 = vpop.f32.mrb[115].mxu1  ;;  %v7011_v29 = vrot.slane %v6828_v62, 2 }
 0x8c0   : > { %v7191_v41 = vmax.f32 %v7127_v16, %v7159_v46  ;;  %v7089_v26 = vadd.f32 %v7086_v22, %v14397_v15 }
 0x8c2   : > { %7223 = vst.msk [vmem:[%s14650_s23] sm:$0xff] %vm4152_vm7, %v7191_v41  ;;  %v7128_v28 = vadd.f32 %v14642_v17, %v7089_v26 }
 0x8c4   : > { %v7160_v34 = vmul.f32 0.2, %v7128_v28  ;;  %v6833_v1 = vpop.f32.mrb[116].mxu1 }
 0x8c5   : > { %v7012_v55 = vrot.slane %v6833_v1, 2  ;;  %v10232_v56 = vpop.f32.mrb[117].mxu1 }
 0x8c6   : > { %v7192_v51 = vmax.f32 %v7128_v28, %v7160_v34  ;;  %v6836_v23 = vpop.f32.mrb[118].mxu1 }
 0x8c7   : > { %v7085_v10 = vsel %vm5087_vm9, %v7011_v29, %v7012_v55  ;;  %v7013_v27 = vrot.slane %v6836_v23, 2  ;;  %v10233_v49 = vpop.f32.mrb[119].mxu1 }
 0x8c8   : > { %7224 = vst.msk [vmem:[%s14650_s23 + $0x8] sm:$0xff] %vm4152_vm7, %v7192_v51  ;;  %v7090_v15 = vadd.f32 %v7085_v10, %v14406_v14 }
 0x8c9   : > { %v7084_v30 = vsel %vm5087_vm9, %v7012_v55, %v7013_v27 }
 0x8ca   : > { %v7129_v20 = vadd.f32 %v14642_v17, %v7090_v15  ;;  %v7091_v21 = vadd.f32 %v7084_v30, %v14412_v59 }
 0x8cc   : > { %v7161_v36 = vmul.f32 0.2, %v7129_v20  ;;  %v7130_v6 = vadd.f32 %v14642_v17, %v7091_v21  ;;  %v6841_v63 = vpop.f32.mrb[120].mxu1 }
 0x8cd   : > { %v10236_v57 = vpop.f32.mrb[121].mxu1  ;;  %v7014_v16 = vrot.slane %v6841_v63, 2 }
 0x8ce   : > { %v7193_v50 = vmax.f32 %v7129_v20, %v7161_v36  ;;  %v7162_v2 = vmul.f32 0.2, %v7130_v6  ;;  %v6844_v44 = vpop.f32.mrb[122].mxu1 }
 0x8cf   : > { %v7015_v38 = vrot.slane %v6844_v44, 2  ;;  %v10237_v31 = vpop.f32.mrb[123].mxu1 }
 0x8d0   : > { %7225 = vst.msk [vmem:[%s14650_s23 + $0x10] sm:$0xff] %vm4152_vm7, %v7193_v50  ;;  %v7194_v14 = vmax.f32 %v7130_v6, %v7162_v2 }
 0x8d1   : > { %v7083_v35 = vsel %vm5087_vm9, %v7014_v16, %v7015_v38 }
 0x8d2   : > { %7226 = vst.msk [vmem:[%s14650_s23 + $0x18] sm:$0xff] %vm4152_vm7, %v7194_v14  ;;  %v7092_v59 = vadd.f32 %v7083_v35, %v14422_v18 }
 0x8d4   : > { %v7131_v46 = vadd.f32 %v14642_v17, %v7092_v59  ;;  %v6849_v62 = vpop.f32.mrb[124].mxu1 }
 0x8d5   : > { %v7016_v22 = vrot.slane %v6849_v62, 2  ;;  %v10240_v39 = vpop.f32.mrb[125].mxu1 }
 0x8d6   : > { %v7163_v41 = vmul.f32 0.2, %v7131_v46  ;;  %v6852_v26 = vpop.f32.mrb[126].mxu1 }
 0x8d7   : > { %v7082_v28 = vsel %vm5087_vm9, %v7015_v38, %v7016_v22  ;;  %v10241_v34 = vpop.f32.mrb[127].mxu1  ;;  %v7017_v51 = vrot.slane %v6852_v26, 2 }
 0x8d8   : > { %v7195_v1 = vmax.f32 %v7131_v46, %v7163_v41  ;;  %v7093_v29 = vadd.f32 %v7082_v28, %v14429_v25 }
 0x8da   : > { %7227 = vst.msk [vmem:[%s14650_s23 + $0x20] sm:$0xff] %vm4152_vm7, %v7195_v1  ;;  %v7132_v55 = vadd.f32 %v14642_v17, %v7093_v29 }
 0x8dc   : > { %v7164_v18 = vmul.f32 0.2, %v7132_v55  ;;  %v6857_v56 = vpop.f32.mrb[128].mxu1 }
 0x8dd   : > { %v7018_v23 = vrot.slane %v6857_v56, 2  ;;  %v10244_v10 = vpop.f32.mrb[129].mxu1 }
 0x8de   : > { %v7196_v27 = vmax.f32 %v7132_v55, %v7164_v18  ;;  %v6860_v49 = vpop.f32.mrb[130].mxu1 }
 0x8df   : > { %v7081_v15 = vsel %vm5087_vm9, %v7017_v51, %v7018_v23  ;;  %v7019_v30 = vrot.slane %v6860_v49, 2  ;;  %v10245_v20 = vpop.f32.mrb[131].mxu1 }
 0x8e0   : > { %7228 = vst.msk [vmem:[%s14650_s23 + $0x28] sm:$0xff] %vm4152_vm7, %v7196_v27  ;;  %v7094_v25 = vadd.f32 %v7081_v15, %v14438_v13 }
 0x8e1   : > { %v7080_v21 = vsel %vm5087_vm9, %v7018_v23, %v7019_v30 }
 0x8e2   : > { %v7133_v36 = vadd.f32 %v14642_v17, %v7094_v25  ;;  %v7095_v6 = vadd.f32 %v7080_v21, %v14444_v7 }
 0x8e4   : > { %v7165_v63 = vmul.f32 0.2, %v7133_v36  ;;  %v7134_v57 = vadd.f32 %v14642_v17, %v7095_v6  ;;  %v6865_v50 = vpop.f32.mrb[132].mxu1 }
 0x8e5   : > { %v10248_v2 = vpop.f32.mrb[133].mxu1  ;;  %v7020_v31 = vrot.slane %v6865_v50, 2 }
 0x8e6   : > { %v7197_v44 = vmax.f32 %v7133_v36, %v7165_v63  ;;  %v7166_v16 = vmul.f32 0.2, %v7134_v57  ;;  %v6868_v38 = vpop.f32.mrb[134].mxu1 }
 0x8e7   : > { %v7021_v14 = vrot.slane %v6868_v38, 2  ;;  %v10249_v35 = vpop.f32.mrb[135].mxu1 }
 0x8e8   : > { %7229 = vst.msk [vmem:[%s14650_s23 + $0x30] sm:$0xff] %vm4152_vm7, %v7197_v44  ;;  %v7198_v13 = vmax.f32 %v7134_v57, %v7166_v16 }
 0x8e9   : > { %v7079_v59 = vsel %vm5087_vm9, %v7020_v31, %v7021_v14 }
 0x8ea   : > { %7230 = vst.msk [vmem:[%s14650_s23 + $0x38] sm:$0xff] %vm4152_vm7, %v7198_v13  ;;  %v7096_v7 = vadd.f32 %v7079_v59, %v14454_v24 }
 0x8ec   : > { %v7135_v46 = vadd.f32 %v14642_v17, %v7096_v7  ;;  %v6873_v62 = vpop.f32.mrb[136].mxu1 }
 0x8ed   : > { %v7022_v22 = vrot.slane %v6873_v62, 2  ;;  %v10252_v39 = vpop.f32.mrb[137].mxu1 }
 0x8ee   : > { %v7167_v41 = vmul.f32 0.2, %v7135_v46  ;;  %v6876_v26 = vpop.f32.mrb[138].mxu1 }
 0x8ef   : > { %v7078_v28 = vsel %vm5087_vm9, %v7021_v14, %v7022_v22  ;;  %v10253_v34 = vpop.f32.mrb[139].mxu1  ;;  %v7023_v56 = vrot.slane %v6876_v26, 2 }
 0x8f0   : > { %v7199_v1 = vmax.f32 %v7135_v46, %v7167_v41  ;;  %v7097_v29 = vadd.f32 %v7078_v28, %v14461_v0 }
 0x8f2   : > { %7231 = vst.msk [vmem:[%s14650_s23 + $0x40] sm:$0xff] %vm4152_vm7, %v7199_v1  ;;  %v7136_v55 = vadd.f32 %v14642_v17, %v7097_v29 }
 0x8f4   : > { %v7168_v24 = vmul.f32 0.2, %v7136_v55  ;;  %v6881_v18 = vpop.f32.mrb[140].mxu1 }
 0x8f5   : > { %v7024_v51 = vrot.slane %v6881_v18, 2  ;;  %v10256_v23 = vpop.f32.mrb[141].mxu1 }
 0x8f6   : > { %v7200_v10 = vmax.f32 %v7136_v55, %v7168_v24  ;;  %v6884_v27 = vpop.f32.mrb[142].mxu1 }
 0x8f7   : > { %v7077_v49 = vsel %vm5087_vm9, %v7023_v56, %v7024_v51  ;;  %v7025_v15 = vrot.slane %v6884_v27, 2  ;;  %v10257_v30 = vpop.f32.mrb[143].mxu1 }
 0x8f8   : > { %7232 = vst.msk [vmem:[%s14650_s23 + $0x48] sm:$0xff] %vm4152_vm7, %v7200_v10  ;;  %v7098_v0 = vadd.f32 %v7077_v49, %v14470_v32 }
 0x8f9   : > { %v7076_v20 = vsel %vm5087_vm9, %v7024_v51, %v7025_v15 }
 0x8fa   : > { %v7137_v25 = vadd.f32 %v14642_v17, %v7098_v0  ;;  %v7099_v21 = vadd.f32 %v7076_v20, %v14476_v48 }
 0x8fc   : > { %v7169_v36 = vmul.f32 0.2, %v7137_v25  ;;  %v7138_v6 = vadd.f32 %v14642_v17, %v7099_v21  ;;  %v6889_v63 = vpop.f32.mrb[144].mxu1 }
 0x8fd   : > { %v10260_v57 = vpop.f32.mrb[145].mxu1  ;;  %v7026_v16 = vrot.slane %v6889_v63, 2 }
 0x8fe   : > { %v7201_v50 = vmax.f32 %v7137_v25, %v7169_v36  ;;  %v7170_v2 = vmul.f32 0.2, %v7138_v6  ;;  %v6892_v44 = vpop.f32.mrb[146].mxu1 }
 0x8ff   : > { %v7027_v38 = vrot.slane %v6892_v44, 2  ;;  %v10261_v31 = vpop.f32.mrb[147].mxu1 }
 0x900   : > { %7233 = vst.msk [vmem:[%s14650_s23 + $0x50] sm:$0xff] %vm4152_vm7, %v7201_v50  ;;  %v7202_v32 = vmax.f32 %v7138_v6, %v7170_v2 }
 0x901   : > { %v7075_v14 = vsel %vm5087_vm9, %v7026_v16, %v7027_v38 }
 0x902   : > { %7234 = vst.msk [vmem:[%s14650_s23 + $0x58] sm:$0xff] %vm4152_vm7, %v7202_v32  ;;  %v7100_v48 = vadd.f32 %v7075_v14, %v14486_v61 }
 0x904   : > { %v7139_v35 = vadd.f32 %v14642_v17, %v7100_v48  ;;  %v6897_v13 = vpop.f32.mrb[148].mxu1 }
 0x905   : > { %v7028_v59 = vrot.slane %v6897_v13, 2  ;;  %v10264_v7 = vpop.f32.mrb[149].mxu1 }
 0x906   : > { %v7171_v46 = vmul.f32 0.2, %v7139_v35  ;;  %v6900_v62 = vpop.f32.mrb[150].mxu1 }
 0x907   : > { %v7074_v22 = vsel %vm5087_vm9, %v7027_v38, %v7028_v59  ;;  %v10265_v39 = vpop.f32.mrb[151].mxu1  ;;  %v7029_v1 = vrot.slane %v6900_v62, 2 }
 0x908   : > { %v7203_v41 = vmax.f32 %v7139_v35, %v7171_v46  ;;  %v7101_v26 = vadd.f32 %v7074_v22, %v14493_v47 }
 0x90a   : > { %7235 = vst.msk [vmem:[%s14650_s23 + $0x60] sm:$0xff] %vm4152_vm7, %v7203_v41  ;;  %v7140_v28 = vadd.f32 %v14642_v17, %v7101_v26 }
 0x90c   : > { %v7172_v61 = vmul.f32 0.2, %v7140_v28  ;;  %v6905_v34 = vpop.f32.mrb[152].mxu1 }
 0x90d   : > { %v7030_v29 = vrot.slane %v6905_v34, 2  ;;  %v10268_v55 = vpop.f32.mrb[153].mxu1 }
 0x90e   : > { %v7204_v24 = vmax.f32 %v7140_v28, %v7172_v61  ;;  %v6908_v18 = vpop.f32.mrb[154].mxu1 }
 0x90f   : > { %v7073_v56 = vsel %vm5087_vm9, %v7029_v1, %v7030_v29  ;;  %v7031_v51 = vrot.slane %v6908_v18, 2  ;;  %v10269_v23 = vpop.f32.mrb[155].mxu1 }
 0x910   : > { %7236 = vst.msk [vmem:[%s14650_s23 + $0x68] sm:$0xff] %vm4152_vm7, %v7204_v24  ;;  %v7102_v47 = vadd.f32 %v7073_v56, %v14502_v9 }
 0x911   : > { %v7072_v10 = vsel %vm5087_vm9, %v7030_v29, %v7031_v51 }
 0x912   : > { %v7141_v27 = vadd.f32 %v14642_v17, %v7102_v47  ;;  %v7103_v49 = vadd.f32 %v7072_v10, %v14508_v11 }
 0x914   : > { %v7173_v15 = vmul.f32 0.2, %v7141_v27  ;;  %v7142_v30 = vadd.f32 %v14642_v17, %v7103_v49  ;;  %v6913_v0 = vpop.f32.mrb[156].mxu1 }
 0x915   : > { %v10272_v20 = vpop.f32.mrb[157].mxu1  ;;  %v7032_v6 = vrot.slane %v6913_v0, 2 }
 0x916   : > { %v7205_v25 = vmax.f32 %v7141_v27, %v7173_v15  ;;  %v7174_v21 = vmul.f32 0.2, %v7142_v30  ;;  %v6916_v36 = vpop.f32.mrb[158].mxu1 }
 0x917   : > { %v7033_v63 = vrot.slane %v6916_v36, 2  ;;  %v10273_v57 = vpop.f32.mrb[159].mxu1 }
 0x918   : > { %7237 = vst.msk [vmem:[%s14650_s23 + $0x70] sm:$0xff] %vm4152_vm7, %v7205_v25  ;;  %v7206_v9 = vmax.f32 %v7142_v30, %v7174_v21 }
 0x919   : > { %v7071_v50 = vsel %vm5087_vm9, %v7032_v6, %v7033_v63 }
 0x91a   : > { %7238 = vst.msk [vmem:[%s14650_s23 + $0x78] sm:$0xff] %vm4152_vm7, %v7206_v9  ;;  %v7104_v11 = vadd.f32 %v7071_v50, %v14518_v58 }
 0x91c   : > { %v7143_v2 = vadd.f32 %v14642_v17, %v7104_v11  ;;  %v6921_v44 = vpop.f32.mrb[160].mxu1 }
 0x91d   : > { %v7034_v16 = vrot.slane %v6921_v44, 2  ;;  %v10276_v38 = vpop.f32.mrb[161].mxu1 }
 0x91e   : > { %v7175_v31 = vmul.f32 0.2, %v7143_v2  ;;  %v6924_v32 = vpop.f32.mrb[162].mxu1 }
 0x91f   : > { %v7070_v14 = vsel %vm5087_vm9, %v7033_v63, %v7034_v16  ;;  %v10277_v48 = vpop.f32.mrb[163].mxu1  ;;  %v7035_v46 = vrot.slane %v6924_v32, 2 }
 0x920   : > { %v7207_v35 = vmax.f32 %v7143_v2, %v7175_v31  ;;  %v7105_v13 = vadd.f32 %v7070_v14, %v14525_v8 }
 0x922   : > { %7239 = vst.msk [vmem:[%s14650_s23 + $0x80] sm:$0xff] %vm4152_vm7, %v7207_v35  ;;  %v7144_v59 = vadd.f32 %v14642_v17, %v7105_v13 }
 0x924   : > { %v7176_v58 = vmul.f32 0.2, %v7144_v59  ;;  %v6929_v7 = vpop.f32.mrb[164].mxu1 }
 0x925   : > { %v7036_v62 = vrot.slane %v6929_v7, 2  ;;  %v10280_v22 = vpop.f32.mrb[165].mxu1 }
 0x926   : > { %v7208_v39 = vmax.f32 %v7144_v59, %v7176_v58  ;;  %v6932_v41 = vpop.f32.mrb[166].mxu1 }
 0x927   : > { %v7069_v26 = vsel %vm5087_vm9, %v7035_v46, %v7036_v62  ;;  %v7037_v28 = vrot.slane %v6932_v41, 2  ;;  %v10281_v61 = vpop.f32.mrb[167].mxu1 }
 0x928   : > { %7240 = vst.msk [vmem:[%s14650_s23 + $0x88] sm:$0xff] %vm4152_vm7, %v7208_v39  ;;  %v7106_v8 = vadd.f32 %v7069_v26, %v14534_v40 }
 0x929   : > { %v7068_v34 = vsel %vm5087_vm9, %v7036_v62, %v7037_v28 }
 0x92a   : > { %v7145_v1 = vadd.f32 %v14642_v17, %v7106_v8  ;;  %v7107_v29 = vadd.f32 %v7068_v34, %v14540_v53 }
 0x92c   : > { %v7177_v55 = vmul.f32 0.2, %v7145_v1  ;;  %v7146_v24 = vadd.f32 %v14642_v17, %v7107_v29  ;;  %v6937_v18 = vpop.f32.mrb[168].mxu1 }
 0x92d   : > { %v10284_v56 = vpop.f32.mrb[169].mxu1  ;;  %v7038_v10 = vrot.slane %v6937_v18, 2 }
 0x92e   : > { %v7209_v51 = vmax.f32 %v7145_v1, %v7177_v55  ;;  %v7178_v23 = vmul.f32 0.2, %v7146_v24  ;;  %v6940_v47 = vpop.f32.mrb[170].mxu1 }
 0x92f   : > { %v7039_v27 = vrot.slane %v6940_v47, 2  ;;  %v10285_v49 = vpop.f32.mrb[171].mxu1 }
 0x930   : > { %7241 = vst.msk [vmem:[%s14650_s23 + $0x90] sm:$0xff] %vm4152_vm7, %v7209_v51  ;;  %v7210_v40 = vmax.f32 %v7146_v24, %v7178_v23 }
 0x931   : > { %v7067_v15 = vsel %vm5087_vm9, %v7038_v10, %v7039_v27 }
 0x932   : > { %7242 = vst.msk [vmem:[%s14650_s23 + $0x98] sm:$0xff] %vm4152_vm7, %v7210_v40  ;;  %v7108_v53 = vadd.f32 %v7067_v15, %v14550_v42 }
 0x934   : > { %v7147_v30 = vadd.f32 %v14642_v17, %v7108_v53  ;;  %v6945_v0 = vpop.f32.mrb[172].mxu1 }
 0x935   : > { %v7040_v20 = vrot.slane %v6945_v0, 2  ;;  %v10288_v25 = vpop.f32.mrb[173].mxu1 }
 0x936   : > { %v7179_v21 = vmul.f32 0.2, %v7147_v30  ;;  %v6948_v36 = vpop.f32.mrb[174].mxu1 }
 0x937   : > { %v7066_v6 = vsel %vm5087_vm9, %v7039_v27, %v7040_v20  ;;  %v10289_v63 = vpop.f32.mrb[175].mxu1  ;;  %v7041_v2 = vrot.slane %v6948_v36, 2 }
 0x938   : > { %v7211_v57 = vmax.f32 %v7147_v30, %v7179_v21  ;;  %v7109_v9 = vadd.f32 %v7066_v6, %v14557_v43 }
 0x93a   : > { %7243 = vst.msk [vmem:[%s14650_s23 + $0xa0] sm:$0xff] %vm4152_vm7, %v7211_v57  ;;  %v7148_v50 = vadd.f32 %v14642_v17, %v7109_v9 }
 0x93c   : > { %v7180_v42 = vmul.f32 0.2, %v7148_v50  ;;  %v6953_v11 = vpop.f32.mrb[176].mxu1 }
 0x93d   : > { %v7042_v44 = vrot.slane %v6953_v11, 2  ;;  %v10292_v16 = vpop.f32.mrb[177].mxu1 }
 0x93e   : > { %v7212_v38 = vmax.f32 %v7148_v50, %v7180_v42  ;;  %v6956_v31 = vpop.f32.mrb[178].mxu1 }
 0x93f   : > { %v7065_v32 = vsel %vm5087_vm9, %v7041_v2, %v7042_v44  ;;  %v7043_v14 = vrot.slane %v6956_v31, 2  ;;  %v10293_v48 = vpop.f32.mrb[179].mxu1 }
 0x940   : > { %7244 = vst.msk [vmem:[%s14650_s23 + $0xa8] sm:$0xff] %vm4152_vm7, %v7212_v38  ;;  %v7110_v43 = vadd.f32 %v7065_v32, %v14566_v45 }
 0x941   : > { %v7064_v35 = vsel %vm5087_vm9, %v7042_v44, %v7043_v14 }
 0x942   : > { %v7149_v13 = vadd.f32 %v14642_v17, %v7110_v43  ;;  %v7111_v59 = vadd.f32 %v7064_v35, %v14572_v19 }
 0x944   : > { %v7181_v58 = vmul.f32 0.2, %v7149_v13  ;;  %v7150_v7 = vadd.f32 %v14642_v17, %v7111_v59  ;;  %v6961_v46 = vpop.f32.mrb[180].mxu1 }
 0x945   : > { %v10296_v62 = vpop.f32.mrb[181].mxu1  ;;  %v7044_v26 = vrot.slane %v6961_v46, 2 }
 0x946   : > { %v7213_v22 = vmax.f32 %v7149_v13, %v7181_v58  ;;  %v7182_v39 = vmul.f32 0.2, %v7150_v7  ;;  %v6964_v41 = vpop.f32.mrb[182].mxu1 }
 0x947   : > { %v7045_v28 = vrot.slane %v6964_v41, 2  ;;  %v10297_v61 = vpop.f32.mrb[183].mxu1 }
 0x948   : > { %7245 = vst.msk [vmem:[%s14650_s23 + $0xb0] sm:$0xff] %vm4152_vm7, %v7213_v22  ;;  %v7214_v45 = vmax.f32 %v7150_v7, %v7182_v39 }
 0x949   : > { %v7063_v8 = vsel %vm5087_vm9, %v7044_v26, %v7045_v28 }
 0x94a   : > { %7246 = vst.msk [vmem:[%s14650_s23 + $0xb8] sm:$0xff] %vm4152_vm7, %v7214_v45  ;;  %v7112_v19 = vadd.f32 %v7063_v8, %v14582_v33 }
 0x94c   : > { %v7151_v34 = vadd.f32 %v14642_v17, %v7112_v19  ;;  %v6969_v1 = vpop.f32.mrb[184].mxu1 }
 0x94d   : > { %v7046_v29 = vrot.slane %v6969_v1, 2  ;;  %v10300_v55 = vpop.f32.mrb[185].mxu1 }
 0x94e   : > { %v7183_v24 = vmul.f32 0.2, %v7151_v34  ;;  %v6972_v18 = vpop.f32.mrb[186].mxu1 }
 0x94f   : > { %v7062_v56 = vsel %vm5087_vm9, %v7045_v28, %v7046_v29  ;;  %v10301_v51 = vpop.f32.mrb[187].mxu1  ;;  %v7047_v49 = vrot.slane %v6972_v18, 2 }
 0x950   : > { %v7215_v23 = vmax.f32 %v7151_v34, %v7183_v24  ;;  %v7113_v47 = vadd.f32 %v7062_v56, %v14589_v60 }
 0x952   : > { %7247 = vst.msk [vmem:[%s14650_s23 + $0xc0] sm:$0xff] %vm4152_vm7, %v7215_v23  ;;  %v7152_v10 = vadd.f32 %v14642_v17, %v7113_v47 }
 0x954   : > { %v7184_v33 = vmul.f32 0.2, %v7152_v10  ;;  %v6977_v27 = vpop.f32.mrb[188].mxu1 }
 0x955   : > { %v7048_v40 = vrot.slane %v6977_v27, 2  ;;  %v10304_v15 = vpop.f32.mrb[189].mxu1 }
 0x956   : > { %v7216_v53 = vmax.f32 %v7152_v10, %v7184_v33  ;;  %v6980_v30 = vpop.f32.mrb[190].mxu1 }
 0x957   : > { %v7061_v0 = vsel %vm5087_vm9, %v7047_v49, %v7048_v40  ;;  %v7049_v20 = vrot.slane %v6980_v30, 2  ;;  %v10305_v25 = vpop.f32.mrb[191].mxu1 }
 0x958   : > { %7248 = vst.msk [vmem:[%s14650_s23 + $0xc8] sm:$0xff] %vm4152_vm7, %v7216_v53  ;;  %v7114_v60 = vadd.f32 %v7061_v0, %v14598_v5 }
 0x959   : > { %v7060_v21 = vsel %vm5087_vm9, %v7048_v40, %v7049_v20 }
 0x95a   : > { %v7153_v36 = vadd.f32 %v14642_v17, %v7114_v60  ;;  %v7115_v6 = vadd.f32 %v7060_v21, %v14604_v52 }
 0x95c   : > { %v7185_v63 = vmul.f32 0.2, %v7153_v36  ;;  %v7154_v57 = vadd.f32 %v14642_v17, %v7115_v6  ;;  %v6985_v9 = vpop.f32.mrb[192].mxu1 }
 0x95d   : > { %v10308_v50 = vpop.f32.mrb[193].mxu1  ;;  %v7050_v44 = vrot.slane %v6985_v9, 2 }
 0x95e   : > { %v7217_v42 = vmax.f32 %v7153_v36, %v7185_v63  ;;  %v7186_v11 = vmul.f32 0.2, %v7154_v57  ;;  %v6988_v2 = vpop.f32.mrb[194].mxu1 }
 0x95f   : > { %v7051_v16 = vrot.slane %v6988_v2, 2  ;;  %v10309_v38 = vpop.f32.mrb[195].mxu1 }
 0x960   : > { %7249 = vst.msk [vmem:[%s14650_s23 + $0xd0] sm:$0xff] %vm4152_vm7, %v7217_v42  ;;  %v7218_v5 = vmax.f32 %v7154_v57, %v7186_v11 }
 0x961   : > { %v7059_v31 = vsel %vm5087_vm9, %v7050_v44, %v7051_v16 }
 0x962   : > { %7250 = vst.msk [vmem:[%s14650_s23 + $0xd8] sm:$0xff] %vm4152_vm7, %v7218_v5  ;;  %v7116_v52 = vadd.f32 %v7059_v31, %v14614_v3 }
 0x964   : > { %v7155_v32 = vadd.f32 %v14642_v17, %v7116_v52  ;;  %v6993_v14 = vpop.f32.mrb[196].mxu1 }
 0x965   : > { %v7052_v48 = vrot.slane %v6993_v14, 2  ;;  %v10312_v43 = vpop.f32.mrb[197].mxu1 }
 0x966   : > { %v7187_v35 = vmul.f32 0.2, %v7155_v32  ;;  %v6996_v13 = vpop.f32.mrb[198].mxu1 }
 0x967   : > { %v7058_v59 = vsel %vm5087_vm9, %v7051_v16, %v7052_v48  ;;  %v10313_v58 = vpop.f32.mrb[199].mxu1  ;;  %v7053_v39 = vrot.slane %v6996_v13, 2 }
 0x968   : > { %v7219_v7 = vmax.f32 %v7155_v32, %v7187_v35  ;;  %v7117_v46 = vadd.f32 %v7058_v59, %v14621_v12 }
 0x96a   : > { %7251 = vst.msk [vmem:[%s14650_s23 + $0xe0] sm:$0xff] %vm4152_vm7, %v7219_v7  ;;  %v7156_v62 = vadd.f32 %v14642_v17, %v7117_v46 }
 0x96c   : > { %v7188_v3 = vmul.f32 0.2, %v7156_v62  ;;  %v7001_v22 = vpop.f32.mrb[200].mxu1 }
 0x96d   : > { %v7054_v41 = vrot.slane %v7001_v22, 2  ;;  %v10316_v26 = vpop.f32.mrb[201].mxu1 }
 0x96e   : > { %v7220_v28 = vmax.f32 %v7156_v62, %v7188_v3  ;;  %v7004_v61 = vpop.f32.mrb[202].mxu1 }
 0x96f   : > { %v7057_v45 = vsel %vm5087_vm9, %v7053_v39, %v7054_v41  ;;  %v7055_v8 = vrot.slane %v7004_v61, 2  ;;  %v10317_v19 = vpop.f32.mrb[203].mxu1 }
 0x970   : > { %7252 = vst.msk [vmem:[%s14650_s23 + $0xe8] sm:$0xff] %vm4152_vm7, %v7220_v28  ;;  %v7118_v12 = vadd.f32 %v7057_v45, %v14630_v54 }
 0x971   : > { %v7056_v34 = vsel %vm5087_vm9, %v7054_v41, %v7055_v8 }
 0x972   : > { %v7157_v1 = vadd.f32 %v14642_v17, %v7118_v12  ;;  %v7119_v29 = vadd.f32 %v7056_v34, %v14635_v4 }
 0x974   : > { %v7189_v55 = vmul.f32 0.2, %v7157_v1  ;;  %v7158_v24 = vadd.f32 %v14642_v17, %v7119_v29 }
 0x976   : > { %v7221_v18 = vmax.f32 %v7157_v1, %v7189_v55  ;;  %v7190_v56 = vmul.f32 0.2, %v7158_v24 }
 0x978   : > { %7253 = vst.msk [vmem:[%s14650_s23 + $0xf0] sm:$0xff] %vm4152_vm7, %v7221_v18  ;;  %v7222_v51 = vmax.f32 %v7158_v24, %v7190_v56 }
 0x97a   : > { %7254 = vst.msk [vmem:[%s14650_s23 + $0xf8] sm:$0xff] %vm4152_vm7, %v7222_v51 }
 0x97b PF: > { %s15_s18 = sadd.s32 1, %s10420_s18  }
 0x97c   : > { %p12_p4 = scmp.ge.s32.totalorder %s15_s18, 4  }
 0x97e   :  { %14 = sbr.rel (!%p12_p4) target bundleno = 1 (0x1), region = 86 }

</bundles_post_ra>
